<compile_context>
chip_gen: v7x
topology: tpu7x:2x2x1
jax: 0.10.0
libtpu: 0.0.40
codegen_flags: <defaults>
</compile_context>

<pallas_src>
import functools

import jax
import jax.numpy as jnp
from jax.experimental import pallas as pl
from jax.experimental.pallas import tpu as pltpu

TV_WEIGHT = 1.0
VMEM_LIMIT = 32 * 1024 * 1024    # safe on v5e/v6e/v7x scoped-VMEM defaults


def _mosaic_params(semantics):
    return pltpu.CompilerParams(dimension_semantics=semantics,
                                vmem_limit_bytes=VMEM_LIMIT)


# ----------------------------------------------------------------- host-side prep
def _prep_conv_input(x_nhwc):
    """Zero-pad for a 3x3 'same' conv and flatten rows ('wide conv' layout).

    Padded flat row index r = h*(W+2) + w, so the conv tap (dh, dw) of output
    pixel r is the contiguous row slice [dh*(W+2)+dw : dh*(W+2)+dw + H*(W+2)].
    Two extra zero rows at the bottom keep the dh=2 taps in bounds.
    """
    B, H, W, C = x_nhwc.shape
    xp = jnp.pad(x_nhwc, ((0, 0), (1, 2), (1, 1), (0, 0)))         # (B, H+3, W+2, C)
    return xp.reshape(B, (H + 3) * (W + 2), C).astype(jnp.bfloat16)


def _pack_conv_weights(group_list, c_in):
    """Pack several (3,3,Cin,Cg) conv weights that share one input into a single
    (9*Cin, sum(Cg)) matmul operand and a (1, sum(Cg)) bias."""
    ws, bs = [], []
    total = 0
    for (w, b) in group_list:
        assert w.shape[:3] == (3, 3, c_in), "conv weight must be (3,3,Cin,Cout)"
        cg = w.shape[-1]
        ws.append(w.reshape(9 * c_in, cg))
        bs.append(b.reshape(1, cg))
        total += cg
    assert total <= 128, "fused output channels must fit one lane tile (<=128)"
    w_packed = jnp.concatenate(ws, axis=-1).astype(jnp.bfloat16)    # (9*Cin, N)
    b_packed = jnp.concatenate(bs, axis=-1).astype(jnp.float32)     # (1, N)
    return w_packed, b_packed


# ---------------------------------------------------------------- in-kernel helpers
def _conv3x3_wide(xpad, w, b, H, W):
    """3x3 'same' conv as ONE K=9*Cin MXU matmul on the wide-conv layout.

    xpad : ((H+3)*(W+2), Cin) bf16 padded, row-flattened image (value)
    w    : (9*Cin, N) bf16 packed weights ; b : (1, N) f32 packed bias
    returns (H*(W+2), N) f32; columns with w >= W of each row are garbage.
    """
    Wp = W + 2
    L = H * Wp
    taps = [xpad[dh * Wp + dw: dh * Wp + dw + L, :]
            for dh in range(3) for dw in range(3)]
    xcat = jnp.concatenate(taps, axis=-1)                 # (L, 9*Cin) bf16
    return jnp.dot(xcat, w, preferred_element_type=jnp.float32) + b


def _valid_col_mask(L, W, Wp):
    """col index (L,1) int32 and (L,1) bool mask of real (non-garbage) columns."""
    col = jax.lax.broadcasted_iota(jnp.int32, (L, 1), 0) % Wp
    return col, col < W


def _store_padded_sr(srp_ref, sr_w, H, W):
    """Write sr (wide layout, garbage cols already zero) to the output ref in the
    zero-padded layout expected by the next conv: padded[h+1, w+1] = sr[h, w] is
    exactly a shift of Wp+1 rows in the flat layout (garbage rows land on pad
    positions that must be zero, and they are)."""
    Wp = W + 2
    L = H * Wp
    srp_ref[...] = jnp.zeros_like(srp_ref)
    srp_ref[0, Wp + 1: Wp + 1 + L, :] = sr_w.astype(srp_ref.dtype)


# ------------------------------------------------------------------------ kernels
def _hr_gen_kernel(x_ref, w_ref, b_ref, srp_ref, fhr_ref, part_ref, *, H, W, C, Fv):
    """Generate phase, stage 1 (per image): one fused conv over hr produces
    sr = g_net(hr) (tanh lanes) and fhr = vgg(hr) (relu lanes), and emits the
    per-image partial sums of the image-MSE and TV losses while sr is in VMEM."""
    Wp = W + 2
    L = H * Wp
    acc = _conv3x3_wide(x_ref[0], w_ref[...], b_ref[...], H, W)     # (L, C+Fv) f32
    col, valid = _valid_col_mask(L, W, Wp)

    sr = jnp.where(valid, jnp.tanh(acc[:, :C]), 0.0)                # (L, C)
    fhr = jnp.where(valid, jnp.maximum(acc[:, C:C + Fv], 0.0), 0.0)  # (L, Fv)

    _store_padded_sr(srp_ref, sr, H, W)                             # bf16, padded
    fhr_ref[0] = fhr.astype(fhr_ref.dtype)                          # bf16, wide

    # hr in the wide layout is the centre conv tap of the padded input
    # (garbage columns read the zero padding, so they contribute nothing).
    hr = x_ref[0, Wp + 1: Wp + 1 + L, :].astype(jnp.float32)
    d_img = sr - hr
    p_img = jnp.sum(d_img * d_img, keepdims=True)                   # (1, 1)
    dh = sr[Wp:, :] - sr[:-Wp, :]                                   # vertical diffs
    p_tvh = jnp.sum(dh * dh, keepdims=True)
    dw = sr[1:, :] - sr[:-1, :]                                     # horizontal diffs
    dw = jnp.where(col[:-1, :] < (W - 1), dw, 0.0)                  # drop row wrap
    p_tvw = jnp.sum(dw * dw, keepdims=True)

    lane = jax.lax.broadcasted_iota(jnp.int32, (1, 4), 1)
    part_ref[0] = (jnp.where(lane == 0, p_img, 0.0)
                   + jnp.where(lane == 1, p_tvh, 0.0)
                   + jnp.where(lane == 2, p_tvw, 0.0))


def _sr_gen_kernel(x_ref, fhr_ref, w_ref, b_ref, hw_ref, hb_ref, part_ref,
                   *, H, W, Fv, F):
    """Generate phase, stage 2 (per image): one fused conv over the padded sr
    produces fsr = vgg(sr) and the discriminator features; the perceptual MSE
    partial and fake_out = d_net(sr) never leave VMEM."""
    Wp = W + 2
    L = H * Wp
    acc = _conv3x3_wide(x_ref[0], w_ref[...], b_ref[...], H, W)     # (L, Fv+F)
    _, valid = _valid_col_mask(L, W, Wp)

    fsr = jnp.where(valid, jnp.maximum(acc[:, :Fv], 0.0), 0.0)
    dv = fsr - fhr_ref[0].astype(jnp.float32)
    p_vgg = jnp.sum(dv * dv, keepdims=True)                         # (1, 1)

    dfeat = acc[:, Fv:Fv + F]
    dfeat = jnp.where(dfeat > 0, dfeat, 0.2 * dfeat)                # leaky relu
    dfeat = jnp.where(valid, dfeat, 0.0)
    pooled = jnp.sum(dfeat * hw_ref[...], keepdims=True) * (1.0 / (H * W))
    fake = jax.nn.sigmoid(pooled + hb_ref[...])                     # (1, 1)

    lane = jax.lax.broadcasted_iota(jnp.int32, (1, 4), 1)
    part_ref[0] = (jnp.where(lane == 0, p_vgg, 0.0)
                   + jnp.where(lane == 1, fake, 0.0))


def _hr_disc_kernel(x_ref, w_ref, b_ref, hw_ref, hb_ref, srp_ref, real_ref,
                    *, H, W, C, F):
    """Discriminate phase, stage 1 (per image): one fused conv over hr produces
    sr = g_net(hr) (written out padded for stage 2) and real_out = d_net(hr)."""
    Wp = W + 2
    L = H * Wp
    acc = _conv3x3_wide(x_ref[0], w_ref[...], b_ref[...], H, W)     # (L, C+F)
    _, valid = _valid_col_mask(L, W, Wp)

    sr = jnp.where(valid, jnp.tanh(acc[:, :C]), 0.0)
    _store_padded_sr(srp_ref, sr, H, W)

    dfeat = acc[:, C:C + F]
    dfeat = jnp.where(dfeat > 0, dfeat, 0.2 * dfeat)
    dfeat = jnp.where(valid, dfeat, 0.0)
    pooled = jnp.sum(dfeat * hw_ref[...], keepdims=True) * (1.0 / (H * W))
    real_ref[0] = jax.nn.sigmoid(pooled + hb_ref[...])              # (1, 1)


def _d_net_kernel(x_ref, w_ref, b_ref, hw_ref, hb_ref, out_ref, *, H, W):
    """Stand-alone d_net: 3x3 conv -> leaky relu -> global mean pool -> linear
    -> sigmoid, entirely in VMEM."""
    Wp = W + 2
    L = H * Wp
    acc = _conv3x3_wide(x_ref[0], w_ref[...], b_ref[...], H, W)     # (L, F)
    _, valid = _valid_col_mask(L, W, Wp)
    feat = jnp.where(acc > 0, acc, 0.2 * acc)
    feat = jnp.where(valid, feat, 0.0)
    pooled = jnp.sum(feat * hw_ref[...], keepdims=True) * (1.0 / (H * W))
    out_ref[0] = jax.nn.sigmoid(pooled + hb_ref[...])


def _d_loss_kernel(real_ref, fake_ref, o_ref, *, B):
    r = jnp.sum(real_ref[...], axis=0)                              # (1, 1)
    f = jnp.sum(fake_ref[...], axis=0)                              # (1, 1)
    o_ref[...] = 1.0 - r * (1.0 / B) + f * (1.0 / B)


def _g_finalize_kernel(p1_ref, p2_ref, o_ref, *, B, H, W, C, Fv):
    p1 = jnp.sum(p1_ref[...], axis=0)                               # (1, 4)
    p2 = jnp.sum(p2_ref[...], axis=0)                               # (1, 4)
    image_loss = p1[:, 0:1] * (1.0 / (B * H * W * C))
    vgg_loss = p2[:, 0:1] * (1.0 / (B * H * W * Fv))
    adv_loss = 1.0 - p2[:, 1:2] * (1.0 / B)
    tv_loss = (2.0 * TV_WEIGHT / B) * (p1[:, 1:2] * (1.0 / (C * (H - 1) * W))
                                       + p1[:, 2:3] * (1.0 / (C * H * (W - 1))))
    lane = jax.lax.broadcasted_iota(jnp.int32, (1, 4), 1)
    o_ref[...] = (jnp.where(lane == 0, image_loss, 0.0)
                  + jnp.where(lane == 1, vgg_loss, 0.0)
                  + jnp.where(lane == 2, adv_loss, 0.0)
                  + jnp.where(lane == 3, tv_loss, 0.0))


# ------------------------------------------------------------------------ wrappers
def _generate_losses(params, hr_nhwc):
    B, H, W, C = hr_nhwc.shape
    Fv = params["vw"].shape[-1]
    F = params["dw"].shape[-1]
    Wp = W + 2
    L = H * Wp
    PADL = (H + 3) * Wp

    hr_flat = _prep_conv_input(hr_nhwc)                             # (B, PADL, C) bf16
    hw = params["d_head_w"][:, 0].reshape(1, F).astype(jnp.float32)
    hb = params["d_head_b"].reshape(1, 1).astype(jnp.float32)

    # stage 1: sr + vgg(hr) + image/TV partials, one fused conv over hr
    w1, b1 = _pack_conv_weights([(params["gw"], params["gb"]),
                                 (params["vw"], params["vb"])], C)
    srp, fhr, part1 = pl.pallas_call(
        functools.partial(_hr_gen_kernel, H=H, W=W, C=C, Fv=Fv),
        grid=(B,),
        in_specs=[pl.BlockSpec((1, PADL, C), lambda b: (b, 0, 0)),
                  pl.BlockSpec(w1.shape, lambda b: (0, 0)),
                  pl.BlockSpec(b1.shape, lambda b: (0, 0))],
        out_specs=[pl.BlockSpec((1, PADL, C), lambda b: (b, 0, 0)),
                   pl.BlockSpec((1, L, Fv), lambda b: (b, 0, 0)),
                   pl.BlockSpec((1, 1, 4), lambda b: (b, 0, 0))],
        out_shape=(jax.ShapeDtypeStruct((B, PADL, C), jnp.bfloat16),
                   jax.ShapeDtypeStruct((B, L, Fv), jnp.bfloat16),
                   jax.ShapeDtypeStruct((B, 1, 4), jnp.float32)),
        compiler_params=_mosaic_params(("parallel",)),
    )(hr_flat, w1, b1)

    # stage 2: vgg(sr) + d_net(sr), one fused conv over the padded sr
    w2, b2 = _pack_conv_weights([(params["vw"], params["vb"]),
                                 (params["dw"], params["db"])], C)
    part2 = pl.pallas_call(
        functools.partial(_sr_gen_kernel, H=H, W=W, Fv=Fv, F=F),
        grid=(B,),
        in_specs=[pl.BlockSpec((1, PADL, C), lambda b: (b, 0, 0)),
                  pl.BlockSpec((1, L, Fv), lambda b: (b, 0, 0)),
                  pl.BlockSpec(w2.shape, lambda b: (0, 0)),
                  pl.BlockSpec(b2.shape, lambda b: (0, 0)),
                  pl.BlockSpec((1, F), lambda b: (0, 0)),
                  pl.BlockSpec((1, 1), lambda b: (0, 0))],
        out_specs=pl.BlockSpec((1, 1, 4), lambda b: (b, 0, 0)),
        out_shape=jax.ShapeDtypeStruct((B, 1, 4), jnp.float32),
        compiler_params=_mosaic_params(("parallel",)),
    )(srp, fhr, w2, b2, hw, hb)

    # stage 3: tiny finalize reduce -> the 4 scalar losses
    out = pl.pallas_call(
        functools.partial(_g_finalize_kernel, B=B, H=H, W=W, C=C, Fv=Fv),
        grid=(1,),
        in_specs=[pl.BlockSpec((B, 1, 4), lambda i: (0, 0, 0)),
                  pl.BlockSpec((B, 1, 4), lambda i: (0, 0, 0))],
        out_specs=pl.BlockSpec((1, 4), lambda i: (0, 0)),
        out_shape=jax.ShapeDtypeStruct((1, 4), jnp.float32),
        compiler_params=_mosaic_params(("arbitrary",)),
    )(part1, part2)
    return out[0, 0], out[0, 1], out[0, 2], out[0, 3]


def _discriminate_loss(params, hr_nhwc):
    B, H, W, C = hr_nhwc.shape
    F = params["dw"].shape[-1]
    Wp = W + 2
    PADL = (H + 3) * Wp

    hr_flat = _prep_conv_input(hr_nhwc)
    hw = params["d_head_w"][:, 0].reshape(1, F).astype(jnp.float32)
    hb = params["d_head_b"].reshape(1, 1).astype(jnp.float32)

    # stage 1: sr = g_net(hr) and real_out = d_net(hr), one fused conv (no concat)
    w1, b1 = _pack_conv_weights([(params["gw"], params["gb"]),
                                 (params["dw"], params["db"])], C)
    srp, real = pl.pallas_call(
        functools.partial(_hr_disc_kernel, H=H, W=W, C=C, F=F),
        grid=(B,),
        in_specs=[pl.BlockSpec((1, PADL, C), lambda b: (b, 0, 0)),
                  pl.BlockSpec(w1.shape, lambda b: (0, 0)),
                  pl.BlockSpec(b1.shape, lambda b: (0, 0)),
                  pl.BlockSpec((1, F), lambda b: (0, 0)),
                  pl.BlockSpec((1, 1), lambda b: (0, 0))],
        out_specs=[pl.BlockSpec((1, PADL, C), lambda b: (b, 0, 0)),
                   pl.BlockSpec((1, 1, 1), lambda b: (b, 0, 0))],
        out_shape=(jax.ShapeDtypeStruct((B, PADL, C), jnp.bfloat16),
                   jax.ShapeDtypeStruct((B, 1, 1), jnp.float32)),
        compiler_params=_mosaic_params(("parallel",)),
    )(hr_flat, w1, b1, hw, hb)

    # stage 2: fake_out = d_net(sr)
    w2, b2 = _pack_conv_weights([(params["dw"], params["db"])], C)
    fake = pl.pallas_call(
        functools.partial(_d_net_kernel, H=H, W=W),
        grid=(B,),
        in_specs=[pl.BlockSpec((1, PADL, C), lambda b: (b, 0, 0)),
                  pl.BlockSpec(w2.shape, lambda b: (0, 0)),
                  pl.BlockSpec(b2.shape, lambda b: (0, 0)),
                  pl.BlockSpec((1, F), lambda b: (0, 0)),
                  pl.BlockSpec((1, 1), lambda b: (0, 0))],
        out_specs=pl.BlockSpec((1, 1, 1), lambda b: (b, 0, 0)),
        out_shape=jax.ShapeDtypeStruct((B, 1, 1), jnp.float32),
        compiler_params=_mosaic_params(("parallel",)),
    )(srp, w2, b2, hw, hb)

    # stage 3: d_loss = 1 - mean(real) + mean(fake)
    out = pl.pallas_call(
        functools.partial(_d_loss_kernel, B=B),
        grid=(1,),
        in_specs=[pl.BlockSpec((B, 1, 1), lambda i: (0, 0, 0)),
                  pl.BlockSpec((B, 1, 1), lambda i: (0, 0, 0))],
        out_specs=pl.BlockSpec((1, 1), lambda i: (0, 0)),
        out_shape=jax.ShapeDtypeStruct((1, 1), jnp.float32),
        compiler_params=_mosaic_params(("arbitrary",)),
    )(real, fake)
    return out[0, 0]


# ------------------------------------------------------------------------- model
def init_params(key, c_in=4, d_feat=8, v_feat=8):
    ks = jax.random.split(key, 4)
    s = 0.1
    return {
        "gw": s * jax.random.normal(ks[0], (3, 3, c_in, c_in), jnp.float32),
        "gb": jnp.zeros((c_in,), jnp.float32),
        "dw": s * jax.random.normal(ks[1], (3, 3, c_in, d_feat), jnp.float32),
        "db": jnp.zeros((d_feat,), jnp.float32),
        "d_head_w": s * jax.random.normal(ks[2], (d_feat, 1), jnp.float32),
        "d_head_b": jnp.zeros((1,), jnp.float32),
        "vw": s * jax.random.normal(ks[3], (3, 3, c_in, v_feat), jnp.float32),
        "vb": jnp.zeros((v_feat,), jnp.float32),
    }


@functools.partial(jax.jit, static_argnums=(2,))
def network_forward(params, input_tensor_nchw, phase):
    """Mirrors Network.forward(input_tensor, phase); input is NCHW like PyTorch."""
    hr = jnp.transpose(input_tensor_nchw, (0, 2, 3, 1)).astype(jnp.float32)  # NHWC
    if phase == "discriminate":
        return _discriminate_loss(params, hr)
    elif phase == "generate":
        return _generate_losses(params, hr)
    else:
        raise Exception("Wrong phase!")


if __name__ == "__main__":
    key = jax.random.PRNGKey(0)
    pkey, xkey = jax.random.split(key)
    params = init_params(pkey, c_in=4, d_feat=8, v_feat=8)
    x = jax.random.normal(xkey, (2, 4, 16, 16), jnp.float32)   # NCHW, like PyTorch

    d_loss_val = network_forward(params, x, "discriminate")
    g_losses = network_forward(params, x, "generate")

    jax.block_until_ready(d_loss_val)
    jax.block_until_ready(g_losses)
    print("KERNEL_OK")
</pallas_src>

<mosaic_0001>
module attributes {stable_mosaic.version = 11 : i64} {
  func.func @_hr_disc_kernel(%arg0: i32, %arg1: memref<1x342x4xbf16, #tpu.memory_space<vmem>>, %arg2: memref<36x12xbf16, #tpu.memory_space<vmem>>, %arg3: memref<1x12xf32, #tpu.memory_space<vmem>>, %arg4: memref<1x8xf32, #tpu.memory_space<vmem>>, %arg5: memref<1x1xf32, #tpu.memory_space<vmem>>, %arg6: memref<1x342x4xbf16, #tpu.memory_space<vmem>>, %arg7: memref<1x1x1xf32, #tpu.memory_space<vmem>>) attributes {dimension_semantics = [#tpu.dimension_semantics<parallel>], iteration_bounds = array<i64: 2>, scalar_prefetch = 0 : i64, scratch_operands = 0 : i64, tpu.core_type = #tpu.core_type<tc>, window_params = [{transform_indices = @transform_0, window_bounds = array<i64: 1, 342, 4>}, {pipeline_mode = #tpu.pipeline_mode<synchronous>, transform_indices = @transform_1, window_bounds = array<i64: 36, 12>}, {pipeline_mode = #tpu.pipeline_mode<synchronous>, transform_indices = @transform_2, window_bounds = array<i64: 1, 12>}, {pipeline_mode = #tpu.pipeline_mode<synchronous>, transform_indices = @transform_3, window_bounds = array<i64: 1, 8>}, {pipeline_mode = #tpu.pipeline_mode<synchronous>, transform_indices = @transform_4, window_bounds = array<i64: 1, 1>}, {transform_indices = @transform_5, window_bounds = array<i64: 1, 342, 4>}, {transform_indices = @transform_6, window_bounds = array<i64: 1, 1, 1>}]} {
    %c0 = arith.constant 0 : index
    %c0_0 = arith.constant 0 : index
    %c0_1 = arith.constant 0 : index
    %0 = vector.load %arg1[%c0, %c0_0, %c0_1] : memref<1x342x4xbf16, #tpu.memory_space<vmem>>, vector<1x342x4xbf16>
    %1 = vector.shape_cast %0 : vector<1x342x4xbf16> to vector<342x4xbf16>
    %c0_2 = arith.constant 0 : index
    %c0_3 = arith.constant 0 : index
    %2 = vector.load %arg2[%c0_2, %c0_3] : memref<36x12xbf16, #tpu.memory_space<vmem>>, vector<36x12xbf16>
    %c0_4 = arith.constant 0 : index
    %c0_5 = arith.constant 0 : index
    %3 = vector.load %arg3[%c0_4, %c0_5] : memref<1x12xf32, #tpu.memory_space<vmem>>, vector<1x12xf32>
    %4 = vector.extract_strided_slice %1 {offsets = [0, 0], sizes = [288, 4], strides = [1, 1]} : vector<342x4xbf16> to vector<288x4xbf16>
    %5 = vector.extract_strided_slice %1 {offsets = [1, 0], sizes = [288, 4], strides = [1, 1]} : vector<342x4xbf16> to vector<288x4xbf16>
    %6 = vector.extract_strided_slice %1 {offsets = [2, 0], sizes = [288, 4], strides = [1, 1]} : vector<342x4xbf16> to vector<288x4xbf16>
    %7 = vector.extract_strided_slice %1 {offsets = [18, 0], sizes = [288, 4], strides = [1, 1]} : vector<342x4xbf16> to vector<288x4xbf16>
    %8 = vector.extract_strided_slice %1 {offsets = [19, 0], sizes = [288, 4], strides = [1, 1]} : vector<342x4xbf16> to vector<288x4xbf16>
    %9 = vector.extract_strided_slice %1 {offsets = [20, 0], sizes = [288, 4], strides = [1, 1]} : vector<342x4xbf16> to vector<288x4xbf16>
    %10 = vector.extract_strided_slice %1 {offsets = [36, 0], sizes = [288, 4], strides = [1, 1]} : vector<342x4xbf16> to vector<288x4xbf16>
    %11 = vector.extract_strided_slice %1 {offsets = [37, 0], sizes = [288, 4], strides = [1, 1]} : vector<342x4xbf16> to vector<288x4xbf16>
    %12 = vector.extract_strided_slice %1 {offsets = [38, 0], sizes = [288, 4], strides = [1, 1]} : vector<342x4xbf16> to vector<288x4xbf16>
    %13 = tpu.concatenate %4, %5, %6, %7, %8, %9, %10, %11, %12 in 1 : vector<288x4xbf16>, vector<288x4xbf16>, vector<288x4xbf16>, vector<288x4xbf16>, vector<288x4xbf16>, vector<288x4xbf16>, vector<288x4xbf16>, vector<288x4xbf16>, vector<288x4xbf16> -> vector<288x36xbf16>
    %cst = arith.constant dense<0.000000e+00> : vector<288x12xf32>
    %14 = tpu.matmul %13, %2, %cst {dimension_numbers = #tpu.dot_dimension_numbers<[1], [0], [0], [1], [0, 0, 1, 1], [], []>} : vector<288x36xbf16>, vector<36x12xbf16>, vector<288x12xf32> -> vector<288x12xf32>
    %15 = vector.broadcast %3 : vector<1x12xf32> to vector<288x12xf32>
    %16 = arith.addf %14, %15 : vector<288x12xf32>
    %17 = tpu.iota {dimensions = array<i32: 0>} : vector<288x1xi32>
    %c18_i32 = arith.constant 18 : i32
    %c0_i32 = arith.constant 0 : i32
    %18 = arith.cmpi eq, %c18_i32, %c0_i32 : i32
    %c1_i32 = arith.constant 1 : i32
    %19 = arith.select %18, %c1_i32, %c18_i32 : i32
    %20 = vector.broadcast %19 : i32 to vector<288x1xi32>
    %21 = arith.remsi %17, %20 : vector<288x1xi32>
    %c0_i32_6 = arith.constant 0 : i32
    %22 = vector.broadcast %c0_i32_6 : i32 to vector<288x1xi32>
    %23 = arith.cmpi ne, %21, %22 : vector<288x1xi32>
    %c0_i32_7 = arith.constant 0 : i32
    %24 = vector.broadcast %c0_i32_7 : i32 to vector<288x1xi32>
    %25 = arith.cmpi slt, %21, %24 : vector<288x1xi32>
    %c0_i32_8 = arith.constant 0 : i32
    %26 = arith.cmpi slt, %19, %c0_i32_8 : i32
    %27 = vector.broadcast %26 : i1 to vector<288x1xi1>
    %28 = vector.broadcast %27 : vector<288x1xi1> to vector<288x1xi1>
    %29 = arith.xori %25, %28 : vector<288x1xi1>
    %30 = arith.andi %29, %23 : vector<288x1xi1>
    %31 = vector.broadcast %19 : i32 to vector<288x1xi32>
    %32 = arith.addi %21, %31 : vector<288x1xi32>
    %33 = arith.select %30, %32, %21 : vector<288x1xi1>, vector<288x1xi32>
    %c16_i32 = arith.constant 16 : i32
    %34 = vector.broadcast %c16_i32 : i32 to vector<288x1xi32>
    %35 = arith.cmpi slt, %33, %34 : vector<288x1xi32>
    %36 = vector.extract_strided_slice %16 {offsets = [0, 0], sizes = [288, 4], strides = [1, 1]} : vector<288x12xf32> to vector<288x4xf32>
    %37 = math.tanh %36 : vector<288x4xf32>
    %cst_9 = arith.constant 0.000000e+00 : f32
    %38 = vector.shape_cast %35 : vector<288x1xi1> to vector<288x1xi1>
    %39 = vector.broadcast %38 : vector<288x1xi1> to vector<288x4xi1>
    %40 = vector.broadcast %cst_9 : f32 to vector<288x4xf32>
    %41 = arith.select %39, %37, %40 : vector<288x4xi1>, vector<288x4xf32>
    %cst_10 = arith.constant 0.000000e+00 : bf16
    %42 = vector.broadcast %cst_10 : bf16 to vector<1x342x4xbf16>
    %c0_11 = arith.constant 0 : index
    %c0_12 = arith.constant 0 : index
    %c0_13 = arith.constant 0 : index
    %43 = vector.load %arg6[%c0_11, %c0_12, %c0_13] : memref<1x342x4xbf16, #tpu.memory_space<vmem>>, vector<1x342x4xbf16>
    tpu.vector_store %arg6[%c0_11, %c0_12, %c0_13], %42 {strides = array<i32>} : memref<1x342x4xbf16, #tpu.memory_space<vmem>>, vector<1x342x4xbf16>,
    %44 = arith.truncf %41 : vector<288x4xf32> to vector<288x4xbf16>
    %c0_14 = arith.constant 0 : index
    %c19 = arith.constant 19 : index
    %c0_15 = arith.constant 0 : index
    %45 = vector.load %arg6[%c0_14, %c19, %c0_15] : memref<1x342x4xbf16, #tpu.memory_space<vmem>>, vector<1x288x4xbf16>
    %46 = vector.shape_cast %45 : vector<1x288x4xbf16> to vector<288x4xbf16>
    %47 = vector.shape_cast %44 : vector<288x4xbf16> to vector<1x288x4xbf16>
    tpu.vector_store %arg6[%c0_14, %c19, %c0_15], %47 {strides = array<i32>} : memref<1x342x4xbf16, #tpu.memory_space<vmem>>, vector<1x288x4xbf16>,
    %48 = vector.extract_strided_slice %16 {offsets = [0, 4], sizes = [288, 8], strides = [1, 1]} : vector<288x12xf32> to vector<288x8xf32>
    %cst_16 = arith.constant 0.000000e+00 : f32
    %49 = vector.broadcast %cst_16 : f32 to vector<288x8xf32>
    %50 = arith.cmpf ogt, %48, %49 : vector<288x8xf32>
    %cst_17 = arith.constant 2.000000e-01 : f32
    %51 = vector.broadcast %cst_17 : f32 to vector<288x8xf32>
    %52 = arith.mulf %51, %48 : vector<288x8xf32>
    %53 = arith.select %50, %48, %52 : vector<288x8xi1>, vector<288x8xf32>
    %cst_18 = arith.constant 0.000000e+00 : f32
    %54 = vector.shape_cast %35 : vector<288x1xi1> to vector<288x1xi1>
    %55 = vector.broadcast %54 : vector<288x1xi1> to vector<288x8xi1>
    %56 = vector.broadcast %cst_18 : f32 to vector<288x8xf32>
    %57 = arith.select %55, %53, %56 : vector<288x8xi1>, vector<288x8xf32>
    %c0_19 = arith.constant 0 : index
    %c0_20 = arith.constant 0 : index
    %58 = vector.load %arg4[%c0_19, %c0_20] : memref<1x8xf32, #tpu.memory_space<vmem>>, vector<1x8xf32>
    %59 = vector.broadcast %58 : vector<1x8xf32> to vector<288x8xf32>
    %60 = arith.mulf %57, %59 : vector<288x8xf32>
    %61 = vector.shape_cast %60 : vector<288x8xf32> to vector<1x288x8xf32>
    %cst_21 = arith.constant dense<0.000000e+00> : vector<1xf32>
    %62 = vector.multi_reduction <add>, %61, %cst_21 [1, 2] : vector<1x288x8xf32> to vector<1xf32>
    %63 = vector.shape_cast %62 : vector<1xf32> to vector<1x1x1xf32>
    %64 = vector.extract %63[0, 0, 0] : f32 from vector<1x1x1xf32>
    %65 = vector.broadcast %64 : f32 to vector<1x1xf32>
    %cst_22 = arith.constant 3.906250e-03 : f32
    %66 = vector.broadcast %cst_22 : f32 to vector<1x1xf32>
    %67 = arith.mulf %65, %66 : vector<1x1xf32>
    %c0_23 = arith.constant 0 : index
    %c0_24 = arith.constant 0 : index
    %68 = vector.load %arg5[%c0_23, %c0_24] : memref<1x1xf32, #tpu.memory_space<vmem>>, vector<1x1xf32>
    %69 = arith.addf %67, %68 : vector<1x1xf32>
    %70 = arith.negf %69 : vector<1x1xf32>
    %71 = math.exp %70 : vector<1x1xf32>
    %cst_25 = arith.constant 1.000000e+00 : f32
    %72 = vector.broadcast %cst_25 : f32 to vector<1x1xf32>
    %73 = arith.addf %72, %71 : vector<1x1xf32>
    %74 = arith.divf %72, %73 : vector<1x1xf32>
    %c0_26 = arith.constant 0 : index
    %c0_27 = arith.constant 0 : index
    %c0_28 = arith.constant 0 : index
    %75 = vector.load %arg7[%c0_26, %c0_27, %c0_28] : memref<1x1x1xf32, #tpu.memory_space<vmem>>, vector<1x1x1xf32>
    %76 = vector.shape_cast %75 : vector<1x1x1xf32> to vector<1x1xf32>
    %77 = vector.shape_cast %74 : vector<1x1xf32> to vector<1x1x1xf32>
    tpu.vector_store %arg7[%c0_26, %c0_27, %c0_28], %77 {strides = array<i32>} : memref<1x1x1xf32, #tpu.memory_space<vmem>>, vector<1x1x1xf32>,
    return
  }
  func.func @transform_0(%arg0: i32) -> (i32, i32, i32) {
    %c0_i32 = arith.constant 0 : i32
    %c0_i32_0 = arith.constant 0 : i32
    %c0_i32_1 = arith.constant 0 : i32
    return %arg0, %c0_i32, %c0_i32_0 : i32, i32, i32
  }
  func.func @transform_1(%arg0: i32) -> (i32, i32) {
    %c0_i32 = arith.constant 0 : i32
    %c0_i32_0 = arith.constant 0 : i32
    %c0_i32_1 = arith.constant 0 : i32
    return %c0_i32, %c0_i32_0 : i32, i32
  }
  func.func @transform_2(%arg0: i32) -> (i32, i32) {
    %c0_i32 = arith.constant 0 : i32
    %c0_i32_0 = arith.constant 0 : i32
    %c0_i32_1 = arith.constant 0 : i32
    return %c0_i32, %c0_i32_0 : i32, i32
  }
  func.func @transform_3(%arg0: i32) -> (i32, i32) {
    %c0_i32 = arith.constant 0 : i32
    %c0_i32_0 = arith.constant 0 : i32
    %c0_i32_1 = arith.constant 0 : i32
    return %c0_i32, %c0_i32_0 : i32, i32
  }
  func.func @transform_4(%arg0: i32) -> (i32, i32) {
    %c0_i32 = arith.constant 0 : i32
    %c0_i32_0 = arith.constant 0 : i32
    %c0_i32_1 = arith.constant 0 : i32
    return %c0_i32, %c0_i32_0 : i32, i32
  }
  func.func @transform_5(%arg0: i32) -> (i32, i32, i32) {
    %c0_i32 = arith.constant 0 : i32
    %c0_i32_0 = arith.constant 0 : i32
    %c0_i32_1 = arith.constant 0 : i32
    return %arg0, %c0_i32, %c0_i32_0 : i32, i32, i32
  }
  func.func @transform_6(%arg0: i32) -> (i32, i32, i32) {
    %c0_i32 = arith.constant 0 : i32
    %c0_i32_0 = arith.constant 0 : i32
    %c0_i32_1 = arith.constant 0 : i32
    return %arg0, %c0_i32, %c0_i32_0 : i32, i32, i32
  }
}

module attributes {stable_mosaic.version = 11 : i64} {
  func.func @_d_net_kernel(%arg0: i32, %arg1: memref<1x342x4xbf16, #tpu.memory_space<vmem>>, %arg2: memref<36x8xbf16, #tpu.memory_space<vmem>>, %arg3: memref<1x8xf32, #tpu.memory_space<vmem>>, %arg4: memref<1x8xf32, #tpu.memory_space<vmem>>, %arg5: memref<1x1xf32, #tpu.memory_space<vmem>>, %arg6: memref<1x1x1xf32, #tpu.memory_space<vmem>>) attributes {dimension_semantics = [#tpu.dimension_semantics<parallel>], iteration_bounds = array<i64: 2>, scalar_prefetch = 0 : i64, scratch_operands = 0 : i64, tpu.core_type = #tpu.core_type<tc>, window_params = [{transform_indices = @transform_0, window_bounds = array<i64: 1, 342, 4>}, {pipeline_mode = #tpu.pipeline_mode<synchronous>, transform_indices = @transform_1, window_bounds = array<i64: 36, 8>}, {pipeline_mode = #tpu.pipeline_mode<synchronous>, transform_indices = @transform_2, window_bounds = array<i64: 1, 8>}, {pipeline_mode = #tpu.pipeline_mode<synchronous>, transform_indices = @transform_3, window_bounds = array<i64: 1, 8>}, {pipeline_mode = #tpu.pipeline_mode<synchronous>, transform_indices = @transform_4, window_bounds = array<i64: 1, 1>}, {transform_indices = @transform_5, window_bounds = array<i64: 1, 1, 1>}]} {
    %c0 = arith.constant 0 : index
    %c0_0 = arith.constant 0 : index
    %c0_1 = arith.constant 0 : index
    %0 = vector.load %arg1[%c0, %c0_0, %c0_1] : memref<1x342x4xbf16, #tpu.memory_space<vmem>>, vector<1x342x4xbf16>
    %1 = vector.shape_cast %0 : vector<1x342x4xbf16> to vector<342x4xbf16>
    %c0_2 = arith.constant 0 : index
    %c0_3 = arith.constant 0 : index
    %2 = vector.load %arg2[%c0_2, %c0_3] : memref<36x8xbf16, #tpu.memory_space<vmem>>, vector<36x8xbf16>
    %c0_4 = arith.constant 0 : index
    %c0_5 = arith.constant 0 : index
    %3 = vector.load %arg3[%c0_4, %c0_5] : memref<1x8xf32, #tpu.memory_space<vmem>>, vector<1x8xf32>
    %4 = vector.extract_strided_slice %1 {offsets = [0, 0], sizes = [288, 4], strides = [1, 1]} : vector<342x4xbf16> to vector<288x4xbf16>
    %5 = vector.extract_strided_slice %1 {offsets = [1, 0], sizes = [288, 4], strides = [1, 1]} : vector<342x4xbf16> to vector<288x4xbf16>
    %6 = vector.extract_strided_slice %1 {offsets = [2, 0], sizes = [288, 4], strides = [1, 1]} : vector<342x4xbf16> to vector<288x4xbf16>
    %7 = vector.extract_strided_slice %1 {offsets = [18, 0], sizes = [288, 4], strides = [1, 1]} : vector<342x4xbf16> to vector<288x4xbf16>
    %8 = vector.extract_strided_slice %1 {offsets = [19, 0], sizes = [288, 4], strides = [1, 1]} : vector<342x4xbf16> to vector<288x4xbf16>
    %9 = vector.extract_strided_slice %1 {offsets = [20, 0], sizes = [288, 4], strides = [1, 1]} : vector<342x4xbf16> to vector<288x4xbf16>
    %10 = vector.extract_strided_slice %1 {offsets = [36, 0], sizes = [288, 4], strides = [1, 1]} : vector<342x4xbf16> to vector<288x4xbf16>
    %11 = vector.extract_strided_slice %1 {offsets = [37, 0], sizes = [288, 4], strides = [1, 1]} : vector<342x4xbf16> to vector<288x4xbf16>
    %12 = vector.extract_strided_slice %1 {offsets = [38, 0], sizes = [288, 4], strides = [1, 1]} : vector<342x4xbf16> to vector<288x4xbf16>
    %13 = tpu.concatenate %4, %5, %6, %7, %8, %9, %10, %11, %12 in 1 : vector<288x4xbf16>, vector<288x4xbf16>, vector<288x4xbf16>, vector<288x4xbf16>, vector<288x4xbf16>, vector<288x4xbf16>, vector<288x4xbf16>, vector<288x4xbf16>, vector<288x4xbf16> -> vector<288x36xbf16>
    %cst = arith.constant dense<0.000000e+00> : vector<288x8xf32>
    %14 = tpu.matmul %13, %2, %cst {dimension_numbers = #tpu.dot_dimension_numbers<[1], [0], [0], [1], [0, 0, 1, 1], [], []>} : vector<288x36xbf16>, vector<36x8xbf16>, vector<288x8xf32> -> vector<288x8xf32>
    %15 = vector.broadcast %3 : vector<1x8xf32> to vector<288x8xf32>
    %16 = arith.addf %14, %15 : vector<288x8xf32>
    %17 = tpu.iota {dimensions = array<i32: 0>} : vector<288x1xi32>
    %c18_i32 = arith.constant 18 : i32
    %c0_i32 = arith.constant 0 : i32
    %18 = arith.cmpi eq, %c18_i32, %c0_i32 : i32
    %c1_i32 = arith.constant 1 : i32
    %19 = arith.select %18, %c1_i32, %c18_i32 : i32
    %20 = vector.broadcast %19 : i32 to vector<288x1xi32>
    %21 = arith.remsi %17, %20 : vector<288x1xi32>
    %c0_i32_6 = arith.constant 0 : i32
    %22 = vector.broadcast %c0_i32_6 : i32 to vector<288x1xi32>
    %23 = arith.cmpi ne, %21, %22 : vector<288x1xi32>
    %c0_i32_7 = arith.constant 0 : i32
    %24 = vector.broadcast %c0_i32_7 : i32 to vector<288x1xi32>
    %25 = arith.cmpi slt, %21, %24 : vector<288x1xi32>
    %c0_i32_8 = arith.constant 0 : i32
    %26 = arith.cmpi slt, %19, %c0_i32_8 : i32
    %27 = vector.broadcast %26 : i1 to vector<288x1xi1>
    %28 = vector.broadcast %27 : vector<288x1xi1> to vector<288x1xi1>
    %29 = arith.xori %25, %28 : vector<288x1xi1>
    %30 = arith.andi %29, %23 : vector<288x1xi1>
    %31 = vector.broadcast %19 : i32 to vector<288x1xi32>
    %32 = arith.addi %21, %31 : vector<288x1xi32>
    %33 = arith.select %30, %32, %21 : vector<288x1xi1>, vector<288x1xi32>
    %c16_i32 = arith.constant 16 : i32
    %34 = vector.broadcast %c16_i32 : i32 to vector<288x1xi32>
    %35 = arith.cmpi slt, %33, %34 : vector<288x1xi32>
    %cst_9 = arith.constant 0.000000e+00 : f32
    %36 = vector.broadcast %cst_9 : f32 to vector<288x8xf32>
    %37 = arith.cmpf ogt, %16, %36 : vector<288x8xf32>
    %cst_10 = arith.constant 2.000000e-01 : f32
    %38 = vector.broadcast %cst_10 : f32 to vector<288x8xf32>
    %39 = arith.mulf %38, %16 : vector<288x8xf32>
    %40 = arith.select %37, %16, %39 : vector<288x8xi1>, vector<288x8xf32>
    %cst_11 = arith.constant 0.000000e+00 : f32
    %41 = vector.shape_cast %35 : vector<288x1xi1> to vector<288x1xi1>
    %42 = vector.broadcast %41 : vector<288x1xi1> to vector<288x8xi1>
    %43 = vector.broadcast %cst_11 : f32 to vector<288x8xf32>
    %44 = arith.select %42, %40, %43 : vector<288x8xi1>, vector<288x8xf32>
    %c0_12 = arith.constant 0 : index
    %c0_13 = arith.constant 0 : index
    %45 = vector.load %arg4[%c0_12, %c0_13] : memref<1x8xf32, #tpu.memory_space<vmem>>, vector<1x8xf32>
    %46 = vector.broadcast %45 : vector<1x8xf32> to vector<288x8xf32>
    %47 = arith.mulf %44, %46 : vector<288x8xf32>
    %48 = vector.shape_cast %47 : vector<288x8xf32> to vector<1x288x8xf32>
    %cst_14 = arith.constant dense<0.000000e+00> : vector<1xf32>
    %49 = vector.multi_reduction <add>, %48, %cst_14 [1, 2] : vector<1x288x8xf32> to vector<1xf32>
    %50 = vector.shape_cast %49 : vector<1xf32> to vector<1x1x1xf32>
    %51 = vector.extract %50[0, 0, 0] : f32 from vector<1x1x1xf32>
    %52 = vector.broadcast %51 : f32 to vector<1x1xf32>
    %cst_15 = arith.constant 3.906250e-03 : f32
    %53 = vector.broadcast %cst_15 : f32 to vector<1x1xf32>
    %54 = arith.mulf %52, %53 : vector<1x1xf32>
    %c0_16 = arith.constant 0 : index
    %c0_17 = arith.constant 0 : index
    %55 = vector.load %arg5[%c0_16, %c0_17] : memref<1x1xf32, #tpu.memory_space<vmem>>, vector<1x1xf32>
    %56 = arith.addf %54, %55 : vector<1x1xf32>
    %57 = arith.negf %56 : vector<1x1xf32>
    %58 = math.exp %57 : vector<1x1xf32>
    %cst_18 = arith.constant 1.000000e+00 : f32
    %59 = vector.broadcast %cst_18 : f32 to vector<1x1xf32>
    %60 = arith.addf %59, %58 : vector<1x1xf32>
    %61 = arith.divf %59, %60 : vector<1x1xf32>
    %c0_19 = arith.constant 0 : index
    %c0_20 = arith.constant 0 : index
    %c0_21 = arith.constant 0 : index
    %62 = vector.load %arg6[%c0_19, %c0_20, %c0_21] : memref<1x1x1xf32, #tpu.memory_space<vmem>>, vector<1x1x1xf32>
    %63 = vector.shape_cast %62 : vector<1x1x1xf32> to vector<1x1xf32>
    %64 = vector.shape_cast %61 : vector<1x1xf32> to vector<1x1x1xf32>
    tpu.vector_store %arg6[%c0_19, %c0_20, %c0_21], %64 {strides = array<i32>} : memref<1x1x1xf32, #tpu.memory_space<vmem>>, vector<1x1x1xf32>,
    return
  }
  func.func @transform_0(%arg0: i32) -> (i32, i32, i32) {
    %c0_i32 = arith.constant 0 : i32
    %c0_i32_0 = arith.constant 0 : i32
    %c0_i32_1 = arith.constant 0 : i32
    return %arg0, %c0_i32, %c0_i32_0 : i32, i32, i32
  }
  func.func @transform_1(%arg0: i32) -> (i32, i32) {
    %c0_i32 = arith.constant 0 : i32
    %c0_i32_0 = arith.constant 0 : i32
    %c0_i32_1 = arith.constant 0 : i32
    return %c0_i32, %c0_i32_0 : i32, i32
  }
  func.func @transform_2(%arg0: i32) -> (i32, i32) {
    %c0_i32 = arith.constant 0 : i32
    %c0_i32_0 = arith.constant 0 : i32
    %c0_i32_1 = arith.constant 0 : i32
    return %c0_i32, %c0_i32_0 : i32, i32
  }
  func.func @transform_3(%arg0: i32) -> (i32, i32) {
    %c0_i32 = arith.constant 0 : i32
    %c0_i32_0 = arith.constant 0 : i32
    %c0_i32_1 = arith.constant 0 : i32
    return %c0_i32, %c0_i32_0 : i32, i32
  }
  func.func @transform_4(%arg0: i32) -> (i32, i32) {
    %c0_i32 = arith.constant 0 : i32
    %c0_i32_0 = arith.constant 0 : i32
    %c0_i32_1 = arith.constant 0 : i32
    return %c0_i32, %c0_i32_0 : i32, i32
  }
  func.func @transform_5(%arg0: i32) -> (i32, i32, i32) {
    %c0_i32 = arith.constant 0 : i32
    %c0_i32_0 = arith.constant 0 : i32
    %c0_i32_1 = arith.constant 0 : i32
    return %arg0, %c0_i32, %c0_i32_0 : i32, i32, i32
  }
}

module attributes {stable_mosaic.version = 11 : i64} {
  func.func @_d_loss_kernel(%arg0: i32, %arg1: memref<2x1x1xf32, #tpu.memory_space<vmem>>, %arg2: memref<2x1x1xf32, #tpu.memory_space<vmem>>, %arg3: memref<1x1xf32, #tpu.memory_space<vmem>>) attributes {dimension_semantics = [#tpu.dimension_semantics<arbitrary>], iteration_bounds = array<i64: 1>, scalar_prefetch = 0 : i64, scratch_operands = 0 : i64, tpu.core_type = #tpu.core_type<tc>, window_params = [{pipeline_mode = #tpu.pipeline_mode<synchronous>, transform_indices = @transform_0, window_bounds = array<i64: 2, 1, 1>}, {pipeline_mode = #tpu.pipeline_mode<synchronous>, transform_indices = @transform_1, window_bounds = array<i64: 2, 1, 1>}, {pipeline_mode = #tpu.pipeline_mode<synchronous>, transform_indices = @transform_2, window_bounds = array<i64: 1, 1>}]} {
    %c0 = arith.constant 0 : index
    %c0_0 = arith.constant 0 : index
    %c0_1 = arith.constant 0 : index
    %0 = vector.load %arg1[%c0, %c0_0, %c0_1] : memref<2x1x1xf32, #tpu.memory_space<vmem>>, vector<2x1x1xf32>
    %cst = arith.constant dense<0.000000e+00> : vector<1x1xf32>
    %1 = vector.multi_reduction <add>, %0, %cst [0] : vector<2x1x1xf32> to vector<1x1xf32>
    %c0_2 = arith.constant 0 : index
    %c0_3 = arith.constant 0 : index
    %c0_4 = arith.constant 0 : index
    %2 = vector.load %arg2[%c0_2, %c0_3, %c0_4] : memref<2x1x1xf32, #tpu.memory_space<vmem>>, vector<2x1x1xf32>
    %cst_5 = arith.constant dense<0.000000e+00> : vector<1x1xf32>
    %3 = vector.multi_reduction <add>, %2, %cst_5 [0] : vector<2x1x1xf32> to vector<1x1xf32>
    %cst_6 = arith.constant 5.000000e-01 : f32
    %4 = vector.broadcast %cst_6 : f32 to vector<1x1xf32>
    %5 = arith.mulf %1, %4 : vector<1x1xf32>
    %cst_7 = arith.constant 1.000000e+00 : f32
    %6 = vector.broadcast %cst_7 : f32 to vector<1x1xf32>
    %7 = arith.subf %6, %5 : vector<1x1xf32>
    %cst_8 = arith.constant 5.000000e-01 : f32
    %8 = vector.broadcast %cst_8 : f32 to vector<1x1xf32>
    %9 = arith.mulf %3, %8 : vector<1x1xf32>
    %10 = arith.addf %7, %9 : vector<1x1xf32>
    %c0_9 = arith.constant 0 : index
    %c0_10 = arith.constant 0 : index
    %11 = vector.load %arg3[%c0_9, %c0_10] : memref<1x1xf32, #tpu.memory_space<vmem>>, vector<1x1xf32>
    tpu.vector_store %arg3[%c0_9, %c0_10], %10 {strides = array<i32>} : memref<1x1xf32, #tpu.memory_space<vmem>>, vector<1x1xf32>,
    return
  }
  func.func @transform_0(%arg0: i32) -> (i32, i32, i32) {
    %c0_i32 = arith.constant 0 : i32
    %c0_i32_0 = arith.constant 0 : i32
    %c0_i32_1 = arith.constant 0 : i32
    %c0_i32_2 = arith.constant 0 : i32
    return %c0_i32, %c0_i32_0, %c0_i32_1 : i32, i32, i32
  }
  func.func @transform_1(%arg0: i32) -> (i32, i32, i32) {
    %c0_i32 = arith.constant 0 : i32
    %c0_i32_0 = arith.constant 0 : i32
    %c0_i32_1 = arith.constant 0 : i32
    %c0_i32_2 = arith.constant 0 : i32
    return %c0_i32, %c0_i32_0, %c0_i32_1 : i32, i32, i32
  }
  func.func @transform_2(%arg0: i32) -> (i32, i32) {
    %c0_i32 = arith.constant 0 : i32
    %c0_i32_0 = arith.constant 0 : i32
    %c0_i32_1 = arith.constant 0 : i32
    return %c0_i32, %c0_i32_0 : i32, i32
  }
}

</mosaic_0001>

<bundles_post_ra>
// kernel: network_forward.5
= control target key start
LH: loop header
LB: loop body
LE: loop exit
PB: predicated region body
PF: predicated region fallthrough
CT: control target
= control target key end

     0   :  { %vm14_vm0 = vcmask 0   ;;  %s112_s0 = inlined_call_operand.vmem [shape: f32[2,1,1], index: 0, kind: input, shape index: {}]   ;;  %s113_s1 = inlined_call_operand.vmem [shape: f32[2,1,1], index: 1, kind: input, shape index: {}]   ;;  %s114_s2 = inlined_call_operand.hbm [shape: f32[1,1], index: 2, kind: output, shape index: {}]  }
   0x1   :  { %v12_v0 = vld [vmem:[%s112_s0] sm:$0x1]  ;;  %v13_v1 = vld [vmem:[%s112_s0 + $0x1] sm:$0x1] }
   0x2   :  { %v15_v2 = vsel %vm14_vm0, %v12_v0, 0.0  ;;  %v16_v3 = vsel %vm14_vm0, %v13_v1, 0.0  ;;  %v18_v4 = vld [vmem:[%s113_s1] sm:$0x1]  ;;  %v19_v5 = vld [vmem:[%s113_s1 + $0x1] sm:$0x1] }
   0x3   :  { %v17_v6 = vadd.f32 %v16_v3, %v15_v2  ;;  %v20_v7 = vsel %vm14_vm0, %v18_v4, 0.0  ;;  %v21_v8 = vsel %vm14_vm0, %v19_v5, 0.0 }
   0x4   :  { %7 = vsyncpa [#allocation3], 0  ;;  %v22_v9 = vadd.f32 %v21_v8, %v20_v7  ;;  %s67_s0 = smov [#allocation2]  }
   0x5   :  { %v23_v10 = vmul.f32 0.5, %v17_v6  ;;  %s34_s17 = sshll.u32 %s67_s0, 4  ;;  %s35_s17 = int_to_ptr.vmem [resolvable:$true] %s34_s17 }
   0x6   :  { %v25_v11 = vmul.f32 0.5, %v22_v9  ;;  %s43_s18 = scalar_lea.vmem %s35_s17, 16  ;;  %s47_s19 = scalar_lea.vmem %s35_s17, 32 }
   0x7   :  { %v24_v12 = vsub.f32 1.0, %v23_v10  ;;  %p44_p0 = scmp.ne.s32.totalorder %s35_s17, %s43_s18  ;;  %p48_p1 = scmp.lt.s32.totalorder %s35_s17, %s35_s17 }
   0x8   :  { %p49_p2 = scmp.lt.s32.totalorder %s47_s19, %s43_s18 }
   0x9   :  { %v26_v13 = vadd.f32 %v25_v11, %v24_v12 }
   0xa   :  { %p50_p3 = por %p49_p2, %p48_p1 }
   0xb   :  { %27 = vst.msk [vmem:[#allocation2] sm:$0x1] %vm14_vm0, %v26_v13 }
   0xc   :  { %p51_p4 = pnand %p50_p3, %p44_p0 }
   0xe   :  { %54 = shalt.err (!%p51_p4)
}
   0xf   :  { %s55_s21 = scalar_lea.hbm %s114_s2, 16 }
  0x10   :  { %p56_p5 = scmp.ne.s32.totalorder %s114_s2, %s55_s21  ;;  %p59_p6 = scmp.lt.u32.totalorder %s55_s21, %s114_s2 }
  0x12   :  { %p61_p7 = pnand %p59_p6, %p56_p5 }
  0x14   :  { %64 = shalt.err (!%p61_p7)
}
  0x15   :  { %37 = dma.vmem_to_hbm [thread:$0]  %s35_s17, 16, %s114_s2, [#allocation3]  }
  0x16   :  { %65 = dma.done.wait [#allocation3], 16  }
  0x17   :  { %66 = vsyncadd [#allocation3], 4294967280 }
  0x18   :  { %41 = vsyncpa [#allocation3], 1 }

// kernel: network_forward.4
= control target key start
LH: loop header
LB: loop body
LE: loop exit
PB: predicated region body
PF: predicated region fallthrough
CT: control target
= control target key end

     0   :  { %s2988_s20 = smov 0   ;;  %s4812_s0 = inlined_call_operand.vmem [shape: bf16[2,342,4], index: 0, kind: input, shape index: {}]   ;;  %s4813_s1 = inlined_call_operand.vmem [shape: bf16[36,8], index: 1, kind: input, shape index: {}]   ;;  %s4814_s2 = inlined_call_operand.vmem [shape: f32[1,8], index: 2, kind: input, shape index: {}]   ;;  %s4815_s3 = inlined_call_operand.vmem [shape: f32[1,8], index: 3, kind: input, shape index: {}]   ;;  %s4816_s4 = inlined_call_operand.<no memory space> [shape: f32[1,1], index: 4, kind: input, shape index: {}]   ;;  %s4817_s5 = inlined_call_operand.vmem [shape: f32[2,1,1], index: 5, kind: output, shape index: {}]  }
   0x1   :  { %v10_v0 = vstv %s4816_s4 }
   0x2   :  { %11 = vst [vmem:[#allocation2] sm:$0x1] %v10_v0 }
   0x3 LB: > { %s2689_s21 = sadd.s32 4294967295, %s2945_s20   ;;  %p2693_p0 = scmp.ge.s32.totalorder %s2945_s20, 1  ;;  %s2945_s20 = sphi %s2988_s20, %s17_s20  }
   0x4   : > { %p189_p1 = scmp.lt.s32.totalorder %s2945_s20, 3 }
   0x6   : > { %p190_p2 = pnand %p2693_p0, %p189_p1 }
   0x7   : > { %p215_p3 = scmp.lt.s32.totalorder (!%p190_p2), %s2689_s21, 1  ;;  %vm549_vm0 = vcmask (!%p190_p2), 1046528   ;;  %vm791_vm1 = vcmask (!%p190_p2), 1045504   ;;  %vm364_vm2 = vsmask.f32 (!%p190_p2), 7424  ;;  %s2947_s25 = smov (!%p190_p2), 12  }
   0x8   : > { %193 = sbr.rel (%p190_p2) target bundleno = 890 (0x37a), region = 40  ;;  %s2948_s26 = smov (!%p190_p2), 8   ;;  %v2917_v37 = vld [vmem:[%s4813_s1] sm:$0xff] (!%p190_p2)   ;;  %vm669_vm3 = vsmask.f32 (!%p190_p2), 6400  ;;  %v2919_v45 = vld [vmem:[%s4813_s1 + $0x8] sm:$0xff] (!%p190_p2)  }
   0x9   : > { %s2949_s27 = smov (!%p190_p2), 20   ;;  %s2950_s28 = smov (!%p190_p2), 4   ;;  %2765 = vmatprep.subr.bf16.mxu0 (!%p190_p2), %v2917_v37  ;;  %2807 = vmatprep.subr.bf16.mxu1 (!%p190_p2), %v2917_v37  ;;  %vm911_vm4 = vsmask.f32 (!%p190_p2), 5376  ;;  %vm1033_vm5 = vcmask (!%p190_p2), 1044480   ;;  %vm1461_vm6 = vcmask (!%p190_p2), 1041408  }
   0xa   : > { %2766 = vmatpush3.bf16.msra.mxu0 (!%p190_p2), %v2917_v37  ;;  %2810 = vmatpush3.bf16.msra.mxu1 (!%p190_p2), %v2917_v37  ;;  %s2951_s8 = smov (!%p190_p2), 16   ;;  %s2952_s9 = smov (!%p190_p2), 24   ;;  %vm1107_vm7 = vcmask (!%p190_p2), 31744   ;;  %vm1144_vm8 = vcmask (!%p190_p2), 64512   ;;  %vm1181_vm9 = vcmask (!%p190_p2), 97280   ;;  %vm1218_vm10 = vcmask (!%p190_p2), 130048  }
   0xb   : > { %2767 = vmatprep.subr.bf16.mxu0 (!%p190_p2), %v2919_v45  ;;  %2808 = vmatprep.subr.bf16.mxu1 (!%p190_p2), %v2919_v45  ;;  %s2953_s10 = smov (!%p190_p2), 28   ;;  %s2954_s11 = smov (!%p190_p2), 32   ;;  %vm1255_vm11 = vcmask (!%p190_p2), 162816   ;;  %vm4821_vm12 = vcmask (!%p190_p2), 195584   ;;  %vm4820_vm13 = vcmask (!%p190_p2), 228352   ;;  %vm4819_vm14 = vcmask (!%p190_p2), 261120  }
   0xc   : > { %vm4818_vm15 = vcmask (!%p190_p2), 293888  }
   0xe   : > { %2768 = vmatpush3.bf16.msra.mxu0 (!%p190_p2), %v2919_v45  ;;  %2811 = vmatpush3.bf16.msra.mxu1 (!%p190_p2), %v2919_v45 }
   0xf   : > { %s4969_s21 = smov (!%p215_p3, %s2689_s21), 1 }
  0x10   : > { %s2815_s4 = smul.u32 172, %s4969_s21 }
  0x12   : > { %s3002_s24 = scalar_lea.vmem %s4812_s0, %s2815_s4 }
  0x13   : > { %v3005_v1 = vld [vmem:[%s3002_s24 + $0x8] sm:$0xff]   ;;  %v3008_v2 = vld [vmem:[%s3002_s24 + $0x10] sm:$0xff]   ;;  %v3011_v3 = vld [vmem:[%s3002_s24] sm:$0xff]  }
  0x14   : > { %v551_v4 = vrot.slane %v3005_v1, 1  ;;  %v553_v5 = vrot.slane %v3008_v2, 1  ;;  %v792_v6 = vrot.slane %v3005_v1, 2  ;;  %v793_v7 = vrot.slane %v3008_v2, 2  ;;  %v3019_v9 = vld [vmem:[%s3002_s24 + $0x18] sm:$0xff]   ;;  %v3058_v36 = vld [vmem:[%s3002_s24 + $0x20] sm:$0xff]  }
  0x15   : > { %v550_v8 = vrot.slane %v3011_v3, 1  ;;  %v366_v10 = vshrl.u32 %v3011_v3, 16  ;;  %v368_v11 = vshll.u32 %v3011_v3, 16  ;;  %v373_v13 = vshll.u32 %v3005_v1, 16 }
  0x16   : > { %v554_v12 = vsel %vm549_vm0, %v551_v4, %v553_v5  ;;  %v794_v15 = vsel %vm791_vm1, %v792_v6, %v793_v7  ;;  %v377_v17 = vshrl.u32 %v3005_v1, 16  ;;  %v555_v18 = vrot.slane %v3019_v9, 1 }
  0x17   : > { %633 = vrot.lane.b32.xlu0 %v554_v12, %s2947_s25  ;;  %v552_v14 = vsel %vm549_vm0, %v550_v8, %v551_v4  ;;  %v370_v16 = vrot.slane %v368_v11, 1  ;;  %v375_v19 = vrot.slane %v373_v13, 1  ;;  %v3032_v20 = vshll.u32 %v3008_v2, 16 }
  0x18   : > { %587 = vrot.lane.b32.xlu1 %v552_v14, %s2948_s26  ;;  %v3035_v21 = vshrl.u32 %v3008_v2, 16  ;;  %v3038_v23 = vshll.u32 %v3019_v9, 16  ;;  %v3041_v24 = vshrl.u32 %v3019_v9, 16  ;;  %v670_v30 = vrot.slane %v377_v17, 1 }
  0x19   : > { %v371_v22 = vor.u32 %v370_v16, %v366_v10  ;;  %v383_v25 = vrot.slane %v3032_v20, 1  ;;  %v674_v27 = vrot.slane %v3032_v20, 2  ;;  %v379_v29 = vor.u32 %v377_v17, %v375_v19  ;;  %v3118_v10 = vld [vmem:[%s3002_s24 + $0x28] sm:$0xff]  }
  0x1a   : > { %v673_v26 = vrot.slane %v3035_v21, 1  ;;  %v671_v31 = vrot.slane %v373_v13, 2  ;;  %v3052_v32 = vsel %vm549_vm0, %v553_v5, %v555_v18  ;;  %v795_v33 = vrot.slane %v3019_v9, 2 }
  0x1b   : > { %829 = vrot.lane.b32.xlu0 %v794_v15, %s2949_s27  ;;  %v376_v28 = vsel %vm364_vm2, %v371_v22, %v375_v19  ;;  %v677_v34 = vrot.slane %v3041_v24, 1  ;;  %v678_v35 = vrot.slane %v3038_v23, 2  ;;  %v384_v38 = vsel %vm364_vm2, %v379_v29, %v383_v25 }
  0x1c   : > { %589 = vrot.lane.b32.xlu1 %v554_v12, %s2948_s26  ;;  %v675_v39 = vor.u32 %v674_v27, %v673_v26  ;;  %v672_v40 = vor.u32 %v671_v31, %v670_v30  ;;  %v796_v41 = vsel %vm791_vm1, %v793_v7, %v795_v33  ;;  %v3071_v43 = vshll.u32 %v3058_v36, 16  ;;  %v3146_v26 = vld [vmem:[%s3002_s24 + $0x30] sm:$0xff]  }
  0x1d   : > { %v3068_v42 = vor.u32 %v678_v35, %v677_v34  ;;  %v3074_v44 = vshrl.u32 %v3058_v36, 16  ;;  %v915_v46 = vrot.slane %v3041_v24, 2  ;;  %v916_v47 = vrot.slane %v3038_v23, 3  ;;  %v2920_v27 = vld [vmem:[%s4813_s1 + $0x10] ss:$0 sps:$4 sm:$0x33]  }
  0x1e   : > { %v676_v48 = vsel %vm669_vm3, %v672_v40, %v675_v39  ;;  %v912_v49 = vrot.slane %v3035_v21, 2  ;;  %v913_v50 = vrot.slane %v3032_v20, 3  ;;  %v797_v52 = vrot.slane %v3058_v36, 2  ;;  %2813 = vmatprep.subr.msk.bf16.mxu0 %vm1461_vm6, %v2920_v27  ;;  %2814 = vmatprep.subr.msk.bf16.mxu1 %vm1461_vm6, %v2920_v27 }
  0x1f   : > { %513 = vrot.lane.b32.xlu0 %v376_v28, %s2950_s28  ;;  %v680_v51 = vsel %vm669_vm3, %v675_v39, %v3068_v42  ;;  %v919_v53 = vrot.slane %v3074_v44, 2  ;;  %v920_v54 = vrot.slane %v3071_v43, 3  ;;  %v917_v55 = vor.u32 %v916_v47, %v915_v46 }
  0x20   : > { %635 = vrot.lane.b32.xlu1 %v3052_v32, %s2947_s25  ;;  %v914_v56 = vor.u32 %v913_v50, %v912_v49  ;;  %v3096_v57 = vsel %vm791_vm1, %v795_v33, %v797_v52  ;;  %v1034_v60 = vrot.slane %v3008_v2, 3  ;;  %v1035_v61 = vrot.slane %v3019_v9, 3 }
  0x21   : > { %v3098_v58 = vor.u32 %v920_v54, %v919_v53  ;;  %v387_v63 = vor.u32 %v3035_v21, %v383_v25  ;;  %v391_v0 = vrot.slane %v3038_v23, 1  ;;  %v1037_v5 = vrot.slane %v3058_v36, 3  ;;  %v3194_v54 = vld [vmem:[%s3002_s24 + $0x38] sm:$0xff]  }
  0x22   : > { %v918_v59 = vsel %vm911_vm4, %v914_v56, %v917_v55  ;;  %v1036_v4 = vsel %vm1033_vm5, %v1034_v60, %v1035_v61  ;;  %v399_v8 = vrot.slane %v3071_v43, 1  ;;  %v557_v13 = vrot.slane %v3058_v36, 1 }
  0x23   : > { %515 = vrot.lane.b32.xlu0 %v384_v38, %s2950_s28  ;;  %v922_v62 = vsel %vm911_vm4, %v917_v55, %v3098_v58  ;;  %v392_v6 = vsel %vm364_vm2, %v387_v63, %v391_v0  ;;  %v395_v7 = vor.u32 %v3041_v24, %v391_v0  ;;  %v1038_v11 = vsel %vm1033_vm5, %v1035_v61, %v1037_v5 }
  0x24   : > { %831 = vrot.lane.b32.xlu1 %v796_v41, %s2949_s27  ;;  %v405_v14 = vshll.u32 %v3118_v10, 16  ;;  %v409_v15 = vshrl.u32 %v3118_v10, 16  ;;  %v681_v16 = vrot.slane %v3074_v44, 1  ;;  %v682_v17 = vrot.slane %v3071_v43, 2 }
  0x25   : > { %v400_v12 = vsel %vm364_vm2, %v395_v7, %v399_v8  ;;  %v558_v19 = vsel %vm549_vm0, %v555_v18, %v557_v13  ;;  %v559_v20 = vrot.slane %v3118_v10, 1  ;;  %v799_v29 = vrot.slane %v3118_v10, 2  ;;  %v3215_v7 = vld [vmem:[%s3002_s24 + $0x40] sm:$0xff]  }
  0x26   : > { %v685_v21 = vrot.slane %v409_v15, 1  ;;  %v686_v22 = vrot.slane %v405_v14, 2  ;;  %v683_v23 = vor.u32 %v682_v17, %v681_v16  ;;  %v3159_v30 = vshll.u32 %v3146_v26, 16 }
  0x27   : > { %755 = vrot.lane.b32.xlu0 %v676_v48, %s2951_s8  ;;  %v560_v24 = vsel %vm549_vm0, %v557_v13, %v559_v20  ;;  %v3162_v31 = vshrl.u32 %v3146_v26, 16  ;;  %v923_v33 = vrot.slane %v409_v15, 2  ;;  %v924_v34 = vrot.slane %v405_v14, 3 }
  0x28   : > { %757 = vrot.lane.b32.xlu1 %v680_v51, %s2951_s8  ;;  %v3143_v25 = vor.u32 %v686_v22, %v685_v21  ;;  %v684_v18 = vsel %vm669_vm3, %v3068_v42, %v683_v23  ;;  %v800_v35 = vsel %vm791_vm1, %v797_v52, %v799_v29  ;;  %v928_v38 = vrot.slane %v3159_v30, 3 }
  0x29   : > { %v927_v37 = vrot.slane %v3162_v31, 2  ;;  %v1463_v39 = vsel %vm1461_vm6, %v2920_v27, 0  ;;  %v925_v40 = vor.u32 %v924_v34, %v923_v33  ;;  %v1039_v45 = vrot.slane %v3118_v10, 3 }
  0x2a   : > { %v688_v28 = vsel %vm669_vm3, %v683_v23, %v3143_v25  ;;  %2770 = vmatpush3.bf16.msra.mxu0 %v1463_v39  ;;  %2812 = vmatpush3.bf16.msra.mxu1 %v1463_v39  ;;  %v403_v47 = vor.u32 %v3074_v44, %v399_v8  ;;  %v407_v48 = vrot.slane %v405_v14, 1  ;;  %v1041_v50 = vrot.slane %v3146_v26, 3 }
  0x2b   : > { %875 = vrot.lane.b32.xlu0 %v796_v41, %s2952_s9  ;;  %v929_v42 = vor.u32 %v928_v38, %v927_v37  ;;  %v926_v43 = vsel %vm911_vm4, %v3098_v58, %v925_v40  ;;  %v1040_v49 = vsel %vm1033_vm5, %v1037_v5, %v1039_v45  ;;  %v415_v53 = vrot.slane %v3159_v30, 1  ;;  %v3253_v37 = vld [vmem:[%s3002_s24 + $0x48] sm:$0xff]  }
  0x2c   : > { %877 = vrot.lane.b32.xlu1 %v3096_v57, %s2952_s9  ;;  %v408_v51 = vsel %vm364_vm2, %v403_v47, %v407_v48  ;;  %v411_v52 = vor.u32 %v409_v15, %v407_v48  ;;  %v1042_v44 = vsel %vm1033_vm5, %v1039_v45, %v1041_v50  ;;  %v561_v56 = vrot.slane %v3146_v26, 1 }
  0x2d   : > { %v930_v46 = vsel %vm911_vm4, %v925_v40, %v929_v42  ;;  %v425_v58 = vshrl.u32 %v3194_v54, 16  ;;  %v690_v60 = vrot.slane %v3159_v30, 2  ;;  %v3224_v13 = vshll.u32 %v3215_v7, 16 }
  0x2e   : > { %v416_v55 = vsel %vm364_vm2, %v411_v52, %v415_v53  ;;  %v562_v61 = vsel %vm549_vm0, %v559_v20, %v561_v56  ;;  %v3227_v14 = vshrl.u32 %v3215_v7, 16  ;;  %v565_v39 = vrot.slane %v3215_v7, 1  ;;  %v3278_v52 = vld [vmem:[%s3002_s24 + $0x50] sm:$0xff]  }
  0x2f   : > { %997 = vrot.lane.b32.xlu0 %v918_v59, %s2953_s10  ;;  %v689_v59 = vrot.slane %v3162_v31, 1  ;;  %v693_v63 = vrot.slane %v425_v58, 1  ;;  %v931_v15 = vrot.slane %v425_v58, 2  ;;  %v936_v21 = vrot.slane %v3224_v13, 3 }
  0x30   : > { %999 = vrot.lane.b32.xlu1 %v922_v62, %s2953_s10  ;;  %v563_v62 = vrot.slane %v3194_v54, 1  ;;  %v935_v20 = vrot.slane %v3227_v14, 2  ;;  %v437_v40 = vshll.u32 %v3253_v37, 16 }
  0x32   : > { %v564_v5 = vsel %vm549_vm0, %v561_v56, %v563_v62  ;;  %v566_v45 = vsel %vm549_vm0, %v563_v62, %v565_v39  ;;  %v702_v48 = vrot.slane %v437_v40, 2  ;;  %v3288_v56 = vshll.u32 %v3278_v52, 16 }
  0x33   : > { %1071 = vrot.lane.b32.xlu0 %v1036_v4, %s2954_s11  ;;  %v691_v4 = vor.u32 %v690_v60, %v689_v59  ;;  %v940_v59 = vrot.slane %v437_v40, 3 }
  0x34   : > { %517 = vrot.lane.b32.xlu1 %v392_v6, %s2950_s28 }
  0x35   : > { %v692_v8 = vsel %vm669_vm3, %v3143_v25, %v691_v4 }
  0x37   : > { %1073 = vrot.lane.b32.xlu0 %v1038_v11, %s2954_s11 }
  0x38   : > { %519 = vrot.lane.b32.xlu1 %v400_v12, %s2950_s28  ;;  %v803_v12 = vrot.slane %v3194_v54, 2 }
  0x3b   : > { %591 = vrot.lane.b32.xlu0 %v3052_v32, %s2948_s26  ;;  %v801_v32 = vrot.slane %v3146_v26, 2 }
  0x3c   : > { %593 = vrot.lane.b32.xlu1 %v558_v19, %s2948_s26 }
  0x3d   : > { %v802_v41 = vsel %vm791_vm1, %v799_v29, %v801_v32  ;;  %v804_v17 = vsel %vm791_vm1, %v801_v32, %v803_v12  ;;  %v1045_v32 = vrot.slane %v3215_v7, 3 }
  0x3f   : > { %637 = vrot.lane.b32.xlu0 %v558_v19, %s2947_s25  ;;  %v805_v19 = vrot.slane %v3215_v7, 2 }
  0x40   : > { %639 = vrot.lane.b32.xlu1 %v560_v24, %s2947_s25 }
  0x41   : > { %v806_v23 = vsel %vm791_vm1, %v803_v12, %v805_v19  ;;  %v1047_v12 = vrot.slane %v3253_v37, 3 }
  0x43   : > { %759 = vrot.lane.b32.xlu0 %v684_v18, %s2951_s8  ;;  %v1043_v18 = vrot.slane %v3194_v54, 3 }
  0x44   : > { %761 = vrot.lane.b32.xlu1 %v688_v28, %s2951_s8  ;;  %v419_v28 = vor.u32 %v3162_v31, %v415_v53 }
  0x45   : > { %v1044_v30 = vsel %vm1033_vm5, %v1041_v50, %v1043_v18  ;;  %v1046_v31 = vsel %vm1033_vm5, %v1043_v18, %v1045_v32  ;;  %v3325_v18 = vld [vmem:[%s3002_s24 + $0x58] sm:$0xff]  }
  0x47   : > { %833 = vrot.lane.b32.xlu0 %v3096_v57, %s2949_s27  ;;  %v421_v57 = vshll.u32 %v3194_v54, 16 }
  0x48   : > { %835 = vrot.lane.b32.xlu1 %v800_v35, %s2949_s27 }
  0x49   : > { %v694_v0 = vrot.slane %v421_v57, 2  ;;  %v932_v16 = vrot.slane %v421_v57, 3  ;;  %v423_v29 = vrot.slane %v421_v57, 1  ;;  %v3291_v57 = vshrl.u32 %v3278_v52, 16 }
  0x4b   : > { %879 = vrot.lane.b32.xlu0 %v800_v35, %s2952_s9  ;;  %v695_v6 = vor.u32 %v694_v0, %v693_v63  ;;  %v933_v22 = vor.u32 %v932_v16, %v931_v15  ;;  %v424_v33 = vsel %vm364_vm2, %v419_v28, %v423_v29  ;;  %v427_v34 = vor.u32 %v425_v58, %v423_v29 }
  0x4c   : > { %881 = vrot.lane.b32.xlu1 %v802_v41, %s2952_s9  ;;  %v431_v35 = vrot.slane %v3224_v13, 1  ;;  %v943_v62 = vrot.slane %v3291_v57, 2  ;;  %v944_v63 = vrot.slane %v3288_v56, 3 }
  0x4d   : > { %v696_v11 = vsel %vm669_vm3, %v691_v4, %v695_v6  ;;  %v934_v25 = vsel %vm911_vm4, %v929_v42, %v933_v22  ;;  %v697_v42 = vrot.slane %v3227_v14, 1 }
  0x4e   : > { %v432_v38 = vsel %vm364_vm2, %v427_v34, %v431_v35  ;;  %v435_v16 = vor.u32 %v3227_v14, %v431_v35  ;;  %v571_v35 = vrot.slane %v3325_v18, 1 }
  0x4f   : > { %1001 = vrot.lane.b32.xlu0 %v926_v43, %s2953_s10  ;;  %v698_v43 = vrot.slane %v3224_v13, 2 }
  0x50   : > { %1003 = vrot.lane.b32.xlu1 %v930_v46, %s2953_s10  ;;  %v567_v46 = vrot.slane %v3253_v37, 1 }
  0x52   : > { %v3273_v50 = vsel %vm549_vm0, %v565_v39, %v567_v46 }
  0x53   : > { %1075 = vrot.lane.b32.xlu0 %v1040_v49, %s2954_s11  ;;  %v699_v49 = vor.u32 %v698_v43, %v697_v42 }
  0x54   : > { %521 = vrot.lane.b32.xlu1 %v408_v51, %s2950_s28 }
  0x55   : > { %v700_v53 = vsel %vm669_vm3, %v695_v6, %v699_v49  ;;  %v3306_v6 = vor.u32 %v944_v63, %v943_v62 }
  0x57   : > { %1077 = vrot.lane.b32.xlu0 %v1042_v44, %s2954_s11 }
  0x58   : > { %523 = vrot.lane.b32.xlu1 %v416_v55, %s2950_s28  ;;  %v807_v55 = vrot.slane %v3253_v37, 2 }
  0x5a   : > { %v808_v60 = vsel %vm791_vm1, %v805_v19, %v807_v55 }
  0x5b   : > { %595 = vrot.lane.b32.xlu0 %v560_v24, %s2948_s26  ;;  %v937_v24 = vor.u32 %v936_v21, %v935_v20  ;;  %v1048_v20 = vsel %vm1033_vm5, %v1045_v32, %v1047_v12  ;;  %v1049_v21 = vrot.slane %v3278_v52, 3  ;;  %v3337_v32 = vshll.u32 %v3325_v18, 16 }
  0x5c   : > { %597 = vrot.lane.b32.xlu1 %v562_v61, %s2948_s26 }
  0x5d   : > { %v938_v27 = vsel %vm911_vm4, %v933_v22, %v937_v24  ;;  %v1050_v14 = vsel %vm1033_vm5, %v1047_v12, %v1049_v21  ;;  %v710_v43 = vrot.slane %v3337_v32, 2 }
  0x5f   : > { %641 = vrot.lane.b32.xlu0 %v562_v61, %s2947_s25  ;;  %v809_v61 = vrot.slane %v3278_v52, 2 }
  0x60   : > { %643 = vrot.lane.b32.xlu1 %v564_v5, %s2947_s25 }
  0x63   : > { %763 = vrot.lane.b32.xlu0 %v692_v8, %s2951_s8 }
  0x64   : > { %765 = vrot.lane.b32.xlu1 %v696_v11, %s2951_s8 }
  0x67   : > { %837 = vrot.lane.b32.xlu0 %v802_v41, %s2949_s27  ;;  %v441_v41 = vshrl.u32 %v3253_v37, 16 }
  0x68   : > { %839 = vrot.lane.b32.xlu1 %v804_v17, %s2949_s27 }
  0x69   : > { %v701_v47 = vrot.slane %v441_v41, 1  ;;  %v939_v58 = vrot.slane %v441_v41, 2 }
  0x6b   : > { %883 = vrot.lane.b32.xlu0 %v804_v17, %s2952_s9  ;;  %v3275_v51 = vor.u32 %v702_v48, %v701_v47  ;;  %v941_v0 = vor.u32 %v940_v59, %v939_v58  ;;  %v439_v17 = vrot.slane %v437_v40, 1  ;;  %v811_v58 = vrot.slane %v3325_v18, 2 }
  0x6c   : > { %885 = vrot.lane.b32.xlu1 %v806_v23, %s2952_s9 }
  0x6d   : > { %v704_v44 = vsel %vm669_vm3, %v699_v49, %v3275_v51  ;;  %v942_v11 = vsel %vm911_vm4, %v937_v24, %v941_v0  ;;  %v946_v15 = vsel %vm911_vm4, %v941_v0, %v3306_v6  ;;  %v443_v24 = vor.u32 %v441_v41, %v439_v17 }
  0x6f   : > { %1005 = vrot.lane.b32.xlu0 %v934_v25, %s2953_s10  ;;  %v447_v25 = vrot.slane %v3288_v56, 1 }
  0x70   : > { %1007 = vrot.lane.b32.xlu1 %v938_v27, %s2953_s10 }
  0x71   : > { %v448_v29 = vsel %vm364_vm2, %v443_v24, %v447_v25 }
  0x73   : > { %1079 = vrot.lane.b32.xlu0 %v1044_v30, %s2954_s11  ;;  %v569_v30 = vrot.slane %v3278_v52, 1 }
  0x74   : > { %525 = vrot.lane.b32.xlu1 %v424_v33, %s2950_s28  ;;  %v3340_v33 = vshrl.u32 %v3325_v18, 16 }
  0x75   : > { %v570_v41 = vsel %vm549_vm0, %v567_v46, %v569_v30  ;;  %v3363_v46 = vsel %vm549_vm0, %v569_v30, %v571_v35 }
  0x76   : > { %v709_v42 = vrot.slane %v3340_v33, 1 }
  0x77   : > { %1081 = vrot.lane.b32.xlu0 %v1046_v31, %s2954_s11  ;;  %v705_v31 = vrot.slane %v3291_v57, 1 }
  0x78   : > { %527 = vrot.lane.b32.xlu1 %v432_v38, %s2950_s28  ;;  %v706_v38 = vrot.slane %v3288_v56, 2 }
  0x7b   : > { %599 = vrot.lane.b32.xlu0 %v564_v5, %s2948_s26  ;;  %v3304_v5 = vsel %vm791_vm1, %v807_v55, %v809_v61 }
  0x7c   : > { %601 = vrot.lane.b32.xlu1 %v566_v45, %s2948_s26 }
  0x7f   : > { %645 = vrot.lane.b32.xlu0 %v566_v45, %s2947_s25 }
  0x80   : > { %647 = vrot.lane.b32.xlu1 %v3273_v50, %s2947_s25 }
  0x83   : > { %767 = vrot.lane.b32.xlu0 %v700_v53, %s2951_s8  ;;  %v3365_v53 = vor.u32 %v710_v43, %v709_v42 }
  0x84   : > { %769 = vrot.lane.b32.xlu1 %v704_v44, %s2951_s8  ;;  %v3368_v44 = vld [vmem:[%s3002_s24 + $0x60] sm:$0xff]  }
  0x87   : > { %841 = vrot.lane.b32.xlu0 %v806_v23, %s2949_s27  ;;  %v440_v23 = vsel %vm364_vm2, %v435_v16, %v439_v17  ;;  %v947_v17 = vrot.slane %v3340_v33, 2 }
  0x88   : > { %843 = vrot.lane.b32.xlu1 %v808_v60, %s2949_s27 }
  0x89   : > { %v634_v4 = vpop.permute.xlu0 %633 }
  0x8a   : > { %v588_v8 = vpop.permute.xlu1 %587 }
  0x8b   : > { %887 = vrot.lane.b32.xlu0 %v808_v60, %s2952_s9 }
  0x8c   : > { %889 = vrot.lane.b32.xlu1 %v3304_v5, %s2952_s9 }
  0x8d   : > { %v3313_v13 = vpop.permute.xlu0 %829 }
  0x8e   : > { %v590_v19 = vpop.permute.xlu1 %589 }
  0x8f   : > { %1009 = vrot.lane.b32.xlu0 %v942_v11, %s2953_s10 }
  0x90   : > { %1011 = vrot.lane.b32.xlu1 %v946_v15, %s2953_s10 }
  0x91   : > { %v514_v22 = vpop.permute.xlu0 %513 }
  0x92   : > { %v636_v27 = vpop.permute.xlu1 %635  ;;  %v1109_v39 = vsel %vm1107_vm7, %v3011_v3, %v514_v22  ;;  %v707_v3 = vor.u32 %v706_v38, %v705_v31  ;;  %v813_v22 = vrot.slane %v3368_v44, 2 }
  0x93   : > { %1083 = vrot.lane.b32.xlu0 %v1048_v20, %s2954_s11  ;;  %v1146_v48 = vsel %vm1144_vm8, %v1109_v39, %v588_v8  ;;  %v3386_v8 = vshrl.u32 %v3368_v44, 16 }
  0x94   : > { %529 = vrot.lane.b32.xlu1 %v440_v23, %s2950_s28  ;;  %v1183_v55 = vsel %vm1181_vm9, %v1146_v48, %v634_v4  ;;  %v708_v60 = vsel %vm669_vm3, %v3275_v51, %v707_v3  ;;  %v712_v0 = vsel %vm669_vm3, %v707_v3, %v3365_v53  ;;  %v3383_v4 = vshll.u32 %v3368_v44, 16 }
  0x95   : > { %v516_v28 = vpop.permute.xlu0 %515  ;;  %v812_v51 = vsel %vm791_vm1, %v809_v61, %v811_v58  ;;  %v951_v23 = vrot.slane %v3386_v8, 2  ;;  %v3414_v38 = vsel %vm791_vm1, %v811_v58, %v813_v22  ;;  %v1053_v3 = vrot.slane %v3368_v44, 3 }
  0x96   : > { %v832_v34 = vpop.permute.xlu1 %831  ;;  %v1111_v47 = vsel %vm1107_vm7, %v3005_v1, %v516_v28  ;;  %v952_v61 = vrot.slane %v3383_v4, 3 }
  0x97   : > { %1085 = vrot.lane.b32.xlu0 %v1050_v14, %s2954_s11  ;;  %v1148_v1 = vsel %vm1144_vm8, %v1111_v47, %v590_v19  ;;  %v948_v19 = vrot.slane %v3337_v32, 3  ;;  %v455_v47 = vrot.slane %v3337_v32, 1 }
  0x98   : > { %531 = vrot.lane.b32.xlu1 %v448_v29, %s2950_s28  ;;  %v1185_v62 = vsel %vm1181_vm9, %v1148_v1, %v636_v27  ;;  %v3416_v39 = vor.u32 %v952_v61, %v951_v23 }
  0x99   : > { %v756_v40 = vpop.permute.xlu0 %755  ;;  %v949_v29 = vor.u32 %v948_v19, %v947_v17  ;;  %v459_v56 = vor.u32 %v3340_v33, %v455_v47  ;;  %v573_v33 = vrot.slane %v3368_v44, 1 }
  0x9a   : > { %v758_v45 = vpop.permute.xlu1 %757  ;;  %v1220_v59 = vsel %vm1218_vm10, %v1183_v55, %v756_v40 }
  0x9b   : > { %603 = vrot.lane.b32.xlu0 %v3273_v50, %s2948_s26  ;;  %v1257_v12 = vsel %vm1255_vm11, %v1220_v59, %v3313_v13  ;;  %v1222_v15 = vsel %vm1218_vm10, %v1185_v62, %v758_v45  ;;  %v950_v40 = vsel %vm911_vm4, %v3306_v6, %v949_v29  ;;  %v954_v43 = vsel %vm911_vm4, %v949_v29, %v3416_v39 }
  0x9c   : > { %605 = vrot.lane.b32.xlu1 %v570_v41, %s2948_s26  ;;  %v1259_v14 = vsel %vm1255_vm11, %v1222_v15, %v832_v34  ;;  %v451_v45 = vor.u32 %v3291_v57, %v447_v25  ;;  %v463_v57 = vrot.slane %v3383_v4, 1  ;;  %v3444_v25 = vld [vmem:[%s3002_s24 + $0x68] sm:$0xff]   ;;  %v714_v62 = vrot.slane %v3383_v4, 2 }
  0x9d   : > { %v876_v49 = vpop.permute.xlu0 %875  ;;  %v3456_v55 = vshll.u32 %v3444_v25, 16  ;;  %v3459_v58 = vshrl.u32 %v3444_v25, 16 }
  0x9e   : > { %v878_v50 = vpop.permute.xlu1 %877  ;;  %v1294_v16 = vsel %vm4821_vm12, %v1257_v12, %v876_v49  ;;  %v456_v1 = vsel %vm364_vm2, %v451_v45, %v455_v47 }
  0x9f   : > { %649 = vrot.lane.b32.xlu0 %v570_v41, %s2947_s25  ;;  %v1296_v28 = vsel %vm4821_vm12, %v1259_v14, %v878_v50  ;;  %v1051_v41 = vrot.slane %v3325_v18, 3  ;;  %v464_v50 = vsel %vm364_vm2, %v459_v56, %v463_v57  ;;  %v717_v12 = vrot.slane %v3459_v58, 1 }
  0xa0   : > { %651 = vrot.lane.b32.xlu1 %v3363_v46, %s2947_s25  ;;  %v955_v45 = vrot.slane %v3459_v58, 2 }
  0xa1   : > { %v998_v63 = vpop.permute.xlu0 %997  ;;  %v1052_v6 = vsel %vm1033_vm5, %v1049_v21, %v1051_v41  ;;  %v1054_v52 = vsel %vm1033_vm5, %v1051_v41, %v1053_v3 }
  0xa2   : > { %v1000_v11 = vpop.permute.xlu1 %999  ;;  %v1331_v13 = vsel %vm4820_vm13, %v1294_v16, %v998_v63 }
  0xa3   : > { %771 = vrot.lane.b32.xlu0 %v708_v60, %s2951_s8  ;;  %v1333_v30 = vsel %vm4820_vm13, %v1296_v28, %v1000_v11  ;;  %v713_v60 = vrot.slane %v3386_v8, 1  ;;  %v575_v11 = vrot.slane %v3444_v25, 1 }
  0xa4   : > { %773 = vrot.lane.b32.xlu1 %v712_v0, %s2951_s8  ;;  %v574_v0 = vsel %vm549_vm0, %v571_v35, %v573_v33 }
  0xa5   : > { %v1072_v20 = vpop.permute.xlu0 %1071  ;;  %v715_v16 = vor.u32 %v714_v62, %v713_v60  ;;  %v3477_v19 = vsel %vm549_vm0, %v573_v33, %v575_v11 }
  0xa6   : > { %v518_v24 = vpop.permute.xlu1 %517  ;;  %v1368_v27 = vsel %vm4819_vm14, %v1331_v13, %v1072_v20  ;;  %v3482_v13 = vld [vmem:[%s3002_s24 + $0x70] sm:$0xff]  }
  0xa7   : > { %845 = vrot.lane.b32.xlu0 %v3304_v5, %s2949_s27  ;;  %2771 = vmatprep.mubr.msk.bf16.mxu0 %vm4818_vm15, %v1368_v27  ;;  %v1113_v23 = vsel %vm1107_vm7, %v3008_v2, %v518_v24  ;;  %v716_v27 = vsel %vm669_vm3, %v3365_v53, %v715_v16  ;;  %v3497_v2 = vshll.u32 %v3482_v13, 16  ;;  %v3500_v24 = vshrl.u32 %v3482_v13, 16 }
  0xa8   : > { %847 = vrot.lane.b32.xlu1 %v812_v51, %s2949_s27  ;;  %v817_v41 = vrot.slane %v3482_v13, 2 }
  0xa9   : > { %v1074_v31 = vpop.permute.xlu0 %1073 }
  0xaa   : > { %v3418_v34 = vpop.permute.xlu1 %519  ;;  %v1370_v5 = vsel %vm4819_vm14, %v1333_v30, %v1074_v31 }
  0xab   : > { %891 = vrot.lane.b32.xlu0 %v812_v51, %s2952_s9  ;;  %2772 = vmatmul.mubr.msk.bf16.vlgmr.msra.gmra.mrb[0].mxu0 %vm4818_vm15, %v1370_v5  ;;  %v718_v51 = vrot.slane %v3456_v55, 2  ;;  %v1115_v5 = vsel %vm1107_vm7, %v3019_v9, %v3418_v34  ;;  %v956_v9 = vrot.slane %v3456_v55, 3 }
  0xac   : > { %893 = vrot.lane.b32.xlu1 %v3414_v38, %s2952_s9 }
  0xad   : > { %v592_v42 = vpop.permute.xlu0 %591  ;;  %v3479_v35 = vor.u32 %v718_v51, %v717_v12 }
  0xae   : > { %v594_v48 = vpop.permute.xlu1 %593  ;;  %v1150_v61 = vsel %vm1144_vm8, %v1113_v23, %v592_v42 }
  0xaf   : > { %1013 = vrot.lane.b32.xlu0 %v950_v40, %s2953_s10  ;;  %v720_v29 = vsel %vm669_vm3, %v715_v16, %v3479_v35  ;;  %v1152_v42 = vsel %vm1144_vm8, %v1115_v5, %v594_v48  ;;  %v471_v16 = vrot.slane %v3456_v55, 1 }
  0xb0   : > { %1015 = vrot.lane.b32.xlu1 %v954_v43, %s2953_s10 }
  0xb1   : > { %v638_v49 = vpop.permute.xlu0 %637  ;;  %v475_v4 = vor.u32 %v3459_v58, %v471_v16  ;;  %v577_v58 = vrot.slane %v3482_v13, 1 }
  0xb2   : > { %v640_v32 = vpop.permute.xlu1 %639  ;;  %v1187_v14 = vsel %vm1181_vm9, %v1150_v61, %v638_v49  ;;  %v959_v49 = vrot.slane %v3500_v24, 2 }
  0xb3   : > { %1087 = vrot.lane.b32.xlu0 %v1052_v6, %s2954_s11  ;;  %v1189_v34 = vsel %vm1181_vm9, %v1152_v42, %v640_v32 }
  0xb4   : > { %533 = vrot.lane.b32.xlu1 %v456_v1, %s2950_s28 }
  0xb5   : > { %v760_v21 = vpop.permute.xlu0 %759 }
  0xb6   : > { %v762_v59 = vpop.permute.xlu1 %761  ;;  %v1224_v30 = vsel %vm1218_vm10, %v1187_v14, %v760_v21  ;;  %v957_v21 = vor.u32 %v956_v9, %v955_v45 }
  0xb7   : > { %1089 = vrot.lane.b32.xlu0 %v1054_v52, %s2954_s11  ;;  %v1226_v1 = vsel %vm1218_vm10, %v1189_v34, %v762_v59 }
  0xb8   : > { %535 = vrot.lane.b32.xlu1 %v464_v50, %s2950_s28 }
  0xb9   : > { %v834_v63 = vpop.permute.xlu0 %833 }
  0xba   : > { %v836_v15 = vpop.permute.xlu1 %835  ;;  %v1261_v53 = vsel %vm1255_vm11, %v1224_v30, %v834_v63  ;;  %v958_v63 = vsel %vm911_vm4, %v3416_v39, %v957_v21  ;;  %v721_v30 = vrot.slane %v3500_v24, 1 }
  0xbb   : > { %607 = vrot.lane.b32.xlu0 %v3363_v46, %s2948_s26  ;;  %v815_v46 = vrot.slane %v3444_v25, 2  ;;  %v1263_v52 = vsel %vm1255_vm11, %v1226_v1, %v836_v15  ;;  %v467_v15 = vor.u32 %v3386_v8, %v463_v57  ;;  %v479_v8 = vrot.slane %v3497_v2, 1  ;;  %v3563_v57 = vld [vmem:[%s3002_s24 + $0x78] sm:$0xff]  }
  0xbc   : > { %609 = vrot.lane.b32.xlu1 %v574_v0, %s2948_s26  ;;  %v3575_v14 = vshll.u32 %v3563_v57, 16 }
  0xbd   : > { %v880_v17 = vpop.permute.xlu0 %879  ;;  %v816_v40 = vsel %vm791_vm1, %v813_v22, %v815_v46  ;;  %v960_v22 = vrot.slane %v3497_v2, 3  ;;  %v3533_v59 = vsel %vm791_vm1, %v815_v46, %v817_v41  ;;  %v472_v46 = vsel %vm364_vm2, %v467_v15, %v471_v16 }
  0xbe   : > { %v882_v20 = vpop.permute.xlu1 %881  ;;  %v1298_v43 = vsel %vm4821_vm12, %v1261_v53, %v880_v17  ;;  %v578_v53 = vsel %vm549_vm0, %v575_v11, %v577_v58 }
  0xbf   : > { %653 = vrot.lane.b32.xlu0 %v574_v0, %s2947_s25  ;;  %v1300_v32 = vsel %vm4821_vm12, %v1263_v52, %v882_v20  ;;  %v3535_v60 = vor.u32 %v960_v22, %v959_v49  ;;  %v1055_v0 = vrot.slane %v3444_v25, 3  ;;  %v1057_v20 = vrot.slane %v3482_v13, 3 }
  0xc0   : > { %655 = vrot.lane.b32.xlu1 %v3477_v19, %s2947_s25 }
  0xc1   : > { %v1002_v28 = vpop.permute.xlu0 %1001  ;;  %v962_v51 = vsel %vm911_vm4, %v957_v21, %v3535_v60  ;;  %v1056_v39 = vsel %vm1033_vm5, %v1053_v3, %v1055_v0  ;;  %v1058_v3 = vsel %vm1033_vm5, %v1055_v0, %v1057_v20 }
  0xc2   : > { %v1004_v31 = vpop.permute.xlu1 %1003  ;;  %v1335_v47 = vsel %vm4820_vm13, %v1298_v43, %v1002_v28  ;;  %v3578_v28 = vshrl.u32 %v3563_v57, 16  ;;  %v726_v43 = vrot.slane %v3575_v14, 2 }
  0xc3   : > { %775 = vrot.lane.b32.xlu0 %v716_v27, %s2951_s8  ;;  %v1337_v50 = vsel %vm4820_vm13, %v1300_v32, %v1004_v31  ;;  %v480_v27 = vsel %vm364_vm2, %v475_v4, %v479_v8  ;;  %v722_v31 = vrot.slane %v3497_v2, 2 }
  0xc4   : > { %777 = vrot.lane.b32.xlu1 %v720_v29, %s2951_s8  ;;  %v725_v42 = vrot.slane %v3578_v28, 1  ;;  %v963_v15 = vrot.slane %v3578_v28, 2 }
  0xc5   : > { %v1076_v6 = vpop.permute.xlu0 %1075  ;;  %v723_v9 = vor.u32 %v722_v31, %v721_v30 }
  0xc6   : > { %v522_v48 = vpop.permute.xlu1 %521  ;;  %v1372_v56 = vsel %vm4819_vm14, %v1335_v47, %v1076_v6  ;;  %v3598_v11 = vor.u32 %v726_v43, %v725_v42  ;;  %v3601_v6 = vld [vmem:[%s3002_s24 + $0x80] sm:$0xff]  }
  0xc7   : > { %849 = vrot.lane.b32.xlu0 %v3414_v38, %s2949_s27  ;;  %2775 = vmatprep.mubr.msk.bf16.mxu0 %vm4818_vm15, %v1372_v56  ;;  %v1117_v22 = vsel %vm1107_vm7, %v3058_v36, %v522_v48  ;;  %v724_v56 = vsel %vm669_vm3, %v3479_v35, %v723_v9  ;;  %v3616_v36 = vshll.u32 %v3601_v6, 16  ;;  %v3619_v48 = vshrl.u32 %v3601_v6, 16 }
  0xc8   : > { %851 = vrot.lane.b32.xlu1 %v816_v40, %s2949_s27  ;;  %v728_v21 = vsel %vm669_vm3, %v723_v9, %v3598_v11  ;;  %v821_v0 = vrot.slane %v3601_v6, 2  ;;  %v487_v9 = vrot.slane %v3575_v14, 1 }
  0xc9   : > { %v1078_v33 = vpop.permute.xlu0 %1077 }
  0xca   : > { %v3537_v62 = vpop.permute.xlu1 %523  ;;  %v1374_v38 = vsel %vm4819_vm14, %v1337_v50, %v1078_v33  ;;  %v491_v2 = vor.u32 %v3578_v28, %v487_v9  ;;  %v581_v28 = vrot.slane %v3601_v6, 1 }
  0xcb   : > { %895 = vrot.lane.b32.xlu0 %v816_v40, %s2952_s9  ;;  %2776 = vmatmul.mubr.msk.bf16.gmra.mrb[4].mxu0 %vm4818_vm15, %v1374_v38  ;;  %v579_v40 = vrot.slane %v3563_v57, 1  ;;  %v1119_v38 = vsel %vm1107_vm7, %v3118_v10, %v3537_v62  ;;  %v964_v10 = vrot.slane %v3575_v14, 3 }
  0xcc   : > { %897 = vrot.lane.b32.xlu1 %v3533_v59, %s2952_s9 }
  0xcd   : > { %v596_v12 = vpop.permute.xlu0 %595  ;;  %v3596_v47 = vsel %vm549_vm0, %v577_v58, %v579_v40 }
  0xce   : > { %v598_v17 = vpop.permute.xlu1 %597  ;;  %v1154_v1 = vsel %vm1144_vm8, %v1117_v22, %v596_v12 }
  0xcf   : > { %1017 = vrot.lane.b32.xlu0 %v958_v63, %s2953_s10  ;;  %v1156_v12 = vsel %vm1144_vm8, %v1119_v38, %v598_v17 }
  0xd0   : > { %1019 = vrot.lane.b32.xlu1 %v962_v51, %s2953_s10 }
  0xd1   : > { %v642_v23 = vpop.permute.xlu0 %641 }
  0xd2   : > { %v644_v55 = vpop.permute.xlu1 %643  ;;  %v1191_v52 = vsel %vm1181_vm9, %v1154_v1, %v642_v23  ;;  %v967_v23 = vrot.slane %v3619_v48, 2 }
  0xd3   : > { %1091 = vrot.lane.b32.xlu0 %v1056_v39, %s2954_s11  ;;  %v1193_v62 = vsel %vm1181_vm9, %v1156_v12, %v644_v55 }
  0xd4   : > { %537 = vrot.lane.b32.xlu1 %v472_v46, %s2950_s28 }
  0xd5   : > { %v764_v61 = vpop.permute.xlu0 %763 }
  0xd6   : > { %v766_v29 = vpop.permute.xlu1 %765  ;;  %v1228_v50 = vsel %vm1218_vm10, %v1191_v52, %v764_v61  ;;  %v965_v61 = vor.u32 %v964_v10, %v963_v15  ;;  %v260_v10 = vld [vmem:[%s3002_s24 + $0x90] sm:$0xf] }
  0xd7   : > { %1093 = vrot.lane.b32.xlu0 %v1058_v3, %s2954_s11  ;;  %v1230_v46 = vsel %vm1218_vm10, %v1193_v62, %v766_v29  ;;  %v261_v62 = vld [vmem:[%s3002_s24 + $0x94] sm:$0xf] }
  0xd8   : > { %539 = vrot.lane.b32.xlu1 %v480_v27, %s2950_s28 }
  0xd9   : > { %v838_v5 = vpop.permute.xlu0 %837 }
  0xda   : > { %v840_v45 = vpop.permute.xlu1 %839  ;;  %v1265_v35 = vsel %vm1255_vm11, %v1228_v50, %v838_v5  ;;  %v966_v5 = vsel %vm911_vm4, %v3535_v60, %v965_v61  ;;  %v729_v50 = vrot.slane %v3619_v48, 1 }
  0xdb   : > { %611 = vrot.lane.b32.xlu0 %v3477_v19, %s2948_s26  ;;  %v819_v19 = vrot.slane %v3563_v57, 2  ;;  %v1267_v3 = vsel %vm1255_vm11, %v1230_v46, %v840_v45  ;;  %v483_v45 = vor.u32 %v3500_v24, %v479_v8  ;;  %v495_v24 = vrot.slane %v3616_v36, 1  ;;  %v3684_v8 = vld [vmem:[%s3002_s24 + $0x88] sm:$0xff]  }
  0xdc   : > { %613 = vrot.lane.b32.xlu1 %v578_v53, %s2948_s26  ;;  %v3696_v52 = vshll.u32 %v3684_v8, 16 }
  0xdd   : > { %v884_v34 = vpop.permute.xlu0 %883  ;;  %v820_v63 = vsel %vm791_vm1, %v817_v41, %v819_v19  ;;  %v968_v41 = vrot.slane %v3616_v36, 3  ;;  %v3654_v29 = vsel %vm791_vm1, %v819_v19, %v821_v0  ;;  %v488_v19 = vsel %vm364_vm2, %v483_v45, %v487_v9 }
  0xde   : > { %v886_v49 = vpop.permute.xlu1 %885  ;;  %v1302_v51 = vsel %vm4821_vm12, %v1265_v35, %v884_v34  ;;  %v582_v35 = vsel %vm549_vm0, %v579_v40, %v581_v28 }
  0xdf   : > { %657 = vrot.lane.b32.xlu0 %v578_v53, %s2947_s25  ;;  %v1304_v55 = vsel %vm4821_vm12, %v1267_v3, %v886_v49  ;;  %v3656_v30 = vor.u32 %v968_v41, %v967_v23  ;;  %v1059_v53 = vrot.slane %v3563_v57, 3  ;;  %v1061_v49 = vrot.slane %v3601_v6, 3 }
  0xe0   : > { %659 = vrot.lane.b32.xlu1 %v3596_v47, %s2947_s25  ;;  %v3724_v41 = vcombine.low %v260_v10, %v261_v62 }
  0xe1   : > { %v1006_v32 = vpop.permute.xlu0 %1005  ;;  %v970_v43 = vsel %vm911_vm4, %v965_v61, %v3656_v30  ;;  %v1060_v60 = vsel %vm1033_vm5, %v1057_v20, %v1059_v53  ;;  %v1062_v20 = vsel %vm1033_vm5, %v1059_v53, %v1061_v49 }
  0xe2   : > { %v1008_v33 = vpop.permute.xlu1 %1007  ;;  %v1339_v16 = vsel %vm4820_vm13, %v1302_v51, %v1006_v32  ;;  %v3699_v32 = vshrl.u32 %v3684_v8, 16  ;;  %v734_v51 = vrot.slane %v3696_v52, 2 }
  0xe3   : > { %779 = vrot.lane.b32.xlu0 %v724_v56, %s2951_s8  ;;  %v1341_v27 = vsel %vm4820_vm13, %v1304_v55, %v1008_v33  ;;  %v496_v56 = vsel %vm364_vm2, %v491_v2, %v495_v24  ;;  %v730_v33 = vrot.slane %v3616_v36, 2 }
  0xe4   : > { %781 = vrot.lane.b32.xlu1 %v728_v21, %s2951_s8  ;;  %v733_v12 = vrot.slane %v3699_v32, 1 }
  0xe5   : > { %v1080_v39 = vpop.permute.xlu0 %1079 }
  0xe6   : > { %v3641_v17 = vpop.permute.xlu1 %525  ;;  %v1376_v4 = vsel %vm4819_vm14, %v1339_v16, %v1080_v39  ;;  %v731_v16 = vor.u32 %v730_v33, %v729_v50  ;;  %v3722_v23 = vor.u32 %v734_v51, %v733_v12 }
  0xe7   : > { %853 = vrot.lane.b32.xlu0 %v3533_v59, %s2949_s27  ;;  %2779 = vmatprep.mubr.msk.bf16.mxu0 %vm4818_vm15, %v1376_v4  ;;  %v1121_v4 = vsel %vm1107_vm7, %v3146_v26, %v3641_v17  ;;  %v738_v26 = vshrl.u32 %v3724_v41, 16  ;;  %v741_v17 = vshll.u32 %v3724_v41, 16 }
  0xe8   : > { %855 = vrot.lane.b32.xlu1 %v820_v63, %s2949_s27  ;;  %v732_v55 = vsel %vm669_vm3, %v3598_v11, %v731_v16 }
  0xe9   : > { %v1082_v58 = vpop.permute.xlu0 %1081  ;;  %v976_v2 = vrot.slane %v741_v17, 3 }
  0xea   : > { %v3658_v31 = vpop.permute.xlu1 %527  ;;  %v1378_v59 = vsel %vm4819_vm14, %v1341_v27, %v1082_v58  ;;  %v736_v58 = vsel %vm669_vm3, %v731_v16, %v3722_v23  ;;  %v499_v16 = vor.u32 %v3619_v48, %v495_v24 }
  0xeb   : > { %899 = vrot.lane.b32.xlu0 %v820_v63, %s2952_s9  ;;  %2780 = vmatmul.mubr.msk.bf16.gmra.mrb[8].mxu0 %vm4818_vm15, %v1378_v59  ;;  %v3709_v63 = vrot.slane %v3684_v8, 1  ;;  %v1123_v53 = vsel %vm1107_vm7, %v3194_v54, %v3658_v31  ;;  %v972_v54 = vrot.slane %v3696_v52, 3 }
  0xec   : > { %901 = vrot.lane.b32.xlu1 %v3654_v29, %s2952_s9 }
  0xed   : > { %v600_v42 = vpop.permute.xlu0 %599  ;;  %v3720_v40 = vsel %vm549_vm0, %v581_v28, %v3709_v63 }
  0xee   : > { %v602_v34 = vpop.permute.xlu1 %601  ;;  %v1158_v3 = vsel %vm1144_vm8, %v1121_v4, %v600_v42 }
  0xef   : > { %1021 = vrot.lane.b32.xlu0 %v966_v5, %s2953_s10  ;;  %v1160_v45 = vsel %vm1144_vm8, %v1123_v53, %v602_v34 }
  0xf0   : > { %1023 = vrot.lane.b32.xlu1 %v970_v43, %s2953_s10  ;;  %v3751_v43 = vrot.slane %v3724_v41, 2 }
  0xf1   : > { %v646_v22 = vpop.permute.xlu0 %645 }
  0xf2   : > { %v648_v14 = vpop.permute.xlu1 %647  ;;  %v1195_v61 = vsel %vm1181_vm9, %v1158_v3, %v646_v22  ;;  %v1065_v3 = vrot.slane %v3724_v41, 3 }
  0xf3   : > { %1095 = vrot.lane.b32.xlu0 %v1060_v60, %s2954_s11  ;;  %v971_v60 = vrot.slane %v3699_v32, 2  ;;  %v1197_v31 = vsel %vm1181_vm9, %v1160_v45, %v648_v14  ;;  %v743_v45 = vrot.slane %v741_v17, 2 }
  0xf4   : > { %541 = vrot.lane.b32.xlu1 %v488_v19, %s2950_s28 }
  0xf5   : > { %v768_v1 = vpop.permute.xlu0 %767  ;;  %v973_v28 = vor.u32 %v972_v54, %v971_v60 }
  0xf6   : > { %v770_v21 = vpop.permute.xlu1 %769  ;;  %v1232_v59 = vsel %vm1218_vm10, %v1195_v61, %v768_v1 }
  0xf7   : > { %1097 = vrot.lane.b32.xlu0 %v1062_v20, %s2954_s11  ;;  %v1234_v34 = vsel %vm1218_vm10, %v1197_v31, %v770_v21  ;;  %v974_v51 = vsel %vm911_vm4, %v3656_v30, %v973_v28 }
  0xf8   : > { %543 = vrot.lane.b32.xlu1 %v496_v56, %s2950_s28 }
  0xf9   : > { %v842_v38 = vpop.permute.xlu0 %841 }
  0xfa   : > { %v844_v15 = vpop.permute.xlu1 %843  ;;  %v1269_v42 = vsel %vm1255_vm11, %v1232_v59, %v842_v38 }
  0xfb   : > { %615 = vrot.lane.b32.xlu0 %v3596_v47, %s2948_s26  ;;  %v823_v47 = vrot.slane %v3684_v8, 2  ;;  %v1271_v56 = vsel %vm1255_vm11, %v1234_v34, %v844_v15  ;;  %v1063_v15 = vrot.slane %v3684_v8, 3 }
  0xfc   : > { %617 = vrot.lane.b32.xlu1 %v582_v35, %s2948_s26 }
  0xfd   : > { %v888_v39 = vpop.permute.xlu0 %887  ;;  %v824_v11 = vsel %vm791_vm1, %v821_v0, %v823_v47  ;;  %v975_v0 = vrot.slane %v738_v26, 2  ;;  %v3777_v21 = vsel %vm791_vm1, %v823_v47, %v3751_v43  ;;  %v262_v47 = vld [vmem:[%s3002_s24 + $0x98] sm:$0xf]  ;;  %v1064_v30 = vsel %vm1033_vm5, %v1061_v49, %v1063_v15 }
  0xfe   : > { %v890_v46 = vpop.permute.xlu1 %889  ;;  %v1306_v9 = vsel %vm4821_vm12, %v1269_v42, %v888_v39  ;;  %v503_v39 = vrot.slane %v3696_v52, 1  ;;  %v2715_v52 = vcombine.low %v262_v47, %v262_v47 }
  0xff   : > { %661 = vrot.lane.b32.xlu0 %v582_v35, %s2947_s25  ;;  %v1308_v14 = vsel %vm4821_vm12, %v1271_v56, %v890_v46  ;;  %v3779_v38 = vor.u32 %v976_v2, %v975_v0  ;;  %v2713_v35 = vcombine.low %v260_v10, %v260_v10 }
 0x100   : > { %663 = vrot.lane.b32.xlu1 %v3720_v40, %s2947_s25  ;;  %v504_v36 = vsel %vm364_vm2, %v499_v16, %v503_v39  ;;  %v507_v48 = vor.u32 %v3699_v32, %v503_v39  ;;  %v750_v53 = vshll.u32 %v2715_v52, 16  ;;  %v629_v32 = vrot.slane %v3724_v41, 1 }
 0x101   : > { %v1010_v27 = vpop.permute.xlu0 %1009  ;;  %v978_v10 = vsel %vm911_vm4, %v973_v28, %v3779_v38  ;;  %v509_v46 = vshll.u32 %v2713_v35, 16  ;;  %v585_v59 = vrot.slane %v2713_v35, 1  ;;  %v631_v54 = vrot.slane %v2715_v52, 1 }
 0x102   : > { %v1012_v5 = vpop.permute.xlu1 %1011  ;;  %v1343_v22 = vsel %vm4820_vm13, %v1306_v9, %v1010_v27  ;;  %v1066_v27 = vsel %vm1033_vm5, %v1063_v15, %v1065_v3 }
 0x103   : > { %783 = vrot.lane.b32.xlu0 %v732_v55, %s2951_s8  ;;  %v1345_v50 = vsel %vm4820_vm13, %v1308_v14, %v1012_v5  ;;  %v511_v24 = vrot.slane %v509_v46, 1  ;;  %v747_v5 = vshrl.u32 %v2715_v52, 16  ;;  %v586_v60 = vsel %vm549_vm0, %v3709_v63, %v585_v59  ;;  %v3833_v14 = vld [vmem:[%s3002_s24 + $0xa0] ss:$0 sps:$4 sm:$0xff]  }
 0x104   : > { %785 = vrot.lane.b32.xlu1 %v736_v58, %s2951_s8 }
 0x105   : > { %v1084_v19 = vpop.permute.xlu0 %1083  ;;  %v512_v49 = vsel %vm364_vm2, %v507_v48, %v511_v24  ;;  %v749_v31 = vrot.slane %v747_v5, 1 }
 0x106   : > { %v3765_v20 = vpop.permute.xlu1 %529  ;;  %v1380_v1 = vsel %vm4819_vm14, %v1343_v22, %v1084_v19  ;;  %v752_v22 = vrot.slane %v750_v53, 2  ;;  %v263_v19 = vld [vmem:[%s3002_s24 + $0x9c] sm:$0xf] }
 0x107   : > { %857 = vrot.lane.b32.xlu0 %v3654_v29, %s2949_s27  ;;  %2783 = vmatprep.mubr.msk.bf16.mxu0 %vm4818_vm15, %v1380_v1  ;;  %v3829_v17 = vcombine.low %v262_v47, %v263_v19  ;;  %v632_v1 = vsel %vm549_vm0, %v629_v32, %v631_v54  ;;  %v1069_v19 = vrot.slane %v3833_v14, 3 }
 0x108   : > { %859 = vrot.lane.b32.xlu1 %v824_v11, %s2949_s27  ;;  %v753_v56 = vor.u32 %v752_v22, %v749_v31 }
 0x109   : > { %v1086_v33 = vpop.permute.xlu0 %1085  ;;  %v980_v35 = vshrl.u32 %v3829_v17, 16  ;;  %v871_v47 = vrot.slane %v3829_v17, 2 }
 0x10a   : > { %v3781_v12 = vpop.permute.xlu1 %531  ;;  %v1382_v29 = vsel %vm4819_vm14, %v1345_v50, %v1086_v33  ;;  %v827_v50 = vrot.slane %v2715_v52, 2 }
 0x10b   : > { %903 = vrot.lane.b32.xlu0 %v824_v11, %s2952_s9  ;;  %2784 = vmatmul.mubr.msk.bf16.gmra.mrb[12].mxu0 %vm4818_vm15, %v1382_v29  ;;  %v740_v11 = vrot.slane %v738_v26, 1  ;;  %v630_v26 = vsel %vm549_vm0, %v3709_v63, %v629_v32  ;;  %v983_v29 = vshll.u32 %v3829_v17, 16  ;;  %v982_v48 = vrot.slane %v980_v35, 2 }
 0x10c   : > { %905 = vrot.lane.b32.xlu1 %v3777_v21, %s2952_s9  ;;  %v828_v39 = vsel %vm791_vm1, %v3751_v43, %v827_v50 }
 0x10d   : > { %v604_v62 = vpop.permute.xlu0 %603  ;;  %v744_v2 = vor.u32 %v743_v45, %v740_v11  ;;  %v985_v24 = vrot.slane %v983_v29, 3 }
 0x10e   : > { %v3797_v4 = vpop.permute.xlu1 %605 }
 0x10f   : > { %1025 = vrot.lane.b32.xlu0 %v974_v51, %s2953_s10  ;;  %v745_v63 = vsel %vm669_vm3, %v3722_v23, %v744_v2  ;;  %v1127_v23 = vsel %vm1107_vm7, %v3253_v37, %v3781_v12  ;;  %v986_v32 = vor.u32 %v985_v24, %v982_v48 }
 0x110   : > { %1027 = vrot.lane.b32.xlu1 %v978_v10, %s2953_s10  ;;  %v754_v10 = vsel %vm669_vm3, %v744_v2, %v753_v56 }
 0x111   : > { %v650_v55 = vpop.permute.xlu0 %649 }
 0x112   : > { %v652_v61 = vpop.permute.xlu1 %651 }
 0x113   : > { %1099 = vrot.lane.b32.xlu0 %v1064_v30, %s2954_s11  ;;  %v873_v30 = vrot.slane %v3833_v14, 2 }
 0x114   : > { %545 = vrot.lane.b32.xlu1 %v504_v36, %s2950_s28 }
 0x115   : > { %v772_v58 = vpop.permute.xlu0 %771  ;;  %v874_v45 = vsel %vm791_vm1, %v871_v47, %v873_v30 }
 0x116   : > { %v774_v42 = vpop.permute.xlu1 %773 }
 0x117   : > { %1101 = vrot.lane.b32.xlu0 %v1066_v27, %s2954_s11 }
 0x118   : > { %547 = vrot.lane.b32.xlu1 %v512_v49, %s2950_s28 }
 0x119   : > { %v846_v9 = vpop.permute.xlu0 %845 }
 0x11a   : > { %v848_v0 = vpop.permute.xlu1 %847 }
 0x11b   : > { %619 = vrot.lane.b32.xlu0 %v3720_v40, %s2948_s26  ;;  %v1125_v40 = vsel %vm1107_vm7, %v3215_v7, %v3765_v20  ;;  %v989_v7 = vshrl.u32 %v3833_v14, 16  ;;  %v992_v20 = vshll.u32 %v3833_v14, 16 }
 0x11c   : > { %621 = vrot.lane.b32.xlu1 %v586_v60, %s2948_s26  ;;  %v1162_v33 = vsel %vm1144_vm8, %v1125_v40, %v604_v62  ;;  %v2936_v40 = vld [vmem:[%s3002_s24 + $0x50] sm:$0xff]   ;;  %s222_s26 = scalar_lea.vmem %s4817_s5, %s4969_s21 }
 0x11d   : > { %v892_v34 = vpop.permute.xlu0 %891  ;;  %v1199_v51 = vsel %vm1181_vm9, %v1162_v33, %v650_v55  ;;  %v1164_v55 = vsel %vm1144_vm8, %v1127_v23, %v3797_v4  ;;  %v991_v27 = vrot.slane %v989_v7, 2 }
 0x11e   : > { %v894_v28 = vpop.permute.xlu1 %893  ;;  %v1236_v62 = vsel %vm1218_vm10, %v1199_v51, %v772_v58  ;;  %v1201_v52 = vsel %vm1181_vm9, %v1164_v55, %v652_v61  ;;  %v994_v58 = vrot.slane %v992_v20, 3  ;;  %v872_v61 = vsel %vm791_vm1, %v3751_v43, %v871_v47 }
 0x11f   : > { %665 = vrot.lane.b32.xlu0 %v630_v26, %s2947_s25  ;;  %v1273_v46 = vsel %vm1255_vm11, %v1236_v62, %v846_v9  ;;  %v1238_v49 = vsel %vm1218_vm10, %v1201_v52, %v774_v42  ;;  %v1067_v43 = vrot.slane %v3829_v17, 3 }
 0x120   : > { %667 = vrot.lane.b32.xlu1 %v632_v1, %s2947_s25  ;;  %v1310_v36 = vsel %vm4821_vm12, %v1273_v46, %v892_v34  ;;  %v1275_v4 = vsel %vm1255_vm11, %v1238_v49, %v848_v0  ;;  %v995_v9 = vor.u32 %v994_v58, %v991_v27  ;;  %v1642_v27 = vlaneseq }
 0x121   : > { %v1014_v15 = vpop.permute.xlu0 %1013  ;;  %v1312_v53 = vsel %vm4821_vm12, %v1275_v4, %v894_v28  ;;  %v1068_v26 = vsel %vm1033_vm5, %v1065_v3, %v1067_v43 }
 0x122   : > { %v1016_v16 = vpop.permute.xlu1 %1015  ;;  %v1347_v37 = vsel %vm4820_vm13, %v1310_v36, %v1014_v15  ;;  %v996_v22 = vsel %vm911_vm4, %v986_v32, %v995_v9 }
 0x123   : > { %787 = vrot.lane.b32.xlu0 %v745_v63, %s2951_s8  ;;  %v1349_v42 = vsel %vm4820_vm13, %v1312_v53, %v1016_v16 }
 0x124   : > { %789 = vrot.lane.b32.xlu1 %v754_v10, %s2951_s8 }
 0x125   : > { %v1088_v12 = vpop.permute.xlu0 %1087 }
 0x126   : > { %v534_v59 = vpop.permute.xlu1 %533  ;;  %v1384_v5 = vsel %vm4819_vm14, %v1347_v37, %v1088_v12 }
 0x127   : > { %861 = vrot.lane.b32.xlu0 %v3777_v21, %s2949_s27  ;;  %2787 = vmatprep.mubr.msk.bf16.mxu0 %vm4818_vm15, %v1384_v5  ;;  %v987_v21 = vsel %vm911_vm4, %v3779_v38, %v986_v32  ;;  %v1070_v38 = vsel %vm1033_vm5, %v1067_v43, %v1069_v19  ;;  %v1129_v33 = vsel %vm1107_vm7, %v2936_v40, %v534_v59  ;;  %v3914_v59 = vshrl.u32 %v1642_v27, 7 }
 0x128   : > { %863 = vrot.lane.b32.xlu1 %v828_v39, %s2949_s27 }
 0x129   : > { %v1090_v11 = vpop.permute.xlu0 %1089  ;;  %v1645_v53 = vadd.s32 16, %v3914_v59 }
 0x12a   : > { %v536_v60 = vpop.permute.xlu1 %535  ;;  %v1386_v54 = vsel %vm4819_vm14, %v1349_v42, %v1090_v11  ;;  %v1644_v42 = vadd.s32 8, %v3914_v59 }
 0x12b   : > { %907 = vrot.lane.b32.xlu0 %v872_v61, %s2952_s9  ;;  %2788 = vmatmul.mubr.msk.bf16.gmra.mrb[16].mxu0 %vm4818_vm15, %v1386_v54  ;;  %v1131_v51 = vsel %vm1107_vm7, %v3325_v18, %v536_v60  ;;  %v1646_v61 = vadd.s32 24, %v3914_v59 }
 0x12c   : > { %909 = vrot.lane.b32.xlu1 %v874_v45, %s2952_s9  ;;  %v3919_v45 = vmul.u32.u64.low 3817748708, %v1645_v53  ;;  %v3920_v9 = vmul.u32.u64.high 3817748708, %v1645_v53, %v3919_v45 }
 0x12d   : > { %v608_v31 = vpop.permute.xlu0 %607 }
 0x12e   : > { %v610_v0 = vpop.permute.xlu1 %609  ;;  %v1166_v41 = vsel %vm1144_vm8, %v1129_v33, %v608_v31 }
 0x12f   : > { %1029 = vrot.lane.b32.xlu0 %v987_v21, %s2953_s10  ;;  %v1168_v10 = vsel %vm1144_vm8, %v1131_v51, %v610_v0  ;;  %v3925_v54 = vmul.u32.u64.low 3817748708, %v3914_v59  ;;  %v3926_v21 = vmul.u32.u64.high 3817748708, %v3914_v59, %v3925_v54 }
 0x130   : > { %1031 = vrot.lane.b32.xlu1 %v996_v22, %s2953_s10  ;;  %v3929_v31 = vmul.u32.u64.low 3817748708, %v1646_v61  ;;  %v3930_v22 = vmul.u32.u64.high 3817748708, %v1646_v61, %v3929_v31 }
 0x131   : > { %v654_v2 = vpop.permute.xlu0 %653 }
 0x132   : > { %v656_v34 = vpop.permute.xlu1 %655  ;;  %v1203_v3 = vsel %vm1181_vm9, %v1166_v41, %v654_v2 }
 0x133   : > { %1103 = vrot.lane.b32.xlu0 %v1068_v26, %s2954_s11  ;;  %v1205_v20 = vsel %vm1181_vm9, %v1168_v10, %v656_v34  ;;  %v3933_v26 = vmul.u32.u64.low 3817748708, %v1644_v42  ;;  %v3934_v2 = vmul.u32.u64.high 3817748708, %v1644_v42, %v3933_v26 }
 0x134   : > { %1105 = vrot.lane.b32.xlu1 %v1070_v38, %s2954_s11 }
 0x135   : > { %v776_v17 = vpop.permute.xlu0 %775  ;;  %v1696_v10 = vshrl.u32 %v3934_v2, 4  ;;  %v4008_v2 = vld [vmem:[%s4814_s2] ss:$0 sm:$0xff] }
 0x136   : > { %v778_v1 = vpop.permute.xlu1 %777  ;;  %v1240_v35 = vsel %vm1218_vm10, %v1203_v3, %v776_v17  ;;  %v1707_v3 = vshrl.u32 %v3920_v9, 4 }
 0x137   : > { %v1242_v39 = vsel %vm1218_vm10, %v1205_v20, %v778_v1 }
 0x139   : > { %v850_v56 = vpop.permute.xlu0 %849 }
 0x13a   : > { %v852_v14 = vpop.permute.xlu1 %851  ;;  %v1277_v15 = vsel %vm1255_vm11, %v1240_v35, %v850_v56 }
 0x13b   : > { %v1279_v47 = vsel %vm1255_vm11, %v1242_v39, %v852_v14 }
 0x13d   : > { %v896_v28 = vpop.permute.xlu0 %895 }
 0x13e   : > { %v898_v50 = vpop.permute.xlu1 %897  ;;  %v1314_v7 = vsel %vm4821_vm12, %v1277_v15, %v896_v28 }
 0x13f   : > { %v1316_v18 = vsel %vm4821_vm12, %v1279_v47, %v898_v50 }
 0x141   : > { %v1018_v63 = vpop.permute.xlu0 %1017 }
 0x142   : > { %v1020_v29 = vpop.permute.xlu1 %1019  ;;  %v1351_v62 = vsel %vm4820_vm13, %v1314_v7, %v1018_v63  ;;  %v1685_v63 = vshrl.u32 %v3926_v21, 4 }
 0x143   : > { %v1353_v30 = vsel %vm4820_vm13, %v1316_v18, %v1020_v29  ;;  %v1718_v29 = vshrl.u32 %v3930_v22, 4 }
 0x145   : > { %v1092_v16 = vpop.permute.xlu0 %1091  ;;  %v1719_v39 = vmul.u32 18, %v1718_v29 }
 0x146   : > { %v538_v23 = vpop.permute.xlu1 %537  ;;  %v1388_v46 = vsel %vm4819_vm14, %v1351_v62, %v1092_v16  ;;  %v1708_v62 = vmul.u32 18, %v1707_v3  ;;  %v1686_v16 = vmul.u32 18, %v1685_v63 }
 0x147   : > { %2791 = vmatprep.mubr.msk.bf16.mxu1 %vm4818_vm15, %v1388_v46  ;;  %v1133_v60 = vsel %vm1107_vm7, %v3368_v44, %v538_v23  ;;  %v1697_v46 = vmul.u32 18, %v1696_v10 }
 0x148   : > { %v1709_v18 = vsub.s32 %v1645_v53, %v1708_v62 }
 0x149   : > { %v1094_v55 = vpop.permute.xlu0 %1093 }
 0x14a   : > { %v540_v36 = vpop.permute.xlu1 %539  ;;  %v1390_v48 = vsel %vm4819_vm14, %v1353_v30, %v1094_v55  ;;  %v1687_v30 = vsub.s32 %v3914_v59, %v1686_v16  ;;  %v1720_v55 = vsub.s32 %v1646_v61, %v1719_v39  ;;  %vm2077_vm0 = vcmp.ne.s32.totalorder %v1709_v18, 0 }
 0x14b   : > { %2792 = vmatmul.mubr.msk.bf16.vlgmr.msra.gmra.mrb[0].mxu1 %vm4818_vm15, %v1390_v48  ;;  %v1135_v44 = vsel %vm1107_vm7, %v3444_v25, %v540_v36  ;;  %v1698_v48 = vsub.s32 %v1644_v42, %v1697_v46  ;;  %vm2113_vm1 = vcmp.lt.s32.totalorder %v1709_v18, 0 }
 0x14c   : > { %vm2075_vm2 = vcmp.ne.s32.totalorder %v1687_v30, 0  ;;  %vm2111_vm3 = vcmp.lt.s32.totalorder %v1687_v30, 0  ;;  %vm2078_vm4 = vcmp.ne.s32.totalorder %v1720_v55, 0  ;;  %vm2114_vm5 = vcmp.lt.s32.totalorder %v1720_v55, 0  ;;  %vm3965_vm6 = vmand %vm2113_vm1, %vm2077_vm0 }
 0x14d   : > { %v612_v24 = vpop.permute.xlu0 %611  ;;  %v2186_v53 = vadd.s32 18, %v1720_v55 }
 0x14e   : > { %v614_v52 = vpop.permute.xlu1 %613  ;;  %v1170_v43 = vsel %vm1144_vm8, %v1133_v60, %v612_v24 }
 0x14f   : > { %v1172_v1 = vsel %vm1144_vm8, %v1135_v44, %v614_v52  ;;  %v3960_v52 = vadd.s32 48, %v3914_v59 }
 0x151   : > { %v658_v37 = vpop.permute.xlu0 %657 }
 0x152   : > { %v660_v12 = vpop.permute.xlu1 %659  ;;  %v1207_v19 = vsel %vm1181_vm9, %v1170_v43, %v658_v37  ;;  %v3963_v37 = vadd.s32 32, %v3914_v59  ;;  %v3994_v43 = vadd.s32 56, %v3914_v59 }
 0x153   : > { %v1209_v14 = vsel %vm1181_vm9, %v1172_v1, %v660_v12 }
 0x154   : > { %v3988_v9 = vmul.u32.u64.low 3817748708, %v3963_v37  ;;  %v3989_v60 = vmul.u32.u64.high 3817748708, %v3963_v37, %v3988_v9 }
 0x155   : > { %v780_v58 = vpop.permute.xlu0 %779 }
 0x156   : > { %v782_v49 = vpop.permute.xlu1 %781  ;;  %v1244_v38 = vsel %vm1218_vm10, %v1207_v19, %v780_v58  ;;  %v2185_v58 = vadd.s32 18, %v1709_v18 }
 0x157   : > { %v1246_v40 = vsel %vm1218_vm10, %v1209_v14, %v782_v49 }
 0x158   : > { %v2221_v21 = vsel %vm3965_vm6, %v2185_v58, %v1709_v18  ;;  %vm4839_vm6 = vcmask 228352  }
 0x159   : > { %v854_v5 = vpop.permute.xlu0 %853 }
 0x15a   : > { %v856_v4 = vpop.permute.xlu1 %855  ;;  %v1281_v17 = vsel %vm1255_vm11, %v1244_v38, %v854_v5 }
 0x15b   : > { %v1283_v25 = vsel %vm1255_vm11, %v1246_v40, %v856_v4  ;;  %v2183_v4 = vadd.s32 18, %v1687_v30 }
 0x15d   : > { %v900_v32 = vpop.permute.xlu0 %899 }
 0x15e   : > { %v902_v11 = vpop.permute.xlu1 %901  ;;  %v1318_v56 = vsel %vm4821_vm12, %v1281_v17, %v900_v32  ;;  %v2184_v32 = vadd.s32 18, %v1698_v48 }
 0x15f   : > { %v1320_v35 = vsel %vm4821_vm12, %v1283_v25, %v902_v11  ;;  %vm3975_vm12 = vmand %vm2114_vm5, %vm2078_vm4  ;;  %v3980_v42 = vmul.u32.u64.low 3817748708, %v3960_v52  ;;  %v3981_v11 = vmul.u32.u64.high 3817748708, %v3960_v52, %v3980_v42  ;;  %vm4838_vm4 = vcmask 195584  }
 0x160   : > { %v2222_v19 = vsel %vm3975_vm12, %v2186_v53, %v1720_v55 }
 0x161   : > { %v1022_v0 = vpop.permute.xlu0 %1021  ;;  %vm4018_vm12 = vcmp.lt.s32.totalorder %v2222_v19, 16 }
 0x162   : > { %v1024_v34 = vpop.permute.xlu1 %1023  ;;  %v1355_v28 = vsel %vm4820_vm13, %v1318_v56, %v1022_v0  ;;  %v4001_v0 = vadd.s32 40, %v3914_v59  ;;  %v4023_v1 = vmul.u32.u64.low 3817748708, %v3994_v43  ;;  %v4024_v56 = vmul.u32.u64.high 3817748708, %v3994_v43, %v4023_v1 }
 0x163   : > { %v1357_v51 = vsel %vm4820_vm13, %v1320_v35, %v1024_v34  ;;  %vm3971_vm13 = vmand %vm2111_vm3, %vm2075_vm2 }
 0x164   : > { %v2219_v22 = vsel %vm3971_vm13, %v2183_v4, %v1687_v30 }
 0x165   : > { %v1096_v50 = vpop.permute.xlu0 %1095  ;;  %vm4014_vm13 = vcmp.lt.s32.totalorder %v2219_v22, 16 }
 0x166   : > { %v3945_v33 = vpop.permute.xlu1 %541  ;;  %v1392_v41 = vsel %vm4819_vm14, %v1355_v28, %v1096_v50 }
 0x167   : > { %2795 = vmatprep.mubr.msk.bf16.mxu1 %vm4818_vm15, %v1392_v41  ;;  %v1137_v14 = vsel %vm1107_vm7, %v3482_v13, %v3945_v33  ;;  %v4034_v41 = vmul.u32.u64.low 3817748708, %v4001_v0  ;;  %v4035_v3 = vmul.u32.u64.high 3817748708, %v4001_v0, %v4034_v41  ;;  %v1751_v13 = vshrl.u32 %v3981_v11, 4 }
 0x169   : > { %v1098_v15 = vpop.permute.xlu0 %1097  ;;  %v1740_v17 = vshrl.u32 %v4035_v3, 4 }
 0x16a   : > { %v544_v7 = vpop.permute.xlu1 %543  ;;  %v1394_v20 = vsel %vm4819_vm14, %v1357_v51, %v1098_v15  ;;  %vm2112_vm14 = vcmp.lt.s32.totalorder %v1698_v48, 0 }
 0x16b   : > { %2796 = vmatmul.mubr.msk.bf16.gmra.mrb[4].mxu1 %vm4818_vm15, %v1394_v20  ;;  %vm2076_vm15 = vcmp.ne.s32.totalorder %v1698_v48, 0  ;;  %v1139_v25 = vsel %vm1107_vm7, %v3563_v57, %v544_v7  ;;  %v1729_v20 = vshrl.u32 %v3989_v60, 4  ;;  %v1741_v3 = vmul.u32 18, %v1740_v17 }
 0x16c   : > { %vm3983_vm0 = vmand %vm2112_vm14, %vm2076_vm15  ;;  %vm4010_vm14 = vcmp.lt.s32.totalorder %v2221_v21, 16 }
 0x16d   : > { %v616_v23 = vpop.permute.xlu0 %615  ;;  %v2220_v26 = vsel %vm3983_vm0, %v2184_v32, %v1698_v48  ;;  %vm4840_vm0 = vcmask 261120   ;;  %v1730_v44 = vmul.u32 18, %v1729_v20 }
 0x16e   : > { %v618_v47 = vpop.permute.xlu1 %617  ;;  %vm4029_vm15 = vcmp.lt.s32.totalorder %v2220_v26, 16  ;;  %v1174_v63 = vsel %vm1144_vm8, %v1137_v14, %v616_v23  ;;  %v1762_v26 = vshrl.u32 %v4024_v56, 4 }
 0x16f   : > { %v1176_v33 = vsel %vm1144_vm8, %v1139_v25, %v618_v47 }
 0x170   : > { %v1763_v25 = vmul.u32 18, %v1762_v26 }
 0x171   : > { %v662_v36 = vpop.permute.xlu0 %661 }
 0x172   : > { %v664_v24 = vpop.permute.xlu1 %663  ;;  %v1211_v51 = vsel %vm1181_vm9, %v1174_v63, %v662_v36  ;;  %v4054_v36 = vld [vmem:[%s4815_s3] ss:$0 sm:$0xff] }
 0x173   : > { %v1213_v62 = vsel %vm1181_vm9, %v1176_v33, %v664_v24 }
 0x175   : > { %v784_v12 = vpop.permute.xlu0 %783 }
 0x176   : > { %v3969_v49 = vpop.permute.xlu1 %785  ;;  %v1248_v23 = vsel %vm1218_vm10, %v1211_v51, %v784_v12  ;;  %v1731_v51 = vsub.s32 %v3963_v37, %v1730_v44 }
 0x177   : > { %v1250_v32 = vsel %vm1218_vm10, %v1213_v62, %v3969_v49  ;;  %v1742_v62 = vsub.s32 %v4001_v0, %v1741_v3 }
 0x179   : > { %v858_v54 = vpop.permute.xlu0 %857 }
 0x17a   : > { %v860_v31 = vpop.permute.xlu1 %859  ;;  %v1285_v30 = vsel %vm1255_vm11, %v1248_v23, %v858_v54 }
 0x17b   : > { %v1287_v60 = vsel %vm1255_vm11, %v1250_v32, %v860_v31  ;;  %v1752_v31 = vmul.u32 18, %v1751_v13 }
 0x17d   : > { %v904_v34 = vpop.permute.xlu0 %903 }
 0x17e   : > { %v906_v28 = vpop.permute.xlu1 %905  ;;  %v2773_v50 = vpop.f32.mrb[0].mxu0  ;;  %v1322_v24 = vsel %vm4838_vm4, %v1285_v30, %v904_v34 }
 0x17f   : > { %v1508_v35 = vadd.f32 %v2773_v50, %v4008_v2  ;;  %v1499_v29 = vpop.f32.mrb[1].mxu0 }
 0x180   : > { %v1500_v15 = vadd.f32 %v4008_v2, %v1499_v29  ;;  %v2774_v10 = vpop.f32.mrb[2].mxu0  ;;  %v1753_v29 = vsub.s32 %v3960_v52, %v1752_v31 }
 0x181   : > { %vm2293_vm1 = vcmp.gt.f32.partialorder %v1508_v35, 0.0  ;;  %v2329_v57 = vmul.f32 0.2, %v1508_v35  ;;  %v1511_v7 = vadd.f32 %v2774_v10, %v4008_v2  ;;  %v1502_v16 = vpop.f32.mrb[3].mxu0  ;;  %v1026_v39 = vpop.permute.xlu0 %1025  ;;  %v1764_v10 = vsub.s32 %v3994_v43, %v1763_v25 }
 0x182   : > { %vm2291_vm2 = vcmp.gt.f32.partialorder %v1500_v15, 0.0  ;;  %v2327_v46 = vmul.f32 0.2, %v1500_v15  ;;  %v1028_v47 = vpop.permute.xlu1 %1027  ;;  %v1503_v18 = vadd.f32 %v4008_v2, %v1502_v16  ;;  %v1359_v53 = vsel %vm4839_vm6, %v1322_v24, %v1026_v39 }
 0x183   : > { %v2365_v55 = vsel %vm2293_vm1, %v1508_v35, %v2329_v57  ;;  %vm2294_vm3 = vcmp.gt.f32.partialorder %v1511_v7, 0.0  ;;  %v2330_v48 = vmul.f32 0.2, %v1511_v7  ;;  %vm4843_vm1 = vmmov %vm4839_vm6  ;;  %v2187_v16 = vadd.s32 18, %v1731_v51 }
 0x184   : > { %v2363_v27 = vsel %vm2291_vm2, %v1500_v15, %v2327_v46  ;;  %vm2292_vm5 = vcmp.gt.f32.partialorder %v1503_v18, 0.0  ;;  %v2328_v12 = vmul.f32 0.2, %v1503_v18  ;;  %v2473_v58 = vsel %vm4010_vm14, %v2365_v55, 0.0 }
 0x185   : > { %v2471_v5 = vsel %vm4014_vm13, %v2363_v27, 0.0  ;;  %v2366_v4 = vsel %vm2294_vm3, %v1511_v7, %v2330_v48  ;;  %v1100_v61 = vpop.permute.xlu0 %1099  ;;  %vm4841_vm14 = vcmask 293888   ;;  %vm4842_vm13 = vmmov %vm4838_vm4  ;;  %v2516_v49 = vmul.f32 %v4054_v36, %v2473_v58 }
 0x186   : > { %v2514_v42 = vmul.f32 %v4054_v36, %v2471_v5  ;;  %v2364_v11 = vsel %vm2292_vm5, %v1503_v18, %v2328_v12  ;;  %v4065_v45 = vpop.permute.xlu1 %545  ;;  %v1396_v9 = vsel %vm4840_vm0, %v1359_v53, %v1100_v61  ;;  %v2474_v54 = vsel %vm4018_vm12, %v2366_v4, 0.0  ;;  %vm4844_vm12 = vmmov %vm4840_vm0 }
 0x187   : > { %v2472_v21 = vsel %vm4029_vm15, %v2364_v11, 0.0  ;;  %2799 = vmatprep.mubr.msk.bf16.mxu1 %vm4841_vm14, %v1396_v9  ;;  %v1324_v22 = vsel %vm4842_vm13, %v1287_v60, %v906_v28  ;;  %v2517_v14 = vmul.f32 %v4054_v36, %v2474_v54  ;;  %vm4845_vm15 = vmmov %vm4841_vm14  ;;  %v2553_v56 = vsel %vm1144_vm8, %v2516_v49, 0.0 }
 0x188   : > { %v2515_v19 = vmul.f32 %v4054_v36, %v2472_v21  ;;  %v1361_v38 = vsel %vm4843_vm1, %v1324_v22, %v1028_v47  ;;  %v2550_v1 = vsel %vm1144_vm8, %v2514_v42, 0.0  ;;  %vm2081_vm2 = vcmp.ne.s32.totalorder %v1753_v29, 0 }
 0x189   : > { %v1102_v34 = vpop.permute.xlu0 %1101  ;;  %v2555_v13 = vsel %vm1144_vm8, %v2517_v14, 0.0  ;;  %vm2117_vm3 = vcmp.lt.s32.totalorder %v1753_v29, 0  ;;  %vm2079_vm4 = vcmp.ne.s32.totalorder %v1731_v51, 0  ;;  %vm2115_vm5 = vcmp.lt.s32.totalorder %v1731_v51, 0 }
 0x18a   : > { %v2551_v50 = vsel %vm1144_vm8, %v2515_v19, 0.0  ;;  %v548_v28 = vpop.permute.xlu1 %547  ;;  %v1398_v40 = vsel %vm4844_vm12, %v1361_v38, %v1102_v34  ;;  %vm4093_vm6 = vmand %vm2117_vm3, %vm2081_vm2  ;;  %v2189_v7 = vadd.s32 18, %v1753_v29  ;;  %vm2082_vm0 = vcmp.ne.s32.totalorder %v1764_v10, 0 }
 0x18b   : > { %v2552_v41 = vadd.f32 %v2551_v50, %v2550_v1  ;;  %2800 = vmatmul.mubr.msk.bf16.gmra.mrb[8].mxu1 %vm4845_vm15, %v1398_v40  ;;  %vm2118_vm14 = vcmp.lt.s32.totalorder %v1764_v10, 0  ;;  %vm4097_vm13 = vmand %vm2115_vm5, %vm2079_vm4  ;;  %vm2080_vm1 = vcmp.ne.s32.totalorder %v1742_v62, 0  ;;  %vm2116_vm12 = vcmp.lt.s32.totalorder %v1742_v62, 0 }
 0x18c   : > { %vm4101_vm15 = vmand %vm2118_vm14, %vm2082_vm0  ;;  %v2190_v23 = vadd.s32 18, %v1764_v10  ;;  %v2188_v46 = vadd.s32 18, %v1742_v62  ;;  %v2225_v47 = vsel %vm4093_vm6, %v2189_v7, %v1753_v29  ;;  %v2223_v18 = vsel %vm4097_vm13, %v2187_v16, %v1731_v51 }
 0x18d   : > { %v2554_v63 = vadd.f32 %v2553_v56, %v2552_v41  ;;  %v620_v35 = vpop.permute.xlu0 %619  ;;  %vm4109_vm2 = vmand %vm2116_vm12, %vm2080_vm1  ;;  %v4114_v55 = vadd.s32 80, %v3914_v59  ;;  %v4117_v48 = vadd.s32 64, %v3914_v59  ;;  %v4120_v27 = vadd.s32 88, %v3914_v59 }
 0x18e   : > { %v622_v33 = vpop.permute.xlu1 %621  ;;  %v4123_v58 = vadd.s32 72, %v3914_v59  ;;  %vm4125_vm3 = vcmp.lt.s32.totalorder %v2225_v47, 16  ;;  %vm4129_vm4 = vcmp.lt.s32.totalorder %v2223_v18, 16  ;;  %v2226_v53 = vsel %vm4101_vm15, %v2190_v23, %v1764_v10 }
 0x18f   : > { %v4089_v15 = vadd.f32 %v2555_v13, %v2554_v63  ;;  %v2224_v61 = vsel %vm4109_vm2, %v2188_v46, %v1742_v62  ;;  %v4138_v32 = vmul.u32.u64.low 3817748708, %v4114_v55  ;;  %v4139_v42 = vmul.u32.u64.high 3817748708, %v4114_v55, %v4138_v32 }
 0x190   : > { %v4142_v11 = vmul.u32.u64.low 3817748708, %v4117_v48  ;;  %v4143_v9 = vmul.u32.u64.high 3817748708, %v4117_v48, %v4142_v11  ;;  %v1141_v60 = vsel %vm1107_vm7, %v3601_v6, %v4065_v45  ;;  %v1143_v54 = vsel %vm1107_vm7, %v3684_v8, %v548_v28 }
 0x191   : > { %v666_v20 = vpop.permute.xlu0 %665  ;;  %v4151_v22 = vmul.u32.u64.low 3817748708, %v4120_v27  ;;  %v4152_v49 = vmul.u32.u64.high 3817748708, %v4120_v27, %v4151_v22  ;;  %v1180_v19 = vsel %vm1144_vm8, %v1143_v54, %v622_v33  ;;  %v1178_v26 = vsel %vm1144_vm8, %v1141_v60, %v620_v35 }
 0x192   : > { %v668_v57 = vpop.permute.xlu1 %667  ;;  %v4157_v31 = vmul.u32.u64.low 3817748708, %v4123_v58  ;;  %v4158_v44 = vmul.u32.u64.high 3817748708, %v4123_v58, %v4157_v31  ;;  %v1215_v45 = vsel %vm1181_vm9, %v1178_v26, %v666_v20  ;;  %vm4163_vm7 = vcmp.lt.s32.totalorder %v2226_v53, 16 }
 0x193   : > { %v1217_v6 = vsel %vm1181_vm9, %v1180_v19, %v668_v57  ;;  %vm4170_vm5 = vcmp.lt.s32.totalorder %v2224_v61, 16  ;;  %vm4866_vm12 = vcmask 261120   ;;  %vm4868_vm2 = vcmask 293888  }
 0x194   : > { %vm4867_vm15 = vmmov %vm4866_vm12  ;;  %v1795_v32 = vshrl.u32 %v4139_v42, 4  ;;  %v1773_v22 = vshrl.u32 %v4143_v9, 4  ;;  %v4234_v41 = vadd.s32 120, %v3914_v59 }
 0x195   : > { %v788_v37 = vpop.permute.xlu0 %787 }
 0x196   : > { %v790_v43 = vpop.permute.xlu1 %789  ;;  %v1252_v50 = vsel %vm1218_vm10, %v1215_v45, %v788_v37  ;;  %v1796_v26 = vmul.u32 18, %v1795_v32 }
 0x197   : > { %v1254_v14 = vsel %vm1218_vm10, %v1217_v6, %v790_v43  ;;  %vm4862_vm10 = vcmask 195584   ;;  %v1774_v6 = vmul.u32 18, %v1773_v22 }
 0x198   : > { %vm4863_vm14 = vmmov %vm4862_vm10  ;;  %v1797_v42 = vsub.s32 %v4114_v55, %v1796_v26 }
 0x199   : > { %v862_v24 = vpop.permute.xlu0 %861 }
 0x19a   : > { %v864_v12 = vpop.permute.xlu1 %863  ;;  %v1289_v56 = vsel %vm1255_vm11, %v1252_v50, %v862_v24 }
 0x19b   : > { %v1291_v3 = vsel %vm1255_vm11, %v1254_v14, %v864_v12  ;;  %vm4864_vm11 = vcmask 228352   ;;  %v2193_v14 = vadd.s32 18, %v1797_v42 }
 0x19c   : > { %vm4865_vm1 = vmmov %vm4864_vm11 }
 0x19d   : > { %v908_v21 = vpop.permute.xlu0 %907 }
 0x19e   : > { %v910_v38 = vpop.permute.xlu1 %909  ;;  %v2777_v34 = vpop.f32.mrb[4].mxu0  ;;  %v1326_v10 = vsel %vm4862_vm10, %v1289_v56, %v908_v21 }
 0x19f   : > { %v1524_v8 = vadd.f32 %v2777_v34, %v4008_v2  ;;  %v1515_v17 = vpop.f32.mrb[5].mxu0  ;;  %v1328_v57 = vsel %vm4863_vm14, %v1291_v3, %v910_v38  ;;  %v1806_v34 = vshrl.u32 %v4152_v49, 4 }
 0x1a0   : > { %v1516_v28 = vadd.f32 %v4008_v2, %v1515_v17  ;;  %v2778_v40 = vpop.f32.mrb[6].mxu0  ;;  %v1775_v17 = vsub.s32 %v4117_v48, %v1774_v6 }
 0x1a1   : > { %vm2297_vm9 = vcmp.gt.f32.partialorder %v1524_v8, 0.0  ;;  %v2333_v25 = vmul.f32 0.2, %v1524_v8  ;;  %v1527_v63 = vadd.f32 %v2778_v40, %v4008_v2  ;;  %v1518_v35 = vpop.f32.mrb[7].mxu0  ;;  %v1030_v29 = vpop.permute.xlu0 %1029  ;;  %v4227_v40 = vadd.s32 96, %v3914_v59 }
 0x1a2   : > { %vm2295_vm6 = vcmp.gt.f32.partialorder %v1516_v28, 0.0  ;;  %v2331_v13 = vmul.f32 0.2, %v1516_v28  ;;  %v1032_v33 = vpop.permute.xlu1 %1031  ;;  %v1519_v51 = vadd.f32 %v4008_v2, %v1518_v35  ;;  %v1363_v43 = vsel %vm4864_vm11, %v1326_v10, %v1030_v29 }
 0x1a3   : > { %v2369_v20 = vsel %vm2297_vm9, %v1524_v8, %v2333_v25  ;;  %vm2298_vm0 = vcmp.gt.f32.partialorder %v1527_v63, 0.0  ;;  %v2334_v62 = vmul.f32 0.2, %v1527_v63  ;;  %v1365_v46 = vsel %vm4865_vm1, %v1328_v57, %v1032_v33 }
 0x1a4   : > { %v2367_v52 = vsel %vm2295_vm6, %v1516_v28, %v2331_v13  ;;  %vm2296_vm13 = vcmp.gt.f32.partialorder %v1519_v51, 0.0  ;;  %v2332_v7 = vmul.f32 0.2, %v1519_v51  ;;  %v2477_v16 = vsel %vm4125_vm3, %v2369_v20, 0.0  ;;  %vm4869_vm3 = vmmov %vm4868_vm2 }
 0x1a5   : > { %v2475_v37 = vsel %vm4129_vm4, %v2367_v52, 0.0  ;;  %v2370_v39 = vsel %vm2298_vm0, %v1527_v63, %v2334_v62  ;;  %v1104_v0 = vpop.permute.xlu0 %1103  ;;  %v2520_v4 = vmul.f32 %v4054_v36, %v2477_v16  ;;  %v1807_v8 = vmul.u32 18, %v1806_v34 }
 0x1a6   : > { %v2518_v23 = vmul.f32 %v4054_v36, %v2475_v37  ;;  %v2368_v47 = vsel %vm2296_vm13, %v1519_v51, %v2332_v7  ;;  %v1106_v18 = vpop.permute.xlu1 %1105  ;;  %v1400_v30 = vsel %vm4866_vm12, %v1363_v43, %v1104_v0  ;;  %v2478_v24 = vsel %vm4163_vm7, %v2370_v39, 0.0 }
 0x1a7   : > { %v2476_v12 = vsel %vm4170_vm5, %v2368_v47, 0.0  ;;  %v1402_v5 = vsel %vm4867_vm15, %v1365_v46, %v1106_v18  ;;  %2803 = vmatprep.mubr.msk.bf16.mxu1 %vm4868_vm2, %v1400_v30  ;;  %v2521_v60 = vmul.f32 %v4054_v36, %v2478_v24  ;;  %v2561_v19 = vsel %vm1144_vm8, %v2520_v4, 0.0 }
 0x1a8   : > { %v2557_v53 = vsel %vm1144_vm8, %v2518_v23, 0.0  ;;  %v2519_v61 = vmul.f32 %v4054_v36, %v2476_v12  ;;  %2804 = vmatmul.mubr.msk.bf16.gmra.mrb[12].mxu1 %vm4869_vm3, %v1402_v5  ;;  %vm2085_vm4 = vcmp.ne.s32.totalorder %v1797_v42, 0  ;;  %vm2121_vm7 = vcmp.lt.s32.totalorder %v1797_v42, 0 }
 0x1a9   : > { %v2558_v11 = vadd.f32 %v2557_v53, %v4089_v15  ;;  %v2563_v31 = vsel %vm1144_vm8, %v2521_v60, 0.0  ;;  %v1784_v15 = vshrl.u32 %v4158_v44, 4  ;;  %v1808_v9 = vsub.s32 %v4120_v27, %v1807_v8  ;;  %vm4212_vm5 = vmand %vm2121_vm7, %vm2085_vm4 }
 0x1aa   : > { %v2559_v54 = vsel %vm1144_vm8, %v2519_v61, 0.0  ;;  %vm2083_vm9 = vcmp.ne.s32.totalorder %v1775_v17, 0  ;;  %vm2119_vm6 = vcmp.lt.s32.totalorder %v1775_v17, 0  ;;  %v2191_v44 = vadd.s32 18, %v1775_v17 }
 0x1ab   : > { %v2560_v21 = vadd.f32 %v2559_v54, %v2558_v11  ;;  %v1785_v1 = vmul.u32 18, %v1784_v15  ;;  %vm2086_vm10 = vcmp.ne.s32.totalorder %v1808_v9, 0  ;;  %vm2122_vm0 = vcmp.lt.s32.totalorder %v1808_v9, 0  ;;  %vm4219_vm14 = vmand %vm2119_vm6, %vm2083_vm9 }
 0x1ac   : > { %v2229_v55 = vsel %vm4212_vm5, %v2193_v14, %v1797_v42  ;;  %v4224_v27 = vadd.s32 112, %v3914_v59  ;;  %v2194_v28 = vadd.s32 18, %v1808_v9  ;;  %vm4229_vm1 = vmand %vm2122_vm0, %vm2086_vm10  ;;  %v2227_v56 = vsel %vm4219_vm14, %v2191_v44, %v1775_v17 }
 0x1ad   : > { %v2562_v38 = vadd.f32 %v2561_v19, %v2560_v21  ;;  %v1786_v50 = vsub.s32 %v4123_v58, %v1785_v1  ;;  %vm4238_vm12 = vcmp.lt.s32.totalorder %v2229_v55, 16  ;;  %vm4258_vm2 = vcmp.lt.s32.totalorder %v2227_v56, 16 }
 0x1ae   : > { %v4247_v3 = vmul.u32.u64.low 3817748708, %v4224_v27  ;;  %v4248_v13 = vmul.u32.u64.high 3817748708, %v4224_v27, %v4247_v3  ;;  %v2230_v10 = vsel %vm4229_vm1, %v2194_v28, %v1808_v9  ;;  %v1656_v12 = vadd.s32 104, %v3914_v59 }
 0x1af   : > { %v4206_v45 = vadd.f32 %v2563_v31, %v2562_v38  ;;  %vm2084_vm13 = vcmp.ne.s32.totalorder %v1786_v50, 0  ;;  %vm2120_vm11 = vcmp.lt.s32.totalorder %v1786_v50, 0  ;;  %v2192_v25 = vadd.s32 18, %v1786_v50 }
 0x1b0   : > { %vm4242_vm15 = vmand %vm2120_vm11, %vm2084_vm13  ;;  %v4254_v20 = vmul.u32.u64.low 3817748708, %v4227_v40  ;;  %v4255_v62 = vmul.u32.u64.high 3817748708, %v4227_v40, %v4254_v20  ;;  %v4263_v16 = vmul.u32.u64.low 3817748708, %v4234_v41  ;;  %v4264_v37 = vmul.u32.u64.high 3817748708, %v4234_v41, %v4263_v16 }
 0x1b1   : > { %v2228_v23 = vsel %vm4242_vm15, %v2192_v25, %v1786_v50  ;;  %vm4269_vm7 = vcmp.lt.s32.totalorder %v2230_v10, 16  ;;  %v4282_v22 = vmul.u32.u64.low 3817748708, %v1656_v12  ;;  %v4283_v19 = vmul.u32.u64.high 3817748708, %v1656_v12, %v4282_v22 }
 0x1b2   : > { %vm2264_vm9 = vcmp.lt.s32.totalorder %v2228_v23, 16  ;;  %v1839_v31 = vshrl.u32 %v4248_v13, 4  ;;  %v1817_v17 = vshrl.u32 %v4255_v62, 4  ;;  %v1850_v49 = vshrl.u32 %v4264_v37, 4 }
 0x1b3   : > { %v4323_v10 = vadd.s32 152, %v3914_v59  ;;  %v1660_v22 = vadd.s32 136, %v3914_v59 }
 0x1b4   : > { %v1840_v9 = vmul.u32 18, %v1839_v31  ;;  %v1818_v44 = vmul.u32 18, %v1817_v17 }
 0x1b5   : > { %v1851_v28 = vmul.u32 18, %v1850_v49 }
 0x1b6   : > { %v1841_v48 = vsub.s32 %v4224_v27, %v1840_v9  ;;  %v1819_v58 = vsub.s32 %v4227_v40, %v1818_v44 }
 0x1b7   : > { %v1852_v25 = vsub.s32 %v4234_v41, %v1851_v28  ;;  %v4313_v41 = vadd.s32 144, %v3914_v59 }
 0x1b8   : > { %vm2089_vm10 = vcmp.ne.s32.totalorder %v1841_v48, 0  ;;  %vm2125_vm0 = vcmp.lt.s32.totalorder %v1841_v48, 0  ;;  %vm2087_vm13 = vcmp.ne.s32.totalorder %v1819_v58, 0  ;;  %vm2123_vm11 = vcmp.lt.s32.totalorder %v1819_v58, 0 }
 0x1b9   : > { %vm4302_vm14 = vmand %vm2125_vm0, %vm2089_vm10  ;;  %v2195_v3 = vadd.s32 18, %v1819_v58  ;;  %vm2090_vm1 = vcmp.ne.s32.totalorder %v1852_v25, 0  ;;  %v2198_v13 = vadd.s32 18, %v1852_v25 }
 0x1ba   : > { %vm4308_vm15 = vmand %vm2123_vm11, %vm2087_vm13  ;;  %v4336_v16 = vmul.u32.u64.low 3817748708, %v4313_v41  ;;  %v4337_v37 = vmul.u32.u64.high 3817748708, %v4313_v41, %v4336_v16 }
 0x1bb   : > { %v2231_v20 = vsel %vm4308_vm15, %v2195_v3, %v1819_v58 }
 0x1be   : > { %v2781_v63 = vpop.f32.mrb[8].mxu0 }
 0x1bf   : > { %v1540_v33 = vadd.f32 %v2781_v63, %v4008_v2  ;;  %v1531_v51 = vpop.f32.mrb[9].mxu0  ;;  %v2197_v63 = vadd.s32 18, %v1841_v48 }
 0x1c0   : > { %v1532_v57 = vadd.f32 %v4008_v2, %v1531_v51  ;;  %v2782_v7 = vpop.f32.mrb[10].mxu0 }
 0x1c1   : > { %vm2301_vm3 = vcmp.gt.f32.partialorder %v1540_v33, 0.0  ;;  %v2337_v39 = vmul.f32 0.2, %v1540_v33  ;;  %v1543_v43 = vadd.f32 %v2782_v7, %v4008_v2  ;;  %v1534_v0 = vpop.f32.mrb[11].mxu0  ;;  %v2233_v27 = vsel %vm4302_vm14, %v2197_v63, %v1841_v48 }
 0x1c2   : > { %vm2299_vm4 = vcmp.gt.f32.partialorder %v1532_v57, 0.0  ;;  %v2335_v46 = vmul.f32 0.2, %v1532_v57  ;;  %v1535_v18 = vadd.f32 %v4008_v2, %v1534_v0 }
 0x1c3   : > { %v2373_v30 = vsel %vm2301_vm3, %v1540_v33, %v2337_v39  ;;  %vm2302_vm5 = vcmp.gt.f32.partialorder %v1543_v43, 0.0  ;;  %v2338_v24 = vmul.f32 0.2, %v1543_v43  ;;  %v4316_v33 = vadd.s32 128, %v3914_v59 }
 0x1c4   : > { %v2371_v5 = vsel %vm2299_vm4, %v1532_v57, %v2335_v46  ;;  %vm2300_vm6 = vcmp.gt.f32.partialorder %v1535_v18, 0.0  ;;  %v2336_v4 = vmul.f32 0.2, %v1535_v18  ;;  %v2481_v53 = vsel %vm4238_vm12, %v2373_v30, 0.0 }
 0x1c5   : > { %v2479_v61 = vsel %vm4258_vm2, %v2371_v5, 0.0  ;;  %v2374_v32 = vsel %vm2302_vm5, %v1543_v43, %v2338_v24  ;;  %v2524_v26 = vmul.f32 %v4054_v36, %v2481_v53  ;;  %vm2126_vm12 = vcmp.lt.s32.totalorder %v1852_v25, 0 }
 0x1c6   : > { %v2522_v11 = vmul.f32 %v4054_v36, %v2479_v61  ;;  %v2372_v60 = vsel %vm2300_vm6, %v1535_v18, %v2336_v4  ;;  %v2482_v54 = vsel %vm4269_vm7, %v2374_v32, 0.0  ;;  %vm4318_vm4 = vmand %vm2126_vm12, %vm2090_vm1  ;;  %vm4327_vm7 = vcmp.lt.s32.totalorder %v2233_v27, 16 }
 0x1c7   : > { %v2480_v21 = vsel %vm2264_vm9, %v2372_v60, 0.0  ;;  %v2525_v15 = vmul.f32 %v4054_v36, %v2482_v54  ;;  %v2569_v1 = vsel %vm1144_vm8, %v2524_v26, 0.0  ;;  %v2234_v0 = vsel %vm4318_vm4, %v2198_v13, %v1852_v25 }
 0x1c8   : > { %v2565_v38 = vsel %vm1144_vm8, %v2522_v11, 0.0  ;;  %v2523_v34 = vmul.f32 %v4054_v36, %v2480_v21  ;;  %v4343_v23 = vmul.u32.u64.low 3817748708, %v4316_v33  ;;  %v4344_v46 = vmul.u32.u64.high 3817748708, %v4316_v33, %v4343_v23 }
 0x1c9   : > { %v2566_v6 = vadd.f32 %v2565_v38, %v4206_v45  ;;  %v2571_v50 = vsel %vm1144_vm8, %v2525_v15, 0.0  ;;  %v1828_v45 = vshrl.u32 %v4283_v19, 4  ;;  %vm4347_vm9 = vcmp.lt.s32.totalorder %v2231_v20, 16 }
 0x1ca   : > { %v2567_v42 = vsel %vm1144_vm8, %v2523_v34, 0.0  ;;  %vm4358_vm0 = vcmp.lt.s32.totalorder %v2234_v0, 16  ;;  %v1861_v58 = vshrl.u32 %v4344_v46, 4  ;;  %v4412_v0 = vadd.s32 184, %v3914_v59 }
 0x1cb   : > { %v2568_v8 = vadd.f32 %v2567_v42, %v2566_v6  ;;  %v1829_v56 = vmul.u32 18, %v1828_v45 }
 0x1cc   : > { %v1862_v3 = vmul.u32 18, %v1861_v58 }
 0x1cd   : > { %v2570_v14 = vadd.f32 %v2569_v1, %v2568_v8  ;;  %v1830_v29 = vsub.s32 %v1656_v12, %v1829_v56  ;;  %v4352_v24 = vmul.u32.u64.low 3817748708, %v4323_v10  ;;  %v4353_v12 = vmul.u32.u64.high 3817748708, %v4323_v10, %v4352_v24 }
 0x1ce   : > { %v4371_v17 = vmul.u32.u64.low 3817748708, %v1660_v22  ;;  %v4372_v1 = vmul.u32.u64.high 3817748708, %v1660_v22, %v4371_v17  ;;  %v1863_v51 = vsub.s32 %v4316_v33, %v1862_v3 }
 0x1cf   : > { %v4296_v55 = vadd.f32 %v2571_v50, %v2570_v14  ;;  %vm2088_vm2 = vcmp.ne.s32.totalorder %v1830_v29, 0  ;;  %vm2124_vm3 = vcmp.lt.s32.totalorder %v1830_v29, 0  ;;  %v2196_v62 = vadd.s32 18, %v1830_v29 }
 0x1d0   : > { %vm4331_vm5 = vmand %vm2124_vm3, %vm2088_vm2  ;;  %v1883_v50 = vshrl.u32 %v4337_v37, 4  ;;  %v1894_v35 = vshrl.u32 %v4353_v12, 4  ;;  %vm2091_vm2 = vcmp.ne.s32.totalorder %v1863_v51, 0  ;;  %vm2127_vm3 = vcmp.lt.s32.totalorder %v1863_v51, 0 }
 0x1d1   : > { %v2232_v61 = vsel %vm4331_vm5, %v2196_v62, %v1830_v29  ;;  %v2199_v16 = vadd.s32 18, %v1863_v51  ;;  %vm4397_vm5 = vmand %vm2127_vm3, %vm2091_vm2  ;;  %v1664_v17 = vadd.s32 168, %v3914_v59 }
 0x1d2   : > { %vm2268_vm13 = vcmp.lt.s32.totalorder %v2232_v61, 16  ;;  %v1884_v25 = vmul.u32 18, %v1883_v50  ;;  %v1895_v13 = vmul.u32 18, %v1894_v35 }
 0x1d3   : > { %v2235_v23 = vsel %vm4397_vm5, %v2199_v16, %v1863_v51 }
 0x1d4   : > { %v1885_v40 = vsub.s32 %v4313_v41, %v1884_v25  ;;  %v1896_v62 = vsub.s32 %v4323_v10, %v1895_v13  ;;  %v4402_v10 = vadd.s32 176, %v3914_v59 }
 0x1d6   : > { %vm2093_vm1 = vcmp.ne.s32.totalorder %v1885_v40, 0  ;;  %vm2129_vm12 = vcmp.lt.s32.totalorder %v1885_v40, 0  ;;  %vm2094_vm4 = vcmp.ne.s32.totalorder %v1896_v62, 0  ;;  %v2202_v37 = vadd.s32 18, %v1896_v62 }
 0x1d7   : > { %vm4391_vm15 = vmand %vm2129_vm12, %vm2093_vm1  ;;  %v4425_v24 = vmul.u32.u64.low 3817748708, %v4402_v10  ;;  %v4426_v12 = vmul.u32.u64.high 3817748708, %v4402_v10, %v4425_v24 }
 0x1de   : > { %v2785_v57 = vpop.f32.mrb[12].mxu0 }
 0x1df   : > { %v1556_v39 = vadd.f32 %v2785_v57, %v4008_v2  ;;  %v1547_v43 = vpop.f32.mrb[13].mxu0  ;;  %v2201_v57 = vadd.s32 18, %v1885_v40 }
 0x1e0   : > { %v1548_v47 = vadd.f32 %v4008_v2, %v1547_v43  ;;  %v2786_v30 = vpop.f32.mrb[14].mxu0 }
 0x1e1   : > { %vm2305_vm6 = vcmp.gt.f32.partialorder %v1556_v39, 0.0  ;;  %v2341_v5 = vmul.f32 0.2, %v1556_v39  ;;  %v1559_v4 = vadd.f32 %v2786_v30, %v4008_v2  ;;  %v1550_v53 = vpop.f32.mrb[15].mxu0  ;;  %v2237_v41 = vsel %vm4391_vm15, %v2201_v57, %v1885_v40 }
 0x1e2   : > { %vm2303_vm10 = vcmp.gt.f32.partialorder %v1548_v47, 0.0  ;;  %v2339_v32 = vmul.f32 0.2, %v1548_v47  ;;  %v1551_v60 = vadd.f32 %v4008_v2, %v1550_v53 }
 0x1e3   : > { %v2377_v54 = vsel %vm2305_vm6, %v1556_v39, %v2341_v5  ;;  %vm2306_vm14 = vcmp.gt.f32.partialorder %v1559_v4, 0.0  ;;  %v2342_v21 = vmul.f32 0.2, %v1559_v4  ;;  %v4405_v39 = vadd.s32 160, %v3914_v59 }
 0x1e4   : > { %v2375_v19 = vsel %vm2303_vm10, %v1548_v47, %v2339_v32  ;;  %vm2304_vm11 = vcmp.gt.f32.partialorder %v1551_v60, 0.0  ;;  %v2340_v26 = vmul.f32 0.2, %v1551_v60  ;;  %v2485_v38 = vsel %vm4327_vm7, %v2377_v54, 0.0 }
 0x1e5   : > { %v2483_v34 = vsel %vm4347_vm9, %v2375_v19, 0.0  ;;  %v2378_v31 = vsel %vm2306_vm14, %v1559_v4, %v2342_v21  ;;  %v2528_v9 = vmul.f32 %v4054_v36, %v2485_v38  ;;  %vm2130_vm7 = vcmp.lt.s32.totalorder %v1896_v62, 0 }
 0x1e6   : > { %v2526_v6 = vmul.f32 %v4054_v36, %v2483_v34  ;;  %v2376_v15 = vsel %vm2304_vm11, %v1551_v60, %v2340_v26  ;;  %v2486_v42 = vsel %vm4358_vm0, %v2378_v31, 0.0  ;;  %vm4407_vm10 = vmand %vm2130_vm7, %vm2094_vm4  ;;  %vm4416_vm0 = vcmp.lt.s32.totalorder %v2237_v41, 16 }
 0x1e7   : > { %v2484_v8 = vsel %vm2268_vm13, %v2376_v15, 0.0  ;;  %v2529_v45 = vmul.f32 %v4054_v36, %v2486_v42  ;;  %v2577_v56 = vsel %vm1144_vm8, %v2528_v9, 0.0  ;;  %v2238_v53 = vsel %vm4407_vm10, %v2202_v37, %v1896_v62 }
 0x1e8   : > { %v2573_v14 = vsel %vm1144_vm8, %v2526_v6, 0.0  ;;  %v2527_v49 = vmul.f32 %v4054_v36, %v2484_v8  ;;  %v4432_v61 = vmul.u32.u64.low 3817748708, %v4405_v39  ;;  %v4433_v32 = vmul.u32.u64.high 3817748708, %v4405_v39, %v4432_v61 }
 0x1e9   : > { %v2574_v44 = vadd.f32 %v2573_v14, %v4296_v55  ;;  %v2579_v29 = vsel %vm1144_vm8, %v2529_v45, 0.0  ;;  %v1872_v55 = vshrl.u32 %v4372_v1, 4  ;;  %vm4436_vm13 = vcmp.lt.s32.totalorder %v2235_v23, 16 }
 0x1ea   : > { %v2575_v48 = vsel %vm1144_vm8, %v2527_v49, 0.0  ;;  %vm4447_vm12 = vcmp.lt.s32.totalorder %v2238_v53, 16  ;;  %v1905_v51 = vshrl.u32 %v4433_v32, 4  ;;  %v1667_v53 = vadd.s32 192, %v3914_v59 }
 0x1eb   : > { %v2576_v28 = vadd.f32 %v2575_v48, %v2574_v44  ;;  %v1873_v20 = vmul.u32 18, %v1872_v55  ;;  %v1927_v55 = vshrl.u32 %v4426_v12, 4 }
 0x1ec   : > { %v1906_v41 = vmul.u32 18, %v1905_v51 }
 0x1ed   : > { %v2578_v63 = vadd.f32 %v2577_v56, %v2576_v28  ;;  %v1874_v7 = vsub.s32 %v1660_v22, %v1873_v20  ;;  %v4441_v21 = vmul.u32.u64.low 3817748708, %v4412_v0  ;;  %v4442_v22 = vmul.u32.u64.high 3817748708, %v4412_v0, %v4441_v21 }
 0x1ee   : > { %v4466_v56 = vmul.u32.u64.low 3817748708, %v1664_v17  ;;  %v4467_v25 = vmul.u32.u64.high 3817748708, %v1664_v17, %v4466_v56  ;;  %v1907_v23 = vsub.s32 %v4405_v39, %v1906_v41 }
 0x1ef   : > { %v4385_v27 = vadd.f32 %v2579_v29, %v2578_v63  ;;  %vm2092_vm9 = vcmp.ne.s32.totalorder %v1874_v7, 0  ;;  %vm2128_vm6 = vcmp.lt.s32.totalorder %v1874_v7, 0  ;;  %v2200_v46 = vadd.s32 18, %v1874_v7 }
 0x1f0   : > { %vm4420_vm14 = vmand %vm2128_vm6, %vm2092_vm9  ;;  %v1938_v62 = vshrl.u32 %v4442_v22, 4  ;;  %v1916_v37 = vshrl.u32 %v4467_v25, 4  ;;  %vm2095_vm5 = vcmp.ne.s32.totalorder %v1907_v23, 0  ;;  %vm2131_vm9 = vcmp.lt.s32.totalorder %v1907_v23, 0 }
 0x1f1   : > { %v2236_v34 = vsel %vm4420_vm14, %v2200_v46, %v1874_v7  ;;  %v1928_v7 = vmul.u32 18, %v1927_v55  ;;  %v2203_v24 = vadd.s32 18, %v1907_v23  ;;  %vm4486_vm14 = vmand %vm2131_vm9, %vm2095_vm5 }
 0x1f2   : > { %vm4453_vm2 = vcmp.lt.s32.totalorder %v2236_v34, 16 }
 0x1f3   : > { %v1929_v43 = vsub.s32 %v4402_v10, %v1928_v7 }
 0x1f5   : > { %vm2097_vm4 = vcmp.ne.s32.totalorder %v1929_v43, 0  ;;  %vm2133_vm7 = vcmp.lt.s32.totalorder %v1929_v43, 0  ;;  %v2205_v18 = vadd.s32 18, %v1929_v43 }
 0x1fe   : > { %v2789_v47 = vpop.f32.mrb[16].mxu0 }
 0x1ff   : > { %v1572_v5 = vadd.f32 %v2789_v47, %v4008_v2  ;;  %v1563_v4 = vpop.f32.mrb[17].mxu0  ;;  %v1917_v47 = vmul.u32 18, %v1916_v37 }
 0x200   : > { %v1564_v11 = vadd.f32 %v4008_v2, %v1563_v4  ;;  %v2790_v54 = vpop.f32.mrb[18].mxu0  ;;  %v2239_v4 = vsel %vm4486_vm14, %v2203_v24, %v1907_v23 }
 0x201   : > { %vm2309_vm11 = vcmp.gt.f32.partialorder %v1572_v5, 0.0  ;;  %v2345_v19 = vmul.f32 0.2, %v1572_v5  ;;  %v1575_v26 = vadd.f32 %v2790_v54, %v4008_v2  ;;  %v1566_v38 = vpop.f32.mrb[19].mxu0  ;;  %v1918_v30 = vsub.s32 %v1664_v17, %v1917_v47 }
 0x202   : > { %vm2307_vm1 = vcmp.gt.f32.partialorder %v1564_v11, 0.0  ;;  %v2343_v31 = vmul.f32 0.2, %v1564_v11  ;;  %v1567_v15 = vadd.f32 %v4008_v2, %v1566_v38 }
 0x203   : > { %v2381_v42 = vsel %vm2309_vm11, %v1572_v5, %v2345_v19  ;;  %vm2310_vm15 = vcmp.gt.f32.partialorder %v1575_v26, 0.0  ;;  %v2346_v8 = vmul.f32 0.2, %v1575_v26  ;;  %vm2096_vm11 = vcmp.ne.s32.totalorder %v1918_v30, 0 }
 0x204   : > { %v2379_v1 = vsel %vm2307_vm1, %v1564_v11, %v2343_v31  ;;  %vm2308_vm3 = vcmp.gt.f32.partialorder %v1567_v15, 0.0  ;;  %v2344_v14 = vmul.f32 0.2, %v1567_v15  ;;  %v2489_v49 = vsel %vm4416_vm0, %v2381_v42, 0.0  ;;  %vm2169_vm0 = vmand %vm2133_vm7, %vm2097_vm4 }
 0x205   : > { %v2487_v50 = vsel %vm4436_vm13, %v2379_v1, 0.0  ;;  %v2382_v44 = vsel %vm2310_vm15, %v1575_v26, %v2346_v8  ;;  %v2532_v63 = vmul.f32 %v4054_v36, %v2489_v49  ;;  %vm2132_vm1 = vcmp.lt.s32.totalorder %v1918_v30, 0 }
 0x206   : > { %v2530_v45 = vmul.f32 %v4054_v36, %v2487_v50  ;;  %v2380_v48 = vsel %vm2308_vm3, %v1567_v15, %v2344_v14  ;;  %v2490_v28 = vsel %vm4447_vm12, %v2382_v44, 0.0  ;;  %v4495_v5 = vadd.s32 208, %v3914_v59  ;;  %vm4506_vm15 = vmand %vm2132_vm1, %vm2096_vm11 }
 0x207   : > { %v2488_v58 = vsel %vm4453_vm2, %v2380_v48, 0.0  ;;  %v2533_v40 = vmul.f32 %v4054_v36, %v2490_v28  ;;  %v2585_v57 = vsel %vm1144_vm8, %v2532_v63, 0.0  ;;  %v2204_v32 = vadd.s32 18, %v1918_v30 }
 0x208   : > { %v2581_v35 = vsel %vm1144_vm8, %v2530_v45, 0.0  ;;  %v2531_v29 = vmul.f32 %v4054_v36, %v2488_v58  ;;  %vm4511_vm2 = vcmp.lt.s32.totalorder %v2239_v4, 16  ;;  %v1670_v50 = vadd.s32 216, %v3914_v59 }
 0x209   : > { %v2582_v3 = vadd.f32 %v2581_v35, %v4385_v27  ;;  %v2587_v16 = vsel %vm1144_vm8, %v2533_v40, 0.0  ;;  %v1939_v27 = vmul.u32 18, %v1938_v62  ;;  %v2240_v9 = vsel %vm4506_vm15, %v2204_v32, %v1918_v30 }
 0x20a   : > { %v2583_v13 = vsel %vm1144_vm8, %v2531_v29, 0.0  ;;  %v4516_v26 = vmul.u32.u64.low 3817748708, %v4495_v5  ;;  %v4517_v38 = vmul.u32.u64.high 3817748708, %v4495_v5, %v4516_v26  ;;  %v1668_v48 = vadd.s32 200, %v3914_v59 }
 0x20b   : > { %v2584_v20 = vadd.f32 %v2583_v13, %v2582_v3  ;;  %v1940_v46 = vsub.s32 %v4412_v0, %v1939_v27  ;;  %v2241_v0 = vsel %vm2169_vm0, %v2205_v18, %v1929_v43  ;;  %vm4533_vm9 = vcmp.lt.s32.totalorder %v2240_v9, 16 }
 0x20c   : > { %vm4502_vm12 = vcmp.lt.s32.totalorder %v2241_v0, 16  ;;  %v4524_v15 = vmul.u32.u64.low 3817748708, %v1667_v53  ;;  %v4525_v42 = vmul.u32.u64.high 3817748708, %v1667_v53, %v4524_v15  ;;  %v4586_v26 = vadd.s32 248, %v3914_v59 }
 0x20d   : > { %v2586_v52 = vadd.f32 %v2585_v57, %v2584_v20  ;;  %vm2098_vm6 = vcmp.ne.s32.totalorder %v1940_v46, 0  ;;  %vm2134_vm10 = vcmp.lt.s32.totalorder %v1940_v46, 0  ;;  %v2206_v10 = vadd.s32 18, %v1940_v46 }
 0x20e   : > { %vm4490_vm13 = vmand %vm2134_vm10, %vm2098_vm6  ;;  %v4542_v3 = vmul.u32.u64.low 3817748708, %v1670_v50  ;;  %v4543_v55 = vmul.u32.u64.high 3817748708, %v1670_v50, %v4542_v3  ;;  %v4549_v51 = vmul.u32.u64.low 3817748708, %v1668_v48  ;;  %v4550_v20 = vmul.u32.u64.high 3817748708, %v1668_v48, %v4549_v51 }
 0x20f   : > { %v4480_v33 = vadd.f32 %v2587_v16, %v2586_v52  ;;  %v2242_v61 = vsel %vm4490_vm13, %v2206_v10, %v1940_v46  ;;  %v1971_v16 = vshrl.u32 %v4517_v38, 4  ;;  %v1949_v37 = vshrl.u32 %v4525_v42, 4 }
 0x210   : > { %vm4520_vm3 = vcmp.lt.s32.totalorder %v2242_v61, 16  ;;  %v1982_v24 = vshrl.u32 %v4543_v55, 4  ;;  %v1672_v3 = vadd.s32 232, %v3914_v59 }
 0x211   : > { %v1972_v47 = vmul.u32 18, %v1971_v16  ;;  %v1950_v30 = vmul.u32 18, %v1949_v37 }
 0x212   : > { %v1983_v39 = vmul.u32 18, %v1982_v24 }
 0x213   : > { %v1951_v10 = vsub.s32 %v1667_v53, %v1950_v30 }
 0x214   : > { %v1984_v4 = vsub.s32 %v1670_v50, %v1983_v39 }
 0x215   : > { %vm2099_vm14 = vcmp.ne.s32.totalorder %v1951_v10, 0  ;;  %vm2135_vm13 = vcmp.lt.s32.totalorder %v1951_v10, 0  ;;  %v2207_v60 = vadd.s32 18, %v1951_v10 }
 0x216   : > { %vm4571_vm1 = vmand %vm2135_vm13, %vm2099_vm14  ;;  %vm2138_vm15 = vcmp.lt.s32.totalorder %v1984_v4, 0  ;;  %v2210_v19 = vadd.s32 18, %v1984_v4 }
 0x21e   : > { %v2793_v11 = vpop.f32.mrb[0].mxu1 }
 0x21f   : > { %v1588_v21 = vadd.f32 %v2793_v11, %v4008_v2  ;;  %v1579_v22 = vpop.f32.mrb[1].mxu1 }
 0x220   : > { %v1580_v34 = vadd.f32 %v4008_v2, %v1579_v22  ;;  %v2794_v31 = vpop.f32.mrb[2].mxu1  ;;  %v2243_v22 = vsel %vm4571_vm1, %v2207_v60, %v1951_v10 }
 0x221   : > { %vm2313_vm4 = vcmp.gt.f32.partialorder %v1588_v21, 0.0  ;;  %v2349_v8 = vmul.f32 0.2, %v1588_v21  ;;  %v1591_v17 = vadd.f32 %v2794_v31, %v4008_v2  ;;  %v1582_v1 = vpop.f32.mrb[3].mxu1 }
 0x222   : > { %vm2311_vm7 = vcmp.gt.f32.partialorder %v1580_v34, 0.0  ;;  %v2347_v14 = vmul.f32 0.2, %v1580_v34  ;;  %v1583_v49 = vadd.f32 %v4008_v2, %v1582_v1 }
 0x223   : > { %v2385_v44 = vsel %vm2313_vm4, %v1588_v21, %v2349_v8  ;;  %vm2314_vm5 = vcmp.gt.f32.partialorder %v1591_v17, 0.0  ;;  %v2350_v45 = vmul.f32 0.2, %v1591_v17  ;;  %v4581_v21 = vadd.s32 224, %v3914_v59 }
 0x224   : > { %v2383_v28 = vsel %vm2311_vm7, %v1580_v34, %v2347_v14  ;;  %vm2312_vm6 = vcmp.gt.f32.partialorder %v1583_v49, 0.0  ;;  %v2348_v56 = vmul.f32 0.2, %v1583_v49  ;;  %v2493_v25 = vsel %vm4502_vm12, %v2385_v44, 0.0 }
 0x225   : > { %v2491_v2 = vsel %vm4511_vm2, %v2383_v28, 0.0  ;;  %v2386_v63 = vsel %vm2314_vm5, %v1591_v17, %v2350_v45  ;;  %v2536_v62 = vmul.f32 %v4054_v36, %v2493_v25  ;;  %vm2102_vm12 = vcmp.ne.s32.totalorder %v1984_v4, 0  ;;  %v4607_v17 = vld [vmem:[%s4814_s2] ss:$0 sm:$0xff] }
 0x226   : > { %v2534_v35 = vmul.f32 %v4054_v36, %v2491_v2  ;;  %v2384_v29 = vsel %vm2312_vm6, %v1583_v49, %v2348_v56  ;;  %v2494_v40 = vsel %vm4520_vm3, %v2386_v63, 0.0  ;;  %vm4588_vm4 = vmand %vm2138_vm15, %vm2102_vm12  ;;  %v4686_v14 = vadd.s32 264, %v3914_v59 }
 0x227   : > { %v2492_v13 = vsel %vm4533_vm9, %v2384_v29, 0.0  ;;  %v2537_v41 = vmul.f32 %v4054_v36, %v2494_v40  ;;  %v2593_v23 = vsel %vm1144_vm8, %v2536_v62, 0.0  ;;  %vm4610_vm9 = vcmp.lt.s32.totalorder %v2243_v22, 16 }
 0x228   : > { %v2589_v57 = vsel %vm1144_vm8, %v2534_v35, 0.0  ;;  %v2535_v52 = vmul.f32 %v4054_v36, %v2492_v13  ;;  %v1973_v36 = vsub.s32 %v4495_v5, %v1972_v47  ;;  %v4576_v5 = vadd.s32 240, %v3914_v59 }
 0x229   : > { %v2590_v7 = vadd.f32 %v2589_v57, %v4480_v33  ;;  %v2595_v18 = vsel %vm1144_vm8, %v2537_v41, 0.0  ;;  %v1960_v33 = vshrl.u32 %v4550_v20, 4 }
 0x22a   : > { %v2591_v27 = vsel %vm1144_vm8, %v2535_v52, 0.0  ;;  %vm2101_vm10 = vcmp.ne.s32.totalorder %v1973_v36, 0  ;;  %vm2137_vm0 = vcmp.lt.s32.totalorder %v1973_v36, 0  ;;  %v2209_v61 = vadd.s32 18, %v1973_v36 }
 0x22b   : > { %v2592_v43 = vadd.f32 %v2591_v27, %v2590_v7  ;;  %v1961_v0 = vmul.u32 18, %v1960_v33  ;;  %vm4567_vm11 = vmand %vm2137_vm0, %vm2101_vm10  ;;  %v4601_v42 = vmul.u32.u64.low 3817748708, %v4576_v5  ;;  %v4602_v8 = vmul.u32.u64.high 3817748708, %v4576_v5, %v4601_v42  ;;  %v4641_v7 = vld [vmem:[%s4815_s3] ss:$0 sm:$0xff] }
 0x22c   : > { %v2245_v53 = vsel %vm4567_vm11, %v2209_v61, %v1973_v36  ;;  %v4615_v49 = vmul.u32.u64.low 3817748708, %v4581_v21  ;;  %v4616_v50 = vmul.u32.u64.high 3817748708, %v4581_v21, %v4615_v49  ;;  %v4673_v42 = vadd.s32 272, %v3914_v59 }
 0x22d   : > { %v2594_v46 = vadd.f32 %v2593_v23, %v2592_v43  ;;  %v1962_v32 = vsub.s32 %v1668_v48, %v1961_v0  ;;  %vm4592_vm7 = vcmp.lt.s32.totalorder %v2245_v53, 16  ;;  %v2246_v48 = vsel %vm4588_vm4, %v2210_v19, %v1984_v4 }
 0x22e   : > { %v4622_v28 = vmul.u32.u64.low 3817748708, %v4586_v26  ;;  %v4623_v58 = vmul.u32.u64.high 3817748708, %v4586_v26, %v4622_v28  ;;  %vm4630_vm0 = vcmp.lt.s32.totalorder %v2246_v48, 16  ;;  %v1993_v61 = vshrl.u32 %v4616_v50, 4 }
 0x22f   : > { %v4563_v12 = vadd.f32 %v2595_v18, %v2594_v46  ;;  %vm2100_vm2 = vcmp.ne.s32.totalorder %v1962_v32, 0  ;;  %vm2136_vm3 = vcmp.lt.s32.totalorder %v1962_v32, 0  ;;  %v2208_v34 = vadd.s32 18, %v1962_v32 }
 0x230   : > { %vm4596_vm5 = vmand %vm2136_vm3, %vm2100_vm2  ;;  %v4644_v27 = vmul.u32.u64.low 3817748708, %v1672_v3  ;;  %v4645_v37 = vmul.u32.u64.high 3817748708, %v1672_v3, %v4644_v27  ;;  %v2015_v46 = vshrl.u32 %v4602_v8, 4  ;;  %v2026_v11 = vshrl.u32 %v4623_v58, 4 }
 0x231   : > { %v2244_v63 = vsel %vm4596_vm5, %v2208_v34, %v1962_v32  ;;  %v1994_v53 = vmul.u32 18, %v1993_v61  ;;  %v4676_v8 = vadd.s32 256, %v3914_v59 }
 0x232   : > { %vm2280_vm13 = vcmp.lt.s32.totalorder %v2244_v63, 16  ;;  %v2016_v39 = vmul.u32 18, %v2015_v46  ;;  %v2027_v22 = vmul.u32 18, %v2026_v11 }
 0x233   : > { %v1995_v34 = vsub.s32 %v4581_v21, %v1994_v53  ;;  %v4701_v28 = vmul.u32.u64.low 3817748708, %v4673_v42  ;;  %v4702_v58 = vmul.u32.u64.high 3817748708, %v4673_v42, %v4701_v28 }
 0x234   : > { %v2017_v60 = vsub.s32 %v4576_v5, %v2016_v39  ;;  %v2028_v6 = vsub.s32 %v4586_v26, %v2027_v22 }
 0x235   : > { %vm2103_vm2 = vcmp.ne.s32.totalorder %v1995_v34, 0  ;;  %vm2139_vm3 = vcmp.lt.s32.totalorder %v1995_v34, 0  ;;  %v2211_v21 = vadd.s32 18, %v1995_v34 }
 0x236   : > { %vm2105_vm1 = vcmp.ne.s32.totalorder %v2017_v60, 0  ;;  %vm2141_vm12 = vcmp.lt.s32.totalorder %v2017_v60, 0  ;;  %v2213_v38 = vadd.s32 18, %v2017_v60  ;;  %vm2106_vm4 = vcmp.ne.s32.totalorder %v2028_v6, 0 }
 0x237   : > { %vm4665_vm15 = vmand %vm2141_vm12, %vm2105_vm1 }
 0x238   : > { %v2249_v5 = vsel %vm4665_vm15, %v2213_v38, %v2017_v60 }
 0x23e   : > { %v2797_v31 = vpop.f32.mrb[4].mxu1 }
 0x23f   : > { %v1604_v1 = vadd.f32 %v4607_v17, %v2797_v31  ;;  %v1595_v9 = vpop.f32.mrb[5].mxu1 }
 0x240   : > { %v1596_v44 = vadd.f32 %v4607_v17, %v1595_v9  ;;  %v2798_v45 = vpop.f32.mrb[6].mxu1  ;;  %v2214_v9 = vadd.s32 18, %v2028_v6 }
 0x241   : > { %vm2317_vm6 = vcmp.gt.f32.partialorder %v1604_v1, 0.0  ;;  %v2353_v56 = vmul.f32 0.2, %v1604_v1  ;;  %v1607_v25 = vadd.f32 %v4607_v17, %v2798_v45  ;;  %v1598_v2 = vpop.f32.mrb[7].mxu1 }
 0x242   : > { %vm2315_vm10 = vcmp.gt.f32.partialorder %v1596_v44, 0.0  ;;  %v2351_v35 = vmul.f32 0.2, %v1596_v44  ;;  %v1599_v29 = vadd.f32 %v4607_v17, %v1598_v2 }
 0x243   : > { %v2389_v55 = vsel %vm2317_vm6, %v1604_v1, %v2353_v56  ;;  %vm2318_vm14 = vcmp.gt.f32.partialorder %v1607_v25, 0.0  ;;  %v2354_v13 = vmul.f32 0.2, %v1607_v25  ;;  %v4679_v1 = vadd.s32 280, %v3914_v59  ;;  %vm4681_vm6 = vmand %vm2139_vm3, %vm2103_vm2 }
 0x244   : > { %v2387_v51 = vsel %vm2315_vm10, %v1596_v44, %v2351_v35  ;;  %vm2316_vm11 = vcmp.gt.f32.partialorder %v1599_v29, 0.0  ;;  %v2352_v20 = vmul.f32 0.2, %v1599_v29  ;;  %v2497_v62 = vsel %vm4592_vm7, %v2389_v55, 0.0 }
 0x245   : > { %v2495_v57 = vsel %vm4610_vm9, %v2387_v51, 0.0  ;;  %v2390_v52 = vsel %vm2318_vm14, %v1607_v25, %v2354_v13  ;;  %v2540_v47 = vmul.f32 %v4641_v7, %v2497_v62  ;;  %vm2142_vm7 = vcmp.lt.s32.totalorder %v2028_v6, 0 }
 0x246   : > { %v2538_v16 = vmul.f32 %v4641_v7, %v2495_v57  ;;  %v2388_v41 = vsel %vm2316_vm11, %v1599_v29, %v2352_v20  ;;  %v2498_v43 = vsel %vm4630_vm0, %v2390_v52, 0.0  ;;  %vm4688_vm10 = vcmp.lt.s32.totalorder %v2249_v5, 16  ;;  %vm4692_vm0 = vmand %vm2142_vm7, %vm2106_vm4 }
 0x247   : > { %v2496_v23 = vsel %vm2280_vm13, %v2388_v41, 0.0  ;;  %v2541_v33 = vmul.f32 %v4641_v7, %v2498_v43  ;;  %v2601_v0 = vsel %vm1144_vm8, %v2540_v47, 0.0  ;;  %v2247_v63 = vsel %vm4681_vm6, %v2211_v21, %v1995_v34 }
 0x248   : > { %v2597_v18 = vsel %vm1144_vm8, %v2538_v16, 0.0  ;;  %v2539_v30 = vmul.f32 %v4641_v7, %v2496_v23  ;;  %v4705_v59 = vmul.u32.u64.low 3817748708, %v4676_v8  ;;  %v4706_v56 = vmul.u32.u64.high 3817748708, %v4676_v8, %v4705_v59 }
 0x249   : > { %v2598_v24 = vadd.f32 %v2597_v18, %v4563_v12  ;;  %v2603_v32 = vsel %vm1144_vm8, %v2541_v33, 0.0  ;;  %v2004_v12 = vshrl.u32 %v4645_v37, 4  ;;  %v2250_v40 = vsel %vm4692_vm0, %v2214_v9, %v2028_v6 }
 0x24a   : > { %v2599_v36 = vsel %vm1144_vm8, %v2539_v30, 0.0  ;;  %v4712_v35 = vmul.u32.u64.low 3817748708, %v4679_v1  ;;  %v4713_v29 = vmul.u32.u64.high 3817748708, %v4679_v1, %v4712_v35  ;;  %vm4725_vm11 = vcmp.lt.s32.totalorder %v2247_v63, 16 }
 0x24b   : > { %v2600_v10 = vadd.f32 %v2599_v36, %v2598_v24  ;;  %v2005_v19 = vmul.u32 18, %v2004_v12  ;;  %v4719_v13 = vmul.u32.u64.low 3817748708, %v4686_v14  ;;  %v4720_v51 = vmul.u32.u64.high 3817748708, %v4686_v14, %v4719_v13 }
 0x24c   : > { %vm4730_vm12 = vcmp.lt.s32.totalorder %v2250_v40, 16  ;;  %v2037_v53 = vshrl.u32 %v4706_v56, 4 }
 0x24d   : > { %v2602_v4 = vadd.f32 %v2601_v0, %v2600_v10  ;;  %v2006_v15 = vsub.s32 %v1672_v3, %v2005_v19  ;;  %v2070_v19 = vshrl.u32 %v4713_v29, 4  ;;  %v2048_v31 = vshrl.u32 %v4720_v51, 4 }
 0x24e   : > { %v2038_v5 = vmul.u32 18, %v2037_v53 }
 0x24f   : > { %v4661_v54 = vadd.f32 %v2603_v32, %v2602_v4  ;;  %vm2104_vm5 = vcmp.ne.s32.totalorder %v2006_v15, 0  ;;  %vm2140_vm9 = vcmp.lt.s32.totalorder %v2006_v15, 0  ;;  %v2212_v44 = vadd.s32 18, %v2006_v15 }
 0x250   : > { %vm4696_vm14 = vmand %vm2140_vm9, %vm2104_vm5  ;;  %v2059_v32 = vshrl.u32 %v4702_v58, 4  ;;  %v2071_v21 = vmul.u32 18, %v2070_v19  ;;  %v2049_v9 = vmul.u32 18, %v2048_v31  ;;  %v2039_v49 = vsub.s32 %v4676_v8, %v2038_v5 }
 0x251   : > { %v2248_v52 = vsel %vm4696_vm14, %v2212_v44, %v2006_v15 }
 0x252   : > { %vm2284_vm2 = vcmp.lt.s32.totalorder %v2248_v52, 16  ;;  %v2060_v34 = vmul.u32 18, %v2059_v32  ;;  %v2072_v50 = vsub.s32 %v4679_v1, %v2071_v21  ;;  %v2050_v44 = vsub.s32 %v4686_v14, %v2049_v9 }
 0x253   : > { %vm2107_vm5 = vcmp.ne.s32.totalorder %v2039_v49, 0  ;;  %vm2143_vm9 = vcmp.lt.s32.totalorder %v2039_v49, 0  ;;  %v2215_v28 = vadd.s32 18, %v2039_v49 }
 0x254   : > { %v2061_v26 = vsub.s32 %v4673_v42, %v2060_v34  ;;  %vm2146_vm0 = vcmp.lt.s32.totalorder %v2072_v50, 0  ;;  %vm2108_vm14 = vcmp.ne.s32.totalorder %v2050_v44, 0  ;;  %v2218_v8 = vadd.s32 18, %v2072_v50 }
 0x255   : > { %v2216_v58 = vadd.s32 18, %v2050_v44 }
 0x256   : > { %vm2109_vm4 = vcmp.ne.s32.totalorder %v2061_v26, 0  ;;  %vm2145_vm7 = vcmp.lt.s32.totalorder %v2061_v26, 0 }
 0x257   : > { %vm4757_vm6 = vmand %vm2145_vm7, %vm2109_vm4 }
 0x25e   : > { %v2801_v45 = vpop.f32.mrb[8].mxu1 }
 0x25f   : > { %v1620_v25 = vadd.f32 %v4607_v17, %v2801_v45  ;;  %v1611_v2 = vpop.f32.mrb[9].mxu1  ;;  %v2217_v45 = vadd.s32 18, %v2061_v26 }
 0x260   : > { %v1612_v3 = vadd.f32 %v4607_v17, %v1611_v2  ;;  %v2802_v55 = vpop.f32.mrb[10].mxu1 }
 0x261   : > { %vm2321_vm13 = vcmp.gt.f32.partialorder %v1620_v25, 0.0  ;;  %v2357_v20 = vmul.f32 0.2, %v1620_v25  ;;  %v1623_v62 = vadd.f32 %v4607_v17, %v2802_v55  ;;  %v1614_v57 = vpop.f32.mrb[11].mxu1  ;;  %v2253_v1 = vsel %vm4757_vm6, %v2217_v45, %v2061_v26 }
 0x262   : > { %vm2319_vm1 = vcmp.gt.f32.partialorder %v1612_v3, 0.0  ;;  %v2355_v41 = vmul.f32 0.2, %v1612_v3  ;;  %v1615_v27 = vadd.f32 %v4607_v17, %v1614_v57 }
 0x263   : > { %v2393_v37 = vsel %vm2321_vm13, %v1620_v25, %v2357_v20  ;;  %vm2322_vm15 = vcmp.gt.f32.partialorder %v1623_v62, 0.0  ;;  %v2358_v23 = vmul.f32 0.2, %v1623_v62  ;;  %vm2144_vm13 = vcmp.lt.s32.totalorder %v2050_v44, 0 }
 0x264   : > { %v2391_v46 = vsel %vm2319_vm1, %v1612_v3, %v2355_v41  ;;  %vm2320_vm3 = vcmp.gt.f32.partialorder %v1615_v27, 0.0  ;;  %v2356_v47 = vmul.f32 0.2, %v1615_v27  ;;  %v2501_v18 = vsel %vm4688_vm10, %v2393_v37, 0.0 }
 0x265   : > { %v2499_v30 = vsel %vm4725_vm11, %v2391_v46, 0.0  ;;  %v2394_v24 = vsel %vm2322_vm15, %v1623_v62, %v2358_v23  ;;  %v2544_v0 = vmul.f32 %v4641_v7, %v2501_v18  ;;  %vm2110_vm10 = vcmp.ne.s32.totalorder %v2072_v50, 0  ;;  %vm4761_vm11 = vmand %vm2143_vm9, %vm2107_vm5 }
 0x266   : > { %v2542_v33 = vmul.f32 %v4641_v7, %v2499_v30  ;;  %v2392_v36 = vsel %vm2320_vm3, %v1615_v27, %v2356_v47  ;;  %v2502_v10 = vsel %vm4730_vm12, %v2394_v24, 0.0  ;;  %vm4767_vm1 = vmand %vm2146_vm0, %vm2110_vm10  ;;  %v2251_v63 = vsel %vm4761_vm11, %v2215_v28, %v2039_v49 }
 0x267   : > { %v2500_v39 = vsel %vm2284_vm2, %v2392_v36, 0.0  ;;  %v2545_v60 = vmul.f32 %v4641_v7, %v2502_v10  ;;  %v2609_v38 = vsel %vm1144_vm8, %v2544_v0, 0.0  ;;  %vm4771_vm12 = vmand %vm2144_vm13, %vm2108_vm14  ;;  %vm4778_vm15 = vcmp.lt.s32.totalorder %v2253_v1, 16 }
 0x268   : > { %v2605_v4 = vsel %vm1144_vm8, %v2542_v33, 0.0  ;;  %v2543_v61 = vmul.f32 %v4641_v7, %v2500_v39  ;;  %v2254_v55 = vsel %vm4767_vm1, %v2218_v8, %v2072_v50  ;;  %v2252_v20 = vsel %vm4771_vm12, %v2216_v58, %v2050_v44 }
 0x269   : > { %v2606_v11 = vadd.f32 %v2605_v4, %v4661_v54  ;;  %v2611_v15 = vsel %vm1144_vm8, %v2545_v60, 0.0  ;;  %vm2287_vm3 = vcmp.lt.s32.totalorder %v2251_v63, 16  ;;  %vm4789_vm7 = vcmp.lt.s32.totalorder %v2254_v55, 16 }
 0x26a   : > { %v2607_v12 = vsel %vm1144_vm8, %v2543_v61, 0.0  ;;  %vm2288_vm9 = vcmp.lt.s32.totalorder %v2252_v20, 16 }
 0x26b   : > { %v2608_v22 = vadd.f32 %v2607_v12, %v2606_v11 }
 0x26d   : > { %v2610_v6 = vadd.f32 %v2609_v38, %v2608_v22 }
 0x26f   : > { %v2612_v54 = vadd.f32 %v2611_v15, %v2610_v6  ;;  %v2632_v6 = vld [vmem:[#allocation2] sm:$0x1] }
 0x27b   : > { %v2805_v59 = vpop.f32.mrb[12].mxu1 }
 0x27c   : > { %v1636_v25 = vadd.f32 %v4607_v17, %v2805_v59  ;;  %v1627_v2 = vpop.f32.mrb[13].mxu1 }
 0x27d   : > { %v1628_v29 = vadd.f32 %v4607_v17, %v1627_v2  ;;  %v2806_v3 = vpop.f32.mrb[14].mxu1 }
 0x27e   : > { %vm2325_vm2 = vcmp.gt.f32.partialorder %v1636_v25, 0.0  ;;  %v2361_v40 = vmul.f32 0.2, %v1636_v25  ;;  %v1639_v13 = vadd.f32 %v4607_v17, %v2806_v3  ;;  %v1630_v51 = vpop.f32.mrb[15].mxu1 }
 0x27f   : > { %vm2323_vm4 = vcmp.gt.f32.partialorder %v1628_v29, 0.0  ;;  %v2359_v62 = vmul.f32 0.2, %v1628_v29  ;;  %v1631_v57 = vadd.f32 %v4607_v17, %v1630_v51 }
 0x280   : > { %v2397_v52 = vsel %vm2325_vm2, %v1636_v25, %v2361_v40  ;;  %vm2326_vm5 = vcmp.gt.f32.partialorder %v1639_v13, 0.0  ;;  %v2362_v41 = vmul.f32 0.2, %v1639_v13 }
 0x281   : > { %v2395_v27 = vsel %vm2323_vm4, %v1628_v29, %v2359_v62  ;;  %vm2324_vm6 = vcmp.gt.f32.partialorder %v1631_v57, 0.0  ;;  %v2360_v37 = vmul.f32 0.2, %v1631_v57  ;;  %v2505_v43 = vsel %vm4778_vm15, %v2397_v52, 0.0 }
 0x282   : > { %v2503_v23 = vsel %vm2287_vm3, %v2395_v27, 0.0  ;;  %v2398_v46 = vsel %vm2326_vm5, %v1639_v13, %v2362_v41  ;;  %v2548_v24 = vmul.f32 %v4641_v7, %v2505_v43 }
 0x283   : > { %v2546_v47 = vmul.f32 %v4641_v7, %v2503_v23  ;;  %v2396_v18 = vsel %vm2324_vm6, %v1631_v57, %v2360_v37  ;;  %v2506_v17 = vsel %vm4789_vm7, %v2398_v46, 0.0 }
 0x284   : > { %v2504_v30 = vsel %vm2288_vm9, %v2396_v18, 0.0  ;;  %v2549_v39 = vmul.f32 %v4641_v7, %v2506_v17  ;;  %v2617_v61 = vsel %vm1144_vm8, %v2548_v24, 0.0 }
 0x285   : > { %v2613_v33 = vsel %vm1144_vm8, %v2546_v47, 0.0  ;;  %v2547_v36 = vmul.f32 %v4641_v7, %v2504_v30 }
 0x286   : > { %v2614_v10 = vadd.f32 %v2613_v33, %v2612_v54  ;;  %v2619_v11 = vsel %vm1144_vm8, %v2549_v39, 0.0 }
 0x287   : > { %v2615_v0 = vsel %vm1144_vm8, %v2547_v36, 0.0  ;;  %vm2640_vm8 = vcmask 0  }
 0x288   : > { %v2616_v4 = vadd.f32 %v2615_v0, %v2614_v10 }
 0x28a   : > { %v2618_v32 = vadd.f32 %v2617_v61, %v2616_v4 }
 0x28c   : > { %v2620_v60 = vadd.f32 %v2619_v11, %v2618_v32 }
 0x28e   : > { %2621 = vadd.xlane.f32.xlu0 %v2620_v60 }
 0x31b   : > { %v2622_v12 = vpop.xlane.xlu0 %2621 }
 0x31c   : > { %v2623_v53 = vrot.slane %v2622_v12, 4 }
 0x31e   : > { %v2624_v22 = vadd.f32 %v2623_v53, %v2622_v12 }
 0x320   : > { %v2625_v19 = vrot.slane %v2624_v22, 2 }
 0x322   : > { %v2626_v38 = vadd.f32 %v2625_v19, %v2624_v22 }
 0x324   : > { %v2627_v34 = vrot.slane %v2626_v38, 1 }
 0x326   : > { %v2628_v31 = vadd.f32 %v2627_v34, %v2626_v38 }
 0x328   : > { %2888 = vpush %v2628_v31 }
 0x359   : > { %s2889_s23 = spop %2888 }
 0x35a   : > { %v2630_v7 = vstv %s2889_s23 }
 0x35b   : > { %v2631_v15 = vmul.f32 0.00390625, %v2630_v7 }
 0x35d   : > { %v2633_v5 = vadd.f32 %v2632_v6, %v2631_v15 }
 0x35f   : > { %v2741_v21 = vmul.f32 -1.442695, %v2633_v5 }
 0x361   : > { %2932 = vpow2.f32 %v2741_v21 }
 0x36b   : > { %v2933_v54 = vpop.eup %2932 }
 0x36c   : > { %v2637_v26 = vadd.f32 1.0, %v2933_v54 }
 0x36e   : > { %2934 = vrcp.f32 %v2637_v26 }
 0x378   : > { %v2935_v9 = vpop.eup %2934 }
 0x379   : > { %2641 = vst.msk [vmem:[%s222_s26] sm:$0x1] %vm2640_vm8, %v2935_v9 }
 0x37a PF: > { %s17_s20 = sadd.s32 1, %s2945_s20  }
 0x37b   : > { %p14_p4 = scmp.ge.s32.totalorder %s17_s20, 4  }
 0x37d   :  { %16 = sbr.rel (!%p14_p4) target bundleno = 3 (0x3), region = 70 }

// kernel: network_forward.3
= control target key start
LH: loop header
LB: loop body
LE: loop exit
PB: predicated region body
PF: predicated region fallthrough
CT: control target
= control target key end

     0   :  { %s4038_s23 = smov 0   ;;  %s6708_s0 = inlined_call_operand.vmem [shape: bf16[2,342,4], index: 0, kind: input, shape index: {}]   ;;  %s6709_s1 = inlined_call_operand.vmem [shape: bf16[36,12], index: 1, kind: input, shape index: {}]   ;;  %s6710_s2 = inlined_call_operand.vmem [shape: f32[1,12], index: 2, kind: input, shape index: {}]   ;;  %s6711_s3 = inlined_call_operand.vmem [shape: f32[1,8], index: 3, kind: input, shape index: {}]   ;;  %s6712_s4 = inlined_call_operand.<no memory space> [shape: f32[1,1], index: 4, kind: input, shape index: {}]   ;;  %s6713_s5 = inlined_call_operand.vmem [shape: bf16[2,342,4], index: 5, kind: output, shape index: {0}]   ;;  %s6714_s6 = inlined_call_operand.vmem [shape: f32[2,1,1], index: 6, kind: output, shape index: {1}]  }
   0x1   :  { %v12_v0 = vstv %s6712_s4 }
   0x2   :  { %13 = vst [vmem:[#allocation2] sm:$0x1] %v12_v0 }
   0x3 LB: > { %s3578_s24 = sadd.s32 4294967295, %s3988_s23   ;;  %p3582_p0 = scmp.ge.s32.totalorder %s3988_s23, 1  ;;  %s3988_s23 = sphi %s4038_s23, %s19_s23  }
   0x4   : > { %p217_p1 = scmp.lt.s32.totalorder %s3988_s23, 3 }
   0x6   : > { %p218_p2 = pnand %p3582_p0, %p217_p1 }
   0x7   : > { %p250_p3 = scmp.lt.s32.totalorder (!%p218_p2), %s3578_s24, 1  ;;  %vm589_vm0 = vcmask (!%p218_p2), 1046528   ;;  %vm831_vm1 = vcmask (!%p218_p2), 1045504   ;;  %vm404_vm2 = vsmask.f32 (!%p218_p2), 7424  ;;  %s3990_s28 = smov (!%p218_p2), 12  }
   0x8   : > { %221 = sbr.rel (%p218_p2) target bundleno = 1005 (0x3ed), region = 40  ;;  %s3991_s29 = smov (!%p218_p2), 8   ;;  %v3881_v37 = vld [vmem:[%s6709_s1] sm:$0xff] (!%p218_p2)   ;;  %vm709_vm3 = vsmask.f32 (!%p218_p2), 6400  ;;  %v3883_v45 = vld [vmem:[%s6709_s1 + $0x8] sm:$0xff] (!%p218_p2)  }
   0x9   : > { %s3992_s30 = smov (!%p218_p2), 20   ;;  %s3993_s7 = smov (!%p218_p2), 4   ;;  %3727 = vmatprep.subr.bf16.mxu0 (!%p218_p2), %v3881_v37  ;;  %3769 = vmatprep.subr.bf16.mxu1 (!%p218_p2), %v3881_v37  ;;  %vm951_vm4 = vsmask.f32 (!%p218_p2), 5376  ;;  %vm1073_vm5 = vcmask (!%p218_p2), 1044480   ;;  %vm1501_vm6 = vcmask (!%p218_p2), 1041408  }
   0xa   : > { %3728 = vmatpush3.bf16.msra.mxu0 (!%p218_p2), %v3881_v37  ;;  %3772 = vmatpush3.bf16.msra.mxu1 (!%p218_p2), %v3881_v37  ;;  %s3994_s12 = smov (!%p218_p2), 16   ;;  %s3995_s13 = smov (!%p218_p2), 24   ;;  %vm6724_vm7 = vcmask (!%p218_p2), 31744   ;;  %vm6723_vm8 = vcmask (!%p218_p2), 64512   ;;  %vm6722_vm9 = vcmask (!%p218_p2), 97280   ;;  %vm6721_vm10 = vcmask (!%p218_p2), 130048  }
   0xb   : > { %3729 = vmatprep.subr.bf16.mxu0 (!%p218_p2), %v3883_v45  ;;  %3770 = vmatprep.subr.bf16.mxu1 (!%p218_p2), %v3883_v45  ;;  %s3996_s14 = smov (!%p218_p2), 28   ;;  %s3997_s15 = smov (!%p218_p2), 32   ;;  %vm6720_vm11 = vcmask (!%p218_p2), 162816   ;;  %vm6719_vm12 = vcmask (!%p218_p2), 195584   ;;  %vm6718_vm13 = vcmask (!%p218_p2), 228352   ;;  %vm6717_vm14 = vcmask (!%p218_p2), 261120  }
   0xc   : > { %vm6716_vm15 = vcmask (!%p218_p2), 293888   ;;  %s3999_s26 = smov (!%p218_p2), 124  }
   0xe   : > { %3730 = vmatpush3.bf16.msra.mxu0 (!%p218_p2), %v3883_v45  ;;  %3773 = vmatpush3.bf16.msra.mxu1 (!%p218_p2), %v3883_v45 }
   0xf   : > { %s6968_s24 = smov (!%p250_p3, %s3578_s24), 1 }
  0x10   : > { %s3777_s4 = smul.u32 172, %s6968_s24  ;;  %s262_s10 = scalar_lea.vmem %s6714_s6, %s6968_s24 }
  0x12   : > { %s4054_s27 = scalar_lea.vmem %s6708_s0, %s3777_s4  ;;  %s4859_s20 = scalar_lea.vmem %s6713_s5, %s3777_s4 }
  0x13   : > { %v4057_v1 = vld [vmem:[%s4054_s27 + $0x8] sm:$0xff]   ;;  %v4060_v2 = vld [vmem:[%s4054_s27 + $0x10] sm:$0xff]   ;;  %v4063_v3 = vld [vmem:[%s4054_s27] sm:$0xff]  }
  0x14   : > { %v591_v4 = vrot.slane %v4057_v1, 1  ;;  %v593_v5 = vrot.slane %v4060_v2, 1  ;;  %v832_v6 = vrot.slane %v4057_v1, 2  ;;  %v833_v7 = vrot.slane %v4060_v2, 2  ;;  %v4071_v9 = vld [vmem:[%s4054_s27 + $0x18] sm:$0xff]   ;;  %v4110_v36 = vld [vmem:[%s4054_s27 + $0x20] sm:$0xff]  }
  0x15   : > { %v590_v8 = vrot.slane %v4063_v3, 1  ;;  %v406_v10 = vshrl.u32 %v4063_v3, 16  ;;  %v408_v11 = vshll.u32 %v4063_v3, 16  ;;  %v413_v13 = vshll.u32 %v4057_v1, 16 }
  0x16   : > { %v594_v12 = vsel %vm589_vm0, %v591_v4, %v593_v5  ;;  %v834_v15 = vsel %vm831_vm1, %v832_v6, %v833_v7  ;;  %v417_v17 = vshrl.u32 %v4057_v1, 16  ;;  %v595_v18 = vrot.slane %v4071_v9, 1 }
  0x17   : > { %673 = vrot.lane.b32.xlu0 %v594_v12, %s3990_s28  ;;  %v592_v14 = vsel %vm589_vm0, %v590_v8, %v591_v4  ;;  %v410_v16 = vrot.slane %v408_v11, 1  ;;  %v415_v19 = vrot.slane %v413_v13, 1  ;;  %v4084_v20 = vshll.u32 %v4060_v2, 16 }
  0x18   : > { %627 = vrot.lane.b32.xlu1 %v592_v14, %s3991_s29  ;;  %v4087_v21 = vshrl.u32 %v4060_v2, 16  ;;  %v4090_v23 = vshll.u32 %v4071_v9, 16  ;;  %v4093_v24 = vshrl.u32 %v4071_v9, 16  ;;  %v710_v30 = vrot.slane %v417_v17, 1 }
  0x19   : > { %v411_v22 = vor.u32 %v410_v16, %v406_v10  ;;  %v423_v25 = vrot.slane %v4084_v20, 1  ;;  %v714_v27 = vrot.slane %v4084_v20, 2  ;;  %v419_v29 = vor.u32 %v417_v17, %v415_v19  ;;  %v4170_v10 = vld [vmem:[%s4054_s27 + $0x28] sm:$0xff]  }
  0x1a   : > { %v713_v26 = vrot.slane %v4087_v21, 1  ;;  %v711_v31 = vrot.slane %v413_v13, 2  ;;  %v4104_v32 = vsel %vm589_vm0, %v593_v5, %v595_v18  ;;  %v835_v33 = vrot.slane %v4071_v9, 2 }
  0x1b   : > { %869 = vrot.lane.b32.xlu0 %v834_v15, %s3992_s30  ;;  %v416_v28 = vsel %vm404_vm2, %v411_v22, %v415_v19  ;;  %v717_v34 = vrot.slane %v4093_v24, 1  ;;  %v718_v35 = vrot.slane %v4090_v23, 2  ;;  %v424_v38 = vsel %vm404_vm2, %v419_v29, %v423_v25 }
  0x1c   : > { %629 = vrot.lane.b32.xlu1 %v594_v12, %s3991_s29  ;;  %v715_v39 = vor.u32 %v714_v27, %v713_v26  ;;  %v712_v40 = vor.u32 %v711_v31, %v710_v30  ;;  %v836_v41 = vsel %vm831_vm1, %v833_v7, %v835_v33  ;;  %v4123_v43 = vshll.u32 %v4110_v36, 16  ;;  %v4198_v26 = vld [vmem:[%s4054_s27 + $0x30] sm:$0xff]  }
  0x1d   : > { %v4120_v42 = vor.u32 %v718_v35, %v717_v34  ;;  %v4126_v44 = vshrl.u32 %v4110_v36, 16  ;;  %v955_v46 = vrot.slane %v4093_v24, 2  ;;  %v956_v47 = vrot.slane %v4090_v23, 3  ;;  %v3884_v27 = vld [vmem:[%s6709_s1 + $0x10] ss:$0 sps:$4 sm:$0x33]  }
  0x1e   : > { %v716_v48 = vsel %vm709_vm3, %v712_v40, %v715_v39  ;;  %v952_v49 = vrot.slane %v4087_v21, 2  ;;  %v953_v50 = vrot.slane %v4084_v20, 3  ;;  %v837_v52 = vrot.slane %v4110_v36, 2  ;;  %3775 = vmatprep.subr.msk.bf16.mxu0 %vm1501_vm6, %v3884_v27  ;;  %3776 = vmatprep.subr.msk.bf16.mxu1 %vm1501_vm6, %v3884_v27 }
  0x1f   : > { %553 = vrot.lane.b32.xlu0 %v416_v28, %s3993_s7  ;;  %v720_v51 = vsel %vm709_vm3, %v715_v39, %v4120_v42  ;;  %v959_v53 = vrot.slane %v4126_v44, 2  ;;  %v960_v54 = vrot.slane %v4123_v43, 3  ;;  %v957_v55 = vor.u32 %v956_v47, %v955_v46 }
  0x20   : > { %675 = vrot.lane.b32.xlu1 %v4104_v32, %s3990_s28  ;;  %v954_v56 = vor.u32 %v953_v50, %v952_v49  ;;  %v4148_v57 = vsel %vm831_vm1, %v835_v33, %v837_v52  ;;  %v1074_v60 = vrot.slane %v4060_v2, 3  ;;  %v1075_v61 = vrot.slane %v4071_v9, 3 }
  0x21   : > { %v4150_v58 = vor.u32 %v960_v54, %v959_v53  ;;  %v427_v63 = vor.u32 %v4087_v21, %v423_v25  ;;  %v431_v0 = vrot.slane %v4090_v23, 1  ;;  %v1077_v5 = vrot.slane %v4110_v36, 3  ;;  %v4246_v54 = vld [vmem:[%s4054_s27 + $0x38] sm:$0xff]  }
  0x22   : > { %v958_v59 = vsel %vm951_vm4, %v954_v56, %v957_v55  ;;  %v1076_v4 = vsel %vm1073_vm5, %v1074_v60, %v1075_v61  ;;  %v439_v8 = vrot.slane %v4123_v43, 1  ;;  %v597_v13 = vrot.slane %v4110_v36, 1 }
  0x23   : > { %555 = vrot.lane.b32.xlu0 %v424_v38, %s3993_s7  ;;  %v962_v62 = vsel %vm951_vm4, %v957_v55, %v4150_v58  ;;  %v432_v6 = vsel %vm404_vm2, %v427_v63, %v431_v0  ;;  %v435_v7 = vor.u32 %v4093_v24, %v431_v0  ;;  %v1078_v11 = vsel %vm1073_vm5, %v1075_v61, %v1077_v5 }
  0x24   : > { %871 = vrot.lane.b32.xlu1 %v836_v41, %s3992_s30  ;;  %v445_v14 = vshll.u32 %v4170_v10, 16  ;;  %v449_v15 = vshrl.u32 %v4170_v10, 16  ;;  %v721_v16 = vrot.slane %v4126_v44, 1  ;;  %v722_v17 = vrot.slane %v4123_v43, 2 }
  0x25   : > { %v440_v12 = vsel %vm404_vm2, %v435_v7, %v439_v8  ;;  %v598_v19 = vsel %vm589_vm0, %v595_v18, %v597_v13  ;;  %v599_v20 = vrot.slane %v4170_v10, 1  ;;  %v839_v29 = vrot.slane %v4170_v10, 2  ;;  %v4267_v7 = vld [vmem:[%s4054_s27 + $0x40] sm:$0xff]  }
  0x26   : > { %v725_v21 = vrot.slane %v449_v15, 1  ;;  %v726_v22 = vrot.slane %v445_v14, 2  ;;  %v723_v23 = vor.u32 %v722_v17, %v721_v16  ;;  %v4211_v30 = vshll.u32 %v4198_v26, 16 }
  0x27   : > { %795 = vrot.lane.b32.xlu0 %v716_v48, %s3994_s12  ;;  %v600_v24 = vsel %vm589_vm0, %v597_v13, %v599_v20  ;;  %v4214_v31 = vshrl.u32 %v4198_v26, 16  ;;  %v963_v33 = vrot.slane %v449_v15, 2  ;;  %v964_v34 = vrot.slane %v445_v14, 3 }
  0x28   : > { %797 = vrot.lane.b32.xlu1 %v720_v51, %s3994_s12  ;;  %v4195_v25 = vor.u32 %v726_v22, %v725_v21  ;;  %v724_v18 = vsel %vm709_vm3, %v4120_v42, %v723_v23  ;;  %v840_v35 = vsel %vm831_vm1, %v837_v52, %v839_v29  ;;  %v968_v38 = vrot.slane %v4211_v30, 3 }
  0x29   : > { %v967_v37 = vrot.slane %v4214_v31, 2  ;;  %v1503_v39 = vsel %vm1501_vm6, %v3884_v27, 0  ;;  %v965_v40 = vor.u32 %v964_v34, %v963_v33  ;;  %v1079_v45 = vrot.slane %v4170_v10, 3 }
  0x2a   : > { %v728_v28 = vsel %vm709_vm3, %v723_v23, %v4195_v25  ;;  %3732 = vmatpush3.bf16.msra.mxu0 %v1503_v39  ;;  %3774 = vmatpush3.bf16.msra.mxu1 %v1503_v39  ;;  %v443_v47 = vor.u32 %v4126_v44, %v439_v8  ;;  %v447_v48 = vrot.slane %v445_v14, 1  ;;  %v1081_v50 = vrot.slane %v4198_v26, 3 }
  0x2b   : > { %915 = vrot.lane.b32.xlu0 %v836_v41, %s3995_s13  ;;  %v969_v42 = vor.u32 %v968_v38, %v967_v37  ;;  %v966_v43 = vsel %vm951_vm4, %v4150_v58, %v965_v40  ;;  %v1080_v49 = vsel %vm1073_vm5, %v1077_v5, %v1079_v45  ;;  %v455_v53 = vrot.slane %v4211_v30, 1  ;;  %v4305_v37 = vld [vmem:[%s4054_s27 + $0x48] sm:$0xff]  }
  0x2c   : > { %917 = vrot.lane.b32.xlu1 %v4148_v57, %s3995_s13  ;;  %v448_v51 = vsel %vm404_vm2, %v443_v47, %v447_v48  ;;  %v451_v52 = vor.u32 %v449_v15, %v447_v48  ;;  %v1082_v44 = vsel %vm1073_vm5, %v1079_v45, %v1081_v50  ;;  %v601_v56 = vrot.slane %v4198_v26, 1 }
  0x2d   : > { %v970_v46 = vsel %vm951_vm4, %v965_v40, %v969_v42  ;;  %v465_v58 = vshrl.u32 %v4246_v54, 16  ;;  %v730_v60 = vrot.slane %v4211_v30, 2  ;;  %v4276_v13 = vshll.u32 %v4267_v7, 16 }
  0x2e   : > { %v456_v55 = vsel %vm404_vm2, %v451_v52, %v455_v53  ;;  %v602_v61 = vsel %vm589_vm0, %v599_v20, %v601_v56  ;;  %v4279_v14 = vshrl.u32 %v4267_v7, 16  ;;  %v605_v39 = vrot.slane %v4267_v7, 1  ;;  %v4330_v52 = vld [vmem:[%s4054_s27 + $0x50] sm:$0xff]  }
  0x2f   : > { %1037 = vrot.lane.b32.xlu0 %v958_v59, %s3996_s14  ;;  %v729_v59 = vrot.slane %v4214_v31, 1  ;;  %v733_v63 = vrot.slane %v465_v58, 1  ;;  %v971_v15 = vrot.slane %v465_v58, 2  ;;  %v976_v21 = vrot.slane %v4276_v13, 3 }
  0x30   : > { %1039 = vrot.lane.b32.xlu1 %v962_v62, %s3996_s14  ;;  %v603_v62 = vrot.slane %v4246_v54, 1  ;;  %v975_v20 = vrot.slane %v4279_v14, 2  ;;  %v477_v40 = vshll.u32 %v4305_v37, 16  ;;  %vm6715_vm6 = vcmask 27648  }
  0x32   : > { %v604_v5 = vsel %vm589_vm0, %v601_v56, %v603_v62  ;;  %v606_v45 = vsel %vm589_vm0, %v603_v62, %v605_v39  ;;  %v742_v48 = vrot.slane %v477_v40, 2  ;;  %v4340_v56 = vshll.u32 %v4330_v52, 16 }
  0x33   : > { %1111 = vrot.lane.b32.xlu0 %v1076_v4, %s3997_s15  ;;  %v731_v4 = vor.u32 %v730_v60, %v729_v59  ;;  %v980_v59 = vrot.slane %v477_v40, 3 }
  0x34   : > { %557 = vrot.lane.b32.xlu1 %v432_v6, %s3993_s7 }
  0x35   : > { %v732_v8 = vsel %vm709_vm3, %v4195_v25, %v731_v4 }
  0x37   : > { %1113 = vrot.lane.b32.xlu0 %v1078_v11, %s3997_s15 }
  0x38   : > { %559 = vrot.lane.b32.xlu1 %v440_v12, %s3993_s7  ;;  %v843_v12 = vrot.slane %v4246_v54, 2 }
  0x3b   : > { %631 = vrot.lane.b32.xlu0 %v4104_v32, %s3991_s29  ;;  %v841_v32 = vrot.slane %v4198_v26, 2 }
  0x3c   : > { %633 = vrot.lane.b32.xlu1 %v598_v19, %s3991_s29 }
  0x3d   : > { %v842_v41 = vsel %vm831_vm1, %v839_v29, %v841_v32  ;;  %v844_v17 = vsel %vm831_vm1, %v841_v32, %v843_v12  ;;  %v1085_v32 = vrot.slane %v4267_v7, 3 }
  0x3f   : > { %677 = vrot.lane.b32.xlu0 %v598_v19, %s3990_s28  ;;  %v845_v19 = vrot.slane %v4267_v7, 2 }
  0x40   : > { %679 = vrot.lane.b32.xlu1 %v600_v24, %s3990_s28 }
  0x41   : > { %v846_v23 = vsel %vm831_vm1, %v843_v12, %v845_v19 }
  0x43   : > { %799 = vrot.lane.b32.xlu0 %v724_v18, %s3994_s12  ;;  %v1083_v18 = vrot.slane %v4246_v54, 3 }
  0x44   : > { %801 = vrot.lane.b32.xlu1 %v728_v28, %s3994_s12  ;;  %v459_v28 = vor.u32 %v4214_v31, %v455_v53 }
  0x45   : > { %v1084_v30 = vsel %vm1073_vm5, %v1081_v50, %v1083_v18  ;;  %v1086_v31 = vsel %vm1073_vm5, %v1083_v18, %v1085_v32 }
  0x47   : > { %873 = vrot.lane.b32.xlu0 %v4148_v57, %s3992_s30  ;;  %v461_v57 = vshll.u32 %v4246_v54, 16 }
  0x48   : > { %875 = vrot.lane.b32.xlu1 %v840_v35, %s3992_s30 }
  0x49   : > { %v734_v0 = vrot.slane %v461_v57, 2  ;;  %v972_v16 = vrot.slane %v461_v57, 3  ;;  %v463_v29 = vrot.slane %v461_v57, 1  ;;  %v4343_v57 = vshrl.u32 %v4330_v52, 16 }
  0x4b   : > { %919 = vrot.lane.b32.xlu0 %v840_v35, %s3995_s13  ;;  %v735_v6 = vor.u32 %v734_v0, %v733_v63  ;;  %v973_v22 = vor.u32 %v972_v16, %v971_v15  ;;  %v464_v33 = vsel %vm404_vm2, %v459_v28, %v463_v29  ;;  %v467_v34 = vor.u32 %v465_v58, %v463_v29 }
  0x4c   : > { %921 = vrot.lane.b32.xlu1 %v842_v41, %s3995_s13  ;;  %v471_v35 = vrot.slane %v4276_v13, 1  ;;  %v983_v62 = vrot.slane %v4343_v57, 2  ;;  %v984_v63 = vrot.slane %v4340_v56, 3  ;;  %v479_v16 = vrot.slane %v477_v40, 1 }
  0x4d   : > { %v736_v11 = vsel %vm709_vm3, %v731_v4, %v735_v6  ;;  %v974_v25 = vsel %vm951_vm4, %v969_v42, %v973_v22  ;;  %v737_v42 = vrot.slane %v4279_v14, 1  ;;  %v609_v29 = vrot.slane %v4330_v52, 1 }
  0x4e   : > { %v472_v38 = vsel %vm404_vm2, %v467_v34, %v471_v35  ;;  %v475_v15 = vor.u32 %v4279_v14, %v471_v35  ;;  %v745_v35 = vrot.slane %v4343_v57, 1 }
  0x4f   : > { %1041 = vrot.lane.b32.xlu0 %v966_v43, %s3996_s14  ;;  %v738_v43 = vrot.slane %v4276_v13, 2 }
  0x50   : > { %1043 = vrot.lane.b32.xlu1 %v970_v46, %s3996_s14  ;;  %v607_v46 = vrot.slane %v4305_v37, 1 }
  0x52   : > { %v4325_v50 = vsel %vm589_vm0, %v605_v39, %v607_v46  ;;  %v610_v40 = vsel %vm589_vm0, %v607_v46, %v609_v29 }
  0x53   : > { %1115 = vrot.lane.b32.xlu0 %v1080_v49, %s3997_s15  ;;  %v739_v49 = vor.u32 %v738_v43, %v737_v42 }
  0x54   : > { %561 = vrot.lane.b32.xlu1 %v448_v51, %s3993_s7 }
  0x55   : > { %v740_v53 = vsel %vm709_vm3, %v735_v6, %v739_v49  ;;  %v4358_v6 = vor.u32 %v984_v63, %v983_v62 }
  0x57   : > { %1117 = vrot.lane.b32.xlu0 %v1082_v44, %s3997_s15 }
  0x58   : > { %563 = vrot.lane.b32.xlu1 %v456_v55, %s3993_s7  ;;  %v847_v55 = vrot.slane %v4305_v37, 2 }
  0x5a   : > { %v848_v60 = vsel %vm831_vm1, %v845_v19, %v847_v55 }
  0x5b   : > { %635 = vrot.lane.b32.xlu0 %v600_v24, %s3991_s29  ;;  %v977_v24 = vor.u32 %v976_v21, %v975_v20  ;;  %v1089_v20 = vrot.slane %v4330_v52, 3 }
  0x5c   : > { %637 = vrot.lane.b32.xlu1 %v602_v61, %s3991_s29 }
  0x5d   : > { %v978_v27 = vsel %vm951_vm4, %v973_v22, %v977_v24  ;;  %v480_v22 = vsel %vm404_vm2, %v475_v15, %v479_v16 }
  0x5f   : > { %681 = vrot.lane.b32.xlu0 %v602_v61, %s3990_s28  ;;  %v849_v61 = vrot.slane %v4330_v52, 2 }
  0x60   : > { %683 = vrot.lane.b32.xlu1 %v604_v5, %s3990_s28 }
  0x63   : > { %803 = vrot.lane.b32.xlu0 %v732_v8, %s3994_s12 }
  0x64   : > { %805 = vrot.lane.b32.xlu1 %v736_v11, %s3994_s12  ;;  %v1087_v11 = vrot.slane %v4305_v37, 3 }
  0x66   : > { %v1088_v19 = vsel %vm1073_vm5, %v1085_v32, %v1087_v11  ;;  %v1090_v14 = vsel %vm1073_vm5, %v1087_v11, %v1089_v20 }
  0x67   : > { %877 = vrot.lane.b32.xlu0 %v842_v41, %s3992_s30  ;;  %v481_v41 = vshrl.u32 %v4305_v37, 16 }
  0x68   : > { %879 = vrot.lane.b32.xlu1 %v844_v17, %s3992_s30 }
  0x69   : > { %v741_v47 = vrot.slane %v481_v41, 1  ;;  %v979_v58 = vrot.slane %v481_v41, 2 }
  0x6b   : > { %923 = vrot.lane.b32.xlu0 %v844_v17, %s3995_s13  ;;  %v4327_v51 = vor.u32 %v742_v48, %v741_v47  ;;  %v981_v0 = vor.u32 %v980_v59, %v979_v58 }
  0x6c   : > { %925 = vrot.lane.b32.xlu1 %v846_v23, %s3995_s13 }
  0x6d   : > { %v744_v44 = vsel %vm709_vm3, %v739_v49, %v4327_v51  ;;  %v982_v8 = vsel %vm951_vm4, %v977_v24, %v981_v0  ;;  %v986_v13 = vsel %vm951_vm4, %v981_v0, %v4358_v6  ;;  %v487_v24 = vrot.slane %v4340_v56, 1  ;;  %v4420_v49 = vld [vmem:[%s4054_s27 + $0x60] sm:$0xff]  }
  0x6e   : > { %v4435_v63 = vshll.u32 %v4420_v49, 16  ;;  %v4438_v0 = vshrl.u32 %v4420_v49, 16 }
  0x6f   : > { %1045 = vrot.lane.b32.xlu0 %v974_v25, %s3996_s14  ;;  %v4377_v25 = vld [vmem:[%s4054_s27 + $0x58] sm:$0xff]  }
  0x70   : > { %1047 = vrot.lane.b32.xlu1 %v978_v27, %s3996_s14  ;;  %v4392_v32 = vshrl.u32 %v4377_v25, 16  ;;  %v611_v34 = vrot.slane %v4377_v25, 1 }
  0x72   : > { %v4415_v46 = vsel %vm589_vm0, %v609_v29, %v611_v34 }
  0x73   : > { %1119 = vrot.lane.b32.xlu0 %v1084_v30, %s3997_s15  ;;  %v4389_v30 = vshll.u32 %v4377_v25, 16 }
  0x74   : > { %565 = vrot.lane.b32.xlu1 %v464_v33, %s3993_s7 }
  0x75   : > { %v750_v42 = vrot.slane %v4389_v30, 2  ;;  %v988_v15 = vrot.slane %v4389_v30, 3 }
  0x77   : > { %1121 = vrot.lane.b32.xlu0 %v1086_v31, %s3997_s15  ;;  %v746_v31 = vrot.slane %v4340_v56, 2 }
  0x78   : > { %567 = vrot.lane.b32.xlu1 %v472_v38, %s3993_s7 }
  0x7b   : > { %639 = vrot.lane.b32.xlu0 %v604_v5, %s3991_s29  ;;  %v4356_v5 = vsel %vm831_vm1, %v847_v55, %v849_v61 }
  0x7c   : > { %641 = vrot.lane.b32.xlu1 %v606_v45, %s3991_s29 }
  0x7f   : > { %685 = vrot.lane.b32.xlu0 %v606_v45, %s3990_s28 }
  0x80   : > { %687 = vrot.lane.b32.xlu1 %v4325_v50, %s3990_s28 }
  0x83   : > { %807 = vrot.lane.b32.xlu0 %v740_v53, %s3994_s12 }
  0x84   : > { %809 = vrot.lane.b32.xlu1 %v744_v44, %s3994_s12  ;;  %v851_v44 = vrot.slane %v4377_v25, 2 }
  0x87   : > { %881 = vrot.lane.b32.xlu0 %v846_v23, %s3992_s30  ;;  %v483_v23 = vor.u32 %v481_v41, %v479_v16  ;;  %v749_v41 = vrot.slane %v4392_v32, 1 }
  0x88   : > { %883 = vrot.lane.b32.xlu1 %v848_v60, %s3992_s30 }
  0x89   : > { %v674_v4 = vpop.permute.xlu0 %673  ;;  %v488_v28 = vsel %vm404_vm2, %v483_v23, %v487_v24  ;;  %v4417_v48 = vor.u32 %v750_v42, %v749_v41  ;;  %v491_v41 = vor.u32 %v4343_v57, %v487_v24  ;;  %v495_v42 = vrot.slane %v4389_v30, 1  ;;  %v4496_v24 = vld [vmem:[%s4054_s27 + $0x68] sm:$0xff]  }
  0x8a   : > { %v628_v7 = vpop.permute.xlu1 %627  ;;  %v503_v57 = vrot.slane %v4435_v63, 1 }
  0x8b   : > { %927 = vrot.lane.b32.xlu0 %v848_v60, %s3995_s13  ;;  %v499_v56 = vor.u32 %v4392_v32, %v495_v42 }
  0x8c   : > { %929 = vrot.lane.b32.xlu1 %v4356_v5, %s3995_s13 }
  0x8d   : > { %v4365_v12 = vpop.permute.xlu0 %869 }
  0x8e   : > { %v630_v17 = vpop.permute.xlu1 %629 }
  0x8f   : > { %1049 = vrot.lane.b32.xlu0 %v982_v8, %s3996_s14 }
  0x90   : > { %1051 = vrot.lane.b32.xlu1 %v986_v13, %s3996_s14  ;;  %v987_v13 = vrot.slane %v4392_v32, 2  ;;  %v613_v32 = vrot.slane %v4420_v49, 1 }
  0x91   : > { %v554_v21 = vpop.permute.xlu0 %553 }
  0x92   : > { %v676_v18 = vpop.permute.xlu1 %675  ;;  %v1149_v38 = vsel %vm6724_vm7, %v4063_v3, %v554_v21  ;;  %v747_v3 = vor.u32 %v746_v31, %v745_v35 }
  0x93   : > { %1123 = vrot.lane.b32.xlu0 %v1088_v19, %s3997_s15  ;;  %v1186_v47 = vsel %vm6723_vm8, %v1149_v38, %v628_v7  ;;  %v991_v19 = vrot.slane %v4438_v0, 2  ;;  %v1091_v38 = vrot.slane %v4377_v25, 3 }
  0x94   : > { %569 = vrot.lane.b32.xlu1 %v480_v22, %s3993_s7  ;;  %v1223_v53 = vsel %vm6722_vm9, %v1186_v47, %v674_v4  ;;  %v748_v58 = vsel %vm709_vm3, %v4327_v51, %v747_v3  ;;  %v752_v62 = vsel %vm709_vm3, %v747_v3, %v4417_v48  ;;  %v852_v51 = vsel %vm831_vm1, %v849_v61, %v851_v44 }
  0x95   : > { %v556_v27 = vpop.permute.xlu0 %555  ;;  %v992_v61 = vrot.slane %v4435_v63, 3  ;;  %v496_v3 = vsel %vm404_vm2, %v491_v41, %v495_v42 }
  0x96   : > { %v872_v33 = vpop.permute.xlu1 %871  ;;  %v1151_v45 = vsel %vm6724_vm7, %v4057_v1, %v556_v27 }
  0x97   : > { %1125 = vrot.lane.b32.xlu0 %v1090_v14, %s3997_s15  ;;  %v1188_v1 = vsel %vm6723_vm8, %v1151_v45, %v630_v17  ;;  %v853_v17 = vrot.slane %v4420_v49, 2  ;;  %v989_v14 = vor.u32 %v988_v15, %v987_v13  ;;  %v4468_v35 = vor.u32 %v992_v61, %v991_v19 }
  0x98   : > { %571 = vrot.lane.b32.xlu1 %v488_v28, %s3993_s7  ;;  %v1225_v59 = vsel %vm6722_vm9, %v1188_v1, %v676_v18  ;;  %v1093_v45 = vrot.slane %v4420_v49, 3  ;;  %v4508_v1 = vshll.u32 %v4496_v24, 16 }
  0x99   : > { %v796_v39 = vpop.permute.xlu0 %795  ;;  %v4466_v29 = vsel %vm831_vm1, %v851_v44, %v853_v17  ;;  %v990_v31 = vsel %vm951_vm4, %v4358_v6, %v989_v14  ;;  %v1092_v6 = vsel %vm1073_vm5, %v1089_v20, %v1091_v38  ;;  %v753_v44 = vrot.slane %v4438_v0, 1 }
  0x9a   : > { %v798_v43 = vpop.permute.xlu1 %797  ;;  %v1260_v55 = vsel %vm6721_vm10, %v1223_v53, %v796_v39  ;;  %v1094_v52 = vsel %vm1073_vm5, %v1091_v38, %v1093_v45 }
  0x9b   : > { %643 = vrot.lane.b32.xlu0 %v4325_v50, %s3991_s29  ;;  %v1297_v7 = vsel %vm6720_vm11, %v1260_v55, %v4365_v12  ;;  %v1262_v8 = vsel %vm6721_vm10, %v1225_v59, %v798_v43  ;;  %v754_v55 = vrot.slane %v4435_v63, 2  ;;  %v614_v59 = vsel %vm589_vm0, %v611_v34, %v613_v32 }
  0x9c   : > { %645 = vrot.lane.b32.xlu1 %v610_v40, %s3991_s29  ;;  %v1299_v23 = vsel %vm6720_vm11, %v1262_v8, %v872_v33 }
  0x9d   : > { %v916_v37 = vpop.permute.xlu0 %915 }
  0x9e   : > { %v918_v50 = vpop.permute.xlu1 %917  ;;  %v1334_v11 = vsel %vm6719_vm12, %v1297_v7, %v916_v37  ;;  %v504_v37 = vsel %vm404_vm2, %v499_v56, %v503_v57 }
  0x9f   : > { %689 = vrot.lane.b32.xlu0 %v610_v40, %s3990_s28  ;;  %v1336_v18 = vsel %vm6719_vm12, %v1299_v23, %v918_v50  ;;  %v994_v40 = vsel %vm951_vm4, %v989_v14, %v4468_v35  ;;  %v4511_v50 = vshrl.u32 %v4496_v24, 16 }
  0xa0   : > { %691 = vrot.lane.b32.xlu1 %v4415_v46, %s3990_s28 }
  0xa1   : > { %v1038_v60 = vpop.permute.xlu0 %1037  ;;  %v995_v38 = vrot.slane %v4511_v50, 2 }
  0xa2   : > { %v1040_v4 = vpop.permute.xlu1 %1039  ;;  %v1371_v12 = vsel %vm6718_vm13, %v1334_v11, %v1038_v60  ;;  %v615_v60 = vrot.slane %v4496_v24, 1  ;;  %v4534_v11 = vld [vmem:[%s4054_s27 + $0x70] sm:$0xff]  }
  0xa3   : > { %811 = vrot.lane.b32.xlu0 %v748_v58, %s3994_s12  ;;  %v1373_v27 = vsel %vm6718_vm13, %v1336_v18, %v1040_v4  ;;  %v758_v4 = vrot.slane %v4508_v1, 2 }
  0xa4   : > { %813 = vrot.lane.b32.xlu1 %v752_v62, %s3994_s12  ;;  %v757_v62 = vrot.slane %v4511_v50, 1  ;;  %v4529_v25 = vsel %vm589_vm0, %v613_v32, %v615_v60 }
  0xa5   : > { %v1112_v16 = vpop.permute.xlu0 %1111 }
  0xa6   : > { %v558_v21 = vpop.permute.xlu1 %557  ;;  %v1408_v22 = vsel %vm6717_vm14, %v1371_v12, %v1112_v16  ;;  %v4531_v34 = vor.u32 %v758_v4, %v757_v62  ;;  %v511_v62 = vrot.slane %v4508_v1, 1 }
  0xa7   : > { %885 = vrot.lane.b32.xlu0 %v4356_v5, %s3992_s30  ;;  %3733 = vmatprep.mubr.msk.bf16.mxu0 %vm6716_vm15, %v1408_v22  ;;  %v1153_v15 = vsel %vm6724_vm7, %v4060_v2, %v558_v21  ;;  %v4549_v2 = vshll.u32 %v4534_v11, 16  ;;  %v4552_v21 = vshrl.u32 %v4534_v11, 16 }
  0xa8   : > { %887 = vrot.lane.b32.xlu1 %v852_v51, %s3992_s30  ;;  %v515_v63 = vor.u32 %v4511_v50, %v511_v62  ;;  %v617_v50 = vrot.slane %v4534_v11, 1 }
  0xa9   : > { %v1114_v28 = vpop.permute.xlu0 %1113  ;;  %v999_v41 = vrot.slane %v4552_v21, 2 }
  0xaa   : > { %v4470_v33 = vpop.permute.xlu1 %559  ;;  %v1410_v5 = vsel %vm6717_vm14, %v1373_v27, %v1114_v28  ;;  %v857_v28 = vrot.slane %v4534_v11, 2 }
  0xab   : > { %931 = vrot.lane.b32.xlu0 %v852_v51, %s3995_s13  ;;  %3734 = vmatmul.mubr.msk.bf16.vlgmr.msra.gmra.mrb[0].mxu0 %vm6716_vm15, %v1410_v5  ;;  %v755_v51 = vor.u32 %v754_v55, %v753_v44  ;;  %v1155_v14 = vsel %vm6724_vm7, %v4071_v9, %v4470_v33  ;;  %v996_v9 = vrot.slane %v4508_v1, 3  ;;  %v1095_v44 = vrot.slane %v4496_v24, 3 }
  0xac   : > { %933 = vrot.lane.b32.xlu1 %v4466_v29, %s3995_s13 }
  0xad   : > { %v632_v39 = vpop.permute.xlu0 %631  ;;  %v756_v16 = vsel %vm709_vm3, %v4417_v48, %v755_v51  ;;  %v760_v22 = vsel %vm709_vm3, %v755_v51, %v4531_v34  ;;  %v997_v56 = vor.u32 %v996_v9, %v995_v38  ;;  %v4653_v38 = vld [vmem:[%s4054_s27 + $0x80] sm:$0xff]  }
  0xae   : > { %v634_v43 = vpop.permute.xlu1 %633  ;;  %v1190_v12 = vsel %vm6723_vm8, %v1153_v15, %v632_v39 }
  0xaf   : > { %1053 = vrot.lane.b32.xlu0 %v990_v31, %s3996_s14  ;;  %v1192_v5 = vsel %vm6723_vm8, %v1155_v14, %v634_v43 }
  0xb0   : > { %1055 = vrot.lane.b32.xlu1 %v994_v40, %s3996_s14 }
  0xb1   : > { %v678_v47 = vpop.permute.xlu0 %677 }
  0xb2   : > { %v680_v30 = vpop.permute.xlu1 %679  ;;  %v1227_v19 = vsel %vm6722_vm9, %v1190_v12, %v678_v47 }
  0xb3   : > { %1127 = vrot.lane.b32.xlu0 %v1092_v6, %s3997_s15  ;;  %v1229_v33 = vsel %vm6722_vm9, %v1192_v5, %v680_v30 }
  0xb4   : > { %573 = vrot.lane.b32.xlu1 %v496_v3, %s3993_s7 }
  0xb5   : > { %v800_v20 = vpop.permute.xlu0 %799 }
  0xb6   : > { %v802_v53 = vpop.permute.xlu1 %801  ;;  %v1264_v23 = vsel %vm6721_vm10, %v1227_v19, %v800_v20  ;;  %v762_v19 = vrot.slane %v4549_v2, 2 }
  0xb7   : > { %1129 = vrot.lane.b32.xlu0 %v1094_v52, %s3997_s15  ;;  %v1266_v42 = vsel %vm6721_vm10, %v1229_v33, %v802_v53  ;;  %v998_v53 = vsel %vm951_vm4, %v4468_v35, %v997_v56  ;;  %v1096_v35 = vsel %vm1073_vm5, %v1093_v45, %v1095_v44 }
  0xb8   : > { %575 = vrot.lane.b32.xlu1 %v504_v37, %s3993_s7 }
  0xb9   : > { %v874_v58 = vpop.permute.xlu0 %873 }
  0xba   : > { %v876_v7 = vpop.permute.xlu1 %875  ;;  %v1301_v48 = vsel %vm6720_vm11, %v1264_v23, %v874_v58 }
  0xbb   : > { %647 = vrot.lane.b32.xlu0 %v4415_v46, %s3991_s29  ;;  %v855_v46 = vrot.slane %v4496_v24, 2  ;;  %v1303_v47 = vsel %vm6720_vm11, %v1266_v42, %v876_v7  ;;  %v1097_v7 = vrot.slane %v4534_v11, 3 }
  0xbc   : > { %649 = vrot.lane.b32.xlu1 %v614_v59, %s3991_s29 }
  0xbd   : > { %v920_v8 = vpop.permute.xlu0 %919  ;;  %v856_v27 = vsel %vm831_vm1, %v853_v17, %v855_v46  ;;  %v1000_v17 = vrot.slane %v4549_v2, 3  ;;  %v4585_v20 = vsel %vm831_vm1, %v855_v46, %v857_v28  ;;  %v1098_v49 = vsel %vm1073_vm5, %v1095_v44, %v1097_v7 }
  0xbe   : > { %v922_v13 = vpop.permute.xlu1 %921  ;;  %v1338_v31 = vsel %vm6719_vm12, %v1301_v48, %v920_v8 }
  0xbf   : > { %693 = vrot.lane.b32.xlu0 %v614_v59, %s3990_s28  ;;  %v1340_v3 = vsel %vm6719_vm12, %v1303_v47, %v922_v13  ;;  %v4587_v37 = vor.u32 %v1000_v17, %v999_v41  ;;  %v507_v59 = vor.u32 %v4438_v0, %v503_v57  ;;  %v519_v0 = vrot.slane %v4549_v2, 1  ;;  %v4615_v57 = vld [vmem:[%s4054_s27 + $0x78] sm:$0xff]  }
  0xc0   : > { %695 = vrot.lane.b32.xlu1 %v4529_v25, %s3990_s28  ;;  %v4627_v15 = vshll.u32 %v4615_v57, 16  ;;  %v4630_v46 = vshrl.u32 %v4615_v57, 16  ;;  %v619_v23 = vrot.slane %v4615_v57, 1 }
  0xc1   : > { %v1042_v61 = vpop.permute.xlu0 %1041  ;;  %v1002_v58 = vsel %vm951_vm4, %v997_v56, %v4587_v37  ;;  %v512_v8 = vsel %vm404_vm2, %v507_v59, %v511_v62  ;;  %v520_v13 = vsel %vm404_vm2, %v515_v63, %v519_v0 }
  0xc2   : > { %v1044_v18 = vpop.permute.xlu1 %1043  ;;  %v1375_v39 = vsel %vm6718_vm13, %v1338_v31, %v1042_v61  ;;  %v766_v14 = vrot.slane %v4627_v15, 2  ;;  %v4648_v31 = vsel %vm589_vm0, %v617_v50, %v619_v23 }
  0xc3   : > { %815 = vrot.lane.b32.xlu0 %v756_v16, %s3994_s12  ;;  %v1377_v30 = vsel %vm6718_vm13, %v1340_v3, %v1044_v18  ;;  %v761_v16 = vrot.slane %v4552_v21, 1  ;;  %v765_v18 = vrot.slane %v4630_v46, 1 }
  0xc4   : > { %817 = vrot.lane.b32.xlu1 %v760_v22, %s3994_s12  ;;  %v618_v22 = vsel %vm589_vm0, %v615_v60, %v617_v50 }
  0xc5   : > { %v1116_v40 = vpop.permute.xlu0 %1115  ;;  %v4650_v60 = vor.u32 %v766_v14, %v765_v18  ;;  %v1101_v14 = vrot.slane %v4653_v38, 3 }
  0xc6   : > { %v562_v43 = vpop.permute.xlu1 %561  ;;  %v1412_v6 = vsel %vm6717_vm14, %v1375_v39, %v1116_v40 }
  0xc7   : > { %889 = vrot.lane.b32.xlu0 %v4466_v29, %s3992_s30  ;;  %3737 = vmatprep.mubr.msk.bf16.mxu0 %vm6716_vm15, %v1412_v6  ;;  %v1157_v33 = vsel %vm6724_vm7, %v4110_v36, %v562_v43  ;;  %v4668_v36 = vshll.u32 %v4653_v38, 16  ;;  %v4671_v43 = vshrl.u32 %v4653_v38, 16 }
  0xc8   : > { %891 = vrot.lane.b32.xlu1 %v856_v27, %s3992_s30 }
  0xc9   : > { %v1118_v52 = vpop.permute.xlu0 %1117 }
  0xca   : > { %v4589_v32 = vpop.permute.xlu1 %563  ;;  %v1414_v29 = vsel %vm6717_vm14, %v1377_v30, %v1118_v52  ;;  %v861_v30 = vrot.slane %v4653_v38, 2 }
  0xcb   : > { %935 = vrot.lane.b32.xlu0 %v856_v27, %s3995_s13  ;;  %3738 = vmatmul.mubr.msk.bf16.gmra.mrb[4].mxu0 %vm6716_vm15, %v1414_v29  ;;  %v763_v27 = vor.u32 %v762_v19, %v761_v16  ;;  %v1159_v3 = vsel %vm6724_vm7, %v4170_v10, %v4589_v32  ;;  %v1004_v10 = vrot.slane %v4627_v15, 3 }
  0xcc   : > { %937 = vrot.lane.b32.xlu1 %v4585_v20, %s3995_s13 }
  0xcd   : > { %v636_v55 = vpop.permute.xlu0 %635  ;;  %v764_v40 = vsel %vm709_vm3, %v4531_v34, %v763_v27  ;;  %v768_v42 = vsel %vm709_vm3, %v763_v27, %v4650_v60 }
  0xce   : > { %v638_v4 = vpop.permute.xlu1 %637  ;;  %v1194_v39 = vsel %vm6723_vm8, %v1157_v33, %v636_v55 }
  0xcf   : > { %1057 = vrot.lane.b32.xlu0 %v998_v53, %s3996_s14  ;;  %v1196_v52 = vsel %vm6723_vm8, %v1159_v3, %v638_v4  ;;  %v1003_v53 = vrot.slane %v4630_v46, 2 }
  0xd0   : > { %1059 = vrot.lane.b32.xlu1 %v1002_v58, %s3996_s14  ;;  %v1007_v58 = vrot.slane %v4671_v43, 2 }
  0xd1   : > { %v682_v51 = vpop.permute.xlu0 %681 }
  0xd2   : > { %v684_v1 = vpop.permute.xlu1 %683  ;;  %v1231_v41 = vsel %vm6722_vm9, %v1194_v39, %v682_v51  ;;  %v769_v39 = vrot.slane %v4671_v43, 1 }
  0xd3   : > { %1131 = vrot.lane.b32.xlu0 %v1096_v35, %s3997_s15  ;;  %v1233_v32 = vsel %vm6722_vm9, %v1196_v52, %v684_v1 }
  0xd4   : > { %577 = vrot.lane.b32.xlu1 %v512_v8, %s3993_s7  ;;  %v1005_v8 = vor.u32 %v1004_v10, %v1003_v53 }
  0xd5   : > { %v804_v45 = vpop.permute.xlu0 %803 }
  0xd6   : > { %v806_v12 = vpop.permute.xlu1 %805  ;;  %v1268_v6 = vsel %vm6721_vm10, %v1231_v41, %v804_v45  ;;  %v1006_v50 = vsel %vm951_vm4, %v4587_v37, %v1005_v8 }
  0xd7   : > { %1133 = vrot.lane.b32.xlu0 %v1098_v49, %s3997_s15  ;;  %v1270_v59 = vsel %vm6721_vm10, %v1233_v32, %v806_v12  ;;  %v1099_v12 = vrot.slane %v4615_v57, 3 }
  0xd8   : > { %579 = vrot.lane.b32.xlu1 %v520_v13, %s3993_s7 }
  0xd9   : > { %v878_v61 = vpop.permute.xlu0 %877  ;;  %v1100_v37 = vsel %vm1073_vm5, %v1097_v7, %v1099_v12  ;;  %v1102_v11 = vsel %vm1073_vm5, %v1099_v12, %v1101_v14 }
  0xda   : > { %v880_v48 = vpop.permute.xlu1 %879  ;;  %v1305_v34 = vsel %vm6720_vm11, %v1268_v6, %v878_v61  ;;  %v523_v61 = vor.u32 %v4552_v21, %v519_v0  ;;  %v535_v21 = vrot.slane %v4668_v36, 1  ;;  %v4736_v0 = vld [vmem:[%s4054_s27 + $0x88] sm:$0xff]  }
  0xdb   : > { %651 = vrot.lane.b32.xlu0 %v4529_v25, %s3991_s29  ;;  %v859_v25 = vrot.slane %v4615_v57, 2  ;;  %v1307_v35 = vsel %vm6720_vm11, %v1270_v59, %v880_v48  ;;  %v4751_v33 = vshrl.u32 %v4736_v0, 16 }
  0xdc   : > { %653 = vrot.lane.b32.xlu1 %v618_v22, %s3991_s29 }
  0xdd   : > { %v924_v5 = vpop.permute.xlu0 %923  ;;  %v860_v56 = vsel %vm831_vm1, %v857_v28, %v859_v25  ;;  %v1008_v28 = vrot.slane %v4668_v36, 3  ;;  %v4706_v49 = vsel %vm831_vm1, %v859_v25, %v861_v30  ;;  %v773_v6 = vrot.slane %v4751_v33, 1 }
  0xde   : > { %v926_v9 = vpop.permute.xlu1 %925  ;;  %v1342_v29 = vsel %vm6719_vm12, %v1305_v34, %v924_v5  ;;  %v300_v34 = vld [vmem:[%s4054_s27 + $0x90] sm:$0xf]  ;;  %v1011_v12 = vrot.slane %v4751_v33, 2 }
  0xdf   : > { %697 = vrot.lane.b32.xlu0 %v618_v22, %s3990_s28  ;;  %v1344_v51 = vsel %vm6719_vm12, %v1307_v35, %v926_v9  ;;  %v4708_v45 = vor.u32 %v1008_v28, %v1007_v58  ;;  %v527_v22 = vrot.slane %v4627_v15, 1  ;;  %v4748_v9 = vshll.u32 %v4736_v0, 16 }
  0xe0   : > { %699 = vrot.lane.b32.xlu1 %v4648_v31, %s3990_s28 }
  0xe1   : > { %v1046_v17 = vpop.permute.xlu0 %1045  ;;  %v1010_v19 = vsel %vm951_vm4, %v1005_v8, %v4708_v45  ;;  %v528_v27 = vsel %vm404_vm2, %v523_v61, %v527_v22  ;;  %v531_v2 = vor.u32 %v4630_v46, %v527_v22  ;;  %v621_v46 = vrot.slane %v4653_v38, 1 }
  0xe2   : > { %v1048_v47 = vpop.permute.xlu1 %1047  ;;  %v1379_v44 = vsel %vm6718_vm13, %v1342_v29, %v1046_v17 }
  0xe3   : > { %819 = vrot.lane.b32.xlu0 %v764_v40, %s3994_s12  ;;  %v1381_v63 = vsel %vm6718_vm13, %v1344_v51, %v1048_v47  ;;  %v536_v5 = vsel %vm404_vm2, %v531_v2, %v535_v21  ;;  %v770_v40 = vrot.slane %v4668_v36, 2  ;;  %v622_v17 = vsel %vm589_vm0, %v619_v23, %v621_v46 }
  0xe4   : > { %821 = vrot.lane.b32.xlu1 %v768_v42, %s3994_s12  ;;  %v4761_v42 = vrot.slane %v4736_v0, 1  ;;  %v774_v47 = vrot.slane %v4748_v9, 2 }
  0xe5   : > { %v1120_v55 = vpop.permute.xlu0 %1119  ;;  %v771_v52 = vor.u32 %v770_v40, %v769_v39  ;;  %v1103_v40 = vrot.slane %v4736_v0, 3 }
  0xe6   : > { %v4693_v62 = vpop.permute.xlu1 %565  ;;  %v1416_v4 = vsel %vm6717_vm14, %v1379_v44, %v1120_v55  ;;  %v4772_v23 = vsel %vm589_vm0, %v621_v46, %v4761_v42  ;;  %v4774_v53 = vor.u32 %v774_v47, %v773_v6  ;;  %v4833_v46 = vcombine.low %v300_v34, %v300_v34 }
  0xe7   : > { %893 = vrot.lane.b32.xlu0 %v4585_v20, %s3992_s30  ;;  %3741 = vmatprep.mubr.msk.bf16.mxu0 %vm6716_vm15, %v1416_v4  ;;  %v1161_v44 = vsel %vm6724_vm7, %v4198_v26, %v4693_v62  ;;  %v772_v58 = vsel %vm709_vm3, %v4650_v60, %v771_v52  ;;  %v539_v6 = vor.u32 %v4671_v43, %v535_v21  ;;  %v543_v47 = vrot.slane %v4748_v9, 1 }
  0xe8   : > { %895 = vrot.lane.b32.xlu1 %v860_v56, %s3992_s30  ;;  %v776_v4 = vsel %vm709_vm3, %v771_v52, %v4774_v53  ;;  %v1104_v36 = vsel %vm1073_vm5, %v1101_v14, %v1103_v40  ;;  %v3998_v14 = vmov 0  }
  0xe9   : > { %v1122_v1 = vpop.permute.xlu0 %1121  ;;  %2478 = vst.msk [vmem:[%s4859_s20 + $0x8] sm:$0xf] %vm6715_vm6, %v3998_v14  ;;  %2479 = vst.msk [vmem:[%s4859_s20 + $0xc] sm:$0xf] %vm6715_vm6, %v3998_v14 }
  0xea   : > { %v4710_v13 = vpop.permute.xlu1 %567  ;;  %v1418_v20 = vsel %vm6717_vm14, %v1381_v63, %v1122_v1  ;;  %2476 = vst.msk [vmem:[%s4859_s20] sm:$0xf] %vm6715_vm6, %v3998_v14  ;;  %2477 = vst.msk [vmem:[%s4859_s20 + $0x4] sm:$0xf] %vm6715_vm6, %v3998_v14 }
  0xeb   : > { %939 = vrot.lane.b32.xlu0 %v860_v56, %s3995_s13  ;;  %3742 = vmatmul.mubr.msk.bf16.gmra.mrb[8].mxu0 %vm6716_vm15, %v1418_v20  ;;  %v301_v56 = vld [vmem:[%s4054_s27 + $0x94] sm:$0xf]  ;;  %v1163_v8 = vsel %vm6724_vm7, %v4246_v54, %v4710_v13  ;;  %v1012_v54 = vrot.slane %v4748_v9, 3  ;;  %v544_v9 = vsel %vm404_vm2, %v539_v6, %v543_v47  ;;  %2480 = vst.msk [vmem:[%s4859_s20 + $0x10] sm:$0xf] %vm6715_vm6, %v3998_v14 }
  0xec   : > { %941 = vrot.lane.b32.xlu1 %v4706_v49, %s3995_s13  ;;  %v4776_v10 = vcombine.low %v300_v34, %v301_v56  ;;  %v4864_v34 = vld [vmem:[%s4054_s27 + $0x98] sm:$0xf]  ;;  %v547_v56 = vor.u32 %v4751_v33, %v543_v47  ;;  %2481 = vst.msk [vmem:[%s4859_s20 + $0x14] sm:$0xf] %vm6715_vm6, %v3998_v14  ;;  %2482 = vst.msk [vmem:[%s4859_s20 + $0x18] sm:$0xf] %vm6715_vm6, %v3998_v14 }
  0xed   : > { %v640_v16 = vpop.permute.xlu0 %639  ;;  %v1013_v2 = vor.u32 %v1012_v54, %v1011_v12  ;;  %v4880_v38 = vcombine.low %v4864_v34, %v4864_v34  ;;  %2483 = vst.msk [vmem:[%s4859_s20 + $0x1c] sm:$0xf] %vm6715_vm6, %v3998_v14  ;;  %2484 = vst.msk [vmem:[%s4859_s20 + $0x20] sm:$0xf] %vm6715_vm6, %v3998_v14 }
  0xee   : > { %v642_v18 = vpop.permute.xlu1 %641  ;;  %v1198_v55 = vsel %vm6723_vm8, %v1161_v44, %v640_v16  ;;  %v778_v26 = vshrl.u32 %v4776_v10, 16  ;;  %v781_v62 = vshll.u32 %v4776_v10, 16  ;;  %v4803_v1 = vrot.slane %v4776_v10, 2  ;;  %2485 = vst.msk [vmem:[%s4859_s20 + $0x24] sm:$0xf] %vm6715_vm6, %v3998_v14 }
  0xef   : > { %1061 = vrot.lane.b32.xlu0 %v1006_v50, %s3996_s14  ;;  %v1200_v20 = vsel %vm6723_vm8, %v1163_v8, %v642_v18  ;;  %v1014_v39 = vsel %vm951_vm4, %v4708_v45, %v1013_v2  ;;  %v1105_v43 = vrot.slane %v4776_v10, 3  ;;  %2486 = vst.msk [vmem:[%s4859_s20 + $0x28] sm:$0xf] %vm6715_vm6, %v3998_v14  ;;  %2487 = vst.msk [vmem:[%s4859_s20 + $0x2c] sm:$0xf] %vm6715_vm6, %v3998_v14  ;;  %v671_v8 = vrot.slane %v4880_v38, 1 }
  0xf0   : > { %1063 = vrot.lane.b32.xlu1 %v1010_v19, %s3996_s14  ;;  %v1016_v61 = vrot.slane %v781_v62, 3  ;;  %2488 = vst.msk [vmem:[%s4859_s20 + $0x30] sm:$0xf] %vm6715_vm6, %v3998_v14  ;;  %2489 = vst.msk [vmem:[%s4859_s20 + $0x34] sm:$0xf] %vm6715_vm6, %v3998_v14 }
  0xf1   : > { %v686_v48 = vpop.permute.xlu0 %685  ;;  %2490 = vst.msk [vmem:[%s4859_s20 + $0x38] sm:$0xf] %vm6715_vm6, %v3998_v14  ;;  %2491 = vst.msk [vmem:[%s4859_s20 + $0x3c] sm:$0xf] %vm6715_vm6, %v3998_v14 }
  0xf2   : > { %v688_v15 = vpop.permute.xlu1 %687  ;;  %v1235_v28 = vsel %vm6722_vm9, %v1198_v55, %v686_v48  ;;  %2492 = vst.msk [vmem:[%s4859_s20 + $0x40] sm:$0xf] %vm6715_vm6, %v3998_v14  ;;  %2493 = vst.msk [vmem:[%s4859_s20 + $0x44] sm:$0xf] %vm6715_vm6, %v3998_v14  ;;  %v787_v55 = vshrl.u32 %v4880_v38, 16 }
  0xf3   : > { %1135 = vrot.lane.b32.xlu0 %v1100_v37, %s3997_s15  ;;  %v1237_v13 = vsel %vm6722_vm9, %v1200_v20, %v688_v15  ;;  %2494 = vst.msk [vmem:[%s4859_s20 + $0x48] sm:$0xf] %vm6715_vm6, %v3998_v14  ;;  %2495 = vst.msk [vmem:[%s4859_s20 + $0x4c] sm:$0xf] %vm6715_vm6, %v3998_v14  ;;  %v303_v20 = vld [vmem:[%s4054_s27 + $0x9c] sm:$0xf] }
  0xf4   : > { %581 = vrot.lane.b32.xlu1 %v528_v27, %s3993_s7  ;;  %2496 = vst.msk [vmem:[%s4859_s20 + $0x50] sm:$0xf] %vm6715_vm6, %v3998_v14  ;;  %2497 = vst.msk [vmem:[%s4859_s20 + $0x54] sm:$0xf] %vm6715_vm6, %v3998_v14  ;;  %v5036_v12 = vcombine.low %v4864_v34, %v303_v20 }
  0xf5   : > { %v808_v7 = vpop.permute.xlu0 %807  ;;  %2498 = vst.msk [vmem:[%s4859_s20 + $0x58] sm:$0xf] %vm6715_vm6, %v3998_v14  ;;  %2499 = vst.msk [vmem:[%s4859_s20 + $0x5c] sm:$0xf] %vm6715_vm6, %v3998_v14 }
  0xf6   : > { %v810_v25 = vpop.permute.xlu1 %809  ;;  %v1272_v35 = vsel %vm6721_vm10, %v1235_v28, %v808_v7  ;;  %2500 = vst.msk [vmem:[%s4859_s20 + $0x60] sm:$0xf] %vm6715_vm6, %v3998_v14  ;;  %2501 = vst.msk [vmem:[%s4859_s20 + $0x64] sm:$0xf] %vm6715_vm6, %v3998_v14  ;;  %v911_v6 = vrot.slane %v5036_v12, 2 }
  0xf7   : > { %1137 = vrot.lane.b32.xlu0 %v1102_v11, %s3997_s15  ;;  %v1274_v22 = vsel %vm6721_vm10, %v1237_v13, %v810_v25  ;;  %2502 = vst.msk [vmem:[%s4859_s20 + $0x68] sm:$0xf] %vm6715_vm6, %v3998_v14  ;;  %2503 = vst.msk [vmem:[%s4859_s20 + $0x6c] sm:$0xf] %vm6715_vm6, %v3998_v14 }
  0xf8   : > { %583 = vrot.lane.b32.xlu1 %v536_v5, %s3993_s7  ;;  %2504 = vst.msk [vmem:[%s4859_s20 + $0x70] sm:$0xf] %vm6715_vm6, %v3998_v14  ;;  %2505 = vst.msk [vmem:[%s4859_s20 + $0x74] sm:$0xf] %vm6715_vm6, %v3998_v14 }
  0xf9   : > { %v882_v41 = vpop.permute.xlu0 %881  ;;  %2506 = vst.msk [vmem:[%s4859_s20 + $0x78] sm:$0xf] %vm6715_vm6, %v3998_v14  ;;  %2507 = vst.msk [vmem:[%s4859_s20 + $0x7c] sm:$0xf] %vm6715_vm6, %v3998_v14 }
  0xfa   : > { %v884_v3 = vpop.permute.xlu1 %883  ;;  %v1309_v63 = vsel %vm6720_vm11, %v1272_v35, %v882_v41  ;;  %2508 = vst.msk [vmem:[%s4859_s20 + $0x80] sm:$0xf] %vm6715_vm6, %v3998_v14  ;;  %2509 = vst.msk [vmem:[%s4859_s20 + $0x84] sm:$0xf] %vm6715_vm6, %v3998_v14 }
  0xfb   : > { %655 = vrot.lane.b32.xlu0 %v4648_v31, %s3991_s29  ;;  %v863_v31 = vrot.slane %v4736_v0, 2  ;;  %v1311_v48 = vsel %vm6720_vm11, %v1274_v22, %v884_v3  ;;  %v549_v3 = vshll.u32 %v4833_v46, 16  ;;  %2510 = vst.msk [vmem:[%s4859_s20 + $0x88] sm:$0xf] %vm6715_vm6, %v3998_v14  ;;  %2511 = vst.msk [vmem:[%s4859_s20 + $0x8c] sm:$0xf] %vm6715_vm6, %v3998_v14 }
  0xfc   : > { %657 = vrot.lane.b32.xlu1 %v622_v17, %s3991_s29  ;;  %2512 = vst.msk [vmem:[%s4859_s20 + $0x90] sm:$0xf] %vm6715_vm6, %v3998_v14  ;;  %2513 = vst.msk [vmem:[%s4859_s20 + $0x94] sm:$0xf] %vm6715_vm6, %v3998_v14  ;;  %v780_v0 = vrot.slane %v778_v26, 1  ;;  %v3972_v22 = vld [vmem:[%s4054_s27 + $0x40] sm:$0xff]  }
  0xfd   : > { %v928_v29 = vpop.permute.xlu0 %927  ;;  %v864_v60 = vsel %vm831_vm1, %v861_v30, %v863_v31  ;;  %v1015_v30 = vrot.slane %v778_v26, 2  ;;  %v4829_v7 = vsel %vm831_vm1, %v863_v31, %v4803_v1  ;;  %v551_v52 = vrot.slane %v549_v3, 1  ;;  %2514 = vst.msk [vmem:[%s4859_s20 + $0x98] sm:$0xf] %vm6715_vm6, %v3998_v14  ;;  %2515 = vst.msk [vmem:[%s4859_s20 + $0x9c] sm:$0xf] %vm6715_vm6, %v3998_v14 }
  0xfe   : > { %v930_v32 = vpop.permute.xlu1 %929  ;;  %v1346_v50 = vsel %vm6719_vm12, %v1309_v63, %v928_v29  ;;  %2516 = vst.msk [vmem:[%s4859_s20 + $0xa0] sm:$0xf] %vm6715_vm6, %v3998_v14  ;;  %2517 = vst.msk [vmem:[%s4859_s20 + $0xa4] sm:$0xf] %vm6715_vm6, %v3998_v14  ;;  %v1106_v29 = vsel %vm1073_vm5, %v1103_v40, %v1105_v43  ;;  %v625_v31 = vrot.slane %v4833_v46, 1  ;;  %v789_v63 = vrot.slane %v787_v55, 1 }
  0xff   : > { %701 = vrot.lane.b32.xlu0 %v622_v17, %s3990_s28  ;;  %v1348_v27 = vsel %vm6719_vm12, %v1311_v48, %v930_v32  ;;  %v4831_v5 = vor.u32 %v1016_v61, %v1015_v30  ;;  %v552_v44 = vsel %vm404_vm2, %v547_v56, %v551_v52  ;;  %v867_v61 = vrot.slane %v4880_v38, 2  ;;  %v3973_v40 = vld [vmem:[%s4054_s27 + $0x48] sm:$0xff]  }
 0x100   : > { %703 = vrot.lane.b32.xlu1 %v4772_v23, %s3990_s28  ;;  %v1020_v48 = vshrl.u32 %v5036_v12, 16 }
 0x101   : > { %v1050_v59 = vpop.permute.xlu0 %1049  ;;  %v1018_v17 = vsel %vm951_vm4, %v1013_v2, %v4831_v5 }
 0x102   : > { %v1052_v51 = vpop.permute.xlu1 %1051  ;;  %v1383_v16 = vsel %vm6718_vm13, %v1346_v50, %v1050_v59  ;;  %v669_v59 = vrot.slane %v4776_v10, 1 }
 0x103   : > { %823 = vrot.lane.b32.xlu0 %v772_v58, %s3994_s12  ;;  %v1385_v15 = vsel %vm6718_vm13, %v1348_v27, %v1052_v51  ;;  %v790_v58 = vshll.u32 %v4880_v38, 16  ;;  %v626_v51 = vsel %vm589_vm0, %v4761_v42, %v625_v31  ;;  %v1023_v27 = vshll.u32 %v5036_v12, 16 }
 0x104   : > { %825 = vrot.lane.b32.xlu1 %v776_v4, %s3994_s12  ;;  %v783_v4 = vrot.slane %v781_v62, 2  ;;  %v670_v26 = vsel %vm589_vm0, %v4761_v42, %v669_v59  ;;  %v672_v13 = vsel %vm589_vm0, %v669_v59, %v671_v8 }
 0x105   : > { %v1124_v19 = vpop.permute.xlu0 %1123 }
 0x106   : > { %v4817_v18 = vpop.permute.xlu1 %569  ;;  %v1420_v37 = vsel %vm6717_vm14, %v1383_v16, %v1124_v19  ;;  %v784_v62 = vor.u32 %v783_v4, %v780_v0  ;;  %v5040_v19 = vld [vmem:[%s4054_s27 + $0xa0] ss:$0 sps:$4 sm:$0xff]  }
 0x107   : > { %897 = vrot.lane.b32.xlu0 %v4706_v49, %s3992_s30  ;;  %3745 = vmatprep.mubr.msk.bf16.mxu0 %vm6716_vm15, %v1420_v37  ;;  %v1032_v46 = vshll.u32 %v5040_v19, 16  ;;  %v913_v47 = vrot.slane %v5040_v19, 2 }
 0x108   : > { %899 = vrot.lane.b32.xlu1 %v864_v60, %s3992_s30  ;;  %v785_v37 = vsel %vm709_vm3, %v4774_v53, %v784_v62  ;;  %v868_v53 = vsel %vm831_vm1, %v4803_v1, %v867_v61 }
 0x109   : > { %v1126_v11 = vpop.permute.xlu0 %1125  ;;  %v1034_v38 = vrot.slane %v1032_v46, 3  ;;  %v914_v59 = vsel %vm831_vm1, %v911_v6, %v913_v47 }
 0x10a   : > { %v4835_v49 = vpop.permute.xlu1 %571  ;;  %v1422_v25 = vsel %vm6717_vm14, %v1385_v15, %v1126_v11  ;;  %v1029_v11 = vshrl.u32 %v5040_v19, 16 }
 0x10b   : > { %943 = vrot.lane.b32.xlu0 %v864_v60, %s3995_s13  ;;  %3746 = vmatmul.mubr.msk.bf16.gmra.mrb[12].mxu0 %vm6716_vm15, %v1422_v25  ;;  %v792_v60 = vrot.slane %v790_v58, 2 }
 0x10c   : > { %945 = vrot.lane.b32.xlu1 %v4829_v7, %s3995_s13  ;;  %v1031_v52 = vrot.slane %v1029_v11, 2 }
 0x10d   : > { %v4845_v41 = vpop.permute.xlu0 %643  ;;  %v793_v16 = vor.u32 %v792_v60, %v789_v63  ;;  %v1109_v63 = vrot.slane %v5040_v19, 3  ;;  %v3974_v19 = vld [vmem:[%s4054_s27 + $0x50] sm:$0xff]  }
 0x10e   : > { %v4861_v45 = vpop.permute.xlu1 %645  ;;  %v1035_v0 = vor.u32 %v1034_v38, %v1031_v52 }
 0x10f   : > { %1065 = vrot.lane.b32.xlu0 %v1014_v39, %s3996_s14 }
 0x110   : > { %1067 = vrot.lane.b32.xlu1 %v1018_v17, %s3996_s14 }
 0x111   : > { %v4874_v21 = vpop.permute.xlu0 %689 }
 0x112   : > { %v692_v33 = vpop.permute.xlu1 %691 }
 0x113   : > { %1139 = vrot.lane.b32.xlu0 %v1104_v36, %s3997_s15  ;;  %v1022_v36 = vrot.slane %v1020_v48, 2  ;;  %v3975_v48 = vld [vmem:[%s4054_s27 + $0x58] sm:$0xff]  }
 0x114   : > { %585 = vrot.lane.b32.xlu1 %v544_v9, %s3993_s7 }
 0x115   : > { %v812_v32 = vpop.permute.xlu0 %811 }
 0x116   : > { %v814_v28 = vpop.permute.xlu1 %813 }
 0x117   : > { %1141 = vrot.lane.b32.xlu0 %v1106_v29, %s3997_s15 }
 0x118   : > { %587 = vrot.lane.b32.xlu1 %v552_v44, %s3993_s7 }
 0x119   : > { %v886_v35 = vpop.permute.xlu0 %885 }
 0x11a   : > { %v888_v50 = vpop.permute.xlu1 %887 }
 0x11b   : > { %659 = vrot.lane.b32.xlu0 %v4772_v23, %s3991_s29  ;;  %v1165_v23 = vsel %vm6724_vm7, %v3972_v22, %v4817_v18  ;;  %v794_v18 = vsel %vm709_vm3, %v784_v62, %v793_v16  ;;  %v3666_v62 = vld [vmem:[%s6711_s3] ss:$0 sm:$0xff] }
 0x11c   : > { %661 = vrot.lane.b32.xlu1 %v626_v51, %s3991_s29  ;;  %v1202_v42 = vsel %vm6723_vm8, %v1165_v23, %v4845_v41  ;;  %v1167_v41 = vsel %vm6724_vm7, %v3973_v40, %v4835_v49 }
 0x11d   : > { %v932_v54 = vpop.permute.xlu0 %931  ;;  %v1239_v2 = vsel %vm6722_vm9, %v1202_v42, %v4874_v21  ;;  %v1204_v3 = vsel %vm6723_vm8, %v1167_v41, %v4861_v45  ;;  %v1025_v21 = vrot.slane %v1023_v27, 3 }
 0x11e   : > { %v934_v30 = vpop.permute.xlu1 %933  ;;  %v1276_v25 = vsel %vm6721_vm10, %v1239_v2, %v812_v32  ;;  %v1241_v9 = vsel %vm6722_vm9, %v1204_v3, %v692_v33  ;;  %v912_v33 = vsel %vm831_vm1, %v4803_v1, %v911_v6  ;;  %v1107_v1 = vrot.slane %v5036_v12, 3 }
 0x11f   : > { %705 = vrot.lane.b32.xlu0 %v670_v26, %s3990_s28  ;;  %v1313_v17 = vsel %vm6720_vm11, %v1276_v25, %v886_v35  ;;  %v1278_v29 = vsel %vm6721_vm10, %v1241_v9, %v814_v28  ;;  %v1026_v55 = vor.u32 %v1025_v21, %v1022_v36 }
 0x120   : > { %707 = vrot.lane.b32.xlu1 %v672_v13, %s3990_s28  ;;  %v1350_v34 = vsel %vm6719_vm12, %v1313_v17, %v932_v54  ;;  %v1315_v45 = vsel %vm6720_vm11, %v1278_v29, %v888_v50  ;;  %v1108_v20 = vsel %vm1073_vm5, %v1105_v43, %v1107_v1 }
 0x121   : > { %v1054_v15 = vpop.permute.xlu0 %1053  ;;  %v1352_v31 = vsel %vm6719_vm12, %v1315_v45, %v934_v30  ;;  %v1036_v8 = vsel %vm951_vm4, %v1026_v55, %v1035_v0 }
 0x122   : > { %v1056_v39 = vpop.permute.xlu1 %1055  ;;  %v1387_v49 = vsel %vm6718_vm13, %v1350_v34, %v1054_v15 }
 0x123   : > { %827 = vrot.lane.b32.xlu0 %v785_v37, %s3994_s12  ;;  %v1389_v58 = vsel %vm6718_vm13, %v1352_v31, %v1056_v39  ;;  %v3976_v31 = vld [vmem:[%s4054_s27 + $0x60] sm:$0xff]  }
 0x124   : > { %829 = vrot.lane.b32.xlu1 %v794_v18, %s3994_s12 }
 0x125   : > { %v1128_v56 = vpop.permute.xlu0 %1127 }
 0x126   : > { %v574_v32 = vpop.permute.xlu1 %573  ;;  %v1424_v44 = vsel %vm6717_vm14, %v1387_v49, %v1128_v56 }
 0x127   : > { %901 = vrot.lane.b32.xlu0 %v4829_v7, %s3992_s30  ;;  %3749 = vmatprep.mubr.msk.bf16.mxu0 %vm6716_vm15, %v1424_v44  ;;  %v1027_v7 = vsel %vm951_vm4, %v4831_v5, %v1026_v55  ;;  %v1110_v5 = vsel %vm1073_vm5, %v1107_v1, %v1109_v63  ;;  %v1169_v30 = vsel %vm6724_vm7, %v3974_v19, %v574_v32  ;;  %v1682_v32 = vlaneseq }
 0x128   : > { %903 = vrot.lane.b32.xlu1 %v868_v53, %s3992_s30 }
 0x129   : > { %v1130_v28 = vpop.permute.xlu0 %1129  ;;  %v5130_v55 = vshrl.u32 %v1682_v32, 7 }
 0x12a   : > { %v576_v4 = vpop.permute.xlu1 %575  ;;  %v1426_v35 = vsel %vm6717_vm14, %v1389_v58, %v1130_v28 }
 0x12b   : > { %947 = vrot.lane.b32.xlu0 %v912_v33, %s3995_s13  ;;  %3750 = vmatmul.mubr.msk.bf16.gmra.mrb[16].mxu0 %vm6716_vm15, %v1426_v35  ;;  %v1171_v27 = vsel %vm6724_vm7, %v3975_v48, %v576_v4  ;;  %v1686_v0 = vadd.s32 24, %v5130_v55 }
 0x12c   : > { %949 = vrot.lane.b32.xlu1 %v914_v59, %s3995_s13 }
 0x12d   : > { %v648_v51 = vpop.permute.xlu0 %647 }
 0x12e   : > { %v650_v60 = vpop.permute.xlu1 %649  ;;  %v1206_v61 = vsel %vm6723_vm8, %v1169_v30, %v648_v51 }
 0x12f   : > { %1069 = vrot.lane.b32.xlu0 %v1027_v7, %s3996_s14  ;;  %v1208_v15 = vsel %vm6723_vm8, %v1171_v27, %v650_v60  ;;  %v1684_v7 = vadd.s32 8, %v5130_v55 }
 0x130   : > { %1071 = vrot.lane.b32.xlu1 %v1036_v8, %s3996_s14  ;;  %v1685_v8 = vadd.s32 16, %v5130_v55 }
 0x131   : > { %v694_v50 = vpop.permute.xlu0 %693 }
 0x132   : > { %v696_v26 = vpop.permute.xlu1 %695  ;;  %v1243_v22 = vsel %vm6722_vm9, %v1206_v61, %v694_v50 }
 0x133   : > { %1143 = vrot.lane.b32.xlu0 %v1108_v20, %s3997_s15  ;;  %v1245_v11 = vsel %vm6722_vm9, %v1208_v15, %v696_v26  ;;  %v5144_v20 = vmul.u32.u64.low 3817748708, %v5130_v55  ;;  %v5145_v50 = vmul.u32.u64.high 3817748708, %v5130_v55, %v5144_v20 }
 0x134   : > { %1145 = vrot.lane.b32.xlu1 %v1110_v5, %s3997_s15 }
 0x135   : > { %v816_v12 = vpop.permute.xlu0 %815  ;;  %v1725_v27 = vshrl.u32 %v5145_v50, 4 }
 0x136   : > { %v818_v54 = vpop.permute.xlu1 %817  ;;  %v1280_v42 = vsel %vm6721_vm10, %v1243_v22, %v816_v12 }
 0x137   : > { %3223 = vrot.lane.b32.xlu0 %v3666_v62, %s3993_s7  ;;  %v1282_v39 = vsel %vm6721_vm10, %v1245_v11, %v818_v54  ;;  %v5149_v12 = vmul.u32.u64.low 3817748708, %v1686_v0  ;;  %v5150_v54 = vmul.u32.u64.high 3817748708, %v1686_v0, %v5149_v12 }
 0x139   : > { %v890_v10 = vpop.permute.xlu0 %889  ;;  %v1758_v15 = vshrl.u32 %v5150_v54, 4 }
 0x13a   : > { %v892_v13 = vpop.permute.xlu1 %891  ;;  %v1317_v2 = vsel %vm6720_vm11, %v1280_v42, %v890_v10 }
 0x13b   : > { %v1319_v41 = vsel %vm6720_vm11, %v1282_v39, %v892_v13  ;;  %v1759_v39 = vmul.u32 18, %v1758_v15 }
 0x13d   : > { %v936_v43 = vpop.permute.xlu0 %935 }
 0x13e   : > { %v938_v16 = vpop.permute.xlu1 %937  ;;  %v1354_v18 = vsel %vm6719_vm12, %v1317_v2, %v936_v43 }
 0x13f   : > { %v1356_v17 = vsel %vm6719_vm12, %v1319_v41, %v938_v16  ;;  %v5156_v43 = vmul.u32.u64.low 3817748708, %v1684_v7  ;;  %v5157_v16 = vmul.u32.u64.high 3817748708, %v1684_v7, %v5156_v43 }
 0x141   : > { %v1058_v23 = vpop.permute.xlu0 %1057  ;;  %v1736_v11 = vshrl.u32 %v5157_v16, 4 }
 0x142   : > { %v1060_v37 = vpop.permute.xlu1 %1059  ;;  %v1391_v46 = vsel %vm6718_vm13, %v1354_v18, %v1058_v23  ;;  %v5163_v23 = vmul.u32.u64.low 3817748708, %v1685_v8  ;;  %v5164_v42 = vmul.u32.u64.high 3817748708, %v1685_v8, %v5163_v23 }
 0x143   : > { %v1393_v6 = vsel %vm6718_vm13, %v1356_v17, %v1060_v37  ;;  %v1737_v17 = vmul.u32 18, %v1736_v11 }
 0x145   : > { %v1132_v25 = vpop.permute.xlu0 %1131 }
 0x146   : > { %v578_v53 = vpop.permute.xlu1 %577  ;;  %v1428_v40 = vsel %vm6717_vm14, %v1391_v46, %v1132_v25  ;;  %v1726_v46 = vmul.u32 18, %v1725_v27 }
 0x147   : > { %3753 = vmatprep.mubr.msk.bf16.mxu1 %vm6716_vm15, %v1428_v40  ;;  %v1173_v33 = vsel %vm6724_vm7, %v3976_v31, %v578_v53  ;;  %v1747_v53 = vshrl.u32 %v5164_v42, 4  ;;  %v5177_v40 = vadd.s32 48, %v5130_v55 }
 0x149   : > { %v1134_v47 = vpop.permute.xlu0 %1133 }
 0x14a   : > { %v580_v3 = vpop.permute.xlu1 %579  ;;  %v1430_v34 = vsel %vm6717_vm14, %v1393_v6, %v1134_v47  ;;  %v5182_v6 = vsub.s32 %v5130_v55, %v1726_v46  ;;  %v5185_v47 = vadd.s32 32, %v5130_v55 }
 0x14b   : > { %3754 = vmatmul.mubr.msk.bf16.vlgmr.msra.gmra.mrb[0].mxu1 %vm6716_vm15, %v1430_v34  ;;  %v1175_v1 = vsel %vm6724_vm7, %v4496_v24, %v580_v3  ;;  %v5187_v34 = vsub.s32 %v1686_v0, %v1759_v39 }
 0x14c   : > { %vm2115_vm0 = vcmp.ne.s32.totalorder %v5182_v6, 0  ;;  %vm2151_vm1 = vcmp.lt.s32.totalorder %v5182_v6, 0 }
 0x14d   : > { %v652_v36 = vpop.permute.xlu0 %651  ;;  %vm2118_vm2 = vcmp.ne.s32.totalorder %v5187_v34, 0  ;;  %vm2154_vm3 = vcmp.lt.s32.totalorder %v5187_v34, 0  ;;  %vm5221_vm6 = vmand %vm2151_vm1, %vm2115_vm0  ;;  %v2226_v0 = vadd.s32 18, %v5187_v34 }
 0x14e   : > { %v654_v21 = vpop.permute.xlu1 %653  ;;  %v1210_v58 = vsel %vm6723_vm8, %v1173_v33, %v652_v36  ;;  %v1748_v36 = vmul.u32 18, %v1747_v53 }
 0x14f   : > { %v1212_v63 = vsel %vm6723_vm8, %v1175_v1, %v654_v21 }
 0x151   : > { %v698_v9 = vpop.permute.xlu0 %697 }
 0x152   : > { %v700_v49 = vpop.permute.xlu1 %699  ;;  %v1247_v28 = vsel %vm6722_vm9, %v1210_v58, %v698_v9  ;;  %v5190_v21 = vmul.u32.u64.low 3817748708, %v5177_v40  ;;  %v5191_v9 = vmul.u32.u64.high 3817748708, %v5177_v40, %v5190_v21 }
 0x153   : > { %v1249_v5 = vsel %vm6722_vm9, %v1212_v63, %v700_v49 }
 0x155   : > { %v820_v56 = vpop.permute.xlu0 %819 }
 0x156   : > { %v822_v52 = vpop.permute.xlu1 %821  ;;  %v1284_v4 = vsel %vm6721_vm10, %v1247_v28, %v820_v56  ;;  %v5195_v56 = vsub.s32 %v1684_v7, %v1737_v17  ;;  %v5234_v7 = vld [vmem:[%s6710_s2] ss:$0 sm:$0xff] }
 0x157   : > { %v1286_v24 = vsel %vm6721_vm10, %v1249_v5, %v822_v52  ;;  %v5198_v52 = vadd.s32 40, %v5130_v55 }
 0x158   : > { %vm2116_vm4 = vcmp.ne.s32.totalorder %v5195_v56, 0  ;;  %vm2152_vm5 = vcmp.lt.s32.totalorder %v5195_v56, 0  ;;  %v2224_v1 = vadd.s32 18, %v5195_v56 }
 0x159   : > { %v894_v38 = vpop.permute.xlu0 %893  ;;  %v5218_v33 = vmul.u32.u64.low 3817748708, %v5198_v52  ;;  %v5219_v58 = vmul.u32.u64.high 3817748708, %v5198_v52, %v5218_v33  ;;  %vm5241_vm0 = vmand %vm2152_vm5, %vm2116_vm4  ;;  %vm6741_vm4 = vcmask 293888  }
 0x15a   : > { %v896_v29 = vpop.permute.xlu1 %895  ;;  %v1321_v51 = vsel %vm6720_vm11, %v1284_v4, %v894_v38  ;;  %v5201_v38 = vadd.s32 56, %v5130_v55 }
 0x15b   : > { %v1323_v19 = vsel %vm6720_vm11, %v1286_v24, %v896_v29  ;;  %v5206_v29 = vmul.u32.u64.low 3817748708, %v5185_v47  ;;  %v5207_v32 = vmul.u32.u64.high 3817748708, %v5185_v47, %v5206_v29  ;;  %v1780_v46 = vshrl.u32 %v5219_v58, 4 }
 0x15d   : > { %v940_v44 = vpop.permute.xlu0 %939 }
 0x15e   : > { %v942_v45 = vpop.permute.xlu1 %941  ;;  %v1358_v60 = vsel %vm6719_vm12, %v1321_v51, %v940_v44  ;;  %v5352_v51 = vadd.s32 88, %v5130_v55 }
 0x15f   : > { %v1360_v30 = vsel %vm6719_vm12, %v1323_v19, %v942_v45  ;;  %v5211_v45 = vsub.s32 %v1685_v8, %v1748_v36 }
 0x161   : > { %v1062_v59 = vpop.permute.xlu0 %1061  ;;  %vm2117_vm1 = vcmp.ne.s32.totalorder %v5211_v45, 0  ;;  %v2225_v5 = vadd.s32 18, %v5211_v45 }
 0x162   : > { %v1064_v35 = vpop.permute.xlu1 %1063  ;;  %v1395_v26 = vsel %vm6718_vm13, %v1358_v60, %v1062_v59  ;;  %v2223_v59 = vadd.s32 18, %v5182_v6  ;;  %v1791_v60 = vshrl.u32 %v5191_v9, 4 }
 0x163   : > { %v1397_v61 = vsel %vm6718_vm13, %v1360_v30, %v1064_v35  ;;  %v5228_v4 = vmul.u32.u64.low 3817748708, %v5201_v38  ;;  %v5229_v35 = vmul.u32.u64.high 3817748708, %v5201_v38, %v5228_v4  ;;  %v1769_v30 = vshrl.u32 %v5207_v32, 4 }
 0x164   : > { %v2259_v24 = vsel %vm5221_vm6, %v2223_v59, %v5182_v6  ;;  %v1781_v32 = vmul.u32 18, %v1780_v46 }
 0x165   : > { %v1136_v62 = vpop.permute.xlu0 %1135  ;;  %v1802_v53 = vshrl.u32 %v5229_v35, 4 }
 0x166   : > { %v5153_v10 = vpop.permute.xlu1 %581  ;;  %v1432_v13 = vsel %vm6717_vm14, %v1395_v26, %v1136_v62  ;;  %v3977_v26 = vld [vmem:[%s4054_s27 + $0x70] sm:$0xff]  }
 0x167   : > { %3757 = vmatprep.mubr.msk.bf16.mxu1 %vm6716_vm15, %v1432_v13  ;;  %v1177_v62 = vsel %vm6724_vm7, %v3977_v26, %v5153_v10  ;;  %v2260_v10 = vsel %vm5241_vm0, %v2224_v1, %v5195_v56  ;;  %v1803_v33 = vmul.u32 18, %v1802_v53  ;;  %vm3027_vm0 = vcmask 27649  }
 0x169   : > { %v1138_v22 = vpop.permute.xlu0 %1137  ;;  %v5356_v63 = vsub.s32 %v5201_v38, %v1803_v33 }
 0x16a   : > { %v5166_v37 = vpop.permute.xlu1 %583  ;;  %v1434_v48 = vsel %vm6717_vm14, %v1397_v61, %v1138_v22  ;;  %vm2153_vm14 = vcmp.lt.s32.totalorder %v5211_v45, 0 }
 0x16b   : > { %3758 = vmatmul.mubr.msk.bf16.gmra.mrb[4].mxu1 %vm6716_vm15, %v1434_v48  ;;  %vm5237_vm15 = vmand %vm2154_vm3, %vm2118_vm2  ;;  %v1792_v48 = vmul.u32 18, %v1791_v60  ;;  %vm6738_vm2 = vcmask 261120   ;;  %vm5317_vm3 = vcmp.lt.s32.totalorder %v2260_v10, 16 }
 0x16c   : > { %v2262_v13 = vsel %vm5237_vm15, %v2226_v0, %v5187_v34  ;;  %vm5283_vm15 = vmand %vm2153_vm14, %vm2117_vm1  ;;  %vm5298_vm14 = vcmp.lt.s32.totalorder %v2259_v24, 16  ;;  %v1770_v34 = vmul.u32 18, %v1769_v30  ;;  %vm3028_vm1 = vsmask.f32 7942 }
 0x16d   : > { %v656_v2 = vpop.permute.xlu0 %655  ;;  %vm5305_vm6 = vcmp.lt.s32.totalorder %v2262_v13, 16 }
 0x16e   : > { %v5172_v18 = vpop.permute.xlu1 %657  ;;  %v1214_v43 = vsel %vm6723_vm8, %v1177_v62, %v656_v2  ;;  %v5336_v59 = vsub.s32 %v5185_v47, %v1770_v34  ;;  %v5349_v47 = vsub.s32 %v5198_v52, %v1781_v32 }
 0x171   : > { %v702_v25 = vpop.permute.xlu0 %701 }
 0x172   : > { %v5179_v41 = vpop.permute.xlu1 %703  ;;  %v1251_v61 = vsel %vm6722_vm9, %v1214_v43, %v702_v25  ;;  %v1179_v25 = vsel %vm6724_vm7, %v4615_v57, %v5166_v37  ;;  %vm5402_vm7 = vmand %vm3027_vm0, %vm3028_vm1 }
 0x173   : > { %v1216_v17 = vsel %vm6723_vm8, %v1179_v25, %v5172_v18  ;;  %v2261_v18 = vsel %vm5283_vm15, %v2225_v5, %v5211_v45  ;;  %v5325_v45 = vsub.s32 %v5177_v40, %v1792_v48  ;;  %v5343_v40 = vadd.s32 72, %v5130_v55  ;;  %vm6744_vm15 = vmmov %vm6738_vm2 }
 0x174   : > { %v1253_v57 = vsel %vm6722_vm9, %v1216_v17, %v5179_v41  ;;  %vm5331_vm5 = vcmp.lt.s32.totalorder %v2261_v18, 16  ;;  %vm2158_vm8 = vcmp.lt.s32.totalorder %v5356_v63, 0 }
 0x175   : > { %v824_v3 = vpop.permute.xlu0 %823  ;;  %v5361_v60 = vadd.s32 18, %v5325_v45 }
 0x176   : > { %v5193_v49 = vpop.permute.xlu1 %825  ;;  %v1288_v27 = vsel %vm6721_vm10, %v1251_v61, %v824_v3 }
 0x177   : > { %v1290_v9 = vsel %vm6721_vm10, %v1253_v57, %v5193_v49  ;;  %v5328_v49 = vadd.s32 80, %v5130_v55  ;;  %vm2120_vm10 = vcmp.ne.s32.totalorder %v5349_v47, 0 }
 0x179   : > { %v898_v44 = vpop.permute.xlu0 %897 }
 0x17a   : > { %v5213_v31 = vpop.permute.xlu1 %899  ;;  %v1325_v39 = vsel %vm6720_vm11, %v1288_v27, %v898_v44 }
 0x17b   : > { %v1327_v44 = vsel %vm6720_vm11, %v1290_v9, %v5213_v31  ;;  %v5339_v31 = vadd.s32 64, %v5130_v55  ;;  %vm2157_vm11 = vcmp.lt.s32.totalorder %v5325_v45, 0 }
 0x17d   : > { %v944_v8 = vpop.permute.xlu0 %943  ;;  %v5371_v38 = vmul.u32.u64.low 3817748708, %v5339_v31  ;;  %v5372_v26 = vmul.u32.u64.high 3817748708, %v5339_v31, %v5371_v38 }
 0x17e   : > { %v946_v20 = vpop.permute.xlu1 %945  ;;  %v3735_v50 = vpop.f32.mrb[0].mxu0  ;;  %v1362_v6 = vsel %vm6719_vm12, %v1325_v39, %v944_v8 }
 0x17f   : > { %v5253_v12 = vadd.f32 %v3735_v50, %v5234_v7  ;;  %v1539_v54 = vpop.f32.mrb[1].mxu0  ;;  %v1364_v58 = vsel %vm6719_vm12, %v1327_v44, %v946_v20  ;;  %vm2121_vm12 = vcmp.ne.s32.totalorder %v5325_v45, 0  ;;  %v1813_v38 = vshrl.u32 %v5372_v26, 4 }
 0x180   : > { %v5263_v16 = vadd.f32 %v5234_v7, %v1539_v54  ;;  %v3736_v19 = vpop.f32.mrb[2].mxu0  ;;  %v5364_v20 = vmul.u32.u64.low 3817748708, %v5328_v49  ;;  %v5365_v52 = vmul.u32.u64.high 3817748708, %v5328_v49, %v5364_v20  ;;  %vm5427_vm0 = vmand %vm2157_vm11, %vm2121_vm12  ;;  %vm6757_vm12 = vcmp.ne.s32.totalorder %v5356_v63, 0 }
 0x181   : > { %3896 = vtanh.f32 %v5253_v12  ;;  %v5272_v22 = vadd.f32 %v3736_v19, %v5234_v7  ;;  %v1542_v23 = vpop.f32.mrb[3].mxu0  ;;  %v1066_v42 = vpop.permute.xlu0 %1065  ;;  %v5379_v43 = vmul.u32.u64.low 3817748708, %v5343_v40  ;;  %v5380_v19 = vmul.u32.u64.high 3817748708, %v5343_v40, %v5379_v43 }
 0x182   : > { %3898 = vtanh.f32 %v5263_v16  ;;  %v1068_v2 = vpop.permute.xlu1 %1067  ;;  %v5277_v15 = vadd.f32 %v5234_v7, %v1542_v23  ;;  %v1399_v37 = vsel %vm6718_vm13, %v1362_v6, %v1066_v42 }
 0x183   : > { %3900 = vtanh.f32 %v5272_v22  ;;  %v1401_v0 = vsel %vm6718_vm13, %v1364_v58, %v1068_v2  ;;  %vm6745_vm13 = vcmask 293888  }
 0x184   : > { %3902 = vtanh.f32 %v5277_v15  ;;  %v5387_v42 = vmul.u32.u64.low 3817748708, %v5352_v51  ;;  %v5388_v48 = vmul.u32.u64.high 3817748708, %v5352_v51, %v5387_v42 }
 0x185   : > { %v1140_v36 = vpop.permute.xlu0 %1139 }
 0x186   : > { %v5314_v56 = vpop.permute.xlu1 %585  ;;  %v1436_v29 = vsel %vm6738_vm2, %v1399_v37, %v1140_v36  ;;  %vm6725_vm2 = vsmask.f32 1280 }
 0x187   : > { %3761 = vmatprep.mubr.msk.bf16.mxu1 %vm6741_vm4, %v1436_v29  ;;  %vm2629_vm4 = vsmask.f32 5392 }
 0x188   : > { %vm5412_vm9 = vmor %vm6725_vm2, %vm2629_vm4  ;;  %vm6779_vm2 = vcmask 195584  }
 0x189   : > { %v1142_v4 = vpop.permute.xlu0 %1141  ;;  %vm5462_vm4 = vmand %vm2158_vm8, %vm6757_vm12 }
 0x18a   : > { %v5345_v35 = vpop.permute.xlu1 %587  ;;  %v1438_v1 = vsel %vm6744_vm15, %v1401_v0, %v1142_v4  ;;  %vm2155_vm15 = vcmp.lt.s32.totalorder %v5336_v59, 0  ;;  %v3030_v4 = vld [vmem:[%s4859_s20 + $0x8] sm:$0xe] }
 0x18b   : > { %v3897_v8 = vpop.eup %3896  ;;  %3762 = vmatmul.mubr.msk.bf16.gmra.mrb[8].mxu1 %vm6745_vm13, %v1438_v1  ;;  %vm2119_vm13 = vcmp.ne.s32.totalorder %v5336_v59, 0 }
 0x18c   : > { %v3899_v50 = vpop.eup %3898  ;;  %v2441_v5 = vsel %vm5331_vm5, %v3897_v8, 0.0  ;;  %v1835_v8 = vshrl.u32 %v5365_v52, 4  ;;  %vm5439_vm1 = vmand %vm2155_vm15, %vm2119_vm13 }
 0x18d   : > { %v3901_v62 = vpop.eup %3900  ;;  %v5374_v54 = vpop.permute.xlu0 %659  ;;  %v2439_v24 = vsel %vm5298_vm14, %v3899_v50, 0.0  ;;  %v3672_v13 = vpack.c.bf16 %v2441_v5, %v2441_v5 }
 0x18e   : > { %v3903_v10 = vpop.eup %3902  ;;  %v5382_v30 = vpop.permute.xlu1 %661  ;;  %v3670_v61 = vpack.c.bf16 %v2439_v24, %v2439_v24  ;;  %v2442_v23 = vsel %vm5305_vm6, %v3901_v62, 0.0  ;;  %v1824_v62 = vshrl.u32 %v5380_v19, 4  ;;  %v2228_v19 = vadd.s32 18, %v5349_v47 }
 0x18f   : > { %v2440_v27 = vsel %vm5317_vm3, %v3903_v10, 0.0  ;;  %v3673_v2 = vpack.c.bf16 %v2442_v23, %v2442_v23  ;;  %v2651_v11 = vshrl.u32 %v3672_v13, 16  ;;  %v2654_v53 = vshll.u32 %v3672_v13, 16 }
 0x190   : > { %v3671_v46 = vpack.c.bf16 %v2440_v27, %v2440_v27  ;;  %v2632_v25 = vshrl.u32 %v3670_v61, 16  ;;  %v2635_v39 = vshll.u32 %v3670_v61, 16  ;;  %v1846_v61 = vshrl.u32 %v5388_v48, 4 }
 0x191   : > { %v5393_v17 = vpop.permute.xlu0 %705  ;;  %v2661_v6 = vshrl.u32 %v3673_v2, 16  ;;  %v2664_v34 = vshll.u32 %v3673_v2, 16  ;;  %v2653_v9 = vrot.slane %v2651_v11, 6  ;;  %v2656_v1 = vrot.slane %v2654_v53, 7 }
 0x192   : > { %v5397_v57 = vpop.permute.xlu1 %707  ;;  %v2641_v37 = vshrl.u32 %v3671_v46, 16  ;;  %v2644_v36 = vshll.u32 %v3671_v46, 16  ;;  %v2634_v18 = vrot.slane %v2632_v25, 6  ;;  %v2637_v29 = vrot.slane %v2635_v39, 7 }
 0x193   : > { %v2663_v32 = vrot.slane %v2661_v6, 6  ;;  %v2666_v44 = vrot.slane %v2664_v34, 7  ;;  %v2657_v43 = vor.u32 %v2656_v1, %v2653_v9  ;;  %v2227_v27 = vadd.s32 18, %v5336_v59 }
 0x194   : > { %v2643_v33 = vrot.slane %v2641_v37, 6  ;;  %v2646_v58 = vrot.slane %v2644_v36, 7  ;;  %v2638_v5 = vor.u32 %v2637_v29, %v2634_v18  ;;  %v5454_v46 = vadd.s32 18, %v5356_v63 }
 0x195   : > { %v5408_v20 = vpop.permute.xlu0 %827  ;;  %v5421_v52 = vor.u32 %v2666_v44, %v2663_v32  ;;  %v2659_v48 = vrot.slane %v2657_v43, 4  ;;  %v1836_v25 = vmul.u32 18, %v1835_v8  ;;  %v1814_v34 = vmul.u32 18, %v1813_v38 }
 0x196   : > { %v5419_v24 = vpop.permute.xlu1 %829  ;;  %v2647_v13 = vor.u32 %v2646_v58, %v2643_v33  ;;  %v2639_v23 = vrot.slane %v2638_v5, 4  ;;  %v3031_v26 = vsel %vm5402_vm7, %v2638_v5, %v3030_v4  ;;  %vm6754_vm7 = vcmp.lt.s32.totalorder %v5349_v47, 0 }
 0x197   : > { %3032 = vst [vmem:[%s4859_s20 + $0x8] sm:$0xe] %v3031_v26  ;;  %vm5449_vm11 = vmand %vm6754_vm7, %vm2120_vm10  ;;  %v1825_v37 = vmul.u32 18, %v1824_v62  ;;  %vm6760_vm10 = vcmask 27648   ;;  %v2668_v9 = vsel %vm5412_vm9, %v2659_v48, %v5421_v52  ;;  %v1847_v29 = vmul.u32 18, %v1846_v61  ;;  %v3979_v62 = vld [vmem:[%s4054_s27 + $0x88] sm:$0xff]  }
 0x198   : > { %v2649_v2 = vrot.slane %v2647_v13, 4  ;;  %v2648_v53 = vsel %vm5412_vm9, %v2639_v23, %v2647_v13  ;;  %vm6761_vm13 = vmmov %vm6760_vm10  ;;  %v2264_v32 = vsel %vm5449_vm11, %v2228_v19, %v5349_v47  ;;  %v2263_v44 = vsel %vm5439_vm1, %v2227_v27, %v5336_v59 }
 0x199   : > { %v902_v39 = vpop.permute.xlu0 %901  ;;  %3033 = vst.msk [vmem:[%s4859_s20 + $0xc] sm:$0xf] %vm6760_vm10, %v2648_v53  ;;  %vm6762_vm15 = vmmov %vm6760_vm10  ;;  %v2266_v33 = vsel %vm5462_vm4, %v5454_v46, %v5356_v63  ;;  %v2265_v58 = vsel %vm5427_vm0, %v5361_v60, %v5325_v45  ;;  %v5493_v47 = vsub.s32 %v5339_v31, %v1814_v34  ;;  %v5496_v59 = vsub.s32 %v5343_v40, %v1825_v37  ;;  %v3978_v31 = vld [vmem:[%s4054_s27 + $0x80] sm:$0xff]  }
 0x19a   : > { %v904_v36 = vpop.permute.xlu1 %903  ;;  %v2658_v18 = vsel %vm5412_vm9, %v2649_v2, %v2657_v43  ;;  %3035 = vst.msk [vmem:[%s4859_s20 + $0x14] sm:$0xf] %vm6762_vm15, %v2668_v9  ;;  %v5499_v4 = vsub.s32 %v5328_v49, %v1836_v25  ;;  %v3111_v63 = vmul.f32 0.2, %v5253_v12  ;;  %vm3073_vm1 = vcmp.gt.f32.partialorder %v5263_v16, 0.0 }
 0x19b   : > { %3034 = vst.msk [vmem:[%s4859_s20 + $0x10] sm:$0xf] %vm6761_vm13, %v2658_v18  ;;  %v3109_v1 = vmul.f32 0.2, %v5263_v16  ;;  %v5505_v8 = vsub.s32 %v5352_v51, %v1847_v29  ;;  %vm3074_vm7 = vcmp.gt.f32.partialorder %v5277_v15, 0.0  ;;  %vm6763_vm11 = vcmask 31744  }
 0x19c   : > { %v1181_v49 = vsel %vm6763_vm11, %v3978_v31, %v5314_v56  ;;  %v3110_v38 = vmul.f32 0.2, %v5277_v15  ;;  %vm6764_vm12 = vmmov %vm6763_vm11  ;;  %vm6765_vm4 = vcmask 64512   ;;  %vm6767_vm13 = vcmask 97280  }
 0x19d   : > { %v948_v0 = vpop.permute.xlu0 %947  ;;  %v1183_v13 = vsel %vm6764_vm12, %v3979_v62, %v5345_v35  ;;  %v1218_v51 = vsel %vm6765_vm4, %v1181_v49, %v5374_v54  ;;  %vm6766_vm10 = vmmov %vm6765_vm4  ;;  %vm5528_vm15 = vcmp.lt.s32.totalorder %v2263_v44, 16  ;;  %vm6771_vm12 = vcmask 130048  }
 0x19e   : > { %v950_v45 = vpop.permute.xlu1 %949  ;;  %v3739_v60 = vpop.f32.mrb[4].mxu0  ;;  %v1220_v61 = vsel %vm6766_vm10, %v1183_v13, %v5382_v30  ;;  %v1255_v56 = vsel %vm6767_vm13, %v1218_v51, %v5393_v17  ;;  %vm6770_vm11 = vmmov %vm6767_vm13  ;;  %vm5537_vm4 = vcmp.lt.s32.totalorder %v2264_v32, 16  ;;  %v3112_v2 = vmul.f32 0.2, %v5272_v22 }
 0x19f   : > { %v5513_v40 = vadd.f32 %v3739_v60, %v5234_v7  ;;  %v1555_v5 = vpop.f32.mrb[5].mxu0  ;;  %v1257_v54 = vsel %vm6770_vm11, %v1220_v61, %v5397_v57  ;;  %v1292_v42 = vsel %vm6771_vm12, %v1255_v56, %v5408_v20  ;;  %vm6774_vm10 = vmmov %vm6771_vm12  ;;  %vm6775_vm13 = vcmask 162816  }
 0x1a0   : > { %v1556_v43 = vadd.f32 %v5234_v7, %v1555_v5  ;;  %v3740_v10 = vpop.f32.mrb[6].mxu0  ;;  %v1294_v48 = vsel %vm6774_vm10, %v1257_v54, %v5419_v24  ;;  %v1329_v11 = vsel %vm6775_vm13, %v1292_v42, %v902_v39  ;;  %vm5545_vm11 = vcmp.lt.s32.totalorder %v2265_v58, 16  ;;  %vm6778_vm12 = vmmov %vm6775_vm13 }
 0x1a1   : > { %3904 = vtanh.f32 %v5513_v40  ;;  %v1567_v23 = vadd.f32 %v3740_v10, %v5234_v7  ;;  %v1558_v26 = vpop.f32.mrb[7].mxu0  ;;  %v1070_v19 = vpop.permute.xlu0 %1069  ;;  %v3145_v20 = vsel %vm3073_vm1, %v5263_v16, %v3109_v1  ;;  %v1331_v46 = vsel %vm6778_vm12, %v1294_v48, %v904_v36  ;;  %vm6780_vm10 = vmmov %vm6779_vm2 }
 0x1a2   : > { %3906 = vtanh.f32 %v1556_v43  ;;  %v1072_v30 = vpop.permute.xlu1 %1071  ;;  %v1559_v17 = vadd.f32 %v5234_v7, %v1558_v26  ;;  %v1366_v25 = vsel %vm6779_vm2, %v1329_v11, %v948_v0  ;;  %v3146_v24 = vsel %vm3074_vm7, %v5277_v15, %v3110_v38 }
 0x1a3   : > { %3908 = vtanh.f32 %v1567_v23  ;;  %v1368_v39 = vsel %vm6780_vm10, %v1331_v46, %v950_v45  ;;  %v3113_v53 = vmul.f32 0.2, %v1556_v43  ;;  %vm6781_vm13 = vcmask 228352  }
 0x1a4   : > { %3910 = vtanh.f32 %v1559_v17  ;;  %v1403_v6 = vsel %vm6781_vm13, %v1366_v25, %v1070_v19  ;;  %vm5559_vm0 = vcmp.lt.s32.totalorder %v2266_v33, 16  ;;  %vm6784_vm8 = vmmov %vm6781_vm13  ;;  %v3114_v36 = vmul.f32 0.2, %v1559_v17 }
 0x1a5   : > { %v1144_v34 = vpop.permute.xlu0 %1143  ;;  %v1405_v16 = vsel %vm6784_vm8, %v1368_v39, %v1072_v30  ;;  %vm6785_vm2 = vcmask 261120   ;;  %vm6786_vm7 = vcmp.gt.f32.partialorder %v5253_v12, 0.0  ;;  %vm3078_vm12 = vcmp.gt.f32.partialorder %v1559_v17, 0.0 }
 0x1a6   : > { %v1146_v18 = vpop.permute.xlu1 %1145  ;;  %v1440_v9 = vsel %vm6785_vm2, %v1403_v6, %v1144_v34  ;;  %v3147_v15 = vsel %vm6786_vm7, %v5253_v12, %v3111_v63  ;;  %vm6787_vm10 = vmmov %vm6785_vm2  ;;  %vm6788_vm13 = vcmask 293888   ;;  %v5571_v32 = vadd.s32 112, %v5130_v55 }
 0x1a7   : > { %v1442_v29 = vsel %vm6787_vm10, %v1405_v16, %v1146_v18  ;;  %3765 = vmatprep.mubr.msk.bf16.mxu1 %vm6788_vm13, %v1440_v9  ;;  %vm6789_vm1 = vcmp.gt.f32.partialorder %v5272_v22, 0.0  ;;  %v3115_v33 = vmul.f32 0.2, %v5513_v40  ;;  %v3116_v58 = vmul.f32 0.2, %v1567_v23  ;;  %vm6790_vm8 = vmmov %vm6788_vm13 }
 0x1a8   : > { %v3148_v44 = vsel %vm6789_vm1, %v5272_v22, %v3112_v2  ;;  %3766 = vmatmul.mubr.msk.bf16.gmra.mrb[12].mxu1 %vm6790_vm8, %v1442_v29  ;;  %v3181_v12 = vsel %vm5298_vm14, %v3145_v20, 0.0  ;;  %vm3079_vm2 = vcmp.gt.f32.partialorder %v5513_v40, 0.0  ;;  %vm6791_vm7 = vcmp.gt.f32.partialorder %v1556_v43, 0.0 }
 0x1a9   : > { %v3149_v0 = vsel %vm6791_vm7, %v1556_v43, %v3113_v53  ;;  %vm3080_vm10 = vcmp.gt.f32.partialorder %v1567_v23, 0.0  ;;  %v5582_v63 = vpop.permute.xlu0 %3223  ;;  %v3182_v1 = vsel %vm5317_vm3, %v3146_v24, 0.0  ;;  %v3150_v45 = vsel %vm3078_vm12, %v1559_v17, %v3114_v36 }
 0x1aa   : > { %v3227_v22 = vmul.f32 %v5582_v63, %v3182_v1  ;;  %v3226_v60 = vmul.f32 %v5582_v63, %v3181_v12  ;;  %v5589_v31 = vadd.s32 96, %v5130_v55  ;;  %v3184_v49 = vsel %vm5305_vm6, %v3148_v44, 0.0 }
 0x1ab   : > { %v3905_v3 = vpop.eup %3904  ;;  %v3183_v5 = vsel %vm5331_vm5, %v3147_v15, 0.0  ;;  %v5596_v38 = vmul.u32.u64.low 3817748708, %v5571_v32  ;;  %v5597_v62 = vmul.u32.u64.high 3817748708, %v5571_v32, %v5596_v38  ;;  %v3151_v13 = vsel %vm3079_vm2, %v5513_v40, %v3115_v33 }
 0x1ac   : > { %v3907_v41 = vpop.eup %3906  ;;  %v3152_v51 = vsel %vm3080_vm10, %v1567_v23, %v3116_v58  ;;  %3300 = vrot.lane.b32.xlu0 %v3227_v22, %s3999_s26  ;;  %3298 = vrot.lane.b32.xlu1 %v3226_v60, %s3999_s26  ;;  %v3185_v21 = vsel %vm5528_vm15, %v3149_v0, 0.0  ;;  %v2445_v28 = vsel %vm5545_vm11, %v3905_v3, 0.0  ;;  %vm2125_vm14 = vcmp.ne.s32.totalorder %v5499_v4, 0 }
 0x1ad   : > { %vm2161_vm6 = vcmp.lt.s32.totalorder %v5499_v4, 0  ;;  %v3909_v43 = vpop.eup %3908  ;;  %v3229_v10 = vmul.f32 %v5582_v63, %v3184_v49  ;;  %v3186_v40 = vsel %vm5537_vm4, %v3150_v45, 0.0  ;;  %v2443_v61 = vsel %vm5528_vm15, %v3907_v41, 0.0 }
 0x1ae   : > { %v3676_v56 = vpack.c.bf16 %v2445_v28, %v2445_v28  ;;  %vm2123_vm3 = vcmp.ne.s32.totalorder %v5493_v47, 0  ;;  %vm2159_vm5 = vcmp.lt.s32.totalorder %v5493_v47, 0  ;;  %v3911_v23 = vpop.eup %3910  ;;  %v3228_v26 = vmul.f32 %v5582_v63, %v3183_v5 }
 0x1af   : > { %v3231_v19 = vmul.f32 %v5582_v63, %v3186_v40  ;;  %v3674_v54 = vpack.c.bf16 %v2443_v61, %v2443_v61  ;;  %v2446_v42 = vsel %vm5559_vm0, %v3909_v43, 0.0  ;;  %vm2124_vm1 = vcmp.ne.s32.totalorder %v5496_v59, 0 }
 0x1b0   : > { %vm2160_vm12 = vcmp.lt.s32.totalorder %v5496_v59, 0  ;;  %v2444_v35 = vsel %vm5537_vm4, %v3911_v23, 0.0  ;;  %v3677_v30 = vpack.c.bf16 %v2446_v42, %v2446_v42  ;;  %v2691_v17 = vshrl.u32 %v3676_v56, 16  ;;  %3304 = vrot.lane.b32.xlu0 %v3229_v10, %s3999_s26  ;;  %3302 = vrot.lane.b32.xlu1 %v3228_v26, %s3999_s26 }
 0x1b1   : > { %v2694_v2 = vshll.u32 %v3676_v56, 16  ;;  %v3675_v48 = vpack.c.bf16 %v2444_v35, %v2444_v35  ;;  %v2671_v11 = vshrl.u32 %v3674_v54, 16  ;;  %v2674_v20 = vshll.u32 %v3674_v54, 16  ;;  %vm5680_vm8 = vmand %vm2160_vm12, %vm2124_vm1 }
 0x1b2   : > { %v3230_v46 = vmul.f32 %v5582_v63, %v3185_v21  ;;  %v2701_v25 = vshrl.u32 %v3677_v30, 16  ;;  %v2704_v24 = vshll.u32 %v3677_v30, 16  ;;  %v2693_v39 = vrot.slane %v2691_v17, 6 }
 0x1b3   : > { %v2696_v53 = vrot.slane %v2694_v2, 7  ;;  %v2681_v6 = vshrl.u32 %v3675_v48, 16  ;;  %v2684_v34 = vshll.u32 %v3675_v48, 16  ;;  %v2673_v27 = vrot.slane %v2671_v11, 6 }
 0x1b4   : > { %v2676_v16 = vrot.slane %v2674_v20, 7  ;;  %v2669_v36 = vrot.slane %v5421_v52, 4  ;;  %v2703_v18 = vrot.slane %v2701_v25, 6  ;;  %v2706_v9 = vrot.slane %v2704_v24, 7  ;;  %3308 = vrot.lane.b32.xlu0 %v3231_v19, %s3999_s26  ;;  %3306 = vrot.lane.b32.xlu1 %v3230_v46, %s3999_s26 }
 0x1b5   : > { %v2697_v15 = vor.u32 %v2696_v53, %v2693_v39  ;;  %v2683_v29 = vrot.slane %v2681_v6, 6  ;;  %v2686_v44 = vrot.slane %v2684_v34, 7  ;;  %v3188_v58 = vsel %vm5559_vm0, %v3152_v51, 0.0  ;;  %vm5651_vm0 = vmand %vm2161_vm6, %vm2125_vm14 }
 0x1b6   : > { %v2677_v33 = vor.u32 %v2676_v16, %v2673_v27  ;;  %v5632_v12 = vor.u32 %v2706_v9, %v2703_v18  ;;  %v3233_v0 = vmul.f32 %v5582_v63, %v3188_v58  ;;  %v3187_v1 = vsel %vm5545_vm11, %v3151_v13, 0.0  ;;  %vm5666_vm11 = vmand %vm2159_vm5, %vm2123_vm3 }
 0x1b7   : > { %v2699_v52 = vrot.slane %v2697_v15, 4  ;;  %v2687_v45 = vor.u32 %v2686_v44, %v2683_v29  ;;  %v3232_v3 = vmul.f32 %v5582_v63, %v3187_v1  ;;  %vm6792_vm15 = vcmask 27648  }
 0x1b8   : > { %v2678_v22 = vsel %vm5412_vm9, %v2669_v36, %v2677_v33  ;;  %v2679_v60 = vrot.slane %v2677_v33, 4  ;;  %v2231_v49 = vadd.s32 18, %v5493_v47  ;;  %v2232_v5 = vadd.s32 18, %v5496_v59  ;;  %3312 = vrot.lane.b32.xlu0 %v3233_v0, %s3999_s26  ;;  %vm6795_vm4 = vmmov %vm6792_vm15 }
 0x1b9   : > { %3036 = vst.msk [vmem:[%s4859_s20 + $0x18] sm:$0xf] %vm6792_vm15, %v2678_v22  ;;  %v2708_v37 = vsel %vm5412_vm9, %v2699_v52, %v5632_v12  ;;  %v2233_v38 = vadd.s32 18, %v5499_v4  ;;  %v2689_v41 = vrot.slane %v2687_v45, 4  ;;  %3310 = vrot.lane.b32.xlu1 %v3232_v3, %s3999_s26  ;;  %vm6798_vm13 = vmmov %vm6795_vm4  ;;  %vm2126_vm2 = vcmp.ne.s32.totalorder %v5505_v8, 0 }
 0x1ba   : > { %v2688_v13 = vsel %vm5412_vm9, %v2679_v60, %v2687_v45  ;;  %3039 = vst.msk [vmem:[%s4859_s20 + $0x24] sm:$0xf] %vm6795_vm4, %v2708_v37  ;;  %v5671_v21 = vmul.u32.u64.low 3817748708, %v5589_v31  ;;  %v5672_v28 = vmul.u32.u64.high 3817748708, %v5589_v31, %v5671_v21  ;;  %vm2162_vm7 = vcmp.lt.s32.totalorder %v5505_v8, 0  ;;  %vm6801_vm10 = vmmov %vm6795_vm4 }
 0x1bb   : > { %3037 = vst.msk [vmem:[%s4859_s20 + $0x1c] sm:$0xf] %vm6798_vm13, %v2688_v13  ;;  %v2698_v10 = vsel %vm5412_vm9, %v2689_v41, %v2697_v15  ;;  %v5689_v40 = vadd.s32 120, %v5130_v55  ;;  %v2267_v61 = vsel %vm5666_vm11, %v2231_v49, %v5493_v47  ;;  %v2269_v56 = vsel %vm5651_vm0, %v2233_v38, %v5499_v4  ;;  %vm5707_vm14 = vmand %vm2162_vm7, %vm2126_vm2 }
 0x1bc   : > { %3038 = vst.msk [vmem:[%s4859_s20 + $0x20] sm:$0xf] %vm6801_vm10, %v2698_v10  ;;  %v5700_v23 = vadd.s32 104, %v5130_v55  ;;  %v2268_v26 = vsel %vm5680_vm8, %v2232_v5, %v5496_v59  ;;  %v2234_v19 = vadd.s32 18, %v5505_v8  ;;  %v1879_v54 = vshrl.u32 %v5597_v62, 4 }
 0x1bd   : > { %vm5711_vm6 = vcmp.lt.s32.totalorder %v2267_v61, 16  ;;  %vm5715_vm3 = vcmp.lt.s32.totalorder %v2269_v56, 16  ;;  %v5720_v30 = vmul.u32.u64.low 3817748708, %v5689_v40  ;;  %v5721_v59 = vmul.u32.u64.high 3817748708, %v5689_v40, %v5720_v30 }
 0x1be   : > { %v3743_v47 = vpop.f32.mrb[8].mxu0  ;;  %vm5724_vm5 = vcmp.lt.s32.totalorder %v2268_v26, 16  ;;  %v5729_v48 = vmul.u32.u64.low 3817748708, %v5700_v23  ;;  %v5730_v11 = vmul.u32.u64.high 3817748708, %v5700_v23, %v5729_v48  ;;  %v2270_v25 = vsel %vm5707_vm14, %v2234_v19, %v5505_v8 }
 0x1bf   : > { %v1580_v17 = vadd.f32 %v3743_v47, %v5234_v7  ;;  %v1571_v62 = vpop.f32.mrb[9].mxu0  ;;  %v1857_v24 = vshrl.u32 %v5672_v28, 4  ;;  %v1880_v39 = vmul.u32 18, %v1879_v54  ;;  %vm5742_vm4 = vcmp.lt.s32.totalorder %v2270_v25, 16 }
 0x1c0   : > { %v1572_v20 = vadd.f32 %v5234_v7, %v1571_v62  ;;  %v3744_v46 = vpop.f32.mrb[10].mxu0  ;;  %v1868_v45 = vshrl.u32 %v5730_v11, 4  ;;  %v1890_v22 = vshrl.u32 %v5721_v59, 4  ;;  %v5765_v57 = vadd.s32 128, %v5130_v55 }
 0x1c1   : > { %3912 = vtanh.f32 %v1580_v17  ;;  %vm3083_vm1 = vcmp.gt.f32.partialorder %v1580_v17, 0.0  ;;  %v3119_v53 = vmul.f32 0.2, %v1580_v17  ;;  %v1583_v6 = vadd.f32 %v3744_v46, %v5234_v7  ;;  %v1574_v34 = vpop.f32.mrb[11].mxu0 }
 0x1c2   : > { %3914 = vtanh.f32 %v1572_v20  ;;  %vm3081_vm12 = vcmp.gt.f32.partialorder %v1572_v20, 0.0  ;;  %v3117_v27 = vmul.f32 0.2, %v1572_v20  ;;  %v1575_v16 = vadd.f32 %v5234_v7, %v1574_v34 }
 0x1c3   : > { %v3155_v36 = vsel %vm3083_vm1, %v1580_v17, %v3119_v53  ;;  %3916 = vtanh.f32 %v1583_v6  ;;  %vm3084_vm15 = vcmp.gt.f32.partialorder %v1583_v6, 0.0  ;;  %v3120_v18 = vmul.f32 0.2, %v1583_v6 }
 0x1c4   : > { %v3153_v9 = vsel %vm3081_vm12, %v1572_v20, %v3117_v27  ;;  %3918 = vtanh.f32 %v1575_v16  ;;  %vm3082_vm0 = vcmp.gt.f32.partialorder %v1575_v16, 0.0  ;;  %v3118_v8 = vmul.f32 0.2, %v1575_v16 }
 0x1c5   : > { %v3189_v15 = vsel %vm5711_vm6, %v3153_v9, 0.0  ;;  %v1858_v29 = vmul.u32 18, %v1857_v24  ;;  %v3156_v44 = vsel %vm3084_vm15, %v1583_v6, %v3120_v18  ;;  %v3191_v1 = vsel %vm5715_vm3, %v3155_v36, 0.0 }
 0x1c6   : > { %v3154_v33 = vsel %vm3082_vm0, %v1575_v16, %v3118_v8  ;;  %v3234_v58 = vmul.f32 %v5582_v63, %v3189_v15  ;;  %v5755_v3 = vsub.s32 %v5571_v32, %v1880_v39  ;;  %v3192_v37 = vsel %vm5742_vm4, %v3156_v44, 0.0 }
 0x1c7   : > { %v3190_v52 = vsel %vm5724_vm5, %v3154_v33, 0.0  ;;  %v5760_v49 = vsub.s32 %v5589_v31, %v1858_v29  ;;  %v3236_v5 = vmul.f32 %v5582_v63, %v3191_v1  ;;  %v1869_v41 = vmul.u32 18, %v1868_v45 }
 0x1c8   : > { %3314 = vrot.lane.b32.xlu1 %v3234_v58, %s3999_s26  ;;  %v3235_v60 = vmul.f32 %v5582_v63, %v3190_v52  ;;  %v1891_v13 = vmul.u32 18, %v1890_v22  ;;  %v3237_v21 = vmul.f32 %v5582_v63, %v3192_v37  ;;  %vm2129_vm11 = vcmp.ne.s32.totalorder %v5755_v3, 0 }
 0x1c9   : > { %vm2165_vm13 = vcmp.lt.s32.totalorder %v5755_v3, 0  ;;  %vm2127_vm8 = vcmp.ne.s32.totalorder %v5760_v49, 0  ;;  %vm2163_vm2 = vcmp.lt.s32.totalorder %v5760_v49, 0  ;;  %v1870_v17 = vsub.s32 %v5700_v23, %v1869_v41 }
 0x1ca   : > { %3316 = vrot.lane.b32.xlu0 %v3235_v60, %s3999_s26  ;;  %v5781_v26 = vmul.u32.u64.low 3817748708, %v5765_v57  ;;  %v5782_v19 = vmul.u32.u64.high 3817748708, %v5765_v57, %v5781_v26  ;;  %v5788_v34 = vadd.s32 144, %v5130_v55  ;;  %v2709_v27 = vrot.slane %v5632_v12, 4 }
 0x1cb   : > { %v3913_v38 = vpop.eup %3912  ;;  %vm2128_vm7 = vcmp.ne.s32.totalorder %v1870_v17, 0  ;;  %v5794_v8 = vsub.s32 %v5689_v40, %v1891_v13  ;;  %vm2164_vm10 = vcmp.lt.s32.totalorder %v1870_v17, 0  ;;  %vm6812_vm14 = vcmask 27648  }
 0x1cc   : > { %v3915_v51 = vpop.eup %3914  ;;  %v2449_v32 = vsel %vm5715_vm3, %v3913_v38, 0.0  ;;  %3318 = vrot.lane.b32.xlu1 %v3236_v5, %s3999_s26  ;;  %v2235_v33 = vadd.s32 18, %v5760_v49  ;;  %v2236_v58 = vadd.s32 18, %v1870_v17  ;;  %v2237_v0 = vadd.s32 18, %v5755_v3  ;;  %vm6815_vm3 = vmmov %vm6812_vm14 }
 0x1cd   : > { %v3917_v31 = vpop.eup %3916  ;;  %v2447_v28 = vsel %vm5711_vm6, %v3915_v51, 0.0  ;;  %v3680_v43 = vpack.c.bf16 %v2449_v32, %v2449_v32  ;;  %vm5808_vm6 = vmand %vm2165_vm13, %vm2129_vm11  ;;  %v5826_v22 = vmul.u32.u64.low 3817748708, %v5788_v34  ;;  %v5827_v60 = vmul.u32.u64.high 3817748708, %v5788_v34, %v5826_v22 }
 0x1ce   : > { %v3919_v10 = vpop.eup %3918  ;;  %v3678_v61 = vpack.c.bf16 %v2447_v28, %v2447_v28  ;;  %v2450_v56 = vsel %vm5742_vm4, %v3917_v31, 0.0  ;;  %3320 = vrot.lane.b32.xlu0 %v3237_v21, %s3999_s26  ;;  %vm6818_vm1 = vmmov %vm6815_vm3  ;;  %v5837_v5 = vadd.s32 136, %v5130_v55  ;;  %vm2130_vm15 = vcmp.ne.s32.totalorder %v5794_v8, 0 }
 0x1cf   : > { %v2448_v54 = vsel %vm5724_vm5, %v3919_v10, 0.0  ;;  %v2731_v42 = vshrl.u32 %v3680_v43, 16  ;;  %v2734_v47 = vshll.u32 %v3680_v43, 16  ;;  %v3681_v35 = vpack.c.bf16 %v2450_v56, %v2450_v56  ;;  %vm5821_vm5 = vmand %vm2163_vm2, %vm2127_vm8 }
 0x1d0   : > { %v2711_v4 = vshrl.u32 %v3678_v61, 16  ;;  %v2714_v30 = vshll.u32 %v3678_v61, 16  ;;  %v3679_v59 = vpack.c.bf16 %v2448_v54, %v2448_v54  ;;  %vm5832_vm12 = vmand %vm2164_vm10, %vm2128_vm7  ;;  %vm2166_vm0 = vcmp.lt.s32.totalorder %v5794_v8, 0 }
 0x1d1   : > { %v2733_v62 = vrot.slane %v2731_v42, 6  ;;  %v2736_v48 = vrot.slane %v2734_v47, 7  ;;  %v2741_v11 = vshrl.u32 %v3681_v35, 16  ;;  %v2744_v20 = vshll.u32 %v3681_v35, 16  ;;  %vm6821_vm4 = vmmov %vm6818_vm1 }
 0x1d2   : > { %v2713_v46 = vrot.slane %v2711_v4, 6  ;;  %v2716_v25 = vrot.slane %v2714_v30, 7  ;;  %v2721_v24 = vshrl.u32 %v3679_v59, 16  ;;  %v2724_v39 = vshll.u32 %v3679_v59, 16  ;;  %vm5858_vm11 = vmand %vm2166_vm0, %vm2130_vm15 }
 0x1d3   : > { %v2737_v53 = vor.u32 %v2736_v48, %v2733_v62  ;;  %v2743_v2 = vrot.slane %v2741_v11, 6  ;;  %v2746_v6 = vrot.slane %v2744_v20, 7  ;;  %v2271_v41 = vsel %vm5821_vm5, %v2235_v33, %v5760_v49 }
 0x1d4   : > { %v2717_v16 = vor.u32 %v2716_v25, %v2713_v46  ;;  %v2723_v36 = vrot.slane %v2721_v24, 6  ;;  %v2726_v23 = vrot.slane %v2724_v39, 7  ;;  %v2273_v13 = vsel %vm5808_vm6, %v2237_v0, %v5755_v3 }
 0x1d5   : > { %v2739_v18 = vrot.slane %v2737_v53, 4  ;;  %v5791_v9 = vor.u32 %v2746_v6, %v2743_v2  ;;  %v5852_v51 = vadd.s32 152, %v5130_v55  ;;  %v2272_v32 = vsel %vm5832_vm12, %v2236_v58, %v1870_v17 }
 0x1d6   : > { %v2718_v15 = vsel %vm5412_vm9, %v2709_v27, %v2717_v16  ;;  %v2719_v29 = vrot.slane %v2717_v16, 4  ;;  %v2727_v44 = vor.u32 %v2726_v23, %v2723_v36  ;;  %v2238_v21 = vadd.s32 18, %v5794_v8 }
 0x1d7   : > { %3040 = vst.msk [vmem:[%s4859_s20 + $0x28] sm:$0xf] %vm6812_vm14, %v2718_v15  ;;  %v2748_v12 = vsel %vm5412_vm9, %v2739_v18, %v5791_v9  ;;  %v1901_v31 = vshrl.u32 %v5782_v19, 4  ;;  %v5863_v49 = vmul.u32.u64.low 3817748708, %v5837_v5  ;;  %v5864_v43 = vmul.u32.u64.high 3817748708, %v5837_v5, %v5863_v49 }
 0x1d8   : > { %v2728_v52 = vsel %vm5412_vm9, %v2719_v29, %v2727_v44  ;;  %v2729_v1 = vrot.slane %v2727_v44, 4  ;;  %3043 = vst.msk [vmem:[%s4859_s20 + $0x34] sm:$0xf] %vm6815_vm3, %v2748_v12  ;;  %vm5866_vm13 = vcmp.lt.s32.totalorder %v2271_v41, 16  ;;  %vm5870_vm8 = vcmp.lt.s32.totalorder %v2273_v13, 16 }
 0x1d9   : > { %3041 = vst.msk [vmem:[%s4859_s20 + $0x2c] sm:$0xf] %vm6818_vm1, %v2728_v52  ;;  %vm5875_vm2 = vcmp.lt.s32.totalorder %v2272_v32, 16  ;;  %v5880_v54 = vmul.u32.u64.low 3817748708, %v5852_v51  ;;  %v5881_v42 = vmul.u32.u64.high 3817748708, %v5852_v51, %v5880_v54  ;;  %v2274_v4 = vsel %vm5858_vm11, %v2238_v21, %v5794_v8 }
 0x1da   : > { %v2738_v38 = vsel %vm5412_vm9, %v2729_v1, %v2737_v53  ;;  %v1902_v30 = vmul.u32 18, %v1901_v31  ;;  %v1923_v59 = vshrl.u32 %v5827_v60, 4  ;;  %vm5892_vm3 = vcmp.lt.s32.totalorder %v2274_v4, 16 }
 0x1db   : > { %3042 = vst.msk [vmem:[%s4859_s20 + $0x30] sm:$0xf] %vm6821_vm4, %v2738_v38  ;;  %v1912_v6 = vshrl.u32 %v5864_v43, 4  ;;  %v1934_v52 = vshrl.u32 %v5881_v42, 4  ;;  %v5934_v4 = vadd.s32 160, %v5130_v55  ;;  %vm6832_vm11 = vcmask 27648  }
 0x1dc   : > { %v1924_v36 = vmul.u32 18, %v1923_v59  ;;  %v5905_v15 = vsub.s32 %v5765_v57, %v1902_v30  ;;  %v2749_v30 = vrot.slane %v5791_v9, 4 }
 0x1dd   : > { %v1913_v44 = vmul.u32 18, %v1912_v6  ;;  %v1935_v49 = vmul.u32 18, %v1934_v52 }
 0x1de   : > { %v3747_v10 = vpop.f32.mrb[12].mxu0  ;;  %v5912_v33 = vsub.s32 %v5788_v34, %v1924_v36  ;;  %vm2131_vm5 = vcmp.ne.s32.totalorder %v5905_v15, 0  ;;  %vm2167_vm1 = vcmp.lt.s32.totalorder %v5905_v15, 0 }
 0x1df   : > { %v1596_v56 = vadd.f32 %v3747_v10, %v5234_v7  ;;  %v1587_v26 = vpop.f32.mrb[13].mxu0  ;;  %v5924_v34 = vsub.s32 %v5837_v5, %v1913_v44 }
 0x1e0   : > { %v1588_v47 = vadd.f32 %v5234_v7, %v1587_v26  ;;  %v3748_v35 = vpop.f32.mrb[14].mxu0  ;;  %vm2133_vm12 = vcmp.ne.s32.totalorder %v5912_v33, 0  ;;  %vm2169_vm15 = vcmp.lt.s32.totalorder %v5912_v33, 0  ;;  %v2241_v2 = vadd.s32 18, %v5912_v33 }
 0x1e1   : > { %3920 = vtanh.f32 %v1596_v56  ;;  %vm3087_vm7 = vcmp.gt.f32.partialorder %v1596_v56, 0.0  ;;  %v3123_v17 = vmul.f32 0.2, %v1596_v56  ;;  %v1599_v62 = vadd.f32 %v3748_v35, %v5234_v7  ;;  %v1590_v48 = vpop.f32.mrb[15].mxu0 }
 0x1e2   : > { %3922 = vtanh.f32 %v1588_v47  ;;  %vm3085_vm10 = vcmp.gt.f32.partialorder %v1588_v47, 0.0  ;;  %v3121_v11 = vmul.f32 0.2, %v1588_v47  ;;  %v1591_v20 = vadd.f32 %v5234_v7, %v1590_v48 }
 0x1e3   : > { %v3159_v46 = vsel %vm3087_vm7, %v1596_v56, %v3123_v17  ;;  %3924 = vtanh.f32 %v1599_v62  ;;  %vm3088_vm14 = vcmp.gt.f32.partialorder %v1599_v62, 0.0  ;;  %v3124_v25 = vmul.f32 0.2, %v1599_v62 }
 0x1e4   : > { %v3157_v24 = vsel %vm3085_vm10, %v1588_v47, %v3121_v11  ;;  %3926 = vtanh.f32 %v1591_v20  ;;  %vm3086_vm6 = vcmp.gt.f32.partialorder %v1591_v20, 0.0  ;;  %v3122_v39 = vmul.f32 0.2, %v1591_v20 }
 0x1e5   : > { %v3193_v53 = vsel %vm5866_vm13, %v3157_v24, 0.0  ;;  %v3160_v27 = vsel %vm3088_vm14, %v1599_v62, %v3124_v25  ;;  %v3195_v18 = vsel %vm5870_vm8, %v3159_v46, 0.0  ;;  %vm2132_vm0 = vcmp.ne.s32.totalorder %v5924_v34, 0 }
 0x1e6   : > { %v3158_v16 = vsel %vm3086_vm6, %v1591_v20, %v3122_v39  ;;  %v3238_v7 = vmul.f32 %v5582_v63, %v3193_v53  ;;  %v3196_v29 = vsel %vm5892_vm3, %v3160_v27, 0.0  ;;  %v3240_v12 = vmul.f32 %v5582_v63, %v3195_v18 }
 0x1e7   : > { %v3194_v23 = vsel %vm5875_vm2, %v3158_v16, 0.0  ;;  %v3241_v57 = vmul.f32 %v5582_v63, %v3196_v29  ;;  %v5941_v20 = vsub.s32 %v5852_v51, %v1935_v49  ;;  %vm2168_vm4 = vcmp.lt.s32.totalorder %v5924_v34, 0 }
 0x1e8   : > { %3322 = vrot.lane.b32.xlu1 %v3238_v7, %s3999_s26  ;;  %v3239_v8 = vmul.f32 %v5582_v63, %v3194_v23  ;;  %v2239_v39 = vadd.s32 18, %v5905_v15  ;;  %v2240_v53 = vadd.s32 18, %v5924_v34  ;;  %vm5982_vm10 = vmand %vm2168_vm4, %vm2132_vm0  ;;  %v5989_v18 = vadd.s32 168, %v5130_v55 }
 0x1e9   : > { %v5975_v7 = vmul.u32.u64.low 3817748708, %v5934_v4  ;;  %v5976_v36 = vmul.u32.u64.high 3817748708, %v5934_v4, %v5975_v7  ;;  %vm2134_vm14 = vcmp.ne.s32.totalorder %v5941_v20, 0  ;;  %vm2170_vm6 = vcmp.lt.s32.totalorder %v5941_v20, 0 }
 0x1ea   : > { %3324 = vrot.lane.b32.xlu0 %v3239_v8, %s3999_s26  ;;  %v5992_v8 = vadd.s32 176, %v5130_v55 }
 0x1eb   : > { %v3921_v58 = vpop.eup %3920 }
 0x1ec   : > { %v3923_v40 = vpop.eup %3922  ;;  %v2453_v0 = vsel %vm5870_vm8, %v3921_v58, 0.0  ;;  %3326 = vrot.lane.b32.xlu1 %v3240_v12, %s3999_s26  ;;  %vm6835_vm8 = vmmov %vm6832_vm11  ;;  %v2242_v12 = vadd.s32 18, %v5941_v20  ;;  %v2276_v58 = vsel %vm5982_vm10, %v2240_v53, %v5924_v34 }
 0x1ed   : > { %v3925_v1 = vpop.eup %3924  ;;  %v2451_v45 = vsel %vm5866_vm13, %v3923_v40, 0.0  ;;  %v3684_v22 = vpack.c.bf16 %v2453_v0, %v2453_v0  ;;  %vm5955_vm13 = vmand %vm2167_vm1, %vm2131_vm5 }
 0x1ee   : > { %v3927_v60 = vpop.eup %3926  ;;  %v3682_v37 = vpack.c.bf16 %v2451_v45, %v2451_v45  ;;  %v2454_v38 = vsel %vm5892_vm3, %v3925_v1, 0.0  ;;  %3328 = vrot.lane.b32.xlu0 %v3241_v57, %s3999_s26  ;;  %vm6838_vm7 = vmmov %vm6835_vm8  ;;  %v2275_v44 = vsel %vm5955_vm13, %v2239_v39, %v5905_v15  ;;  %v6013_v57 = vadd.s32 184, %v5130_v55 }
 0x1ef   : > { %v2452_v41 = vsel %vm5875_vm2, %v3927_v60, 0.0  ;;  %v2771_v13 = vshrl.u32 %v3684_v22, 16  ;;  %v2774_v32 = vshll.u32 %v3684_v22, 16  ;;  %v3685_v21 = vpack.c.bf16 %v2454_v38, %v2454_v38  ;;  %vm5970_vm2 = vmand %vm2169_vm15, %vm2133_vm12 }
 0x1f0   : > { %v2751_v31 = vshrl.u32 %v3682_v37, 16  ;;  %v2754_v5 = vshll.u32 %v3682_v37, 16  ;;  %v3683_v28 = vpack.c.bf16 %v2452_v41, %v2452_v41  ;;  %vm6841_vm3 = vmmov %vm6838_vm7  ;;  %v2277_v40 = vsel %vm5970_vm2, %v2241_v2, %v5912_v33  ;;  %v6030_v33 = vld [vmem:[%s6710_s2] ss:$0 sm:$0xff] }
 0x1f1   : > { %v2773_v43 = vrot.slane %v2771_v13, 6  ;;  %v2776_v10 = vrot.slane %v2774_v32, 7  ;;  %v2781_v3 = vshrl.u32 %v3685_v21, 16  ;;  %v2784_v61 = vshll.u32 %v3685_v21, 16  ;;  %vm6008_vm5 = vmand %vm2170_vm6, %vm2134_vm14 }
 0x1f2   : > { %v2753_v56 = vrot.slane %v2751_v31, 6  ;;  %v2756_v26 = vrot.slane %v2754_v5, 7  ;;  %v2761_v54 = vshrl.u32 %v3683_v28, 16  ;;  %v2764_v42 = vshll.u32 %v3683_v28, 16  ;;  %vm6852_vm6 = vmmov %vm6841_vm3 }
 0x1f3   : > { %v2777_v47 = vor.u32 %v2776_v10, %v2773_v43  ;;  %v2783_v35 = vrot.slane %v2781_v3, 6  ;;  %v2786_v19 = vrot.slane %v2784_v61, 7  ;;  %vm6023_vm1 = vcmp.lt.s32.totalorder %v2275_v44, 16 }
 0x1f4   : > { %v2757_v59 = vor.u32 %v2756_v26, %v2753_v56  ;;  %v2763_v17 = vrot.slane %v2761_v54, 6  ;;  %v2766_v62 = vrot.slane %v2764_v42, 7  ;;  %vm6033_vm12 = vcmp.lt.s32.totalorder %v2276_v58, 16 }
 0x1f5   : > { %v2779_v48 = vrot.slane %v2777_v47, 4  ;;  %v5937_v11 = vor.u32 %v2786_v19, %v2783_v35  ;;  %v6016_v52 = vmul.u32.u64.low 3817748708, %v5989_v18  ;;  %v6017_v15 = vmul.u32.u64.high 3817748708, %v5989_v18, %v6016_v52 }
 0x1f6   : > { %v2758_v46 = vsel %vm5412_vm9, %v2749_v30, %v2757_v59  ;;  %v2759_v25 = vrot.slane %v2757_v59, 4  ;;  %v2767_v24 = vor.u32 %v2766_v62, %v2763_v17  ;;  %vm6037_vm15 = vcmp.lt.s32.totalorder %v2277_v40, 16 }
 0x1f7   : > { %3044 = vst.msk [vmem:[%s4859_s20 + $0x38] sm:$0xf] %vm6832_vm11, %v2758_v46  ;;  %v2788_v9 = vsel %vm5412_vm9, %v2779_v48, %v5937_v11  ;;  %v6020_v1 = vmul.u32.u64.low 3817748708, %v5992_v8  ;;  %v6021_v45 = vmul.u32.u64.high 3817748708, %v5992_v8, %v6020_v1  ;;  %v2278_v13 = vsel %vm6008_vm5, %v2242_v12, %v5941_v20 }
 0x1f8   : > { %v2768_v6 = vsel %vm5412_vm9, %v2759_v25, %v2767_v24  ;;  %v2769_v27 = vrot.slane %v2767_v24, 4  ;;  %3047 = vst.msk [vmem:[%s4859_s20 + $0x44] sm:$0xf] %vm6835_vm8, %v2788_v9  ;;  %v1945_v31 = vshrl.u32 %v5976_v36, 4  ;;  %vm6054_vm8 = vcmp.lt.s32.totalorder %v2278_v13, 16 }
 0x1f9   : > { %3045 = vst.msk [vmem:[%s4859_s20 + $0x3c] sm:$0xf] %vm6838_vm7, %v2768_v6  ;;  %v6047_v5 = vmul.u32.u64.low 3817748708, %v6013_v57  ;;  %v6048_v28 = vmul.u32.u64.high 3817748708, %v6013_v57, %v6047_v5  ;;  %v1956_v19 = vshrl.u32 %v6017_v15, 4  ;;  %v1967_v30 = vshrl.u32 %v6021_v45, 4 }
 0x1fa   : > { %v2778_v29 = vsel %vm5412_vm9, %v2769_v27, %v2777_v47  ;;  %v1946_v48 = vmul.u32 18, %v1945_v31 }
 0x1fb   : > { %3046 = vst.msk [vmem:[%s4859_s20 + $0x40] sm:$0xf] %vm6841_vm3, %v2778_v29  ;;  %v1957_v9 = vmul.u32 18, %v1956_v19  ;;  %v1968_v53 = vmul.u32 18, %v1967_v30  ;;  %v6111_v19 = vadd.s32 208, %v5130_v55 }
 0x1fc   : > { %v6072_v39 = vsub.s32 %v5934_v4, %v1946_v48  ;;  %v1978_v4 = vshrl.u32 %v6048_v28, 4  ;;  %v2789_v28 = vrot.slane %v5937_v11, 4 }
 0x1fd   : > { %v6081_v29 = vsub.s32 %v5989_v18, %v1957_v9  ;;  %v6089_v40 = vsub.s32 %v5992_v8, %v1968_v53 }
 0x1fe   : > { %v3751_v22 = vpop.f32.mrb[16].mxu0  ;;  %vm2135_vm2 = vcmp.ne.s32.totalorder %v6072_v39, 0  ;;  %vm2171_vm7 = vcmp.lt.s32.totalorder %v6072_v39, 0  ;;  %v2243_v35 = vadd.s32 18, %v6072_v39 }
 0x1ff   : > { %v1612_v60 = vadd.f32 %v6030_v33, %v3751_v22  ;;  %v1603_v37 = vpop.f32.mrb[17].mxu0  ;;  %vm2136_vm10 = vcmp.ne.s32.totalorder %v6081_v29, 0  ;;  %vm2172_vm14 = vcmp.lt.s32.totalorder %v6081_v29, 0  ;;  %vm6121_vm5 = vmand %vm2171_vm7, %vm2135_vm2 }
 0x200   : > { %v1604_v32 = vadd.f32 %v6030_v33, %v1603_v37  ;;  %v3752_v21 = vpop.f32.mrb[18].mxu0  ;;  %v2279_v9 = vsel %vm6121_vm5, %v2243_v35, %v6072_v39 }
 0x201   : > { %3928 = vtanh.f32 %v1612_v60  ;;  %vm3091_vm0 = vcmp.gt.f32.partialorder %v1612_v60, 0.0  ;;  %v3127_v49 = vmul.f32 0.2, %v1612_v60  ;;  %v1615_v43 = vadd.f32 %v6030_v33, %v3752_v21  ;;  %v1606_v10 = vpop.f32.mrb[19].mxu0 }
 0x202   : > { %3930 = vtanh.f32 %v1604_v32  ;;  %vm3089_vm4 = vcmp.gt.f32.partialorder %v1604_v32, 0.0  ;;  %v3125_v3 = vmul.f32 0.2, %v1604_v32  ;;  %v1607_v61 = vadd.f32 %v6030_v33, %v1606_v10 }
 0x203   : > { %v3163_v56 = vsel %vm3091_vm0, %v1612_v60, %v3127_v49  ;;  %3932 = vtanh.f32 %v1615_v43  ;;  %vm3092_vm11 = vcmp.gt.f32.partialorder %v1615_v43, 0.0  ;;  %v3128_v26 = vmul.f32 0.2, %v1615_v43 }
 0x204   : > { %v3161_v54 = vsel %vm3089_vm4, %v1604_v32, %v3125_v3  ;;  %3934 = vtanh.f32 %v1607_v61  ;;  %vm3090_vm13 = vcmp.gt.f32.partialorder %v1607_v61, 0.0  ;;  %v3126_v42 = vmul.f32 0.2, %v1607_v61  ;;  %vm6858_vm4 = vmmov %vm6841_vm3 }
 0x205   : > { %v3197_v47 = vsel %vm6023_vm1, %v3161_v54, 0.0  ;;  %v3164_v59 = vsel %vm3092_vm11, %v1615_v43, %v3128_v26  ;;  %v3199_v46 = vsel %vm6037_vm15, %v3163_v56, 0.0  ;;  %v1979_v56 = vmul.u32 18, %v1978_v4 }
 0x206   : > { %v3162_v17 = vsel %vm3090_vm13, %v1607_v61, %v3126_v42  ;;  %v3242_v62 = vmul.f32 %v5582_v63, %v3197_v47  ;;  %v3200_v24 = vsel %vm6054_vm8, %v3164_v59, 0.0  ;;  %v3244_v51 = vmul.f32 %v5582_v63, %v3199_v46 }
 0x207   : > { %v3198_v20 = vsel %vm6033_vm12, %v3162_v17, 0.0  ;;  %v3245_v16 = vmul.f32 %v5582_v63, %v3200_v24  ;;  %v6099_v26 = vadd.s32 192, %v5130_v55  ;;  %vm2173_vm0 = vcmp.lt.s32.totalorder %v6089_v40, 0 }
 0x208   : > { %3330 = vrot.lane.b32.xlu1 %v3242_v62, %s3999_s26  ;;  %v3243_v25 = vmul.f32 %v5582_v63, %v3198_v20  ;;  %v2244_v62 = vadd.s32 18, %v6081_v29  ;;  %v1980_v20 = vsub.s32 %v6013_v57, %v1979_v56  ;;  %vm6163_vm2 = vcmp.lt.s32.totalorder %v2279_v9, 16 }
 0x20a   : > { %3332 = vrot.lane.b32.xlu0 %v3243_v25, %s3999_s26  ;;  %v6138_v46 = vmul.u32.u64.low 3817748708, %v6099_v26  ;;  %v6139_v25 = vmul.u32.u64.high 3817748708, %v6099_v26, %v6138_v46  ;;  %vm2138_vm13 = vcmp.ne.s32.totalorder %v1980_v20, 0  ;;  %v2246_v4 = vadd.s32 18, %v1980_v20 }
 0x20b   : > { %v3929_v2 = vpop.eup %3928 }
 0x20c   : > { %v3931_v6 = vpop.eup %3930  ;;  %v2457_v27 = vsel %vm6037_vm15, %v3929_v2, 0.0  ;;  %3334 = vrot.lane.b32.xlu1 %v3244_v51, %s3999_s26  ;;  %vm6131_vm15 = vmand %vm2172_vm14, %vm2136_vm10  ;;  %v2245_v51 = vadd.s32 18, %v6089_v40  ;;  %v6150_v53 = vmul.u32.u64.low 3817748708, %v6111_v19  ;;  %v6151_v2 = vmul.u32.u64.high 3817748708, %v6111_v19, %v6150_v53 }
 0x20d   : > { %v3933_v7 = vpop.eup %3932  ;;  %v2455_v36 = vsel %vm6023_vm1, %v3931_v6, 0.0  ;;  %v3688_v23 = vpack.c.bf16 %v2457_v27, %v2457_v27  ;;  %vm2137_vm1 = vcmp.ne.s32.totalorder %v6089_v40, 0  ;;  %v2280_v57 = vsel %vm6131_vm15, %v2244_v62, %v6081_v29 }
 0x20e   : > { %v3935_v44 = vpop.eup %3934  ;;  %v3686_v12 = vpack.c.bf16 %v2455_v36, %v2455_v36  ;;  %v2458_v58 = vsel %vm6054_vm8, %v3933_v7, 0.0  ;;  %3336 = vrot.lane.b32.xlu0 %v3245_v16, %s3999_s26  ;;  %vm6156_vm11 = vmand %vm2173_vm0, %vm2137_vm1  ;;  %v6161_v27 = vadd.s32 200, %v5130_v55  ;;  %vm2174_vm8 = vcmp.lt.s32.totalorder %v1980_v20, 0 }
 0x20f   : > { %v2456_v0 = vsel %vm6033_vm12, %v3935_v44, 0.0  ;;  %v2811_v52 = vshrl.u32 %v3688_v23, 16  ;;  %v2814_v18 = vshll.u32 %v3688_v23, 16  ;;  %v3689_v15 = vpack.c.bf16 %v2458_v58, %v2458_v58  ;;  %vm6855_vm12 = vmmov %vm6841_vm3 }
 0x210   : > { %v2791_v1 = vshrl.u32 %v3686_v12, 16  ;;  %v2794_v45 = vshll.u32 %v3686_v12, 16  ;;  %v3687_v22 = vpack.c.bf16 %v2456_v0, %v2456_v0  ;;  %vm6168_vm7 = vcmp.lt.s32.totalorder %v2280_v57, 16  ;;  %vm6176_vm10 = vmand %vm2174_vm8, %vm2138_vm13 }
 0x211   : > { %v2813_v34 = vrot.slane %v2811_v52, 6  ;;  %v2816_v60 = vrot.slane %v2814_v18, 7  ;;  %v2821_v37 = vshrl.u32 %v3689_v15, 16  ;;  %v2824_v41 = vshll.u32 %v3689_v15, 16 }
 0x212   : > { %v2793_v13 = vrot.slane %v2791_v1, 6  ;;  %v2796_v32 = vrot.slane %v2794_v45, 7  ;;  %v2801_v21 = vshrl.u32 %v3687_v22, 16  ;;  %v2804_v8 = vshll.u32 %v3687_v22, 16 }
 0x213   : > { %v2817_v31 = vor.u32 %v2816_v60, %v2813_v34  ;;  %v2823_v38 = vrot.slane %v2821_v37, 6  ;;  %v2826_v5 = vrot.slane %v2824_v41, 7  ;;  %v2281_v29 = vsel %vm6156_vm11, %v2245_v51, %v6089_v40 }
 0x214   : > { %v2797_v49 = vor.u32 %v2796_v32, %v2793_v13  ;;  %v2803_v43 = vrot.slane %v2801_v21, 6  ;;  %v2806_v10 = vrot.slane %v2804_v8, 7  ;;  %v6185_v18 = vadd.s32 216, %v5130_v55 }
 0x215   : > { %v2819_v3 = vrot.slane %v2817_v31, 4  ;;  %v6096_v61 = vor.u32 %v2826_v5, %v2823_v38  ;;  %v6181_v0 = vmul.u32.u64.low 3817748708, %v6161_v27  ;;  %v6182_v52 = vmul.u32.u64.high 3817748708, %v6161_v27, %v6181_v0 }
 0x216   : > { %v2798_v54 = vsel %vm5412_vm9, %v2789_v28, %v2797_v49  ;;  %v2799_v42 = vrot.slane %v2797_v49, 4  ;;  %v2807_v47 = vor.u32 %v2806_v10, %v2803_v43  ;;  %v1989_v40 = vshrl.u32 %v6139_v25, 4 }
 0x217   : > { %3048 = vst.msk [vmem:[%s4859_s20 + $0x48] sm:$0xf] %vm6852_vm6, %v2798_v54  ;;  %v2828_v11 = vsel %vm5412_vm9, %v2819_v3, %v6096_v61  ;;  %v2282_v37 = vsel %vm6176_vm10, %v2246_v4, %v1980_v20  ;;  %v2011_v41 = vshrl.u32 %v6151_v2, 4  ;;  %v2829_v23 = vrot.slane %v6096_v61, 4  ;;  %vm6873_vm10 = vmmov %vm6858_vm4 }
 0x218   : > { %v2808_v30 = vsel %vm5412_vm9, %v2799_v42, %v2807_v47  ;;  %v2809_v59 = vrot.slane %v2807_v47, 4  ;;  %3051 = vst.msk [vmem:[%s4859_s20 + $0x54] sm:$0xf] %vm6841_vm3, %v2828_v11  ;;  %vm6190_vm3 = vcmp.lt.s32.totalorder %v2281_v29, 16  ;;  %v1990_v38 = vmul.u32 18, %v1989_v40 }
 0x219   : > { %3049 = vst.msk [vmem:[%s4859_s20 + $0x4c] sm:$0xf] %vm6855_vm12, %v2808_v30  ;;  %v6201_v5 = vmul.u32.u64.low 3817748708, %v6185_v18  ;;  %v6202_v28 = vmul.u32.u64.high 3817748708, %v6185_v18, %v6201_v5  ;;  %vm6205_vm12 = vcmp.lt.s32.totalorder %v2282_v37, 16  ;;  %v2000_v47 = vshrl.u32 %v6182_v52, 4 }
 0x21a   : > { %v2818_v24 = vsel %vm5412_vm9, %v2809_v59, %v2817_v31  ;;  %v6219_v35 = vsub.s32 %v6099_v26, %v1990_v38  ;;  %v2012_v30 = vmul.u32 18, %v2011_v41 }
 0x21b   : > { %3050 = vst.msk [vmem:[%s4859_s20 + $0x50] sm:$0xf] %vm6858_vm4, %v2818_v24  ;;  %v2001_v26 = vmul.u32 18, %v2000_v47 }
 0x21c   : > { %vm2139_vm15 = vcmp.ne.s32.totalorder %v6219_v35, 0  ;;  %vm2175_vm0 = vcmp.lt.s32.totalorder %v6219_v35, 0  ;;  %v6232_v51 = vsub.s32 %v6111_v19, %v2012_v30  ;;  %v2247_v38 = vadd.s32 18, %v6219_v35 }
 0x21e   : > { %v3755_v39 = vpop.f32.mrb[0].mxu1  ;;  %vm2141_vm13 = vcmp.ne.s32.totalorder %v6232_v51, 0  ;;  %vm2177_vm8 = vcmp.lt.s32.totalorder %v6232_v51, 0  ;;  %v2249_v47 = vadd.s32 18, %v6232_v51 }
 0x21f   : > { %v1628_v7 = vadd.f32 %v6030_v33, %v3755_v39  ;;  %v1619_v36 = vpop.f32.mrb[1].mxu1  ;;  %v2022_v39 = vshrl.u32 %v6202_v28, 4 }
 0x220   : > { %v1620_v44 = vadd.f32 %v6030_v33, %v1619_v36  ;;  %v3756_v12 = vpop.f32.mrb[2].mxu1 }
 0x221   : > { %3936 = vtanh.f32 %v1628_v7  ;;  %vm3095_vm14 = vcmp.gt.f32.partialorder %v1628_v7, 0.0  ;;  %v3131_v15 = vmul.f32 0.2, %v1628_v7  ;;  %v1622_v1 = vpop.f32.mrb[3].mxu1  ;;  %v1631_v22 = vadd.f32 %v6030_v33, %v3756_v12 }
 0x222   : > { %3938 = vtanh.f32 %v1620_v44  ;;  %vm3093_vm6 = vcmp.gt.f32.partialorder %v1620_v44, 0.0  ;;  %v3129_v45 = vmul.f32 0.2, %v1620_v44  ;;  %v1623_v34 = vadd.f32 %v6030_v33, %v1622_v1 }
 0x223   : > { %3940 = vtanh.f32 %v1631_v22  ;;  %vm3096_vm5 = vcmp.gt.f32.partialorder %v1631_v22, 0.0  ;;  %v3132_v32 = vmul.f32 0.2, %v1631_v22  ;;  %v3167_v21 = vsel %vm3095_vm14, %v1628_v7, %v3131_v15  ;;  %vm6874_vm14 = vmmov %vm6858_vm4 }
 0x224   : > { %v3165_v13 = vsel %vm3093_vm6, %v1620_v44, %v3129_v45  ;;  %3942 = vtanh.f32 %v1623_v34  ;;  %vm3094_vm1 = vcmp.gt.f32.partialorder %v1623_v34, 0.0  ;;  %v3130_v8 = vmul.f32 0.2, %v1623_v34  ;;  %vm6281_vm6 = vmand %vm2177_vm8, %vm2141_vm13 }
 0x225   : > { %v3201_v31 = vsel %vm6163_vm2, %v3165_v13, 0.0  ;;  %v3168_v49 = vsel %vm3096_vm5, %v1631_v22, %v3132_v32  ;;  %v3203_v54 = vsel %vm6190_vm3, %v3167_v21, 0.0  ;;  %v6241_v12 = vsub.s32 %v6161_v27, %v2001_v26  ;;  %vm6879_vm5 = vmmov %vm6858_vm4 }
 0x226   : > { %v3166_v43 = vsel %vm3094_vm1, %v1623_v34, %v3130_v8  ;;  %v3246_v10 = vmul.f32 %v5582_v63, %v3201_v31  ;;  %v3204_v11 = vsel %vm6205_vm12, %v3168_v49, 0.0  ;;  %v3248_v17 = vmul.f32 %v5582_v63, %v3203_v54 }
 0x227   : > { %v3202_v56 = vsel %vm6168_vm7, %v3166_v43, 0.0  ;;  %v3249_v25 = vmul.f32 %v5582_v63, %v3204_v11  ;;  %v6244_v22 = vadd.s32 224, %v5130_v55  ;;  %v2023_v32 = vmul.u32 18, %v2022_v39 }
 0x228   : > { %3338 = vrot.lane.b32.xlu1 %v3246_v10, %s3999_s26  ;;  %v3247_v42 = vmul.f32 %v5582_v63, %v3202_v56  ;;  %vm2140_vm11 = vcmp.ne.s32.totalorder %v6241_v12, 0  ;;  %v2248_v54 = vadd.s32 18, %v6241_v12 }
 0x229   : > { %v6270_v49 = vmul.u32.u64.low 3817748708, %v6244_v22  ;;  %v6271_v43 = vmul.u32.u64.high 3817748708, %v6244_v22, %v6270_v49  ;;  %v2024_v56 = vsub.s32 %v6185_v18, %v2023_v32 }
 0x22a   : > { %3340 = vrot.lane.b32.xlu0 %v3247_v42, %s3999_s26 }
 0x22b   : > { %v3937_v59 = vpop.eup %3936  ;;  %vm2142_vm1 = vcmp.ne.s32.totalorder %v2024_v56, 0 }
 0x22c   : > { %v3939_v62 = vpop.eup %3938  ;;  %v2461_v48 = vsel %vm6190_vm3, %v3937_v59, 0.0  ;;  %3342 = vrot.lane.b32.xlu1 %v3248_v17, %s3999_s26  ;;  %v6298_v59 = vadd.s32 240, %v5130_v55  ;;  %v6303_v17 = vadd.s32 232, %v5130_v55 }
 0x22d   : > { %v2459_v20 = vsel %vm6163_vm2, %v3939_v62, 0.0  ;;  %v3692_v46 = vpack.c.bf16 %v2461_v48, %v2461_v48  ;;  %v3941_v24 = vpop.eup %3940  ;;  %vm6264_vm2 = vmand %vm2175_vm0, %vm2139_vm15 }
 0x22e   : > { %v3690_v9 = vpack.c.bf16 %v2459_v20, %v2459_v20  ;;  %v3943_v53 = vpop.eup %3942  ;;  %v2462_v6 = vsel %vm6205_vm12, %v3941_v24, 0.0  ;;  %3344 = vrot.lane.b32.xlu0 %v3249_v25, %s3999_s26  ;;  %v2283_v30 = vsel %vm6264_vm2, %v2247_v38, %v6219_v35  ;;  %vm2178_vm12 = vcmp.lt.s32.totalorder %v2024_v56, 0 }
 0x22f   : > { %v2851_v2 = vshrl.u32 %v3692_v46, 16  ;;  %v2854_v57 = vshll.u32 %v3692_v46, 16  ;;  %v2460_v36 = vsel %vm6168_vm7, %v3943_v53, 0.0  ;;  %v3693_v29 = vpack.c.bf16 %v2462_v6, %v2462_v6  ;;  %vm6324_vm0 = vmand %vm2178_vm12, %vm2142_vm1 }
 0x230   : > { %v2831_v16 = vshrl.u32 %v3690_v9, 16  ;;  %v2834_v7 = vshll.u32 %v3690_v9, 16  ;;  %v3691_v4 = vpack.c.bf16 %v2460_v36, %v2460_v36  ;;  %vm2176_vm7 = vcmp.lt.s32.totalorder %v6241_v12, 0 }
 0x231   : > { %v2853_v44 = vrot.slane %v2851_v2, 6  ;;  %v2856_v19 = vrot.slane %v2854_v57, 7  ;;  %v2861_v52 = vshrl.u32 %v3693_v29, 16  ;;  %v2864_v15 = vshll.u32 %v3693_v29, 16  ;;  %vm6293_vm3 = vmand %vm2176_vm7, %vm2140_vm11 }
 0x232   : > { %v2833_v58 = vrot.slane %v2831_v16, 6  ;;  %v2836_v0 = vrot.slane %v2834_v7, 7  ;;  %v2841_v1 = vshrl.u32 %v3691_v4, 16  ;;  %v2844_v40 = vshll.u32 %v3691_v4, 16 }
 0x233   : > { %v2857_v45 = vor.u32 %v2856_v19, %v2853_v44  ;;  %v2863_v60 = vrot.slane %v2861_v52, 6  ;;  %v2866_v37 = vrot.slane %v2864_v15, 7  ;;  %vm6305_vm15 = vcmp.lt.s32.totalorder %v2283_v30, 16 }
 0x234   : > { %v2837_v34 = vor.u32 %v2836_v0, %v2833_v58  ;;  %v2843_v41 = vrot.slane %v2841_v1, 6  ;;  %v2846_v13 = vrot.slane %v2844_v40, 7  ;;  %v2284_v35 = vsel %vm6293_vm3, %v2248_v54, %v6241_v12 }
 0x235   : > { %v2859_v27 = vrot.slane %v2857_v45, 4  ;;  %v6249_v31 = vor.u32 %v2866_v37, %v2863_v60  ;;  %v2285_v20 = vsel %vm6281_vm6, %v2249_v47, %v6232_v51  ;;  %v2250_v46 = vadd.s32 18, %v2024_v56 }
 0x236   : > { %v2838_v21 = vsel %vm5412_vm9, %v2829_v23, %v2837_v34  ;;  %v2839_v8 = vrot.slane %v2837_v34, 4  ;;  %v2847_v61 = vor.u32 %v2846_v13, %v2843_v41  ;;  %v6321_v53 = vadd.s32 248, %v5130_v55 }
 0x237   : > { %3052 = vst.msk [vmem:[%s4859_s20 + $0x58] sm:$0xf] %vm6858_vm4, %v2838_v21  ;;  %v2868_v5 = vsel %vm5412_vm9, %v2859_v27, %v6249_v31  ;;  %v6317_v24 = vmul.u32.u64.low 3817748708, %v6298_v59  ;;  %v6318_v9 = vmul.u32.u64.high 3817748708, %v6298_v59, %v6317_v24  ;;  %v2033_v51 = vshrl.u32 %v6271_v43, 4 }
 0x238   : > { %v2848_v10 = vsel %vm5412_vm9, %v2839_v8, %v2847_v61  ;;  %v2849_v3 = vrot.slane %v2847_v61, 4  ;;  %3055 = vst.msk [vmem:[%s4859_s20 + $0x64] sm:$0xf] %vm6873_vm10, %v2868_v5  ;;  %v6330_v39 = vmul.u32.u64.low 3817748708, %v6303_v17  ;;  %v6331_v16 = vmul.u32.u64.high 3817748708, %v6303_v17, %v6330_v39 }
 0x239   : > { %3053 = vst.msk [vmem:[%s4859_s20 + $0x5c] sm:$0xf] %vm6874_vm14, %v2848_v10  ;;  %vm6334_vm13 = vcmp.lt.s32.totalorder %v2285_v20, 16  ;;  %v2286_v19 = vsel %vm6324_vm0, %v2250_v46, %v2024_v56  ;;  %v6341_v12 = vmul.u32.u64.low 3817748708, %v6321_v53  ;;  %v6342_v58 = vmul.u32.u64.high 3817748708, %v6321_v53, %v6341_v12 }
 0x23a   : > { %v2858_v11 = vsel %vm5412_vm9, %v2849_v3, %v2857_v45  ;;  %vm6347_vm2 = vcmp.lt.s32.totalorder %v2284_v35, 16  ;;  %v2034_v23 = vmul.u32 18, %v2033_v51  ;;  %vm6354_vm10 = vcmp.lt.s32.totalorder %v2286_v19, 16 }
 0x23b   : > { %3054 = vst.msk [vmem:[%s4859_s20 + $0x60] sm:$0xf] %vm6879_vm5, %v2858_v11  ;;  %v2044_v32 = vshrl.u32 %v6331_v16, 4  ;;  %v2055_v21 = vshrl.u32 %v6318_v9, 4  ;;  %v2066_v47 = vshrl.u32 %v6342_v58, 4 }
 0x23c   : > { %v6366_v5 = vsub.s32 %v6244_v22, %v2034_v23 }
 0x23d   : > { %v2045_v3 = vmul.u32 18, %v2044_v32  ;;  %v2056_v56 = vmul.u32 18, %v2055_v21 }
 0x23e   : > { %v3759_v62 = vpop.f32.mrb[4].mxu1  ;;  %vm2143_vm14 = vcmp.ne.s32.totalorder %v6366_v5, 0  ;;  %vm2179_vm6 = vcmp.lt.s32.totalorder %v6366_v5, 0 }
 0x23f   : > { %v1644_v25 = vadd.f32 %v6030_v33, %v3759_v62  ;;  %v1635_v26 = vpop.f32.mrb[5].mxu1  ;;  %v6387_v24 = vsub.s32 %v6298_v59, %v2056_v56  ;;  %vm6402_vm3 = vmand %vm2179_vm6, %vm2143_vm14 }
 0x240   : > { %v1636_v2 = vadd.f32 %v6030_v33, %v1635_v26  ;;  %v3760_v57 = vpop.f32.mrb[6].mxu1  ;;  %v6384_v26 = vsub.s32 %v6303_v17, %v2045_v3  ;;  %v6393_v17 = vadd.s32 256, %v5130_v55 }
 0x241   : > { %3944 = vtanh.f32 %v1644_v25  ;;  %vm3099_vm4 = vcmp.gt.f32.partialorder %v1644_v25, 0.0  ;;  %v3135_v7 = vmul.f32 0.2, %v1644_v25  ;;  %v1647_v36 = vadd.f32 %v6030_v33, %v3760_v57  ;;  %v1638_v29 = vpop.f32.mrb[7].mxu1 }
 0x242   : > { %3946 = vtanh.f32 %v1636_v2  ;;  %vm3097_vm11 = vcmp.gt.f32.partialorder %v1636_v2, 0.0  ;;  %v3133_v4 = vmul.f32 0.2, %v1636_v2  ;;  %v1639_v1 = vadd.f32 %v6030_v33, %v1638_v29 }
 0x243   : > { %3948 = vtanh.f32 %v1647_v36  ;;  %v3171_v0 = vsel %vm3099_vm4, %v1644_v25, %v3135_v7  ;;  %v3136_v15 = vmul.f32 0.2, %v1647_v36  ;;  %vm3100_vm8 = vcmp.gt.f32.partialorder %v1647_v36, 0.0  ;;  %vm6892_vm4 = vmmov %vm6879_vm5 }
 0x244   : > { %v3169_v52 = vsel %vm3097_vm11, %v1636_v2, %v3133_v4  ;;  %3950 = vtanh.f32 %v1639_v1  ;;  %vm3098_vm7 = vcmp.gt.f32.partialorder %v1639_v1, 0.0  ;;  %v3134_v34 = vmul.f32 0.2, %v1639_v1 }
 0x245   : > { %v3205_v40 = vsel %vm6305_vm15, %v3169_v52, 0.0  ;;  %v3207_v37 = vsel %vm6334_vm13, %v3171_v0, 0.0  ;;  %v3172_v13 = vsel %vm3100_vm8, %v1647_v36, %v3136_v15  ;;  %v2869_v36 = vrot.slane %v6249_v31, 4 }
 0x246   : > { %v3250_v60 = vmul.f32 %v5582_v63, %v3205_v40  ;;  %v3170_v27 = vsel %vm3098_vm7, %v1639_v1, %v3134_v34  ;;  %v3252_v61 = vmul.f32 %v5582_v63, %v3207_v37  ;;  %v3208_v49 = vsel %vm6354_vm10, %v3172_v13, 0.0 }
 0x247   : > { %v3206_v8 = vsel %vm6347_vm2, %v3170_v27, 0.0  ;;  %v3253_v18 = vmul.f32 %v5582_v63, %v3208_v49  ;;  %v2251_v0 = vadd.s32 18, %v6366_v5  ;;  %v2067_v52 = vmul.u32 18, %v2066_v47 }
 0x248   : > { %3346 = vrot.lane.b32.xlu1 %v3250_v60, %s3999_s26  ;;  %v3251_v38 = vmul.f32 %v5582_v63, %v3206_v8  ;;  %vm2144_vm1 = vcmp.ne.s32.totalorder %v6384_v26, 0  ;;  %vm2145_vm12 = vcmp.ne.s32.totalorder %v6387_v24, 0  ;;  %vm2180_vm0 = vcmp.lt.s32.totalorder %v6384_v26, 0 }
 0x249   : > { %v6415_v60 = vmul.u32.u64.low 3817748708, %v6393_v17  ;;  %v6416_v37 = vmul.u32.u64.high 3817748708, %v6393_v17, %v6415_v60  ;;  %v2287_v13 = vsel %vm6402_vm3, %v2251_v0, %v6366_v5  ;;  %v2253_v27 = vadd.s32 18, %v6387_v24  ;;  %vm6439_vm8 = vmand %vm2180_vm0, %vm2144_vm1 }
 0x24a   : > { %3348 = vrot.lane.b32.xlu0 %v3251_v38, %s3999_s26  ;;  %v2252_v8 = vadd.s32 18, %v6384_v26  ;;  %vm6453_vm7 = vcmp.lt.s32.totalorder %v2287_v13, 16 }
 0x24b   : > { %v3945_v28 = vpop.eup %3944 }
 0x24c   : > { %v3947_v43 = vpop.eup %3946  ;;  %v2465_v10 = vsel %vm6334_vm13, %v3945_v28, 0.0  ;;  %3350 = vrot.lane.b32.xlu1 %v3252_v61, %s3999_s26  ;;  %v2068_v61 = vsub.s32 %v6321_v53, %v2067_v52  ;;  %vm6895_vm13 = vmmov %vm6892_vm4  ;;  %v6444_v28 = vadd.s32 264, %v5130_v55  ;;  %v2288_v56 = vsel %vm6439_vm8, %v2252_v8, %v6384_v26 }
 0x24d   : > { %v3949_v54 = vpop.eup %3948  ;;  %v2463_v42 = vsel %vm6305_vm15, %v3947_v43, 0.0  ;;  %v3696_v22 = vpack.c.bf16 %v2465_v10, %v2465_v10  ;;  %vm2181_vm15 = vcmp.lt.s32.totalorder %v6387_v24, 0  ;;  %v6449_v43 = vadd.s32 272, %v5130_v55 }
 0x24e   : > { %v3694_v11 = vpack.c.bf16 %v2463_v42, %v2463_v42  ;;  %v2466_v30 = vsel %vm6354_vm10, %v3949_v54, 0.0  ;;  %v3951_v46 = vpop.eup %3950  ;;  %3352 = vrot.lane.b32.xlu0 %v3253_v18, %s3999_s26  ;;  %vm6430_vm11 = vmand %vm2181_vm15, %vm2145_vm12  ;;  %vm2146_vm10 = vcmp.ne.s32.totalorder %v2068_v61, 0  ;;  %vm2182_vm14 = vcmp.lt.s32.totalorder %v2068_v61, 0 }
 0x24f   : > { %v2891_v62 = vshrl.u32 %v3696_v22, 16  ;;  %v2894_v35 = vshll.u32 %v3696_v22, 16  ;;  %v3697_v20 = vpack.c.bf16 %v2466_v30, %v2466_v30  ;;  %v2464_v9 = vsel %vm6347_vm2, %v3951_v46, 0.0  ;;  %vm6898_vm2 = vmmov %vm6892_vm4 }
 0x250   : > { %v2871_v25 = vshrl.u32 %v3694_v11, 16  ;;  %v2874_v48 = vshll.u32 %v3694_v11, 16  ;;  %v3695_v16 = vpack.c.bf16 %v2464_v9, %v2464_v9  ;;  %v2289_v10 = vsel %vm6430_vm11, %v2253_v27, %v6387_v24  ;;  %vm6484_vm1 = vmand %vm2182_vm14, %vm2146_vm10 }
 0x251   : > { %v2893_v2 = vrot.slane %v2891_v62, 6  ;;  %v2896_v57 = vrot.slane %v2894_v35, 7  ;;  %v2901_v6 = vshrl.u32 %v3697_v20, 16  ;;  %v2904_v7 = vshll.u32 %v3697_v20, 16 }
 0x252   : > { %v2873_v51 = vrot.slane %v2871_v25, 6  ;;  %v2876_v39 = vrot.slane %v2874_v48, 7  ;;  %v2881_v44 = vshrl.u32 %v3695_v16, 16  ;;  %v2884_v19 = vshll.u32 %v3695_v16, 16 }
 0x253   : > { %v2897_v29 = vor.u32 %v2896_v57, %v2893_v2  ;;  %v2903_v4 = vrot.slane %v2901_v6, 6  ;;  %v2906_v12 = vrot.slane %v2904_v7, 7  ;;  %v2254_v54 = vadd.s32 18, %v2068_v61 }
 0x254   : > { %v2877_v59 = vor.u32 %v2876_v39, %v2873_v51  ;;  %v2883_v40 = vrot.slane %v2881_v44, 6  ;;  %v2886_v31 = vrot.slane %v2884_v19, 7  ;;  %v6469_v30 = vadd.s32 280, %v5130_v55 }
 0x255   : > { %v2899_v58 = vrot.slane %v2897_v29, 4  ;;  %v6408_v23 = vor.u32 %v2906_v12, %v2903_v4  ;;  %v6465_v47 = vmul.u32.u64.low 3817748708, %v6444_v28  ;;  %v6466_v11 = vmul.u32.u64.high 3817748708, %v6444_v28, %v6465_v47 }
 0x256   : > { %v2878_v15 = vsel %vm5412_vm9, %v2869_v36, %v2877_v59  ;;  %v2879_v1 = vrot.slane %v2877_v59, 4  ;;  %v2887_v34 = vor.u32 %v2886_v31, %v2883_v40  ;;  %v2077_v35 = vshrl.u32 %v6416_v37, 4 }
 0x257   : > { %3056 = vst.msk [vmem:[%s4859_s20 + $0x68] sm:$0xf] %vm6879_vm5, %v2878_v15  ;;  %v2908_v41 = vsel %vm5412_vm9, %v2899_v58, %v6408_v23  ;;  %v6474_v20 = vmul.u32.u64.low 3817748708, %v6449_v43  ;;  %v6475_v46 = vmul.u32.u64.high 3817748708, %v6449_v43, %v6474_v20  ;;  %vm6478_vm5 = vcmp.lt.s32.totalorder %v2289_v10, 16 }
 0x258   : > { %v2888_v32 = vsel %vm5412_vm9, %v2879_v1, %v2887_v34  ;;  %v2889_v21 = vrot.slane %v2887_v34, 4  ;;  %3059 = vst.msk [vmem:[%s4859_s20 + $0x74] sm:$0xf] %vm6892_vm4, %v2908_v41  ;;  %vm6488_vm12 = vcmp.lt.s32.totalorder %v2288_v56, 16  ;;  %v2078_v4 = vmul.u32 18, %v2077_v35 }
 0x259   : > { %3057 = vst.msk [vmem:[%s4859_s20 + $0x6c] sm:$0xf] %vm6895_vm13, %v2888_v32  ;;  %v6493_v57 = vmul.u32.u64.low 3817748708, %v6469_v30  ;;  %v6494_v6 = vmul.u32.u64.high 3817748708, %v6469_v30, %v6493_v57  ;;  %v2088_v52 = vshrl.u32 %v6466_v11, 4  ;;  %v2099_v1 = vshrl.u32 %v6475_v46, 4 }
 0x25a   : > { %v2898_v49 = vsel %vm5412_vm9, %v2889_v21, %v2897_v29  ;;  %v2290_v29 = vsel %vm6484_vm1, %v2254_v54, %v2068_v61  ;;  %v6516_v45 = vsub.s32 %v6393_v17, %v2078_v4 }
 0x25b   : > { %3058 = vst.msk [vmem:[%s4859_s20 + $0x70] sm:$0xf] %vm6898_vm2, %v2898_v49  ;;  %vm6505_vm4 = vcmp.lt.s32.totalorder %v2290_v29, 16  ;;  %v2089_v13 = vmul.u32 18, %v2088_v52  ;;  %v2110_v27 = vshrl.u32 %v6494_v6, 4  ;;  %v2100_v8 = vmul.u32 18, %v2099_v1 }
 0x25c   : > { %vm2147_vm11 = vcmp.ne.s32.totalorder %v6516_v45, 0  ;;  %vm2183_vm13 = vcmp.lt.s32.totalorder %v6516_v45, 0 }
 0x25d   : > { %v6534_v53 = vsub.s32 %v6444_v28, %v2089_v13  ;;  %v2101_v55 = vsub.s32 %v6449_v43, %v2100_v8 }
 0x25e   : > { %v3763_v3 = vpop.f32.mrb[8].mxu1 }
 0x25f   : > { %v1660_v42 = vadd.f32 %v6030_v33, %v3763_v3  ;;  %v1651_v22 = vpop.f32.mrb[9].mxu1  ;;  %vm2148_vm8 = vcmp.ne.s32.totalorder %v6534_v53, 0  ;;  %vm2184_vm2 = vcmp.lt.s32.totalorder %v6534_v53, 0  ;;  %vm2149_vm10 = vcmp.ne.s32.totalorder %v2101_v55, 0 }
 0x260   : > { %v1652_v18 = vadd.f32 %v6030_v33, %v1651_v22  ;;  %v3764_v62 = vpop.f32.mrb[10].mxu1  ;;  %v2111_v22 = vmul.u32 18, %v2110_v27  ;;  %vm2185_vm14 = vcmp.lt.s32.totalorder %v2101_v55, 0 }
 0x261   : > { %3952 = vtanh.f32 %v1660_v42  ;;  %vm3103_vm6 = vcmp.gt.f32.partialorder %v1660_v42, 0.0  ;;  %v3139_v25 = vmul.f32 0.2, %v1660_v42  ;;  %v1663_v48 = vadd.f32 %v6030_v33, %v3764_v62  ;;  %v1654_v26 = vpop.f32.mrb[11].mxu1  ;;  %vm6572_vm1 = vmand %vm2185_vm14, %vm2149_vm10 }
 0x262   : > { %3954 = vtanh.f32 %v1652_v18  ;;  %vm3101_vm3 = vcmp.gt.f32.partialorder %v1652_v18, 0.0  ;;  %v3137_v24 = vmul.f32 0.2, %v1652_v18  ;;  %v1655_v7 = vadd.f32 %v6030_v33, %v1654_v26 }
 0x263   : > { %3956 = vtanh.f32 %v1663_v48  ;;  %v3175_v51 = vsel %vm3103_vm6, %v1660_v42, %v3139_v25  ;;  %v3140_v16 = vmul.f32 0.2, %v1663_v48  ;;  %vm3104_vm15 = vcmp.gt.f32.partialorder %v1663_v48, 0.0  ;;  %vm6554_vm6 = vmand %vm2183_vm13, %vm2147_vm11 }
 0x264   : > { %v3173_v39 = vsel %vm3101_vm3, %v1652_v18, %v3137_v24  ;;  %3958 = vtanh.f32 %v1655_v7  ;;  %vm3102_vm0 = vcmp.gt.f32.partialorder %v1655_v7, 0.0  ;;  %v3138_v59 = vmul.f32 0.2, %v1655_v7  ;;  %vm6563_vm3 = vmand %vm2184_vm2, %vm2148_vm8 }
 0x265   : > { %v3209_v36 = vsel %vm6453_vm7, %v3173_v39, 0.0  ;;  %v3211_v19 = vsel %vm6478_vm5, %v3175_v51, 0.0  ;;  %v3176_v12 = vsel %vm3104_vm15, %v1663_v48, %v3140_v16  ;;  %v2909_v48 = vrot.slane %v6408_v23, 4 }
 0x266   : > { %v3254_v44 = vmul.f32 %v5582_v63, %v3209_v36  ;;  %v3174_v58 = vsel %vm3102_vm0, %v1655_v7, %v3138_v59  ;;  %v3256_v31 = vmul.f32 %v5582_v63, %v3211_v19  ;;  %v3212_v60 = vsel %vm6505_vm4, %v3176_v12, 0.0 }
 0x267   : > { %v3210_v15 = vsel %vm6488_vm12, %v3174_v58, 0.0  ;;  %v3257_v5 = vmul.f32 %v5582_v63, %v3212_v60  ;;  %v2112_v51 = vsub.s32 %v6469_v30, %v2111_v22  ;;  %v2255_v36 = vadd.s32 18, %v6516_v45 }
 0x268   : > { %3354 = vrot.lane.b32.xlu1 %v3254_v44, %s3999_s26  ;;  %v3255_v40 = vmul.f32 %v5582_v63, %v3210_v15  ;;  %v2256_v44 = vadd.s32 18, %v6534_v53  ;;  %v2257_v19 = vadd.s32 18, %v2101_v55 }
 0x269   : > { %vm2186_vm15 = vcmp.lt.s32.totalorder %v2112_v51, 0  ;;  %v2291_v15 = vsel %vm6554_vm6, %v2255_v36, %v6516_v45 }
 0x26a   : > { %3356 = vrot.lane.b32.xlu0 %v3255_v40, %s3999_s26  ;;  %v2293_v13 = vsel %vm6572_vm1, %v2257_v19, %v2101_v55  ;;  %vm6596_vm8 = vcmp.lt.s32.totalorder %v2291_v15, 16 }
 0x26b   : > { %v3953_v34 = vpop.eup %3952  ;;  %vm6607_vm10 = vcmp.lt.s32.totalorder %v2293_v13, 16 }
 0x26c   : > { %v3955_v37 = vpop.eup %3954  ;;  %v2469_v41 = vsel %vm6478_vm5, %v3953_v34, 0.0  ;;  %3358 = vrot.lane.b32.xlu1 %v3256_v31, %s3999_s26  ;;  %v2258_v34 = vadd.s32 18, %v2112_v51 }
 0x26d   : > { %v3957_v32 = vpop.eup %3956  ;;  %v2467_v17 = vsel %vm6453_vm7, %v3955_v37, 0.0  ;;  %v3700_v21 = vpack.c.bf16 %v2469_v41, %v2469_v41  ;;  %vm6909_vm7 = vcmask 27648   ;;  %v2292_v41 = vsel %vm6563_vm3, %v2256_v44, %v6534_v53 }
 0x26e   : > { %v3698_v38 = vpack.c.bf16 %v2467_v17, %v2467_v17  ;;  %v2470_v61 = vsel %vm6505_vm4, %v3957_v32, 0.0  ;;  %v3959_v56 = vpop.eup %3958  ;;  %3360 = vrot.lane.b32.xlu0 %v3257_v5, %s3999_s26  ;;  %vm6914_vm5 = vmmov %vm6909_vm7 }
 0x26f   : > { %v2931_v49 = vshrl.u32 %v3700_v21, 16  ;;  %v2934_v10 = vshll.u32 %v3700_v21, 16  ;;  %v3701_v3 = vpack.c.bf16 %v2470_v61, %v2470_v61  ;;  %v2468_v47 = vsel %vm6488_vm12, %v3959_v56, 0.0  ;;  %vm6917_vm0 = vmmov %vm6914_vm5  ;;  %v3981_v21 = vld [vmem:[%s6710_s2] ss:$0 sm:$0xff] }
 0x270   : > { %v2911_v54 = vshrl.u32 %v3698_v38, 16  ;;  %v2914_v42 = vshll.u32 %v3698_v38, 16  ;;  %v3699_v46 = vpack.c.bf16 %v2468_v47, %v2468_v47  ;;  %vm2150_vm12 = vcmp.ne.s32.totalorder %v2112_v51, 0  ;;  %vm6918_vm4 = vmmov %vm6917_vm0 }
 0x271   : > { %v2933_v11 = vrot.slane %v2931_v49, 6  ;;  %v2936_v18 = vrot.slane %v2934_v10, 7  ;;  %v2941_v62 = vshrl.u32 %v3701_v3, 16  ;;  %v2944_v25 = vshll.u32 %v3701_v3, 16  ;;  %vm6592_vm11 = vmand %vm2186_vm15, %vm2150_vm12 }
 0x272   : > { %v2913_v35 = vrot.slane %v2911_v54, 6  ;;  %v2916_v20 = vrot.slane %v2914_v42, 7  ;;  %v2921_v9 = vshrl.u32 %v3699_v46, 16  ;;  %v2924_v57 = vshll.u32 %v3699_v46, 16  ;;  %v3299_v42 = vpop.permute.xlu1 %3298 }
 0x273   : > { %v2937_v26 = vor.u32 %v2936_v18, %v2933_v11  ;;  %v2943_v24 = vrot.slane %v2941_v62, 6  ;;  %v2946_v6 = vrot.slane %v2944_v25, 7  ;;  %v2294_v49 = vsel %vm6592_vm11, %v2258_v34, %v2112_v51 }
 0x274   : > { %v2917_v28 = vor.u32 %v2916_v20, %v2913_v35  ;;  %v2923_v16 = vrot.slane %v2921_v9, 6  ;;  %v2926_v7 = vrot.slane %v2924_v57, 7  ;;  %vm6617_vm3 = vcmp.lt.s32.totalorder %v2294_v49, 16 }
 0x275   : > { %v2939_v2 = vrot.slane %v2937_v26, 4  ;;  %v6547_v43 = vor.u32 %v2946_v6, %v2943_v24  ;;  %vm3068_vm12 = vcmask 25600   ;;  %vm6933_vm11 = vsmask.f32 1280 }
 0x276   : > { %v2918_v39 = vsel %vm5412_vm9, %v2909_v48, %v2917_v28  ;;  %v2919_v23 = vrot.slane %v2917_v28, 4  ;;  %v2927_v29 = vor.u32 %v2926_v7, %v2923_v16  ;;  %v3301_v48 = vpop.permute.xlu0 %3300  ;;  %v3303_v55 = vpop.permute.xlu1 %3302 }
 0x277   : > { %3060 = vst.msk [vmem:[%s4859_s20 + $0x78] sm:$0xf] %vm6909_vm7, %v2918_v39  ;;  %v2948_v4 = vsel %vm5412_vm9, %v2939_v2, %v6547_v43  ;;  %vm6603_vm7 = vcmp.lt.s32.totalorder %v2292_v41, 16  ;;  %v2949_v13 = vrot.slane %v6547_v43, 4 }
 0x278   : > { %v2928_v12 = vsel %vm5412_vm9, %v2919_v23, %v2927_v29  ;;  %v2929_v58 = vrot.slane %v2927_v29, 4  ;;  %3063 = vst.msk [vmem:[%s4859_s20 + $0x84] sm:$0xf] %vm6914_vm5, %v2948_v4  ;;  %vm6929_vm5 = vcmask 64512  }
 0x279   : > { %3061 = vst.msk [vmem:[%s4859_s20 + $0x7c] sm:$0xf] %vm6917_vm0, %v2928_v12  ;;  %v3407_v51 = vsel %vm6929_vm5, %v3301_v48, 0.0  ;;  %vm6930_vm1 = vmmov %vm6929_vm5 }
 0x27a   : > { %v2938_v1 = vsel %vm5412_vm9, %v2929_v58, %v2937_v26  ;;  %v3406_v39 = vsel %vm6930_vm1, %v3299_v42, 0.0  ;;  %vm6931_vm15 = vmmov %vm6930_vm1  ;;  %v3307_v17 = vpop.permute.xlu1 %3306 }
 0x27b   : > { %v3767_v52 = vpop.f32.mrb[12].mxu1  ;;  %3062 = vst.msk [vmem:[%s4859_s20 + $0x80] sm:$0xf] %vm6918_vm4, %v2938_v1  ;;  %v3409_v7 = vsel %vm6931_vm15, %v3303_v55, 0.0  ;;  %v3408_v19 = vadd.f32 %v3407_v51, %v3406_v39  ;;  %vm6932_vm0 = vmmov %vm6930_vm1 }
 0x27c   : > { %v1676_v40 = vadd.f32 %v6030_v33, %v3767_v52  ;;  %v1667_v31 = vpop.f32.mrb[13].mxu1  ;;  %vm6941_vm5 = vmmov %vm6932_vm0 }
 0x27d   : > { %v1668_v60 = vadd.f32 %v6030_v33, %v1667_v31  ;;  %v3768_v37 = vpop.f32.mrb[14].mxu1  ;;  %v3305_v31 = vpop.permute.xlu0 %3304  ;;  %v3410_v34 = vadd.f32 %v3409_v7, %v3408_v19  ;;  %vm6943_vm1 = vmmov %vm6932_vm0 }
 0x27e   : > { %3960 = vtanh.f32 %v1676_v40  ;;  %vm3107_vm13 = vcmp.gt.f32.partialorder %v1676_v40, 0.0  ;;  %v3143_v27 = vmul.f32 0.2, %v1676_v40  ;;  %v1670_v32 = vpop.f32.mrb[15].mxu1  ;;  %v1679_v8 = vadd.f32 %v3981_v21, %v3768_v37  ;;  %vm6945_vm15 = vmmov %vm6932_vm0 }
 0x27f   : > { %3962 = vtanh.f32 %v1668_v60  ;;  %vm3105_vm2 = vcmp.gt.f32.partialorder %v1668_v60, 0.0  ;;  %v3141_v33 = vmul.f32 0.2, %v1668_v60  ;;  %v1671_v38 = vadd.f32 %v3981_v21, %v1670_v32 }
 0x280   : > { %3964 = vtanh.f32 %v1679_v8  ;;  %vm3108_vm14 = vcmp.gt.f32.partialorder %v1679_v8, 0.0  ;;  %v3144_v3 = vmul.f32 0.2, %v1679_v8  ;;  %v3179_v56 = vsel %vm3107_vm13, %v1676_v40, %v3143_v27  ;;  %vm3069_vm13 = vmand %vm3068_vm12, %vm6933_vm11 }
 0x281   : > { %v3177_v10 = vsel %vm3105_vm2, %v1668_v60, %v3141_v33  ;;  %3966 = vtanh.f32 %v1671_v38  ;;  %vm3106_vm6 = vcmp.gt.f32.partialorder %v1671_v38, 0.0  ;;  %v3142_v54 = vmul.f32 0.2, %v1671_v38  ;;  %vm6935_vm2 = vmmov %vm6918_vm4 }
 0x282   : > { %v3213_v53 = vsel %vm6596_vm8, %v3177_v10, 0.0  ;;  %v3180_v22 = vsel %vm3108_vm14, %v1679_v8, %v3144_v3  ;;  %v3215_v35 = vsel %vm6607_vm10, %v3179_v56, 0.0  ;;  %v3070_v3 = vld [vmem:[%s4859_s20 + $0x98] sm:$0x3]  ;;  %vm6938_vm14 = vmmov %vm6932_vm0 }
 0x283   : > { %v3178_v47 = vsel %vm3106_vm6, %v1671_v38, %v3142_v54  ;;  %v3258_v11 = vmul.f32 %v5582_v63, %v3213_v53  ;;  %v3216_v46 = vsel %vm6617_vm3, %v3180_v22, 0.0  ;;  %v3260_v26 = vmul.f32 %v5582_v63, %v3215_v35  ;;  %v3311_v35 = vpop.permute.xlu1 %3310  ;;  %vm6939_vm6 = vmmov %vm6932_vm0 }
 0x284   : > { %v3214_v62 = vsel %vm6603_vm7, %v3178_v47, 0.0  ;;  %v3261_v6 = vmul.f32 %v5582_v63, %v3216_v46  ;;  %v3411_v38 = vsel %vm6932_vm0, %v3305_v31, 0.0  ;;  %vm6944_vm12 = vmmov %vm6932_vm0 }
 0x285   : > { %3362 = vrot.lane.b32.xlu1 %v3258_v11, %s3999_s26  ;;  %v3259_v20 = vmul.f32 %v5582_v63, %v3214_v62  ;;  %v3412_v10 = vadd.f32 %v3411_v38, %v3410_v34  ;;  %v3309_v11 = vpop.permute.xlu0 %3308  ;;  %vm6947_vm11 = vmmov %vm6932_vm0 }
 0x287   : > { %3364 = vrot.lane.b32.xlu0 %v3259_v20, %s3999_s26  ;;  %v3415_v20 = vsel %vm6938_vm14, %v3309_v11, 0.0  ;;  %vm6953_vm14 = vmmov %vm6932_vm0 }
 0x288   : > { %v3961_v25 = vpop.eup %3960 }
 0x289   : > { %v3963_v24 = vpop.eup %3962  ;;  %v2473_v28 = vsel %vm6607_vm10, %v3961_v25, 0.0  ;;  %3366 = vrot.lane.b32.xlu1 %v3260_v26, %s3999_s26  ;;  %vm6937_vm10 = vmmov %vm6935_vm2  ;;  %v3417_v25 = vsel %vm6939_vm6, %v3311_v35, 0.0  ;;  %v3313_v48 = vpop.permute.xlu0 %3312 }
 0x28a   : > { %v2471_v9 = vsel %vm6596_vm8, %v3963_v24, 0.0  ;;  %v3704_v57 = vpack.c.bf16 %v2473_v28, %v2473_v28  ;;  %v3965_v2 = vpop.eup %3964  ;;  %vm6934_vm8 = vmmov %vm6932_vm0  ;;  %v3315_v24 = vpop.permute.xlu1 %3314 }
 0x28b   : > { %v3702_v23 = vpack.c.bf16 %v2471_v9, %v2471_v9  ;;  %v3967_v16 = vpop.eup %3966  ;;  %v2474_v30 = vsel %vm6617_vm3, %v3965_v2, 0.0  ;;  %3368 = vrot.lane.b32.xlu0 %v3261_v6, %s3999_s26  ;;  %v3413_v56 = vsel %vm6934_vm8, %v3307_v17, 0.0  ;;  %vm6940_vm3 = vmmov %vm6932_vm0  ;;  %v3421_v28 = vsel %vm6941_vm5, %v3315_v24, 0.0 }
 0x28c   : > { %v2971_v36 = vshrl.u32 %v3704_v57, 16  ;;  %v2974_v29 = vshll.u32 %v3704_v57, 16  ;;  %v2472_v63 = vsel %vm6603_vm7, %v3967_v16, 0.0  ;;  %v3705_v44 = vpack.c.bf16 %v2474_v30, %v2474_v30  ;;  %vm6936_vm7 = vmmov %vm6935_vm2 }
 0x28d   : > { %v2951_v4 = vshrl.u32 %v3702_v23, 16  ;;  %v2954_v59 = vshll.u32 %v3702_v23, 16  ;;  %v3703_v12 = vpack.c.bf16 %v2472_v63, %v2472_v63  ;;  %v3414_v18 = vadd.f32 %v3413_v56, %v3412_v10  ;;  %v3317_v57 = vpop.permute.xlu0 %3316  ;;  %vm6949_vm8 = vmmov %vm6932_vm0 }
 0x28e   : > { %v2973_v58 = vrot.slane %v2971_v36, 6  ;;  %v2976_v0 = vrot.slane %v2974_v29, 7  ;;  %v2981_v1 = vshrl.u32 %v3705_v44, 16  ;;  %v2984_v40 = vshll.u32 %v3705_v44, 16  ;;  %v3319_v2 = vpop.permute.xlu1 %3318  ;;  %vm6954_vm6 = vmmov %vm6932_vm0 }
 0x28f   : > { %v2953_v52 = vrot.slane %v2951_v4, 6  ;;  %v2956_v15 = vrot.slane %v2954_v59, 7  ;;  %v2961_v60 = vshrl.u32 %v3703_v12, 16  ;;  %v2964_v37 = vshll.u32 %v3703_v12, 16  ;;  %vm6956_vm5 = vmmov %vm6932_vm0 }
 0x290   : > { %v2977_v41 = vor.u32 %v2976_v0, %v2973_v58  ;;  %v2983_v27 = vrot.slane %v2981_v1, 6  ;;  %v2986_v32 = vrot.slane %v2984_v40, 7  ;;  %v3416_v46 = vadd.f32 %v3415_v20, %v3414_v18 }
 0x291   : > { %v2957_v45 = vor.u32 %v2956_v15, %v2953_v52  ;;  %v2963_v33 = vrot.slane %v2961_v60, 6  ;;  %v2966_v21 = vrot.slane %v2964_v37, 7  ;;  %v3419_v55 = vsel %vm6940_vm3, %v3313_v48, 0.0  ;;  %v3321_v23 = vpop.permute.xlu0 %3320  ;;  %vm6955_vm3 = vmmov %vm6932_vm0 }
 0x292   : > { %v2979_v8 = vrot.slane %v2977_v41, 4  ;;  %v2987_v49 = vor.u32 %v2986_v32, %v2983_v27  ;;  %v3418_v26 = vadd.f32 %v3417_v25, %v3416_v46  ;;  %v3425_v39 = vsel %vm6943_vm1, %v3319_v2, 0.0  ;;  %v3323_v7 = vpop.permute.xlu1 %3322  ;;  %vm6958_vm1 = vmmov %vm6932_vm0 }
 0x293   : > { %v2958_v61 = vsel %vm5412_vm9, %v2949_v13, %v2957_v45  ;;  %v2959_v5 = vrot.slane %v2957_v45, 4  ;;  %v2967_v43 = vor.u32 %v2966_v21, %v2963_v33  ;;  %v3427_v36 = vsel %vm6944_vm12, %v3321_v23, 0.0  ;;  %vm6959_vm12 = vmmov %vm6932_vm0 }
 0x294   : > { %3064 = vst.msk [vmem:[%s4859_s20 + $0x88] sm:$0xf] %vm6918_vm4, %v2958_v61  ;;  %v2988_v54 = vsel %vm5412_vm9, %v2979_v8, %v2987_v49  ;;  %v2989_v42 = vrot.slane %v2987_v49, 4  ;;  %v3420_v9 = vadd.f32 %v3419_v55, %v3418_v26  ;;  %v3429_v29 = vsel %vm6945_vm15, %v3323_v7, 0.0  ;;  %vm6946_vm4 = vmmov %vm6932_vm0 }
 0x295   : > { %v2968_v53 = vsel %vm5412_vm9, %v2959_v5, %v2967_v43  ;;  %v2969_v22 = vrot.slane %v2967_v43, 4  ;;  %3067 = vst.msk [vmem:[%s4859_s20 + $0x94] sm:$0xf] %vm6935_vm2, %v2988_v54  ;;  %v3325_v4 = vpop.permute.xlu0 %3324  ;;  %vm6950_vm2 = vmmov %vm6932_vm0 }
 0x296   : > { %3065 = vst.msk [vmem:[%s4859_s20 + $0x8c] sm:$0xf] %vm6936_vm7, %v2968_v53  ;;  %v3071_v47 = vsel %vm3069_vm13, %v2989_v42, %v3070_v3  ;;  %v3422_v50 = vadd.f32 %v3421_v28, %v3420_v9  ;;  %v3431_v63 = vsel %vm6932_vm0, %v3325_v4, 0.0  ;;  %v3327_v44 = vpop.permute.xlu1 %3326  ;;  %vm6948_vm13 = vmmov %vm6932_vm0 }
 0x297   : > { %v2978_v62 = vsel %vm5412_vm9, %v2969_v22, %v2977_v41  ;;  %3072 = vst [vmem:[%s4859_s20 + $0x98] sm:$0x3] %v3071_v47  ;;  %vm6942_vm9 = vmmov %vm6932_vm0  ;;  %v3433_v12 = vsel %vm6946_vm4, %v3327_v44, 0.0 }
 0x298   : > { %3066 = vst.msk [vmem:[%s4859_s20 + $0x90] sm:$0xf] %vm6937_vm10, %v2978_v62  ;;  %v3423_v6 = vsel %vm6942_vm9, %v3317_v57, 0.0  ;;  %vm6951_vm7 = vmmov %vm6932_vm0 }
 0x299   : > { %v3424_v51 = vadd.f32 %v3423_v6, %v3422_v50  ;;  %v3329_v58 = vpop.permute.xlu0 %3328  ;;  %vm6952_vm10 = vmmov %vm6932_vm0 }
 0x29a   : > { %v3331_v52 = vpop.permute.xlu1 %3330  ;;  %v3435_v15 = vsel %vm6947_vm11, %v3329_v58, 0.0  ;;  %vm6957_vm9 = vmmov %vm6932_vm0 }
 0x29b   : > { %v3426_v16 = vadd.f32 %v3425_v39, %v3424_v51  ;;  %v3437_v1 = vsel %vm6948_vm13, %v3331_v52, 0.0  ;;  %vm6960_vm15 = vmmov %vm6932_vm0 }
 0x29c   : > { %vm6961_vm4 = vmmov %vm6932_vm0 }
 0x29d   : > { %v3428_v30 = vadd.f32 %v3427_v36, %v3426_v16  ;;  %v3333_v31 = vpop.permute.xlu0 %3332  ;;  %vm6962_vm11 = vmmov %vm6932_vm0 }
 0x29e   : > { %v3439_v60 = vsel %vm6949_vm8, %v3333_v31, 0.0  ;;  %v3335_v37 = vpop.permute.xlu1 %3334  ;;  %vm6963_vm13 = vmmov %vm6932_vm0 }
 0x29f   : > { %v3430_v59 = vadd.f32 %v3429_v29, %v3428_v30  ;;  %v3441_v13 = vsel %vm6950_vm2, %v3335_v37, 0.0  ;;  %vm6964_vm8 = vmmov %vm6932_vm0  ;;  %v3488_v37 = vld [vmem:[#allocation2] sm:$0x1] }
 0x2a0   : > { %vm6965_vm2 = vmmov %vm6932_vm0 }
 0x2a1   : > { %v3432_v19 = vadd.f32 %v3431_v63, %v3430_v59  ;;  %v3337_v45 = vpop.permute.xlu0 %3336 }
 0x2a2   : > { %v3339_v32 = vpop.permute.xlu1 %3338  ;;  %v3443_v17 = vsel %vm6951_vm7, %v3337_v45, 0.0  ;;  %vm6966_vm7 = vmmov %vm6932_vm0 }
 0x2a3   : > { %v3434_v0 = vadd.f32 %v3433_v12, %v3432_v19  ;;  %v3445_v33 = vsel %vm6952_vm10, %v3339_v32, 0.0  ;;  %vm2518_vm10 = vcmask 26624  }
 0x2a4   : > { %2519 = vst.msk [vmem:[%s4859_s20 + $0xa8] sm:$0x7] %vm2518_vm10, %v3998_v14 }
 0x2a5   : > { %v3436_v40 = vadd.f32 %v3435_v15, %v3434_v0  ;;  %v3341_v8 = vpop.permute.xlu0 %3340 }
 0x2a6   : > { %v3447_v61 = vsel %vm6953_vm14, %v3341_v8, 0.0  ;;  %v3343_v5 = vpop.permute.xlu1 %3342  ;;  %vm3496_vm14 = vcmask 0  }
 0x2a7   : > { %v3438_v34 = vadd.f32 %v3437_v1, %v3436_v40  ;;  %v3449_v10 = vsel %vm6954_vm6, %v3343_v5, 0.0 }
 0x2a9   : > { %v3440_v41 = vadd.f32 %v3439_v60, %v3438_v34  ;;  %v3345_v43 = vpop.permute.xlu0 %3344 }
 0x2aa   : > { %v3451_v54 = vsel %vm6955_vm3, %v3345_v43, 0.0 }
 0x2ab   : > { %v3442_v27 = vadd.f32 %v3441_v13, %v3440_v41 }
 0x2ad   : > { %v3444_v21 = vadd.f32 %v3443_v17, %v3442_v27 }
 0x2af   : > { %v3446_v38 = vadd.f32 %v3445_v33, %v3444_v21 }
 0x2b1   : > { %v3448_v49 = vadd.f32 %v3447_v61, %v3446_v38 }
 0x2b3   : > { %v3450_v3 = vadd.f32 %v3449_v10, %v3448_v49 }
 0x2b5   : > { %v3452_v53 = vadd.f32 %v3451_v54, %v3450_v3 }
 0x2ba   : > { %v3347_v56 = vpop.permute.xlu1 %3346 }
 0x2bb   : > { %v3453_v42 = vsel %vm6956_vm5, %v3347_v56, 0.0 }
 0x2bc   : > { %v3349_v22 = vpop.permute.xlu0 %3348  ;;  %v3454_v47 = vadd.f32 %v3453_v42, %v3452_v53 }
 0x2bd   : > { %v3455_v11 = vsel %vm6957_vm9, %v3349_v22, 0.0 }
 0x2be   : > { %v3351_v18 = vpop.permute.xlu1 %3350  ;;  %v3456_v62 = vadd.f32 %v3455_v11, %v3454_v47 }
 0x2bf   : > { %v3457_v35 = vsel %vm6958_vm1, %v3351_v18, 0.0 }
 0x2c0   : > { %v3353_v20 = vpop.permute.xlu0 %3352  ;;  %v3458_v46 = vadd.f32 %v3457_v35, %v3456_v62 }
 0x2c1   : > { %v3459_v48 = vsel %vm6959_vm12, %v3353_v20, 0.0 }
 0x2c2   : > { %v3460_v24 = vadd.f32 %v3459_v48, %v3458_v46 }
 0x2da   : > { %v3355_v25 = vpop.permute.xlu1 %3354 }
 0x2db   : > { %v3461_v26 = vsel %vm6960_vm15, %v3355_v25, 0.0 }
 0x2dc   : > { %v3357_v55 = vpop.permute.xlu0 %3356  ;;  %v3462_v28 = vadd.f32 %v3461_v26, %v3460_v24 }
 0x2dd   : > { %v3463_v9 = vsel %vm6932_vm0, %v3357_v55, 0.0 }
 0x2de   : > { %v3359_v57 = vpop.permute.xlu1 %3358  ;;  %v3464_v50 = vadd.f32 %v3463_v9, %v3462_v28 }
 0x2df   : > { %v3465_v6 = vsel %vm6961_vm4, %v3359_v57, 0.0 }
 0x2e0   : > { %v3361_v2 = vpop.permute.xlu0 %3360  ;;  %v3466_v51 = vadd.f32 %v3465_v6, %v3464_v50 }
 0x2e1   : > { %v3467_v39 = vsel %vm6962_vm11, %v3361_v2, 0.0 }
 0x2e2   : > { %v3468_v23 = vadd.f32 %v3467_v39, %v3466_v51 }
 0x2f7   : > { %v3363_v16 = vpop.permute.xlu1 %3362 }
 0x2f8   : > { %v3469_v7 = vsel %vm6963_vm13, %v3363_v16, 0.0 }
 0x2f9   : > { %v3470_v36 = vadd.f32 %v3469_v7, %v3468_v23  ;;  %v3365_v29 = vpop.permute.xlu0 %3364 }
 0x2fa   : > { %v3471_v30 = vsel %vm6964_vm8, %v3365_v29, 0.0 }
 0x2fb   : > { %v3472_v4 = vadd.f32 %v3471_v30, %v3470_v36  ;;  %v3367_v59 = vpop.permute.xlu1 %3366 }
 0x2fc   : > { %v3473_v63 = vsel %vm6965_vm2, %v3367_v59, 0.0 }
 0x2fd   : > { %v3474_v44 = vadd.f32 %v3473_v63, %v3472_v4  ;;  %v3369_v19 = vpop.permute.xlu0 %3368 }
 0x2fe   : > { %v3475_v12 = vsel %vm6966_vm7, %v3369_v19, 0.0 }
 0x2ff   : > { %v3476_v58 = vadd.f32 %v3475_v12, %v3474_v44 }
 0x301   : > { %3477 = vadd.xlane.f32.xlu1 %v3476_v58 }
 0x38e   : > { %v3478_v0 = vpop.xlane.xlu1 %3477 }
 0x38f   : > { %v3479_v52 = vrot.slane %v3478_v0, 4 }
 0x391   : > { %v3480_v15 = vadd.f32 %v3479_v52, %v3478_v0 }
 0x393   : > { %v3481_v1 = vrot.slane %v3480_v15, 2 }
 0x395   : > { %v3482_v40 = vadd.f32 %v3481_v1, %v3480_v15 }
 0x397   : > { %v3483_v31 = vrot.slane %v3482_v40, 1 }
 0x399   : > { %v3484_v34 = vadd.f32 %v3483_v31, %v3482_v40 }
 0x39b   : > { %3850 = vpush %v3484_v34 }
 0x3cc   : > { %s3851_s7 = spop %3850 }
 0x3cd   : > { %v3486_v60 = vstv %s3851_s7 }
 0x3ce   : > { %v3487_v41 = vmul.f32 0.00390625, %v3486_v60 }
 0x3d0   : > { %v3489_v13 = vadd.f32 %v3488_v37, %v3487_v41 }
 0x3d2   : > { %v3667_v45 = vmul.f32 -1.442695, %v3489_v13 }
 0x3d4   : > { %3968 = vpow2.f32 %v3667_v45 }
 0x3de   : > { %v3969_v27 = vpop.eup %3968 }
 0x3df   : > { %v3493_v32 = vadd.f32 1.0, %v3969_v27 }
 0x3e1   : > { %3970 = vrcp.f32 %v3493_v32 }
 0x3eb   : > { %v3971_v14 = vpop.eup %3970 }
 0x3ec   : > { %3497 = vst.msk [vmem:[%s262_s10] sm:$0x1] %vm3496_vm14, %v3971_v14 }
 0x3ed PF: > { %s19_s23 = sadd.s32 1, %s3988_s23  }
 0x3ee   : > { %p16_p4 = scmp.ge.s32.totalorder %s19_s23, 4  }
 0x3f0   :  { %18 = sbr.rel (!%p16_p4) target bundleno = 3 (0x3), region = 82 }

</bundles_post_ra>
